<compile_context>
chip_gen: v6e
topology: v6e:2x2x1
jax: 0.10.0
libtpu: 0.0.40
codegen_flags: <defaults>
</compile_context>

<pallas_src>
import functools

import jax
import jax.numpy as jnp
from jax import lax
from jax.experimental import pallas as pl
from jax.experimental.pallas import tpu as pltpu

_LANE = 128


def _round_up(v, m):
    return (v + m - 1) // m * m


# ---------------------------------------------------------------------------
# Conv3d (3x3x3, pad 1, no bias) with optional fused input BN+ReLU and fused
# output BN statistics.
# ---------------------------------------------------------------------------
def _make_conv_kernel(D, H, W, ci, fuse_input_bn_relu):
    HW = H * W

    def kernel(*refs):
        if fuse_input_bn_relu:
            x_ref, w_ref, scale_ref, shift_ref, out_ref, stats_ref, acc_ref = refs
        else:
            x_ref, w_ref, out_ref, stats_ref, acc_ref = refs

        d = pl.program_id(1)
        kd = pl.program_id(2)
        last_kd = pl.num_programs(2) - 1

        @pl.when(kd == 0)
        def _init():
            acc_ref[...] = jnp.zeros_like(acc_ref)

        # Padded-depth index of the slab loaded this step. dp == 0 or dp == D+1 is
        # the zero halo slab -> contributes nothing, skip the matmuls entirely.
        dp = d + kd
        is_d_halo = jnp.logical_or(dp == 0, dp == D + 1)

        @pl.when(jnp.logical_not(is_d_halo))
        def _compute():
            x = x_ref[0, 0]                                   # (H+2, W+2, ci)
            if fuse_input_bn_relu:
                # Previous stage's BN affine + ReLU (f32), then re-zero the spatial
                # halo ring so the implicit 'same' zero padding stays correct.
                s = scale_ref[...].reshape(1, 1, ci)
                b = shift_ref[...].reshape(1, 1, ci)
                a = jnp.maximum(x.astype(jnp.float32) * s + b, 0.0)
                hh = lax.broadcasted_iota(jnp.int32, (H + 2, W + 2, 1), 0)
                ww = lax.broadcasted_iota(jnp.int32, (H + 2, W + 2, 1), 1)
                interior = (hh >= 1) & (hh <= H) & (ww >= 1) & (ww <= W)
                x = jnp.where(interior, a, 0.0).astype(jnp.bfloat16)

            wk = w_ref[kd]                                    # (9*ci, co), bf16
            part = None
            for kh in range(3):
                for kw in range(3):
                    t = kh * 3 + kw
                    xs = x[kh:kh + H, kw:kw + W, :].reshape(HW, ci)
                    y = jnp.dot(xs, wk[t * ci:(t + 1) * ci, :],
                                preferred_element_type=jnp.float32)
                    part = y if part is None else part + y
            acc_ref[...] += part

        @pl.when(kd == last_kd)
        def _finalize():
            z = acc_ref[...]                                  # (H*W, co) f32
            co = z.shape[-1]
            out_ref[...] = z.reshape(1, 1, H, W, co)
            s1 = jnp.sum(z, axis=0, keepdims=True)            # (1, co)
            s2 = jnp.sum(z * z, axis=0, keepdims=True)
            stats_ref[0, 0, :, :] = jnp.concatenate([s1, s2], axis=0)

    return kernel


def conv3d_pallas(xp, w, scale=None, shift=None):
    """3x3x3 'same' conv with fused output BN-statistics.

    xp    : (N, D+2, H+2, W+2, Ci_pad) spatially zero-padded, channel-padded input.
            bf16 for the plain path, f32 when scale/shift are given.
    w     : (3, 9*Ci_pad, Co_pad) bf16 weights (tap-major rows).
    scale/shift : optional (Ci_pad,) f32 -> relu(x*scale + shift) is applied to the
            loaded input tile before the conv (stage-1 BN+ReLU fused into stage-2).
    Returns (z, stats): z (N, D, H, W, Co_pad) f32 and stats (N, D, 2, Co_pad) f32
    holding per-(n, d) per-channel [sum, sum_of_squares] of z.
    """
    N, Dp, Hp, Wp, ci = xp.shape
    D, H, W = Dp - 2, Hp - 2, Wp - 2
    co = w.shape[-1]
    fuse = scale is not None

    kernel = _make_conv_kernel(D, H, W, ci, fuse)

    in_specs = [
        pl.BlockSpec((1, 1, Hp, Wp, ci), lambda n, d, kd: (n, d + kd, 0, 0, 0)),
        pl.BlockSpec((3, 9 * ci, co), lambda n, d, kd: (0, 0, 0)),
    ]
    inputs = [xp, w]
    if fuse:
        in_specs += [pl.BlockSpec((1, ci), lambda n, d, kd: (0, 0)),
                     pl.BlockSpec((1, ci), lambda n, d, kd: (0, 0))]
        inputs += [scale.reshape(1, ci), shift.reshape(1, ci)]

    out_shape = (jax.ShapeDtypeStruct((N, D, H, W, co), jnp.float32),
                 jax.ShapeDtypeStruct((N, D, 2, co), jnp.float32))
    out_specs = (pl.BlockSpec((1, 1, H, W, co), lambda n, d, kd: (n, d, 0, 0, 0)),
                 pl.BlockSpec((1, 1, 2, co), lambda n, d, kd: (n, d, 0, 0)))

    return pl.pallas_call(
        kernel,
        grid=(N, D, 3),
        in_specs=in_specs,
        out_specs=out_specs,
        out_shape=out_shape,
        scratch_shapes=[pltpu.VMEM((H * W, co), jnp.float32)],
        compiler_params=pltpu.CompilerParams(
            dimension_semantics=("parallel", "parallel", "arbitrary"),
            vmem_limit_bytes=32 * 1024 * 1024),
    )(*inputs)


# ---------------------------------------------------------------------------
# Final BN (affine from pre-computed stats) + ReLU, lane-dense elementwise.
# ---------------------------------------------------------------------------
def _bn_relu_kernel(x_ref, scale_ref, shift_ref, out_ref):
    x = x_ref[...]                                            # (1,1,H,W,C) f32
    c = x.shape[-1]
    s = scale_ref[...].reshape(1, 1, 1, 1, c)
    b = shift_ref[...].reshape(1, 1, 1, 1, c)
    out_ref[...] = jnp.maximum(x * s + b, 0.0)


def bn_relu_pallas(x, scale, shift):
    N, D, H, W, c = x.shape
    return pl.pallas_call(
        _bn_relu_kernel,
        out_shape=jax.ShapeDtypeStruct((N, D, H, W, c), jnp.float32),
        grid=(N, D),
        in_specs=[pl.BlockSpec((1, 1, H, W, c), lambda n, d: (n, d, 0, 0, 0)),
                  pl.BlockSpec((1, c), lambda n, d: (0, 0)),
                  pl.BlockSpec((1, c), lambda n, d: (0, 0))],
        out_specs=pl.BlockSpec((1, 1, H, W, c), lambda n, d: (n, d, 0, 0, 0)),
        compiler_params=pltpu.CompilerParams(
            dimension_semantics=("parallel", "parallel"),
            vmem_limit_bytes=32 * 1024 * 1024),
    )(x, scale.reshape(1, c), shift.reshape(1, c))


# ---------------------------------------------------------------------------
# Glue: stats -> BN affine, weight prep, parameter init, full forward.
# ---------------------------------------------------------------------------
def _stats_to_affine(stats, gamma_p, beta_p, count, eps):
    # stats: (N, D, 2, Cpad) per-tile [sum, sumsq]; training-mode BN (biased var).
    s = jnp.sum(stats, axis=(0, 1))                           # (2, Cpad)
    mean = s[0] / count
    var = jnp.maximum(s[1] / count - mean * mean, 0.0)
    scale = gamma_p * lax.rsqrt(var + eps)
    shift = beta_p - mean * scale
    return scale, shift


def _prep_weight(w_torch, ci_p, co_p):
    # PyTorch (Co, Ci, kD, kH, kW) -> (kD, 9*Ci_pad, Co_pad) bf16, tap-major rows.
    co, ci = w_torch.shape[0], w_torch.shape[1]
    wt = jnp.transpose(w_torch, (2, 3, 4, 1, 0))              # (3,3,3,ci,co)
    wt = jnp.pad(wt, ((0, 0), (0, 0), (0, 0), (0, ci_p - ci), (0, co_p - co)))
    return wt.reshape(3, 9 * ci_p, co_p).astype(jnp.bfloat16)


def init_double_conv3d_params(key, in_channels, out_channels, mid_channels=None):
    if not mid_channels:
        mid_channels = out_channels
    k1, k2, k3, k4, k5, k6 = jax.random.split(key, 6)
    return dict(
        # PyTorch Conv3d weight layout (Cout, Cin, kD, kH, kW).
        w1=0.1 * jax.random.normal(k1, (mid_channels, in_channels, 3, 3, 3), jnp.float32),
        w2=0.1 * jax.random.normal(k2, (out_channels, mid_channels, 3, 3, 3), jnp.float32),
        gamma1=1.0 + 0.1 * jax.random.normal(k3, (mid_channels,), jnp.float32),
        beta1=0.1 * jax.random.normal(k4, (mid_channels,), jnp.float32),
        gamma2=1.0 + 0.1 * jax.random.normal(k5, (out_channels,), jnp.float32),
        beta2=0.1 * jax.random.normal(k6, (out_channels,), jnp.float32),
    )


def double_conv3d_forward(params, x_ncdhw, eps=1e-5):
    """PyTorch DoubleConv3D.forward. x: (N, C_in, D, H, W) -> (N, C_out, D, H, W)."""
    N, cin, D, H, W = x_ncdhw.shape
    cmid = params["w1"].shape[0]
    cout = params["w2"].shape[0]
    ci_p = _round_up(cin, _LANE)
    cm_p = _round_up(cmid, _LANE)
    co_p = _round_up(cout, _LANE)

    # NCDHW -> NDHWC, zero-pad channels to the lane width and spatial dims by the halo.
    x = jnp.transpose(x_ncdhw, (0, 2, 3, 4, 1))
    xp = jnp.pad(x, ((0, 0), (1, 1), (1, 1), (1, 1), (0, ci_p - cin))).astype(jnp.bfloat16)

    w1p = _prep_weight(params["w1"], ci_p, cm_p)
    w2p = _prep_weight(params["w2"], cm_p, co_p)
    g1 = jnp.pad(params["gamma1"], (0, cm_p - cmid))
    b1 = jnp.pad(params["beta1"], (0, cm_p - cmid))
    g2 = jnp.pad(params["gamma2"], (0, co_p - cout))
    b2 = jnp.pad(params["beta2"], (0, co_p - cout))

    count = N * D * H * W

    # Stage 1: conv (+ fused BN stats).
    z1, st1 = conv3d_pallas(xp, w1p)
    s1, sh1 = _stats_to_affine(st1, g1, b1, count, eps)

    # Stage 2: BN1 + ReLU fused into conv2's input path (+ fused BN2 stats).
    z1p = jnp.pad(z1, ((0, 0), (1, 1), (1, 1), (1, 1), (0, 0)))
    z2, st2 = conv3d_pallas(z1p, w2p, scale=s1, shift=sh1)
    s2, sh2 = _stats_to_affine(st2, g2, b2, count, eps)

    # Final BN + ReLU (needs global stats of z2, so it is a separate lane-dense pass).
    a2 = bn_relu_pallas(z2, s2, sh2)

    return jnp.transpose(a2[..., :cout], (0, 4, 1, 2, 3))     # NDHWC -> NCDHW


# ---------------------------------------------------------------------------
# Pure-JAX reference (mirrors the bf16 MXU-operand casts of the kernel path).
# ---------------------------------------------------------------------------
def _reference_forward(params, x_ncdhw, eps=1e-5):
    x = jnp.transpose(x_ncdhw, (0, 2, 3, 4, 1))
    dn = ("NDHWC", "DHWIO", "NDHWC")

    def stage(h, w_torch, gamma, beta):
        w = jnp.transpose(w_torch, (2, 3, 4, 1, 0))
        z = lax.conv_general_dilated(h.astype(jnp.bfloat16), w.astype(jnp.bfloat16),
                                     (1, 1, 1), "SAME", dimension_numbers=dn,
                                     preferred_element_type=jnp.float32)
        m = jnp.mean(z, axis=(0, 1, 2, 3))
        v = jnp.var(z, axis=(0, 1, 2, 3))
        zn = (z - m) / jnp.sqrt(v + eps)
        return jnp.maximum(zn * gamma + beta, 0.0)

    a1 = stage(x, params["w1"], params["gamma1"], params["beta1"])
    a2 = stage(a1, params["w2"], params["gamma2"], params["beta2"])
    return jnp.transpose(a2, (0, 4, 1, 2, 3))


if __name__ == "__main__":
    key = jax.random.PRNGKey(0)
    kx, kp = jax.random.split(key)

    N, Cin, D, H, W = 2, 4, 8, 16, 16
    Cout = 8  # mid_channels defaults to out_channels

    x = jax.random.normal(kx, (N, Cin, D, H, W), jnp.float32)
    params = init_double_conv3d_params(kp, Cin, Cout)

    fwd = jax.jit(double_conv3d_forward)
    out = jax.block_until_ready(fwd(params, x))
    assert out.shape == (N, Cout, D, H, W), out.shape

    ref = jax.block_until_ready(jax.jit(_reference_forward)(params, x))
    err = float(jnp.max(jnp.abs(out - ref)))
    # bf16 MXU operands -> looser tolerance than a pure-f32 path.
    if not (err < 2e-2):
        raise AssertionError(f"mismatch vs reference, max abs err = {err:e}")

    print("KERNEL_OK")
</pallas_src>

<mosaic_0001>
module attributes {stable_mosaic.version = 11 : i64} {
  func.func @kernel(%arg0: i32, %arg1: i32, %arg2: i32, %arg3: memref<1x1x18x18x128xbf16, #tpu.memory_space<vmem>>, %arg4: memref<3x1152x128xbf16, #tpu.memory_space<vmem>>, %arg5: memref<1x1x16x16x128xf32, #tpu.memory_space<vmem>>, %arg6: memref<1x1x2x128xf32, #tpu.memory_space<vmem>>, %arg7: memref<256x128xf32, #tpu.memory_space<vmem>>) attributes {dimension_semantics = [#tpu.dimension_semantics<parallel>, #tpu.dimension_semantics<parallel>, #tpu.dimension_semantics<arbitrary>], iteration_bounds = array<i64: 2, 8, 3>, scalar_prefetch = 0 : i64, scratch_operands = 1 : i64, tpu.core_type = #tpu.core_type<tc>, window_params = [{transform_indices = @transform_0, window_bounds = array<i64: 1, 1, 18, 18, 128>}, {pipeline_mode = #tpu.pipeline_mode<synchronous>, transform_indices = @transform_1, window_bounds = array<i64: 3, 1152, 128>}, {transform_indices = @transform_2, window_bounds = array<i64: 1, 1, 16, 16, 128>}, {transform_indices = @transform_3, window_bounds = array<i64: 1, 1, 2, 128>}]} {
    %c0_i32 = arith.constant 0 : i32
    %0 = arith.cmpi eq, %arg2, %c0_i32 : i32
    %1 = arith.extui %0 : i1 to i32
    %c0_i32_0 = arith.constant 0 : i32
    %2 = arith.cmpi ne, %1, %c0_i32_0 : i32
    scf.if %2 {
      %cst = arith.constant 0.000000e+00 : f32
      %13 = vector.broadcast %cst : f32 to vector<256x128xf32>
      %c0 = arith.constant 0 : index
      %c0_4 = arith.constant 0 : index
      %14 = vector.load %arg7[%c0, %c0_4] : memref<256x128xf32, #tpu.memory_space<vmem>>, vector<256x128xf32>
      tpu.vector_store %arg7[%c0, %c0_4], %13 {strides = array<i32>} : memref<256x128xf32, #tpu.memory_space<vmem>>, vector<256x128xf32>,
    } else {
    }
    %3 = arith.addi %arg1, %arg2 : i32
    %c0_i32_1 = arith.constant 0 : i32
    %4 = arith.cmpi eq, %3, %c0_i32_1 : i32
    %c9_i32 = arith.constant 9 : i32
    %5 = arith.cmpi eq, %3, %c9_i32 : i32
    %6 = arith.ori %4, %5 : i1
    %true = arith.constant true
    %7 = arith.xori %6, %true : i1
    %8 = arith.extui %7 : i1 to i32
    %c0_i32_2 = arith.constant 0 : i32
    %9 = arith.cmpi ne, %8, %c0_i32_2 : i32
    scf.if %9 {
      %c0 = arith.constant 0 : index
      %c0_4 = arith.constant 0 : index
      %c0_5 = arith.constant 0 : index
      %c0_6 = arith.constant 0 : index
      %c0_7 = arith.constant 0 : index
      %13 = vector.load %arg3[%c0, %c0_4, %c0_5, %c0_6, %c0_7] : memref<1x1x18x18x128xbf16, #tpu.memory_space<vmem>>, vector<1x1x18x18x128xbf16>
      %14 = vector.shape_cast %13 : vector<1x1x18x18x128xbf16> to vector<18x18x128xbf16>
      %15 = arith.index_cast %arg2 : i32 to index
      %c0_8 = arith.constant 0 : index
      %c0_9 = arith.constant 0 : index
      %16 = vector.load %arg4[%15, %c0_8, %c0_9] : memref<3x1152x128xbf16, #tpu.memory_space<vmem>>, vector<1x1152x128xbf16>
      %17 = vector.shape_cast %16 : vector<1x1152x128xbf16> to vector<1152x128xbf16>
      %18 = vector.extract_strided_slice %14 {offsets = [0, 0, 0], sizes = [16, 16, 128], strides = [1, 1, 1]} : vector<18x18x128xbf16> to vector<16x16x128xbf16>
      %19 = vector.shape_cast %18 : vector<16x16x128xbf16> to vector<256x128xbf16>
      %20 = vector.extract_strided_slice %17 {offsets = [0, 0], sizes = [128, 128], strides = [1, 1]} : vector<1152x128xbf16> to vector<128x128xbf16>
      %cst = arith.constant dense<0.000000e+00> : vector<256x128xf32>
      %21 = tpu.matmul %19, %20, %cst {dimension_numbers = #tpu.dot_dimension_numbers<[1], [0], [0], [1], [0, 0, 1, 1], [], []>} : vector<256x128xbf16>, vector<128x128xbf16>, vector<256x128xf32> -> vector<256x128xf32>
      %22 = vector.extract_strided_slice %14 {offsets = [0, 1, 0], sizes = [16, 16, 128], strides = [1, 1, 1]} : vector<18x18x128xbf16> to vector<16x16x128xbf16>
      %23 = vector.shape_cast %22 : vector<16x16x128xbf16> to vector<256x128xbf16>
      %24 = vector.extract_strided_slice %17 {offsets = [128, 0], sizes = [128, 128], strides = [1, 1]} : vector<1152x128xbf16> to vector<128x128xbf16>
      %cst_10 = arith.constant dense<0.000000e+00> : vector<256x128xf32>
      %25 = tpu.matmul %23, %24, %cst_10 {dimension_numbers = #tpu.dot_dimension_numbers<[1], [0], [0], [1], [0, 0, 1, 1], [], []>} : vector<256x128xbf16>, vector<128x128xbf16>, vector<256x128xf32> -> vector<256x128xf32>
      %26 = arith.addf %21, %25 : vector<256x128xf32>
      %27 = vector.extract_strided_slice %14 {offsets = [0, 2, 0], sizes = [16, 16, 128], strides = [1, 1, 1]} : vector<18x18x128xbf16> to vector<16x16x128xbf16>
      %28 = vector.shape_cast %27 : vector<16x16x128xbf16> to vector<256x128xbf16>
      %29 = vector.extract_strided_slice %17 {offsets = [256, 0], sizes = [128, 128], strides = [1, 1]} : vector<1152x128xbf16> to vector<128x128xbf16>
      %cst_11 = arith.constant dense<0.000000e+00> : vector<256x128xf32>
      %30 = tpu.matmul %28, %29, %cst_11 {dimension_numbers = #tpu.dot_dimension_numbers<[1], [0], [0], [1], [0, 0, 1, 1], [], []>} : vector<256x128xbf16>, vector<128x128xbf16>, vector<256x128xf32> -> vector<256x128xf32>
      %31 = arith.addf %26, %30 : vector<256x128xf32>
      %32 = vector.extract_strided_slice %14 {offsets = [1, 0, 0], sizes = [16, 16, 128], strides = [1, 1, 1]} : vector<18x18x128xbf16> to vector<16x16x128xbf16>
      %33 = vector.shape_cast %32 : vector<16x16x128xbf16> to vector<256x128xbf16>
      %34 = vector.extract_strided_slice %17 {offsets = [384, 0], sizes = [128, 128], strides = [1, 1]} : vector<1152x128xbf16> to vector<128x128xbf16>
      %cst_12 = arith.constant dense<0.000000e+00> : vector<256x128xf32>
      %35 = tpu.matmul %33, %34, %cst_12 {dimension_numbers = #tpu.dot_dimension_numbers<[1], [0], [0], [1], [0, 0, 1, 1], [], []>} : vector<256x128xbf16>, vector<128x128xbf16>, vector<256x128xf32> -> vector<256x128xf32>
      %36 = arith.addf %31, %35 : vector<256x128xf32>
      %37 = vector.extract_strided_slice %14 {offsets = [1, 1, 0], sizes = [16, 16, 128], strides = [1, 1, 1]} : vector<18x18x128xbf16> to vector<16x16x128xbf16>
      %38 = vector.shape_cast %37 : vector<16x16x128xbf16> to vector<256x128xbf16>
      %39 = vector.extract_strided_slice %17 {offsets = [512, 0], sizes = [128, 128], strides = [1, 1]} : vector<1152x128xbf16> to vector<128x128xbf16>
      %cst_13 = arith.constant dense<0.000000e+00> : vector<256x128xf32>
      %40 = tpu.matmul %38, %39, %cst_13 {dimension_numbers = #tpu.dot_dimension_numbers<[1], [0], [0], [1], [0, 0, 1, 1], [], []>} : vector<256x128xbf16>, vector<128x128xbf16>, vector<256x128xf32> -> vector<256x128xf32>
      %41 = arith.addf %36, %40 : vector<256x128xf32>
      %42 = vector.extract_strided_slice %14 {offsets = [1, 2, 0], sizes = [16, 16, 128], strides = [1, 1, 1]} : vector<18x18x128xbf16> to vector<16x16x128xbf16>
      %43 = vector.shape_cast %42 : vector<16x16x128xbf16> to vector<256x128xbf16>
      %44 = vector.extract_strided_slice %17 {offsets = [640, 0], sizes = [128, 128], strides = [1, 1]} : vector<1152x128xbf16> to vector<128x128xbf16>
      %cst_14 = arith.constant dense<0.000000e+00> : vector<256x128xf32>
      %45 = tpu.matmul %43, %44, %cst_14 {dimension_numbers = #tpu.dot_dimension_numbers<[1], [0], [0], [1], [0, 0, 1, 1], [], []>} : vector<256x128xbf16>, vector<128x128xbf16>, vector<256x128xf32> -> vector<256x128xf32>
      %46 = arith.addf %41, %45 : vector<256x128xf32>
      %47 = vector.extract_strided_slice %14 {offsets = [2, 0, 0], sizes = [16, 16, 128], strides = [1, 1, 1]} : vector<18x18x128xbf16> to vector<16x16x128xbf16>
      %48 = vector.shape_cast %47 : vector<16x16x128xbf16> to vector<256x128xbf16>
      %49 = vector.extract_strided_slice %17 {offsets = [768, 0], sizes = [128, 128], strides = [1, 1]} : vector<1152x128xbf16> to vector<128x128xbf16>
      %cst_15 = arith.constant dense<0.000000e+00> : vector<256x128xf32>
      %50 = tpu.matmul %48, %49, %cst_15 {dimension_numbers = #tpu.dot_dimension_numbers<[1], [0], [0], [1], [0, 0, 1, 1], [], []>} : vector<256x128xbf16>, vector<128x128xbf16>, vector<256x128xf32> -> vector<256x128xf32>
      %51 = arith.addf %46, %50 : vector<256x128xf32>
      %52 = vector.extract_strided_slice %14 {offsets = [2, 1, 0], sizes = [16, 16, 128], strides = [1, 1, 1]} : vector<18x18x128xbf16> to vector<16x16x128xbf16>
      %53 = vector.shape_cast %52 : vector<16x16x128xbf16> to vector<256x128xbf16>
      %54 = vector.extract_strided_slice %17 {offsets = [896, 0], sizes = [128, 128], strides = [1, 1]} : vector<1152x128xbf16> to vector<128x128xbf16>
      %cst_16 = arith.constant dense<0.000000e+00> : vector<256x128xf32>
      %55 = tpu.matmul %53, %54, %cst_16 {dimension_numbers = #tpu.dot_dimension_numbers<[1], [0], [0], [1], [0, 0, 1, 1], [], []>} : vector<256x128xbf16>, vector<128x128xbf16>, vector<256x128xf32> -> vector<256x128xf32>
      %56 = arith.addf %51, %55 : vector<256x128xf32>
      %57 = vector.extract_strided_slice %14 {offsets = [2, 2, 0], sizes = [16, 16, 128], strides = [1, 1, 1]} : vector<18x18x128xbf16> to vector<16x16x128xbf16>
      %58 = vector.shape_cast %57 : vector<16x16x128xbf16> to vector<256x128xbf16>
      %59 = vector.extract_strided_slice %17 {offsets = [1024, 0], sizes = [128, 128], strides = [1, 1]} : vector<1152x128xbf16> to vector<128x128xbf16>
      %cst_17 = arith.constant dense<0.000000e+00> : vector<256x128xf32>
      %60 = tpu.matmul %58, %59, %cst_17 {dimension_numbers = #tpu.dot_dimension_numbers<[1], [0], [0], [1], [0, 0, 1, 1], [], []>} : vector<256x128xbf16>, vector<128x128xbf16>, vector<256x128xf32> -> vector<256x128xf32>
      %61 = arith.addf %56, %60 : vector<256x128xf32>
      %c0_18 = arith.constant 0 : index
      %c0_19 = arith.constant 0 : index
      %62 = vector.load %arg7[%c0_18, %c0_19] : memref<256x128xf32, #tpu.memory_space<vmem>>, vector<256x128xf32>
      %63 = arith.addf %62, %61 : vector<256x128xf32>
      %c0_20 = arith.constant 0 : index
      %c0_21 = arith.constant 0 : index
      %64 = vector.load %arg7[%c0_20, %c0_21] : memref<256x128xf32, #tpu.memory_space<vmem>>, vector<256x128xf32>
      tpu.vector_store %arg7[%c0_20, %c0_21], %63 {strides = array<i32>} : memref<256x128xf32, #tpu.memory_space<vmem>>, vector<256x128xf32>,
    } else {
    }
    %c2_i32 = arith.constant 2 : i32
    %10 = arith.cmpi eq, %arg2, %c2_i32 : i32
    %11 = arith.extui %10 : i1 to i32
    %c0_i32_3 = arith.constant 0 : i32
    %12 = arith.cmpi ne, %11, %c0_i32_3 : i32
    scf.if %12 {
      %c0 = arith.constant 0 : index
      %c0_4 = arith.constant 0 : index
      %13 = vector.load %arg7[%c0, %c0_4] : memref<256x128xf32, #tpu.memory_space<vmem>>, vector<256x128xf32>
      %14 = vector.shape_cast %13 : vector<256x128xf32> to vector<1x1x16x16x128xf32>
      %c0_5 = arith.constant 0 : index
      %c0_6 = arith.constant 0 : index
      %c0_7 = arith.constant 0 : index
      %c0_8 = arith.constant 0 : index
      %c0_9 = arith.constant 0 : index
      %15 = vector.load %arg5[%c0_5, %c0_6, %c0_7, %c0_8, %c0_9] : memref<1x1x16x16x128xf32, #tpu.memory_space<vmem>>, vector<1x1x16x16x128xf32>
      tpu.vector_store %arg5[%c0_5, %c0_6, %c0_7, %c0_8, %c0_9], %14 {strides = array<i32>} : memref<1x1x16x16x128xf32, #tpu.memory_space<vmem>>, vector<1x1x16x16x128xf32>,
      %cst = arith.constant dense<0.000000e+00> : vector<128xf32>
      %16 = vector.multi_reduction <add>, %13, %cst [0] : vector<256x128xf32> to vector<128xf32>
      %17 = vector.shape_cast %16 : vector<128xf32> to vector<1x128xf32>
      %18 = arith.mulf %13, %13 : vector<256x128xf32>
      %cst_10 = arith.constant dense<0.000000e+00> : vector<128xf32>
      %19 = vector.multi_reduction <add>, %18, %cst_10 [0] : vector<256x128xf32> to vector<128xf32>
      %20 = vector.shape_cast %19 : vector<128xf32> to vector<1x128xf32>
      %21 = tpu.concatenate %17, %20 in 0 : vector<1x128xf32>, vector<1x128xf32> -> vector<2x128xf32>
      %c0_11 = arith.constant 0 : index
      %c0_12 = arith.constant 0 : index
      %c0_13 = arith.constant 0 : index
      %c0_14 = arith.constant 0 : index
      %22 = vector.load %arg6[%c0_11, %c0_12, %c0_13, %c0_14] : memref<1x1x2x128xf32, #tpu.memory_space<vmem>>, vector<1x1x2x128xf32>
      %23 = vector.shape_cast %22 : vector<1x1x2x128xf32> to vector<2x128xf32>
      %24 = vector.shape_cast %21 : vector<2x128xf32> to vector<1x1x2x128xf32>
      tpu.vector_store %arg6[%c0_11, %c0_12, %c0_13, %c0_14], %24 {strides = array<i32>} : memref<1x1x2x128xf32, #tpu.memory_space<vmem>>, vector<1x1x2x128xf32>,
    } else {
    }
    return
  }
  func.func @transform_0(%arg0: i32, %arg1: i32, %arg2: i32) -> (i32, i32, i32, i32, i32) {
    %0 = arith.addi %arg1, %arg2 : i32
    %c0_i32 = arith.constant 0 : i32
    %c0_i32_0 = arith.constant 0 : i32
    %c0_i32_1 = arith.constant 0 : i32
    %c0_i32_2 = arith.constant 0 : i32
    return %arg0, %0, %c0_i32, %c0_i32_0, %c0_i32_1 : i32, i32, i32, i32, i32
  }
  func.func @transform_1(%arg0: i32, %arg1: i32, %arg2: i32) -> (i32, i32, i32) {
    %c0_i32 = arith.constant 0 : i32
    %c0_i32_0 = arith.constant 0 : i32
    %c0_i32_1 = arith.constant 0 : i32
    %c0_i32_2 = arith.constant 0 : i32
    return %c0_i32, %c0_i32_0, %c0_i32_1 : i32, i32, i32
  }
  func.func @transform_2(%arg0: i32, %arg1: i32, %arg2: i32) -> (i32, i32, i32, i32, i32) {
    %c0_i32 = arith.constant 0 : i32
    %c0_i32_0 = arith.constant 0 : i32
    %c0_i32_1 = arith.constant 0 : i32
    %c0_i32_2 = arith.constant 0 : i32
    return %arg0, %arg1, %c0_i32, %c0_i32_0, %c0_i32_1 : i32, i32, i32, i32, i32
  }
  func.func @transform_3(%arg0: i32, %arg1: i32, %arg2: i32) -> (i32, i32, i32, i32) {
    %c0_i32 = arith.constant 0 : i32
    %c0_i32_0 = arith.constant 0 : i32
    %c0_i32_1 = arith.constant 0 : i32
    return %arg0, %arg1, %c0_i32, %c0_i32_0 : i32, i32, i32, i32
  }
}

module attributes {stable_mosaic.version = 11 : i64} {
  func.func @kernel(%arg0: i32, %arg1: i32, %arg2: i32, %arg3: memref<1x1x18x18x128xf32, #tpu.memory_space<vmem>>, %arg4: memref<3x1152x128xbf16, #tpu.memory_space<vmem>>, %arg5: memref<1x128xf32, #tpu.memory_space<vmem>>, %arg6: memref<1x128xf32, #tpu.memory_space<vmem>>, %arg7: memref<1x1x16x16x128xf32, #tpu.memory_space<vmem>>, %arg8: memref<1x1x2x128xf32, #tpu.memory_space<vmem>>, %arg9: memref<256x128xf32, #tpu.memory_space<vmem>>) attributes {dimension_semantics = [#tpu.dimension_semantics<parallel>, #tpu.dimension_semantics<parallel>, #tpu.dimension_semantics<arbitrary>], iteration_bounds = array<i64: 2, 8, 3>, scalar_prefetch = 0 : i64, scratch_operands = 1 : i64, tpu.core_type = #tpu.core_type<tc>, window_params = [{transform_indices = @transform_0, window_bounds = array<i64: 1, 1, 18, 18, 128>}, {pipeline_mode = #tpu.pipeline_mode<synchronous>, transform_indices = @transform_1, window_bounds = array<i64: 3, 1152, 128>}, {pipeline_mode = #tpu.pipeline_mode<synchronous>, transform_indices = @transform_2, window_bounds = array<i64: 1, 128>}, {pipeline_mode = #tpu.pipeline_mode<synchronous>, transform_indices = @transform_3, window_bounds = array<i64: 1, 128>}, {transform_indices = @transform_4, window_bounds = array<i64: 1, 1, 16, 16, 128>}, {transform_indices = @transform_5, window_bounds = array<i64: 1, 1, 2, 128>}]} {
    %c0_i32 = arith.constant 0 : i32
    %0 = arith.cmpi eq, %arg2, %c0_i32 : i32
    %1 = arith.extui %0 : i1 to i32
    %c0_i32_0 = arith.constant 0 : i32
    %2 = arith.cmpi ne, %1, %c0_i32_0 : i32
    scf.if %2 {
      %cst = arith.constant 0.000000e+00 : f32
      %13 = vector.broadcast %cst : f32 to vector<256x128xf32>
      %c0 = arith.constant 0 : index
      %c0_4 = arith.constant 0 : index
      %14 = vector.load %arg9[%c0, %c0_4] : memref<256x128xf32, #tpu.memory_space<vmem>>, vector<256x128xf32>
      tpu.vector_store %arg9[%c0, %c0_4], %13 {strides = array<i32>} : memref<256x128xf32, #tpu.memory_space<vmem>>, vector<256x128xf32>,
    } else {
    }
    %3 = arith.addi %arg1, %arg2 : i32
    %c0_i32_1 = arith.constant 0 : i32
    %4 = arith.cmpi eq, %3, %c0_i32_1 : i32
    %c9_i32 = arith.constant 9 : i32
    %5 = arith.cmpi eq, %3, %c9_i32 : i32
    %6 = arith.ori %4, %5 : i1
    %true = arith.constant true
    %7 = arith.xori %6, %true : i1
    %8 = arith.extui %7 : i1 to i32
    %c0_i32_2 = arith.constant 0 : i32
    %9 = arith.cmpi ne, %8, %c0_i32_2 : i32
    scf.if %9 {
      %c0 = arith.constant 0 : index
      %c0_4 = arith.constant 0 : index
      %c0_5 = arith.constant 0 : index
      %c0_6 = arith.constant 0 : index
      %c0_7 = arith.constant 0 : index
      %13 = vector.load %arg3[%c0, %c0_4, %c0_5, %c0_6, %c0_7] : memref<1x1x18x18x128xf32, #tpu.memory_space<vmem>>, vector<1x1x18x18x128xf32>
      %14 = vector.shape_cast %13 : vector<1x1x18x18x128xf32> to vector<18x18x128xf32>
      %c0_8 = arith.constant 0 : index
      %c0_9 = arith.constant 0 : index
      %15 = vector.load %arg5[%c0_8, %c0_9] : memref<1x128xf32, #tpu.memory_space<vmem>>, vector<1x128xf32>
      %16 = vector.shape_cast %15 : vector<1x128xf32> to vector<1x1x128xf32>
      %c0_10 = arith.constant 0 : index
      %c0_11 = arith.constant 0 : index
      %17 = vector.load %arg6[%c0_10, %c0_11] : memref<1x128xf32, #tpu.memory_space<vmem>>, vector<1x128xf32>
      %18 = vector.shape_cast %17 : vector<1x128xf32> to vector<1x1x128xf32>
      %19 = vector.broadcast %16 : vector<1x1x128xf32> to vector<18x18x128xf32>
      %20 = arith.mulf %14, %19 : vector<18x18x128xf32>
      %21 = vector.broadcast %18 : vector<1x1x128xf32> to vector<18x18x128xf32>
      %22 = arith.addf %20, %21 : vector<18x18x128xf32>
      %cst = arith.constant 0.000000e+00 : f32
      %23 = vector.broadcast %cst : f32 to vector<18x18x128xf32>
      %24 = arith.maximumf %22, %23 : vector<18x18x128xf32>
      %25 = tpu.iota {dimensions = array<i32: 0>} : vector<18x18x1xi32>
      %26 = tpu.iota {dimensions = array<i32: 1>} : vector<18x18x1xi32>
      %c1_i32 = arith.constant 1 : i32
      %27 = vector.broadcast %c1_i32 : i32 to vector<18x18x1xi32>
      %28 = arith.cmpi sge, %25, %27 : vector<18x18x1xi32>
      %c16_i32 = arith.constant 16 : i32
      %29 = vector.broadcast %c16_i32 : i32 to vector<18x18x1xi32>
      %30 = arith.cmpi sle, %25, %29 : vector<18x18x1xi32>
      %31 = arith.andi %28, %30 : vector<18x18x1xi1>
      %c1_i32_12 = arith.constant 1 : i32
      %32 = vector.broadcast %c1_i32_12 : i32 to vector<18x18x1xi32>
      %33 = arith.cmpi sge, %26, %32 : vector<18x18x1xi32>
      %34 = arith.andi %31, %33 : vector<18x18x1xi1>
      %c16_i32_13 = arith.constant 16 : i32
      %35 = vector.broadcast %c16_i32_13 : i32 to vector<18x18x1xi32>
      %36 = arith.cmpi sle, %26, %35 : vector<18x18x1xi32>
      %37 = arith.andi %34, %36 : vector<18x18x1xi1>
      %cst_14 = arith.constant 0.000000e+00 : f32
      %38 = vector.shape_cast %37 : vector<18x18x1xi1> to vector<18x18x1xi1>
      %39 = vector.broadcast %38 : vector<18x18x1xi1> to vector<18x18x128xi1>
      %40 = vector.broadcast %cst_14 : f32 to vector<18x18x128xf32>
      %41 = arith.select %39, %24, %40 : vector<18x18x128xi1>, vector<18x18x128xf32>
      %42 = arith.truncf %41 : vector<18x18x128xf32> to vector<18x18x128xbf16>
      %43 = arith.index_cast %arg2 : i32 to index
      %c0_15 = arith.constant 0 : index
      %c0_16 = arith.constant 0 : index
      %44 = vector.load %arg4[%43, %c0_15, %c0_16] : memref<3x1152x128xbf16, #tpu.memory_space<vmem>>, vector<1x1152x128xbf16>
      %45 = vector.shape_cast %44 : vector<1x1152x128xbf16> to vector<1152x128xbf16>
      %46 = vector.extract_strided_slice %42 {offsets = [0, 0, 0], sizes = [16, 16, 128], strides = [1, 1, 1]} : vector<18x18x128xbf16> to vector<16x16x128xbf16>
      %47 = vector.shape_cast %46 : vector<16x16x128xbf16> to vector<256x128xbf16>
      %48 = vector.extract_strided_slice %45 {offsets = [0, 0], sizes = [128, 128], strides = [1, 1]} : vector<1152x128xbf16> to vector<128x128xbf16>
      %cst_17 = arith.constant dense<0.000000e+00> : vector<256x128xf32>
      %49 = tpu.matmul %47, %48, %cst_17 {dimension_numbers = #tpu.dot_dimension_numbers<[1], [0], [0], [1], [0, 0, 1, 1], [], []>} : vector<256x128xbf16>, vector<128x128xbf16>, vector<256x128xf32> -> vector<256x128xf32>
      %50 = vector.extract_strided_slice %42 {offsets = [0, 1, 0], sizes = [16, 16, 128], strides = [1, 1, 1]} : vector<18x18x128xbf16> to vector<16x16x128xbf16>
      %51 = vector.shape_cast %50 : vector<16x16x128xbf16> to vector<256x128xbf16>
      %52 = vector.extract_strided_slice %45 {offsets = [128, 0], sizes = [128, 128], strides = [1, 1]} : vector<1152x128xbf16> to vector<128x128xbf16>
      %cst_18 = arith.constant dense<0.000000e+00> : vector<256x128xf32>
      %53 = tpu.matmul %51, %52, %cst_18 {dimension_numbers = #tpu.dot_dimension_numbers<[1], [0], [0], [1], [0, 0, 1, 1], [], []>} : vector<256x128xbf16>, vector<128x128xbf16>, vector<256x128xf32> -> vector<256x128xf32>
      %54 = arith.addf %49, %53 : vector<256x128xf32>
      %55 = vector.extract_strided_slice %42 {offsets = [0, 2, 0], sizes = [16, 16, 128], strides = [1, 1, 1]} : vector<18x18x128xbf16> to vector<16x16x128xbf16>
      %56 = vector.shape_cast %55 : vector<16x16x128xbf16> to vector<256x128xbf16>
      %57 = vector.extract_strided_slice %45 {offsets = [256, 0], sizes = [128, 128], strides = [1, 1]} : vector<1152x128xbf16> to vector<128x128xbf16>
      %cst_19 = arith.constant dense<0.000000e+00> : vector<256x128xf32>
      %58 = tpu.matmul %56, %57, %cst_19 {dimension_numbers = #tpu.dot_dimension_numbers<[1], [0], [0], [1], [0, 0, 1, 1], [], []>} : vector<256x128xbf16>, vector<128x128xbf16>, vector<256x128xf32> -> vector<256x128xf32>
      %59 = arith.addf %54, %58 : vector<256x128xf32>
      %60 = vector.extract_strided_slice %42 {offsets = [1, 0, 0], sizes = [16, 16, 128], strides = [1, 1, 1]} : vector<18x18x128xbf16> to vector<16x16x128xbf16>
      %61 = vector.shape_cast %60 : vector<16x16x128xbf16> to vector<256x128xbf16>
      %62 = vector.extract_strided_slice %45 {offsets = [384, 0], sizes = [128, 128], strides = [1, 1]} : vector<1152x128xbf16> to vector<128x128xbf16>
      %cst_20 = arith.constant dense<0.000000e+00> : vector<256x128xf32>
      %63 = tpu.matmul %61, %62, %cst_20 {dimension_numbers = #tpu.dot_dimension_numbers<[1], [0], [0], [1], [0, 0, 1, 1], [], []>} : vector<256x128xbf16>, vector<128x128xbf16>, vector<256x128xf32> -> vector<256x128xf32>
      %64 = arith.addf %59, %63 : vector<256x128xf32>
      %65 = vector.extract_strided_slice %42 {offsets = [1, 1, 0], sizes = [16, 16, 128], strides = [1, 1, 1]} : vector<18x18x128xbf16> to vector<16x16x128xbf16>
      %66 = vector.shape_cast %65 : vector<16x16x128xbf16> to vector<256x128xbf16>
      %67 = vector.extract_strided_slice %45 {offsets = [512, 0], sizes = [128, 128], strides = [1, 1]} : vector<1152x128xbf16> to vector<128x128xbf16>
      %cst_21 = arith.constant dense<0.000000e+00> : vector<256x128xf32>
      %68 = tpu.matmul %66, %67, %cst_21 {dimension_numbers = #tpu.dot_dimension_numbers<[1], [0], [0], [1], [0, 0, 1, 1], [], []>} : vector<256x128xbf16>, vector<128x128xbf16>, vector<256x128xf32> -> vector<256x128xf32>
      %69 = arith.addf %64, %68 : vector<256x128xf32>
      %70 = vector.extract_strided_slice %42 {offsets = [1, 2, 0], sizes = [16, 16, 128], strides = [1, 1, 1]} : vector<18x18x128xbf16> to vector<16x16x128xbf16>
      %71 = vector.shape_cast %70 : vector<16x16x128xbf16> to vector<256x128xbf16>
      %72 = vector.extract_strided_slice %45 {offsets = [640, 0], sizes = [128, 128], strides = [1, 1]} : vector<1152x128xbf16> to vector<128x128xbf16>
      %cst_22 = arith.constant dense<0.000000e+00> : vector<256x128xf32>
      %73 = tpu.matmul %71, %72, %cst_22 {dimension_numbers = #tpu.dot_dimension_numbers<[1], [0], [0], [1], [0, 0, 1, 1], [], []>} : vector<256x128xbf16>, vector<128x128xbf16>, vector<256x128xf32> -> vector<256x128xf32>
      %74 = arith.addf %69, %73 : vector<256x128xf32>
      %75 = vector.extract_strided_slice %42 {offsets = [2, 0, 0], sizes = [16, 16, 128], strides = [1, 1, 1]} : vector<18x18x128xbf16> to vector<16x16x128xbf16>
      %76 = vector.shape_cast %75 : vector<16x16x128xbf16> to vector<256x128xbf16>
      %77 = vector.extract_strided_slice %45 {offsets = [768, 0], sizes = [128, 128], strides = [1, 1]} : vector<1152x128xbf16> to vector<128x128xbf16>
      %cst_23 = arith.constant dense<0.000000e+00> : vector<256x128xf32>
      %78 = tpu.matmul %76, %77, %cst_23 {dimension_numbers = #tpu.dot_dimension_numbers<[1], [0], [0], [1], [0, 0, 1, 1], [], []>} : vector<256x128xbf16>, vector<128x128xbf16>, vector<256x128xf32> -> vector<256x128xf32>
      %79 = arith.addf %74, %78 : vector<256x128xf32>
      %80 = vector.extract_strided_slice %42 {offsets = [2, 1, 0], sizes = [16, 16, 128], strides = [1, 1, 1]} : vector<18x18x128xbf16> to vector<16x16x128xbf16>
      %81 = vector.shape_cast %80 : vector<16x16x128xbf16> to vector<256x128xbf16>
      %82 = vector.extract_strided_slice %45 {offsets = [896, 0], sizes = [128, 128], strides = [1, 1]} : vector<1152x128xbf16> to vector<128x128xbf16>
      %cst_24 = arith.constant dense<0.000000e+00> : vector<256x128xf32>
      %83 = tpu.matmul %81, %82, %cst_24 {dimension_numbers = #tpu.dot_dimension_numbers<[1], [0], [0], [1], [0, 0, 1, 1], [], []>} : vector<256x128xbf16>, vector<128x128xbf16>, vector<256x128xf32> -> vector<256x128xf32>
      %84 = arith.addf %79, %83 : vector<256x128xf32>
      %85 = vector.extract_strided_slice %42 {offsets = [2, 2, 0], sizes = [16, 16, 128], strides = [1, 1, 1]} : vector<18x18x128xbf16> to vector<16x16x128xbf16>
      %86 = vector.shape_cast %85 : vector<16x16x128xbf16> to vector<256x128xbf16>
      %87 = vector.extract_strided_slice %45 {offsets = [1024, 0], sizes = [128, 128], strides = [1, 1]} : vector<1152x128xbf16> to vector<128x128xbf16>
      %cst_25 = arith.constant dense<0.000000e+00> : vector<256x128xf32>
      %88 = tpu.matmul %86, %87, %cst_25 {dimension_numbers = #tpu.dot_dimension_numbers<[1], [0], [0], [1], [0, 0, 1, 1], [], []>} : vector<256x128xbf16>, vector<128x128xbf16>, vector<256x128xf32> -> vector<256x128xf32>
      %89 = arith.addf %84, %88 : vector<256x128xf32>
      %c0_26 = arith.constant 0 : index
      %c0_27 = arith.constant 0 : index
      %90 = vector.load %arg9[%c0_26, %c0_27] : memref<256x128xf32, #tpu.memory_space<vmem>>, vector<256x128xf32>
      %91 = arith.addf %90, %89 : vector<256x128xf32>
      %c0_28 = arith.constant 0 : index
      %c0_29 = arith.constant 0 : index
      %92 = vector.load %arg9[%c0_28, %c0_29] : memref<256x128xf32, #tpu.memory_space<vmem>>, vector<256x128xf32>
      tpu.vector_store %arg9[%c0_28, %c0_29], %91 {strides = array<i32>} : memref<256x128xf32, #tpu.memory_space<vmem>>, vector<256x128xf32>,
    } else {
    }
    %c2_i32 = arith.constant 2 : i32
    %10 = arith.cmpi eq, %arg2, %c2_i32 : i32
    %11 = arith.extui %10 : i1 to i32
    %c0_i32_3 = arith.constant 0 : i32
    %12 = arith.cmpi ne, %11, %c0_i32_3 : i32
    scf.if %12 {
      %c0 = arith.constant 0 : index
      %c0_4 = arith.constant 0 : index
      %13 = vector.load %arg9[%c0, %c0_4] : memref<256x128xf32, #tpu.memory_space<vmem>>, vector<256x128xf32>
      %14 = vector.shape_cast %13 : vector<256x128xf32> to vector<1x1x16x16x128xf32>
      %c0_5 = arith.constant 0 : index
      %c0_6 = arith.constant 0 : index
      %c0_7 = arith.constant 0 : index
      %c0_8 = arith.constant 0 : index
      %c0_9 = arith.constant 0 : index
      %15 = vector.load %arg7[%c0_5, %c0_6, %c0_7, %c0_8, %c0_9] : memref<1x1x16x16x128xf32, #tpu.memory_space<vmem>>, vector<1x1x16x16x128xf32>
      tpu.vector_store %arg7[%c0_5, %c0_6, %c0_7, %c0_8, %c0_9], %14 {strides = array<i32>} : memref<1x1x16x16x128xf32, #tpu.memory_space<vmem>>, vector<1x1x16x16x128xf32>,
      %cst = arith.constant dense<0.000000e+00> : vector<128xf32>
      %16 = vector.multi_reduction <add>, %13, %cst [0] : vector<256x128xf32> to vector<128xf32>
      %17 = vector.shape_cast %16 : vector<128xf32> to vector<1x128xf32>
      %18 = arith.mulf %13, %13 : vector<256x128xf32>
      %cst_10 = arith.constant dense<0.000000e+00> : vector<128xf32>
      %19 = vector.multi_reduction <add>, %18, %cst_10 [0] : vector<256x128xf32> to vector<128xf32>
      %20 = vector.shape_cast %19 : vector<128xf32> to vector<1x128xf32>
      %21 = tpu.concatenate %17, %20 in 0 : vector<1x128xf32>, vector<1x128xf32> -> vector<2x128xf32>
      %c0_11 = arith.constant 0 : index
      %c0_12 = arith.constant 0 : index
      %c0_13 = arith.constant 0 : index
      %c0_14 = arith.constant 0 : index
      %22 = vector.load %arg8[%c0_11, %c0_12, %c0_13, %c0_14] : memref<1x1x2x128xf32, #tpu.memory_space<vmem>>, vector<1x1x2x128xf32>
      %23 = vector.shape_cast %22 : vector<1x1x2x128xf32> to vector<2x128xf32>
      %24 = vector.shape_cast %21 : vector<2x128xf32> to vector<1x1x2x128xf32>
      tpu.vector_store %arg8[%c0_11, %c0_12, %c0_13, %c0_14], %24 {strides = array<i32>} : memref<1x1x2x128xf32, #tpu.memory_space<vmem>>, vector<1x1x2x128xf32>,
    } else {
    }
    return
  }
  func.func @transform_0(%arg0: i32, %arg1: i32, %arg2: i32) -> (i32, i32, i32, i32, i32) {
    %0 = arith.addi %arg1, %arg2 : i32
    %c0_i32 = arith.constant 0 : i32
    %c0_i32_0 = arith.constant 0 : i32
    %c0_i32_1 = arith.constant 0 : i32
    %c0_i32_2 = arith.constant 0 : i32
    return %arg0, %0, %c0_i32, %c0_i32_0, %c0_i32_1 : i32, i32, i32, i32, i32
  }
  func.func @transform_1(%arg0: i32, %arg1: i32, %arg2: i32) -> (i32, i32, i32) {
    %c0_i32 = arith.constant 0 : i32
    %c0_i32_0 = arith.constant 0 : i32
    %c0_i32_1 = arith.constant 0 : i32
    %c0_i32_2 = arith.constant 0 : i32
    return %c0_i32, %c0_i32_0, %c0_i32_1 : i32, i32, i32
  }
  func.func @transform_2(%arg0: i32, %arg1: i32, %arg2: i32) -> (i32, i32) {
    %c0_i32 = arith.constant 0 : i32
    %c0_i32_0 = arith.constant 0 : i32
    %c0_i32_1 = arith.constant 0 : i32
    return %c0_i32, %c0_i32_0 : i32, i32
  }
  func.func @transform_3(%arg0: i32, %arg1: i32, %arg2: i32) -> (i32, i32) {
    %c0_i32 = arith.constant 0 : i32
    %c0_i32_0 = arith.constant 0 : i32
    %c0_i32_1 = arith.constant 0 : i32
    return %c0_i32, %c0_i32_0 : i32, i32
  }
  func.func @transform_4(%arg0: i32, %arg1: i32, %arg2: i32) -> (i32, i32, i32, i32, i32) {
    %c0_i32 = arith.constant 0 : i32
    %c0_i32_0 = arith.constant 0 : i32
    %c0_i32_1 = arith.constant 0 : i32
    %c0_i32_2 = arith.constant 0 : i32
    return %arg0, %arg1, %c0_i32, %c0_i32_0, %c0_i32_1 : i32, i32, i32, i32, i32
  }
  func.func @transform_5(%arg0: i32, %arg1: i32, %arg2: i32) -> (i32, i32, i32, i32) {
    %c0_i32 = arith.constant 0 : i32
    %c0_i32_0 = arith.constant 0 : i32
    %c0_i32_1 = arith.constant 0 : i32
    return %arg0, %arg1, %c0_i32, %c0_i32_0 : i32, i32, i32, i32
  }
}

module attributes {stable_mosaic.version = 11 : i64} {
  func.func @_bn_relu_kernel(%arg0: i32, %arg1: i32, %arg2: memref<1x1x16x16x128xf32, #tpu.memory_space<vmem>>, %arg3: memref<1x128xf32, #tpu.memory_space<vmem>>, %arg4: memref<1x128xf32, #tpu.memory_space<vmem>>, %arg5: memref<1x1x16x16x128xf32, #tpu.memory_space<vmem>>) attributes {dimension_semantics = [#tpu.dimension_semantics<parallel>, #tpu.dimension_semantics<parallel>], iteration_bounds = array<i64: 2, 8>, scalar_prefetch = 0 : i64, scratch_operands = 0 : i64, tpu.core_type = #tpu.core_type<tc>, window_params = [{transform_indices = @transform_0, window_bounds = array<i64: 1, 1, 16, 16, 128>}, {pipeline_mode = #tpu.pipeline_mode<synchronous>, transform_indices = @transform_1, window_bounds = array<i64: 1, 128>}, {pipeline_mode = #tpu.pipeline_mode<synchronous>, transform_indices = @transform_2, window_bounds = array<i64: 1, 128>}, {transform_indices = @transform_3, window_bounds = array<i64: 1, 1, 16, 16, 128>}]} {
    %c0 = arith.constant 0 : index
    %c0_0 = arith.constant 0 : index
    %c0_1 = arith.constant 0 : index
    %c0_2 = arith.constant 0 : index
    %c0_3 = arith.constant 0 : index
    %0 = vector.load %arg2[%c0, %c0_0, %c0_1, %c0_2, %c0_3] : memref<1x1x16x16x128xf32, #tpu.memory_space<vmem>>, vector<1x1x16x16x128xf32>
    %c0_4 = arith.constant 0 : index
    %c0_5 = arith.constant 0 : index
    %1 = vector.load %arg3[%c0_4, %c0_5] : memref<1x128xf32, #tpu.memory_space<vmem>>, vector<1x128xf32>
    %2 = vector.shape_cast %1 : vector<1x128xf32> to vector<1x1x1x1x128xf32>
    %c0_6 = arith.constant 0 : index
    %c0_7 = arith.constant 0 : index
    %3 = vector.load %arg4[%c0_6, %c0_7] : memref<1x128xf32, #tpu.memory_space<vmem>>, vector<1x128xf32>
    %4 = vector.shape_cast %3 : vector<1x128xf32> to vector<1x1x1x1x128xf32>
    %5 = vector.broadcast %2 : vector<1x1x1x1x128xf32> to vector<1x1x16x16x128xf32>
    %6 = arith.mulf %0, %5 : vector<1x1x16x16x128xf32>
    %7 = vector.broadcast %4 : vector<1x1x1x1x128xf32> to vector<1x1x16x16x128xf32>
    %8 = arith.addf %6, %7 : vector<1x1x16x16x128xf32>
    %cst = arith.constant 0.000000e+00 : f32
    %9 = vector.broadcast %cst : f32 to vector<1x1x16x16x128xf32>
    %10 = arith.maximumf %8, %9 : vector<1x1x16x16x128xf32>
    %c0_8 = arith.constant 0 : index
    %c0_9 = arith.constant 0 : index
    %c0_10 = arith.constant 0 : index
    %c0_11 = arith.constant 0 : index
    %c0_12 = arith.constant 0 : index
    %11 = vector.load %arg5[%c0_8, %c0_9, %c0_10, %c0_11, %c0_12] : memref<1x1x16x16x128xf32, #tpu.memory_space<vmem>>, vector<1x1x16x16x128xf32>
    tpu.vector_store %arg5[%c0_8, %c0_9, %c0_10, %c0_11, %c0_12], %10 {strides = array<i32>} : memref<1x1x16x16x128xf32, #tpu.memory_space<vmem>>, vector<1x1x16x16x128xf32>,
    return
  }
  func.func @transform_0(%arg0: i32, %arg1: i32) -> (i32, i32, i32, i32, i32) {
    %c0_i32 = arith.constant 0 : i32
    %c0_i32_0 = arith.constant 0 : i32
    %c0_i32_1 = arith.constant 0 : i32
    %c0_i32_2 = arith.constant 0 : i32
    return %arg0, %arg1, %c0_i32, %c0_i32_0, %c0_i32_1 : i32, i32, i32, i32, i32
  }
  func.func @transform_1(%arg0: i32, %arg1: i32) -> (i32, i32) {
    %c0_i32 = arith.constant 0 : i32
    %c0_i32_0 = arith.constant 0 : i32
    %c0_i32_1 = arith.constant 0 : i32
    return %c0_i32, %c0_i32_0 : i32, i32
  }
  func.func @transform_2(%arg0: i32, %arg1: i32) -> (i32, i32) {
    %c0_i32 = arith.constant 0 : i32
    %c0_i32_0 = arith.constant 0 : i32
    %c0_i32_1 = arith.constant 0 : i32
    return %c0_i32, %c0_i32_0 : i32, i32
  }
  func.func @transform_3(%arg0: i32, %arg1: i32) -> (i32, i32, i32, i32, i32) {
    %c0_i32 = arith.constant 0 : i32
    %c0_i32_0 = arith.constant 0 : i32
    %c0_i32_1 = arith.constant 0 : i32
    %c0_i32_2 = arith.constant 0 : i32
    return %arg0, %arg1, %c0_i32, %c0_i32_0, %c0_i32_1 : i32, i32, i32, i32, i32
  }
}

</mosaic_0001>

<bundles_post_ra>
// kernel: double_conv3d_forward.3
= control target key start
LH: loop header
LB: loop body
LE: loop exit
PB: predicated region body
PF: predicated region fallthrough
CT: control target
= control target key end

     0   :  { %s4911_s12 = smov 0   ;;  %s4913_s13 = smov 0   ;;  %s6460_s0 = inlined_call_operand.vmem [shape: bf16[2,10,18,18,128], index: 0, kind: input, shape index: {}]   ;;  %s6461_s1 = inlined_call_operand.vmem [shape: bf16[3,1152,128], index: 1, kind: input, shape index: {}]   ;;  %s6462_s2 = inlined_call_operand.vmem [shape: f32[2,8,16,16,128], index: 2, kind: output, shape index: {0}]   ;;  %s6463_s3 = inlined_call_operand.vmem [shape: f32[2,8,2,128], index: 3, kind: output, shape index: {1}]  }
   0x1   :  { %s4915_s14 = smov 0   ;;  %s4917_s15 = smov 0  }
   0x2   :  { %s4919_s16 = smov 0   ;;  %s4921_s17 = smov 0  }
   0x3   :  { %s4923_s18 = smov 0  }
   0x4 LB: > { %s26_s19 = sadd.s32 1, %s4876_s15  ;;  %s29_s20 = sadd.s32 1, %s4880_s16  ;;  %s4888_s18 = sphi %s4923_s18, %s14_s18   ;;  %s4884_s17 = sphi %s4921_s17, %s6645_s17   ;;  %s4880_s16 = sphi %s4919_s16, %s6644_s16   ;;  %s4876_s15 = sphi %s4917_s15, %s6643_s15   ;;  %s4872_s14 = sphi %s4915_s14, %s6642_s14   ;;  %s4868_s13 = sphi %s4913_s13, %s6641_s13   ;;  %s4864_s12 = sphi %s4911_s12, %s6640_s12  }
   0x5   : > { %p27_p0 = scmp.ge.s32.totalorder %s26_s19, 3  ;;  %p3853_p1 = scmp.ge.s32.totalorder %s4888_s18, 1 }
   0x6   : > { %p173_p2 = scmp.lt.s32.totalorder %s4888_s18, 49  ;;  %s33_s21 = sadd.s32 1, %s4884_s17 }
   0x7   : > { %s6647_s19 = smov (%p27_p0, %s26_s19), 0  ;;  %s6649_s20 = smov (!%p27_p0, %s29_s20), %s4880_s16 }
   0x8   : > { %6491 = sst [smem:[#allocation3_spill]] %s6647_s19  ;;  %p174_p3 = pnand %p3853_p1, %p173_p2 }
   0x9   : > { %p31_p4 = scmp.ge.s32.totalorder %s6649_s20, 8  ;;  %s4959_s22 = sadd.s32 (!%p174_p3), %s4864_s12, %s4868_s13 }
   0xa   : > { %p215_p6 = scmp.lt.s32.totalorder (!%p174_p3), %s4872_s14, 1  ;;  %p217_p7 = scmp.lt.s32.totalorder (!%p174_p3), %s4959_s22, 9 }
   0xb   : > { %s6651_s20 = smov (%p31_p4, %s6649_s20), 0  ;;  %s6653_s21 = smov (!%p31_p4, %s33_s21), %s4884_s17 }
   0xc   : > { %6492 = sst [smem:[#allocation4_spill]] %s6651_s20  ;;  %p35_p5 = scmp.ge.s32.totalorder %s6653_s21, 2 }
   0xd   : > { %177 = sbr.rel (%p174_p3) target bundleno = 686 (0x2ae), region = 28  ;;  %p227_p8 = scmp.lt.s32.totalorder (!%p174_p3), %s4868_s13, 7 }
   0xe   : > { %s6655_s21 = smov (%p35_p5, %s6653_s21), 0  ;;  %p3860_p9 = scmp.ne.s32.totalorder (!%p174_p3), %s4864_s12, 0 }
   0xf   : > { %6493 = sst [smem:[#allocation5_spill]] %s6655_s21 }
  0x12   : > { %s6657_s14 = smov (!%p215_p6, %s4872_s14), 1  ;;  %s6659_s13 = smov (!%p227_p8, %s4868_s13), 7 }
  0x13   : > { %s218_s23 = scalar_select %p217_p7, %s4959_s22, 9 }
  0x14   : > { %s4675_s24 = smul.u32 540, %s6657_s14  ;;  %s3856_s26 = sshll.u32 %s6657_s14, 8 }
  0x15   : > { %s4674_s25 = smul.u32 54, %s218_s23  ;;  %s3858_s28 = sshll.u32 %s6657_s14, 3 }
  0x16   : > { %s3855_s30 = sshll.u32 %s6659_s13, 5  ;;  %s239_s9 = sadd.s32 %s3858_s28, %s6659_s13 }
  0x17   : > { %s221_s27 = sadd.s32 %s4675_s24, %s4674_s25  ;;  %s231_s7 = sadd.s32 %s3856_s26, %s3855_s30 }
  0x18   : > { %s3854_s29 = sshll.u32 %s221_s27, 2  ;;  %s3857_s8 = sshll.u32 %s231_s7, 3 }
  0x19   : > { %s4968_s6 = scalar_lea.vmem %s6460_s0, %s3854_s29  ;;  %s4973_s21 = scalar_lea.vmem %s6462_s2, %s3857_s8 }
  0x1a   : > { %s3859_s23 = sshll.u32 %s239_s9, 1  ;;  %246 = sbr.rel (%p3860_p9) target bundleno = 48 (0x30), region = 32 }
  0x1b   : > { %s4978_s14 = scalar_lea.vmem %s6463_s3, %s3859_s23 }
  0x1f   : > { %v4890_v0 = vmov 0.0  }
  0x20   : > { %247 = vst [vmem:[#allocation2 + $0xb0] sm:$0xff] %v4890_v0  ;;  %248 = vst [vmem:[#allocation2] sm:$0xff] %v4890_v0 }
  0x21   : > { %249 = vst [vmem:[#allocation2 + $0xd8] sm:$0xff] %v4890_v0  ;;  %250 = vst [vmem:[#allocation2 + $0x18] sm:$0xff] %v4890_v0 }
  0x22   : > { %251 = vst [vmem:[#allocation2 + $0x50] sm:$0xff] %v4890_v0  ;;  %252 = vst [vmem:[#allocation2 + $0x68] sm:$0xff] %v4890_v0 }
  0x23   : > { %253 = vst [vmem:[#allocation2 + $0x30] sm:$0xff] %v4890_v0  ;;  %254 = vst [vmem:[#allocation2 + $0x48] sm:$0xff] %v4890_v0 }
  0x24   : > { %255 = vst [vmem:[#allocation2 + $0x80] sm:$0xff] %v4890_v0  ;;  %256 = vst [vmem:[#allocation2 + $0x88] sm:$0xff] %v4890_v0 }
  0x25   : > { %257 = vst [vmem:[#allocation2 + $0xe8] sm:$0xff] %v4890_v0  ;;  %258 = vst [vmem:[#allocation2 + $0xb8] sm:$0xff] %v4890_v0 }
  0x26   : > { %259 = vst [vmem:[#allocation2 + $0x60] sm:$0xff] %v4890_v0  ;;  %260 = vst [vmem:[#allocation2 + $0xf0] sm:$0xff] %v4890_v0 }
  0x27   : > { %261 = vst [vmem:[#allocation2 + $0x8] sm:$0xff] %v4890_v0  ;;  %262 = vst [vmem:[#allocation2 + $0x78] sm:$0xff] %v4890_v0 }
  0x28   : > { %263 = vst [vmem:[#allocation2 + $0x38] sm:$0xff] %v4890_v0  ;;  %264 = vst [vmem:[#allocation2 + $0x58] sm:$0xff] %v4890_v0 }
  0x29   : > { %265 = vst [vmem:[#allocation2 + $0x40] sm:$0xff] %v4890_v0  ;;  %266 = vst [vmem:[#allocation2 + $0xc8] sm:$0xff] %v4890_v0 }
  0x2a   : > { %267 = vst [vmem:[#allocation2 + $0xe0] sm:$0xff] %v4890_v0  ;;  %268 = vst [vmem:[#allocation2 + $0x90] sm:$0xff] %v4890_v0 }
  0x2b   : > { %269 = vst [vmem:[#allocation2 + $0x70] sm:$0xff] %v4890_v0  ;;  %270 = vst [vmem:[#allocation2 + $0xc0] sm:$0xff] %v4890_v0 }
  0x2c   : > { %271 = vst [vmem:[#allocation2 + $0xa8] sm:$0xff] %v4890_v0  ;;  %272 = vst [vmem:[#allocation2 + $0xd0] sm:$0xff] %v4890_v0 }
  0x2d   : > { %273 = vst [vmem:[#allocation2 + $0x10] sm:$0xff] %v4890_v0  ;;  %274 = vst [vmem:[#allocation2 + $0x28] sm:$0xff] %v4890_v0 }
  0x2e   : > { %275 = vst [vmem:[#allocation2 + $0xa0] sm:$0xff] %v4890_v0  ;;  %276 = vst [vmem:[#allocation2 + $0xf8] sm:$0xff] %v4890_v0 }
  0x2f   : > { %277 = vst [vmem:[#allocation2 + $0x20] sm:$0xff] %v4890_v0  ;;  %278 = vst [vmem:[#allocation2 + $0x98] sm:$0xff] %v4890_v0 }
  0x30 PF: > { %p280_p10 = scmp.eq.s32.totalorder %s4959_s22, 0  ;;  %p281_p11 = scmp.eq.s32.totalorder %s4959_s22, 9 }
  0x32   : > { %p282_p12 = por %p281_p11, %p280_p10 }
  0x34   : > { %285 = sbr.rel (%p282_p12) target bundleno = 600 (0x258), region = 36 }
  0x39   : > { %s4009_s13 = smul.u32 576, %s4864_s12  ;;  %v4985_v1 = vld [vmem:[%s4968_s6] sm:$0xf]  ;;  %v4988_v2 = vld [vmem:[%s4968_s6 + $0x4] sm:$0xf]  ;;  %v6494_v13 = vmov 0 }
  0x3a   : > { %v4991_v3 = vld [vmem:[%s4968_s6 + $0x8] sm:$0x1]  ;;  %vm487_vm0 = vsmask.f32 3328  ;;  %vm488_vm1 = vsmask.f32 7440 }
  0x3b   : > { %s4996_s24 = scalar_lea.vmem %s6461_s1, %s4009_s13  ;;  %v491_v4 = vshrl.u32 %v4985_v1, 16  ;;  %v494_v5 = vshll.u32 %v4985_v1, 16  ;;  %v500_v6 = vshll.u32 %v4988_v2, 16  ;;  %v504_v8 = vshrl.u32 %v4988_v2, 16  ;;  %vm5006_vm2 = vmor %vm487_vm0, %vm488_vm1  ;;  %v310_v18 = vld [vmem:[%s4968_s6 + $0x60] sm:$0xf] }
  0x3c   : > { %v4733_v7 = vld [vmem:[%s4996_s24 + $0x78] sm:$0xff]   ;;  %v4734_v9 = vld [vmem:[%s4996_s24 + $0x70] sm:$0xff]   ;;  %v510_v12 = vshll.u32 %v4991_v3, 16  ;;  %v6495_v13 = vsel %vm5006_vm2, 4294967295, %v6494_v13  ;;  %v4735_v15 = vld [vmem:[%s4996_s24 + $0x68] sm:$0xff]   ;;  %v683_v27 = vshrl.u32 %v310_v18, 16 }
  0x3d   : > { %v493_v10 = vrot.slane %v491_v4, 4  ;;  %4226 = vmatprep.subr.bf16.mxu0 %v4733_v7  ;;  %4658 = vmatprep.subr.bf16.mxu1 %v4733_v7  ;;  %v496_v11 = vrot.slane %v494_v5, 5  ;;  %6496 = vst [vmem:[#allocation6_spill] sm:$0xff] %v6495_v13  ;;  %v502_v14 = vrot.slane %v500_v6, 5  ;;  %v506_v17 = vrot.slane %v504_v8, 4  ;;  %v4736_v22 = vld [vmem:[%s4996_s24 + $0x60] sm:$0xff]  }
  0x3e   : > { %4227 = vmatpush3.bf16.msra.mxu0 %v4733_v7  ;;  %4666 = vmatpush3.bf16.msra.mxu1 %v4733_v7  ;;  %v512_v21 = vrot.slane %v510_v12, 5  ;;  %v311_v25 = vld [vmem:[%s4968_s6 + $0x64] sm:$0xf]  ;;  %v312_v26 = vld [vmem:[%s4968_s6 + $0x68] sm:$0x1]  ;;  %v686_v28 = vshll.u32 %v310_v18, 16 }
  0x3f   : > { %4228 = vmatprep.subr.bf16.mxu0 %v4734_v9  ;;  %4659 = vmatprep.subr.bf16.mxu1 %v4734_v9  ;;  %v497_v16 = vor.u32 %v496_v11, %v493_v10  ;;  %v507_v20 = vor.u32 %v506_v17, %v502_v14  ;;  %v692_v29 = vshll.u32 %v311_v25, 16  ;;  %v696_v30 = vshrl.u32 %v311_v25, 16  ;;  %v5018_v32 = vld [vmem:[%s4968_s6 + $0xc] sm:$0xf]  ;;  %v5023_v35 = vld [vmem:[%s4968_s6 + $0x10] sm:$0xf] }
  0x40   : > { %v702_v31 = vshll.u32 %v312_v26, 16  ;;  %v685_v34 = vrot.slane %v683_v27, 4  ;;  %v5026_v36 = vld [vmem:[%s4968_s6 + $0x14] sm:$0x1]  ;;  %v515_v37 = vshrl.u32 %v5018_v32, 16  ;;  %v688_v39 = vrot.slane %v686_v28, 5 }
  0x41   : > { %v498_v19 = vrot.slane %v497_v16, 4  ;;  %v508_v24 = vrot.slane %v507_v20, 4  ;;  %v694_v40 = vrot.slane %v692_v29, 5  ;;  %v698_v41 = vrot.slane %v696_v30, 4  ;;  %v313_v42 = vld [vmem:[%s4968_s6 + $0x6c] sm:$0xf] }
  0x42   : > { %4229 = vmatpush3.bf16.msra.mxu0 %v4734_v9  ;;  %4667 = vmatpush3.bf16.msra.mxu1 %v4734_v9  ;;  %v4737_v43 = vld [vmem:[%s4996_s24 + $0x58] sm:$0xff]   ;;  %v704_v44 = vrot.slane %v702_v31, 5  ;;  %v517_v45 = vrot.slane %v515_v37, 4  ;;  %v518_v46 = vshll.u32 %v5018_v32, 16  ;;  %v524_v47 = vshll.u32 %v5023_v35, 16  ;;  %v4738_v62 = vld [vmem:[%s4996_s24 + $0x50] sm:$0xff]  }
  0x43   : > { %4230 = vmatprep.subr.bf16.mxu0 %v4735_v15  ;;  %4660 = vmatprep.subr.bf16.mxu1 %v4735_v15  ;;  %v503_v23 = vsel %vm5006_vm2, %v498_v19, %v502_v14  ;;  %v513_v33 = vsel %vm5006_vm2, %v508_v24, %v512_v21  ;;  %v689_v48 = vor.u32 %v688_v39, %v685_v34  ;;  %v528_v50 = vshrl.u32 %v5023_v35, 16  ;;  %v314_v52 = vld [vmem:[%s4968_s6 + $0x70] sm:$0xf]  ;;  %v315_v56 = vld [vmem:[%s4968_s6 + $0x74] sm:$0x1] }
  0x44   : > { %v3862_v38 = vcombine.low %v503_v23, %v513_v33  ;;  %v699_v49 = vor.u32 %v698_v41, %v694_v40  ;;  %v534_v51 = vshll.u32 %v5026_v36, 16  ;;  %v520_v54 = vrot.slane %v518_v46, 5  ;;  %v5056_v23 = vld [vmem:[%s4968_s6 + $0x1c] sm:$0xf]  ;;  %v5059_v24 = vld [vmem:[%s4968_s6 + $0x20] sm:$0x1] }
  0x45   : > { %v526_v55 = vrot.slane %v524_v47, 5  ;;  %v707_v57 = vshrl.u32 %v313_v42, 16  ;;  %v690_v58 = vrot.slane %v689_v48, 4  ;;  %v530_v60 = vrot.slane %v528_v50, 4  ;;  %v316_v29 = vld [vmem:[%s4968_s6 + $0x78] sm:$0xf] }
  0x46   : > { %4231 = vmatpush3.bf16.msra.mxu0 %v4735_v15  ;;  %4668 = vmatpush3.bf16.msra.mxu1 %v4735_v15  ;;  %v700_v59 = vrot.slane %v699_v49, 4  ;;  %v536_v61 = vrot.slane %v534_v51, 5  ;;  %v521_v63 = vor.u32 %v520_v54, %v517_v45  ;;  %v710_v4 = vshll.u32 %v313_v42, 16  ;;  %v4739_v15 = vld [vmem:[%s4996_s24 + $0x48] sm:$0xff]   ;;  %v317_v41 = vld [vmem:[%s4968_s6 + $0x7c] sm:$0xf] }
  0x47   : > { %4232 = vmatprep.subr.bf16.mxu0 %v4736_v22  ;;  %4661 = vmatprep.subr.bf16.mxu1 %v4736_v22  ;;  %v709_v0 = vrot.slane %v707_v57, 4  ;;  %v716_v5 = vshll.u32 %v314_v52, 16  ;;  %v695_v6 = vsel %vm5006_vm2, %v690_v58, %v694_v40  ;;  %v531_v8 = vor.u32 %v530_v60, %v526_v55  ;;  %v4740_v42 = vld [vmem:[%s4996_s24 + $0x40] sm:$0xff]   ;;  %v4742_v60 = vld [vmem:[%s4996_s24 + $0xb8] sm:$0xff]  }
  0x48   : > { %4242 = vmatprep.mubr.bf16.mxu0 %v3862_v38  ;;  %v705_v7 = vsel %vm5006_vm2, %v700_v59, %v704_v44  ;;  %v720_v9 = vshrl.u32 %v314_v52, 16  ;;  %v522_v11 = vrot.slane %v521_v63, 4  ;;  %v712_v12 = vrot.slane %v710_v4, 5  ;;  %v318_v46 = vld [vmem:[%s4968_s6 + $0x80] sm:$0x1] }
  0x49   : > { %v5043_v10 = vcombine.low %v695_v6, %v705_v7  ;;  %v718_v14 = vrot.slane %v716_v5, 5  ;;  %v532_v16 = vrot.slane %v531_v8, 4  ;;  %v726_v18 = vshll.u32 %v315_v56, 16  ;;  %v5080_v52 = vld [vmem:[%s4968_s6 + $0x24] sm:$0xf] }
  0x4a   : > { %4233 = vmatpush3.bf16.msra.mxu0 %v4736_v22  ;;  %4669 = vmatpush3.bf16.msra.mxu1 %v4736_v22  ;;  %v722_v17 = vrot.slane %v720_v9, 4  ;;  %v5048_v19 = vcombine.low %v5018_v32, %v5023_v35  ;;  %v527_v20 = vsel %vm5006_vm2, %v522_v11, %v526_v55  ;;  %v713_v21 = vor.u32 %v712_v12, %v709_v0  ;;  %v5053_v22 = vld [vmem:[%s4968_s6 + $0x18] sm:$0xf]  ;;  %v5086_v59 = vld [vmem:[%s4968_s6 + $0x28] sm:$0xf] }
  0x4b   : > { %4234 = vmatprep.subr.bf16.mxu0 %v4737_v43  ;;  %4662 = vmatprep.subr.bf16.mxu1 %v4737_v43  ;;  %6497 = vst [vmem:[#allocation7_spill] sm:$0xff] %v5043_v10  ;;  %v537_v25 = vsel %vm5006_vm2, %v532_v16, %v536_v61  ;;  %v728_v27 = vrot.slane %v726_v18, 5  ;;  %v539_v28 = vshrl.u32 %v5053_v22, 16  ;;  %v542_v33 = vshll.u32 %v5053_v22, 16  ;;  %v4741_v55 = vld [vmem:[%s4996_s24 + $0x38] sm:$0xff]   ;;  %v4744_v18 = vld [vmem:[%s4996_s24 + $0xb0] sm:$0xff]  }
  0x4c   : > { %4258 = vmatprep.mubr.bf16.mxu1 %v5043_v10  ;;  %v723_v26 = vor.u32 %v722_v17, %v718_v14  ;;  %v5066_v30 = vcombine.low %v527_v20, %v537_v25  ;;  %v714_v31 = vrot.slane %v713_v21, 4  ;;  %v548_v34 = vshll.u32 %v5056_v23, 16  ;;  %v5090_v4 = vld [vmem:[%s4968_s6 + $0x2c] sm:$0x1]  ;;  %v5095_v9 = vld [vmem:[%s4968_s6 + $0x84] sm:$0xf] }
  0x4d   : > { %v541_v38 = vrot.slane %v539_v28, 4  ;;  %v552_v39 = vshrl.u32 %v5056_v23, 16  ;;  %v558_v40 = vshll.u32 %v5059_v24, 16  ;;  %v544_v44 = vrot.slane %v542_v33, 5  ;;  %v5098_v16 = vld [vmem:[%s4968_s6 + $0x88] sm:$0xf] }
  0x4e   : > { %4235 = vmatpush3.bf16.msra.mxu0 %v4737_v43  ;;  %4670 = vmatpush3.bf16.msra.mxu1 %v4737_v43  ;;  %6498 = vst [vmem:[#allocation8_spill] sm:$0xff] %v5066_v30  ;;  %v724_v37 = vrot.slane %v723_v26, 4  ;;  %v719_v43 = vsel %vm5006_vm2, %v714_v31, %v718_v14  ;;  %v550_v45 = vrot.slane %v548_v34, 5  ;;  %v731_v47 = vshrl.u32 %v316_v29, 16  ;;  %v4743_v17 = vld [vmem:[%s4996_s24 + $0x30] sm:$0xff]  }
  0x4f   : > { %4236 = vmatprep.subr.bf16.mxu0 %v4738_v62  ;;  %4663 = vmatprep.subr.bf16.mxu1 %v4738_v62  ;;  %v554_v49 = vrot.slane %v552_v39, 4  ;;  %v560_v50 = vrot.slane %v558_v40, 5  ;;  %v734_v51 = vshll.u32 %v316_v29, 16  ;;  %v545_v56 = vor.u32 %v544_v44, %v541_v38  ;;  %v5112_v39 = vld [vmem:[%s4968_s6 + $0x8c] sm:$0x1] }
  0x50   : > { %v729_v48 = vsel %vm5006_vm2, %v724_v37, %v728_v27  ;;  %v733_v57 = vrot.slane %v731_v47, 4  ;;  %v740_v58 = vshll.u32 %v317_v41, 16  ;;  %v744_v63 = vshrl.u32 %v317_v41, 16 }
  0x51   : > { %v5082_v54 = vcombine.low %v719_v43, %v729_v48  ;;  %v555_v61 = vor.u32 %v554_v49, %v550_v45  ;;  %v750_v0 = vshll.u32 %v318_v46, 16  ;;  %v546_v5 = vrot.slane %v545_v56, 4  ;;  %v5122_v48 = vld [vmem:[%s4968_s6 + $0x30] sm:$0xf] }
  0x52   : > { %4237 = vmatpush3.bf16.msra.mxu0 %v4738_v62  ;;  %4671 = vmatpush3.bf16.msra.mxu1 %v4738_v62  ;;  %v736_v62 = vrot.slane %v734_v51, 5  ;;  %v742_v6 = vrot.slane %v740_v58, 5  ;;  %v563_v7 = vshrl.u32 %v5080_v52, 16  ;;  %v566_v8 = vshll.u32 %v5080_v52, 16 }
  0x53   : > { %4238 = vmatprep.subr.bf16.mxu0 %v4739_v15  ;;  %4664 = vmatprep.subr.bf16.mxu1 %v4739_v15  ;;  %6499 = vst [vmem:[#allocation9_spill] sm:$0xff] %v5082_v54  ;;  %v556_v11 = vrot.slane %v555_v61, 4  ;;  %v746_v14 = vrot.slane %v744_v63, 4  ;;  %v551_v20 = vsel %vm5006_vm2, %v546_v5, %v550_v45  ;;  %v572_v26 = vshll.u32 %v5086_v59, 16  ;;  %v4746_v63 = vld [vmem:[%s4996_s24 + $0xa8] sm:$0xff]  }
  0x54   : > { %v737_v12 = vor.u32 %v736_v62, %v733_v57  ;;  %v565_v21 = vrot.slane %v563_v7, 4  ;;  %v568_v25 = vrot.slane %v566_v8, 5  ;;  %v576_v31 = vshrl.u32 %v5086_v59, 16  ;;  %v5128_v57 = vld [vmem:[%s4968_s6 + $0x34] sm:$0xf]  ;;  %v4745_v62 = vld [vmem:[%s4996_s24 + $0x28] sm:$0xff]  }
  0x55   : > { %v561_v27 = vsel %vm5006_vm2, %v556_v11, %v560_v50  ;;  %v747_v29 = vor.u32 %v746_v14, %v742_v6  ;;  %v574_v37 = vrot.slane %v572_v26, 5  ;;  %v582_v38 = vshll.u32 %v5090_v4, 16  ;;  %v5139_v7 = vld [vmem:[%s4968_s6 + $0x38] sm:$0x1] }
  0x56   : > { %4239 = vmatpush3.bf16.msra.mxu0 %v4739_v15  ;;  %4672 = vmatpush3.bf16.msra.mxu1 %v4739_v15  ;;  %v752_v15 = vrot.slane %v750_v0, 5  ;;  %v738_v28 = vrot.slane %v737_v12, 4  ;;  %v5108_v33 = vcombine.low %v551_v20, %v561_v27  ;;  %v569_v34 = vor.u32 %v568_v25, %v565_v21  ;;  %v5147_v20 = vld [vmem:[%s4968_s6 + $0x90] sm:$0xf]  ;;  %v4747_v27 = vld [vmem:[%s4996_s24 + $0x20] sm:$0xff]  }
  0x57   : > { %4240 = vmatprep.subr.bf16.mxu0 %v4740_v42  ;;  %4665 = vmatprep.subr.bf16.mxu1 %v4740_v42  ;;  %v748_v41 = vrot.slane %v747_v29, 4  ;;  %v755_v43 = vshrl.u32 %v5095_v9, 16  ;;  %v584_v45 = vrot.slane %v582_v38, 5  ;;  %v758_v46 = vshll.u32 %v5095_v9, 16  ;;  %v5153_v29 = vld [vmem:[%s4968_s6 + $0x94] sm:$0xf] }
  0x58   : > { %6500 = vst [vmem:[#allocation10_spill] sm:$0xff] %v5108_v33  ;;  %v743_v40 = vsel %vm5006_vm2, %v738_v28, %v742_v6  ;;  %v570_v44 = vrot.slane %v569_v34, 4  ;;  %v764_v47 = vshll.u32 %v5098_v16, 16  ;;  %v768_v56 = vshrl.u32 %v5098_v16, 16  ;;  %v5159_v38 = vld [vmem:[%s4968_s6 + $0x98] sm:$0x1] }
  0x59   : > { %v753_v49 = vsel %vm5006_vm2, %v748_v41, %v752_v15  ;;  %v757_v51 = vrot.slane %v755_v43, 4  ;;  %v774_v6 = vshll.u32 %v5112_v39, 16  ;;  %v587_v8 = vshrl.u32 %v5122_v48, 16 }
  0x5a   : > { %4241 = vmatpush3.bf16.msra.mxu0 %v4740_v42  ;;  %4673 = vmatpush3.bf16.msra.mxu1 %v4740_v42  ;;  %v578_v42 = vrot.slane %v576_v31, 4  ;;  %v5130_v58 = vcombine.low %v743_v40, %v753_v49  ;;  %v575_v61 = vsel %vm5006_vm2, %v570_v44, %v574_v37  ;;  %v770_v5 = vrot.slane %v768_v56, 4  ;;  %v5164_v44 = vld [vmem:[%s4968_s6 + $0x3c] sm:$0xf] }
  0x5b   : > { %4274 = vmatprep.subr.bf16.mxu1 %v4741_v55  ;;  %4322 = vmatprep.subr.bf16.mxu0 %v4742_v60  ;;  %v590_v12 = vshll.u32 %v5122_v48, 16  ;;  %v596_v14 = vshll.u32 %v5128_v57, 16  ;;  %v600_v15 = vshrl.u32 %v5128_v57, 16  ;;  %v776_v26 = vrot.slane %v774_v6, 5 }
  0x5c   : > { %v579_v50 = vor.u32 %v578_v42, %v574_v37  ;;  %6501 = vst [vmem:[#allocation11_spill] sm:$0xff] %v5130_v58  ;;  %v589_v28 = vrot.slane %v587_v8, 4  ;;  %v4748_v37 = vld [vmem:[%s4996_s24 + $0xa0] sm:$0xff]   ;;  %v606_v42 = vshll.u32 %v5139_v7, 16  ;;  %v779_v43 = vshrl.u32 %v5147_v20, 16 }
  0x5d   : > { %4243 = vmatmul.mubr.bf16.vlgmr.msra.gmra.mxu0 %v5066_v30  ;;  %4259 = vmatmul.mubr.bf16.vlgmr.msra.gmra.mxu1 %v5082_v54  ;;  %v602_v41 = vrot.slane %v600_v15, 4  ;;  %v788_v49 = vshll.u32 %v5153_v29, 16  ;;  %vm1468_vm3 = vcmask 1042432   ;;  %vm1469_vm4 = vcmask 1046532  }
  0x5e   : > { %4275 = vmatpush3.bf16.msra.mxu1 %v4741_v55  ;;  %4323 = vmatpush3.bf16.msra.mxu0 %v4742_v60  ;;  %v760_v55 = vrot.slane %v758_v46, 5  ;;  %v766_v60 = vrot.slane %v764_v47, 5  ;;  %v580_v0 = vrot.slane %v579_v50, 4  ;;  %v782_v47 = vshll.u32 %v5147_v20, 16  ;;  %v5172_v50 = vld [vmem:[%s4968_s6 + $0x40] sm:$0xf]  ;;  %vm5326_vm5 = vmor %vm1468_vm3, %vm1469_vm4 }
  0x5f   : > { %4276 = vmatprep.subr.bf16.mxu1 %v4743_v17  ;;  %4324 = vmatprep.subr.bf16.mxu0 %v4744_v18  ;;  %v790_v8 = vrot.slane %v788_v49, 5  ;;  %v4751_v49 = vld [vmem:[%s4996_s24 + $0x10] sm:$0xff]  }
  0x60   : > { %4246 = vmatprep.mubr.bf16.mxu0 %v5108_v33  ;;  %4262 = vmatprep.mubr.bf16.mxu1 %v5130_v58  ;;  %v761_v11 = vor.u32 %v760_v55, %v757_v51  ;;  %v585_v21 = vsel %vm5006_vm2, %v580_v0, %v584_v45  ;;  %v771_v25 = vor.u32 %v770_v5, %v766_v60  ;;  %v4749_v51 = vld [vmem:[%s4996_s24 + $0x18] sm:$0xff]   ;;  %v608_v55 = vrot.slane %v606_v42, 5 }
  0x61   : > { %v5155_v31 = vcombine.low %v575_v61, %v585_v21  ;;  %v784_v6 = vrot.slane %v782_v47, 5  ;;  %v611_v21 = vshrl.u32 %v5164_v44, 16 }
  0x62   : > { %4277 = vmatpush3.bf16.msra.mxu1 %v4743_v17  ;;  %4325 = vmatpush3.bf16.msra.mxu0 %v4744_v18  ;;  %v762_v34 = vrot.slane %v761_v11, 4  ;;  %v592_v17 = vrot.slane %v590_v12, 5  ;;  %v598_v18 = vrot.slane %v596_v14, 5  ;;  %v772_v40 = vrot.slane %v771_v25, 4  ;;  %v5180_v11 = vld [vmem:[%s4968_s6 + $0x44] sm:$0x1] }
  0x63   : > { %6502 = vst [vmem:[#allocation12_spill] sm:$0xff] %v5155_v31  ;;  %4278 = vmatprep.subr.bf16.mxu1 %v4745_v62  ;;  %4326 = vmatprep.subr.bf16.mxu0 %v4746_v63  ;;  %v5183_v12 = vld [vmem:[%s4968_s6 + $0x9c] sm:$0xf]  ;;  %v5190_v25 = vld [vmem:[%s4968_s6 + $0xa0] sm:$0xf] }
  0x64   : > { %v767_v45 = vsel %vm5006_vm2, %v762_v34, %v766_v60  ;;  %v593_v46 = vor.u32 %v592_v17, %v589_v28  ;;  %v777_v56 = vsel %vm5006_vm2, %v772_v40, %v776_v26  ;;  %v603_v61 = vor.u32 %v602_v41, %v598_v18  ;;  %v4750_v14 = vld [vmem:[%s4996_s24 + $0x98] sm:$0xff]  }
  0x65   : > { %4247 = vmatmul.mubr.bf16.gmra.mxu0 %v5155_v31  ;;  %v781_v60 = vrot.slane %v779_v43, 4  ;;  %v5177_v0 = vcombine.low %v767_v45, %v777_v56  ;;  %v614_v34 = vshll.u32 %v5164_v44, 16  ;;  %v620_v17 = vshll.u32 %v5172_v50, 16  ;;  %v4752_v56 = vld [vmem:[%s4996_s24 + $0x90] sm:$0xff]   ;;  %v5268_v31 = vld [vmem:[%s4996_s24 + $0xf8] sm:$0xff]  }
  0x66   : > { %4279 = vmatpush3.bf16.msra.mxu1 %v4745_v62  ;;  %4327 = vmatpush3.bf16.msra.mxu0 %v4746_v63  ;;  %v594_v5 = vrot.slane %v593_v46, 4  ;;  %v604_v15 = vrot.slane %v603_v61, 4  ;;  %v792_v62 = vshrl.u32 %v5153_v29, 16  ;;  %v798_v63 = vshll.u32 %v5159_v38, 16 }
  0x67   : > { %6503 = vst [vmem:[#allocation13_spill] sm:$0xff] %v5177_v0  ;;  %4280 = vmatprep.subr.bf16.mxu1 %v4747_v27  ;;  %4328 = vmatprep.subr.bf16.mxu0 %v4748_v37  ;;  %v785_v28 = vor.u32 %v784_v6, %v781_v60  ;;  %v613_v43 = vrot.slane %v611_v21, 4  ;;  %v5201_v47 = vrot.slane %v620_v17, 5  ;;  %v630_v61 = vshll.u32 %v5180_v11, 16  ;;  %v5212_v6 = vld [vmem:[%s4968_s6 + $0xa4] sm:$0x1] }
  0x68   : > { %4263 = vmatmul.mubr.bf16.gmra.mxu1 %v5177_v0  ;;  %v599_v26 = vsel %vm5006_vm2, %v594_v5, %v598_v18  ;;  %v609_v40 = vsel %vm5006_vm2, %v604_v15, %v608_v55  ;;  %v794_v41 = vrot.slane %v792_v62, 4  ;;  %v800_v42 = vrot.slane %v798_v63, 5  ;;  %v5217_v63 = vld [vmem:[%s4968_s6 + $0x48] sm:$0xf] }
  0x69   : > { %v5199_v45 = vcombine.low %v599_v26, %v609_v40  ;;  %v786_v46 = vrot.slane %v785_v28, 4  ;;  %v616_v18 = vrot.slane %v614_v34, 5  ;;  %v803_v55 = vshrl.u32 %v5183_v12, 16 }
  0x6a   : > { %4281 = vmatpush3.bf16.msra.mxu1 %v4747_v27  ;;  %4329 = vmatpush3.bf16.msra.mxu0 %v4748_v37  ;;  %v795_v27 = vor.u32 %v794_v41, %v790_v8  ;;  %v624_v37 = vshrl.u32 %v5172_v50, 16  ;;  %v806_v15 = vshll.u32 %v5183_v12, 16  ;;  %v812_v62 = vshll.u32 %v5190_v25, 16 }
  0x6b   : > { %6504 = vst [vmem:[#allocation14_spill] sm:$0xff] %v5199_v45  ;;  %4282 = vmatprep.subr.bf16.mxu1 %v4749_v51  ;;  %4330 = vmatprep.subr.bf16.mxu0 %v4750_v14  ;;  %v791_v60 = vsel %vm5006_vm2, %v786_v46, %v790_v8  ;;  %v617_v5 = vor.u32 %v616_v18, %v613_v43  ;;  %v632_v28 = vrot.slane %v630_v61, 5  ;;  %v805_v34 = vrot.slane %v803_v55, 4  ;;  %v4753_v43 = vld [vmem:[%s4996_s24 + $0x8] sm:$0xff]  }
  0x6c   : > { %4250 = vmatprep.mubr.bf16.mxu0 %v5199_v45  ;;  %v796_v21 = vrot.slane %v795_v27, 4  ;;  %v626_v26 = vrot.slane %v624_v37, 4  ;;  %v808_v8 = vrot.slane %v806_v15, 5  ;;  %v814_v40 = vrot.slane %v812_v62, 5  ;;  %v4754_v37 = vld [vmem:[%s4996_s24 + $0x88] sm:$0xff]  }
  0x6d   : > { %v618_v17 = vrot.slane %v617_v5, 4  ;;  %v816_v41 = vshrl.u32 %v5190_v25, 16  ;;  %v822_v27 = vshll.u32 %v5212_v6, 16  ;;  %v5239_v62 = vld [vmem:[%s4968_s6 + $0xa8] sm:$0xf] }
  0x6e   : > { %4283 = vmatpush3.bf16.msra.mxu1 %v4749_v51  ;;  %4331 = vmatpush3.bf16.msra.mxu0 %v4750_v14  ;;  %v801_v46 = vsel %vm5006_vm2, %v796_v21, %v800_v42  ;;  %v627_v18 = vor.u32 %v626_v26, %v5201_v47  ;;  %v5226_v51 = vld [vmem:[%s4968_s6 + $0x4c] sm:$0xf]  ;;  %v635_v14 = vshrl.u32 %v5217_v63, 16  ;;  %v809_v5 = vor.u32 %v808_v8, %v805_v34  ;;  %v5236_v42 = vld [vmem:[%s4968_s6 + $0x50] sm:$0x1] }
  0x6f   : > { %4284 = vmatprep.subr.bf16.mxu1 %v4751_v49  ;;  %4332 = vmatprep.subr.bf16.mxu0 %v4752_v56  ;;  %v5230_v61 = vcombine.low %v791_v60, %v801_v46  ;;  %v623_v55 = vsel %vm5006_vm2, %v618_v17, %v5201_v47  ;;  %v818_v15 = vrot.slane %v816_v41, 4  ;;  %v824_v26 = vrot.slane %v822_v27, 5  ;;  %v5243_v46 = vld [vmem:[%s4968_s6 + $0xac] sm:$0xf]  ;;  %v5249_v41 = vld [vmem:[%s4968_s6 + $0xb0] sm:$0x1] }
  0x70   : > { %v628_v21 = vrot.slane %v627_v18, 4  ;;  %v637_v53 = vrot.slane %v635_v14, 4  ;;  %v638_v60 = vshll.u32 %v5217_v63, 16  ;;  %v810_v47 = vrot.slane %v809_v5, 4  ;;  %6506 = vst [vmem:[#allocation16_spill] sm:$0xff] %v5249_v41 }
  0x71   : > { %6505 = vst [vmem:[#allocation15_spill] sm:$0xff] %v5230_v61  ;;  %4266 = vmatprep.mubr.bf16.mxu1 %v5230_v61  ;;  %v819_v34 = vor.u32 %v818_v15, %v814_v40  ;;  %v644_v17 = vshll.u32 %v5226_v51, 16  ;;  %v648_v8 = vshrl.u32 %v5226_v51, 16  ;;  %v654_v27 = vshll.u32 %v5236_v42, 16  ;;  %v5257_v5 = vld [vmem:[%s4968_s6 + $0x54] sm:$0xf] }
  0x72   : > { %4285 = vmatpush3.bf16.msra.mxu1 %v4751_v49  ;;  %4333 = vmatpush3.bf16.msra.mxu0 %v4752_v56  ;;  %v4755_v49 = vld [vmem:[%s4996_s24] sm:$0xff]   ;;  %v633_v56 = vsel %vm5006_vm2, %v628_v21, %v632_v28  ;;  %v640_v18 = vrot.slane %v638_v60, 5  ;;  %v827_v14 = vshrl.u32 %v5239_v62, 16  ;;  %v815_v0 = vsel %vm5006_vm2, %v810_v47, %v814_v40  ;;  %v5265_v45 = vld [vmem:[%s4968_s6 + $0x58] sm:$0xf] }
  0x73   : > { %4286 = vmatprep.subr.bf16.mxu1 %v4753_v43  ;;  %4334 = vmatprep.subr.bf16.mxu0 %v4754_v37  ;;  %v4756_v15 = vld [vmem:[%s4996_s24 + $0x80] sm:$0xff]   ;;  %v5260_v61 = vcombine.low %v623_v55, %v633_v56  ;;  %v820_v58 = vrot.slane %v819_v34, 4  ;;  %v646_v54 = vrot.slane %v644_v17, 5  ;;  %v650_v21 = vrot.slane %v648_v8, 4  ;;  %v5277_v34 = vld [vmem:[%s4968_s6 + $0x5c] sm:$0x1] }
  0x74   : > { %v641_v28 = vor.u32 %v640_v18, %v637_v53  ;;  %v656_v60 = vrot.slane %v654_v27, 5  ;;  %v829_v10 = vrot.slane %v827_v14, 4  ;;  %v830_v40 = vshll.u32 %v5239_v62, 16  ;;  %v5280_v17 = vld [vmem:[%s4996_s24 + $0x138] sm:$0xff]   ;;  %v5287_v14 = vld [vmem:[%s4968_s6 + $0xb4] sm:$0xf] }
  0x75   : > { %6507 = vst [vmem:[#allocation17_spill] sm:$0xff] %v5260_v61  ;;  %4251 = vmatmul.mubr.bf16.gmra.mxu0 %v5260_v61  ;;  %v825_v55 = vsel %vm5006_vm2, %v820_v58, %v824_v26  ;;  %v836_v47 = vshll.u32 %v5243_v46, 16  ;;  %v840_v53 = vshrl.u32 %v5243_v46, 16  ;;  %v651_v8 = vor.u32 %v650_v21, %v646_v54  ;;  %v5294_v61 = vld [vmem:[%s4968_s6 + $0xb8] sm:$0xf] }
  0x76   : > { %4287 = vmatpush3.bf16.msra.mxu1 %v4753_v43  ;;  %4335 = vmatpush3.bf16.msra.mxu0 %v4754_v37  ;;  %v5282_v43 = vcombine.low %v815_v0, %v825_v55  ;;  %v642_v37 = vrot.slane %v641_v28, 4  ;;  %v846_v56 = vshll.u32 %v5249_v41, 16  ;;  %v832_v58 = vrot.slane %v830_v40, 5 }
  0x77   : > { %4288 = vmatprep.subr.bf16.mxu1 %v4755_v49  ;;  %4336 = vmatprep.subr.bf16.mxu0 %v4756_v15  ;;  %v838_v26 = vrot.slane %v836_v47, 5  ;;  %v842_v18 = vrot.slane %v840_v53, 4  ;;  %v659_v27 = vshrl.u32 %v5257_v5, 16  ;;  %v652_v55 = vrot.slane %v651_v8, 4 }
  0x78   : > { %6508 = vst [vmem:[#allocation18_spill] sm:$0xff] %v5282_v43  ;;  %4267 = vmatmul.mubr.bf16.gmra.mxu1 %v5282_v43  ;;  %v647_v0 = vsel %vm5006_vm2, %v642_v37, %v646_v54  ;;  %v848_v28 = vrot.slane %v846_v56, 5  ;;  %v662_v21 = vshll.u32 %v5257_v5, 16  ;;  %v833_v40 = vor.u32 %v832_v58, %v829_v10  ;;  %v5303_v56 = vld [vmem:[%s4968_s6 + $0xbc] sm:$0x1] }
  0x79   : > { %v843_v47 = vor.u32 %v842_v18, %v838_v26  ;;  %v661_v53 = vrot.slane %v659_v27, 4  ;;  %v668_v33 = vshll.u32 %v5265_v45, 16  ;;  %v657_v43 = vsel %vm5006_vm2, %v652_v55, %v656_v60 }
  0x7a   : > { %4337 = vmatpush3.bf16.msra.mxu0 %v4756_v15  ;;  %4289 = vmatpush3.bf16.msra.mxu1 %v4755_v49  ;;  %v664_v54 = vrot.slane %v662_v21, 5  ;;  %v672_v37 = vshrl.u32 %v5265_v45, 16  ;;  %v678_v8 = vshll.u32 %v5277_v34, 16  ;;  %v5306_v10 = vcombine.low %v647_v0, %v657_v43 }
  0x7b   : > { %4418 = vmatprep.subr.bf16.mxu0 %v5280_v17  ;;  %4370 = vmatprep.subr.bf16.mxu1 %v5268_v31  ;;  %v834_v15 = vrot.slane %v833_v40, 4  ;;  %v844_v58 = vrot.slane %v843_v47, 4  ;;  %v670_v18 = vrot.slane %v668_v33, 5  ;;  %v851_v41 = vshrl.u32 %v5287_v14, 16 }
  0x7c   : > { %v665_v49 = vor.u32 %v664_v54, %v661_v53  ;;  %v674_v27 = vrot.slane %v672_v37, 4  ;;  %v680_v30 = vrot.slane %v678_v8, 5  ;;  %4254 = vmatprep.mubr.bf16.mxu0 %v5306_v10  ;;  %v854_v21 = vshll.u32 %v5287_v14, 16 }
  0x7d   : > { %v839_v60 = vsel %vm5006_vm2, %v834_v15, %v838_v26  ;;  %v849_v55 = vsel %vm5006_vm2, %v844_v58, %v848_v28  ;;  %v860_v43 = vshll.u32 %v5294_v61, 16  ;;  %v853_v47 = vrot.slane %v851_v41, 4 }
  0x7e   : > { %v5316_v0 = vcombine.low %v839_v60, %v849_v55  ;;  %v666_v33 = vrot.slane %v665_v49, 4  ;;  %v675_v40 = vor.u32 %v674_v27, %v670_v18  ;;  %v856_v53 = vrot.slane %v854_v21, 5 }
  0x7f   : > { %v862_v54 = vrot.slane %v860_v43, 5  ;;  %v864_v37 = vshrl.u32 %v5294_v61, 16  ;;  %v870_v8 = vshll.u32 %v5303_v56, 16  ;;  %v3910_v15 = vrot.slane %v4985_v1, 9 }
  0x80   : > { %4270 = vmatprep.mubr.bf16.mxu1 %v5316_v0  ;;  %v671_v26 = vsel %vm5006_vm2, %v666_v33, %v670_v18  ;;  %v676_v28 = vrot.slane %v675_v40, 4  ;;  %v1483_v58 = vrot.slane %v5026_v36, 5  ;;  %v857_v49 = vor.u32 %v856_v53, %v853_v47 }
  0x81   : > { %v866_v27 = vrot.slane %v864_v37, 4  ;;  %v6509_v41 = vmov 0  ;;  %v1473_v60 = vrot.slane %v4988_v2, 5  ;;  %v3911_v18 = vrot.slane %v5018_v32, 9 }
  0x82   : > { %v6510_v41 = vsel %vm5326_vm5, 4294967295, %v6509_v41  ;;  %v681_v55 = vsel %vm5006_vm2, %v676_v28, %v680_v30  ;;  %v1480_v21 = vrot.slane %v5023_v35, 5  ;;  %v858_v1 = vrot.slane %v857_v49, 4 }
  0x83   : > { %6511 = vst [vmem:[#allocation19_spill] sm:$0xff] %v6510_v41  ;;  %v5335_v43 = vcombine.low %v671_v26, %v681_v55  ;;  %v867_v36 = vor.u32 %v866_v27, %v862_v54  ;;  %v872_v33 = vrot.slane %v870_v8, 5  ;;  %v1474_v40 = vsel %vm5326_vm5, %v3910_v15, %v1473_v60  ;;  %v4823_v27 = vld [vmem:[%s4968_s6] sm:$0xf] }
  0x84   : > { %v1475_v47 = vrot.slane %v1473_v60, 4  ;;  %v1482_v53 = vrot.slane %v1480_v21, 4  ;;  %v3912_v2 = vrot.slane %v5053_v22, 9  ;;  %v863_v32 = vsel %vm5006_vm2, %v858_v1, %v862_v54  ;;  %v4824_v60 = vld [vmem:[%s4968_s6 + $0x4] sm:$0xf] }
  0x85   : > { %4255 = vmatmul.mubr.bf16.gmra.mxu0 %v5335_v43  ;;  %v868_v35 = vrot.slane %v867_v36, 4  ;;  %v1481_v30 = vsel %vm5326_vm5, %v3911_v18, %v1480_v21  ;;  %v1487_v37 = vrot.slane %v5056_v23, 5  ;;  %v6512_v8 = vrot.slane %v4991_v3, 5 }
  0x86   : > { %v1484_v28 = vsel %vm5326_vm5, %v1482_v53, %v1483_v58  ;;  %v1490_v15 = vrot.slane %v5059_v24, 5  ;;  %v5355_v54 = vcombine.low %v5080_v52, %v5086_v59  ;;  %v3886_v55 = vcombine.low %v4823_v27, %v4824_v60  ;;  %v4763_v27 = vld [vmem:[%s4996_s24 + $0xf0] sm:$0xff]   ;;  %v4768_v60 = vld [vmem:[%s4996_s24 + $0x128] sm:$0xff]  }
  0x87   : > { %v1477_v26 = vsel %vm5326_vm5, %v1475_v47, %v6512_v8  ;;  %v873_v49 = vsel %vm5006_vm2, %v868_v35, %v872_v33  ;;  %v1488_v21 = vsel %vm5326_vm5, %v3912_v2, %v1487_v37  ;;  %v1489_v58 = vrot.slane %v1487_v37, 4  ;;  %v4764_v33 = vld [vmem:[%s4996_s24 + $0x130] sm:$0xff]  }
  0x88   : > { %v3926_v3 = vcombine.low %v1474_v40, %v1477_v26  ;;  %v5361_v18 = vcombine.low %v863_v32, %v873_v49  ;;  %v1494_v1 = vrot.slane %v5086_v59, 5  ;;  %v5366_v24 = vcombine.low %v1481_v30, %v1484_v28 }
  0x89   : > { %v3913_v36 = vrot.slane %v5080_v52, 9  ;;  %v1497_v47 = vrot.slane %v5090_v4, 5  ;;  %v1501_v53 = vrot.slane %v5128_v57, 5  ;;  %v1491_v40 = vsel %vm5326_vm5, %v1489_v58, %v1490_v15 }
  0x8a   : > { %4338 = vmatprep.mubr.bf16.mxu0 %v3926_v3  ;;  %4271 = vmatmul.mubr.bf16.gmra.mxu1 %v5361_v18  ;;  %v1496_v32 = vrot.slane %v1494_v1, 4  ;;  %v3914_v2 = vrot.slane %v5122_v48, 9  ;;  %v5376_v59 = vcombine.low %v1488_v21, %v1491_v40  ;;  %v1504_v30 = vrot.slane %v5139_v7, 5  ;;  %v4772_v40 = vld [vmem:[%s4996_s24 + $0x120] sm:$0xff]  }
  0x8b   : > { %4290 = vmatprep.mubr.bf16.mxu1 %v3886_v55  ;;  %v1503_v35 = vrot.slane %v1501_v53, 4  ;;  %v3915_v52 = vrot.slane %v5164_v44, 9  ;;  %v1508_v4 = vrot.slane %v5172_v50, 5  ;;  %v5384_v37 = vcombine.low %v5053_v22, %v5056_v23 }
  0x8c   : > { %v1511_v8 = vrot.slane %v5180_v11, 5  ;;  %v1515_v26 = vrot.slane %v5226_v51, 5  ;;  %v1495_v7 = vsel %vm5326_vm5, %v3913_v36, %v1494_v1  ;;  %v1498_v28 = vsel %vm5326_vm5, %v1496_v32, %v1497_v47  ;;  %v5411_v1 = vld [vmem:[%s4968_s6 + $0x64] sm:$0xf] }
  0x8d   : > { %4339 = vmatmul.mubr.bf16.vlgmr.msra.gmra.mxu0 %v5366_v24  ;;  %v1510_v15 = vrot.slane %v1508_v4, 4  ;;  %v3916_v49 = vrot.slane %v5217_v63, 9  ;;  %v1502_v22 = vsel %vm5326_vm5, %v3914_v2, %v1501_v53  ;;  %v1505_v23 = vsel %vm5326_vm5, %v1503_v35, %v1504_v30  ;;  %v5430_v2 = vld [vmem:[%s4968_s6 + $0x60] sm:$0xf] }
  0x8e   : > { %4419 = vmatpush3.bf16.msra.mxu0 %v5280_v17  ;;  %4342 = vmatprep.mubr.bf16.mxu0 %v5376_v59  ;;  %v1517_v11 = vrot.slane %v1515_v26, 4  ;;  %v1518_v17 = vrot.slane %v5236_v42, 5  ;;  %v5402_v55 = vcombine.low %v1495_v7, %v1498_v28  ;;  %v1522_v3 = vrot.slane %v5265_v45, 5  ;;  %v4827_v28 = vld [vmem:[%s4968_s6 + $0x68] sm:$0x1] }
  0x8f   : > { %4420 = vmatprep.subr.bf16.mxu0 %v4764_v33  ;;  %v5406_v21 = vcombine.low %v1502_v22, %v1505_v23  ;;  %v1509_v58 = vsel %vm5326_vm5, %v3915_v52, %v1508_v4  ;;  %v1529_v42 = vrot.slane %v5411_v1, 5  ;;  %v1512_v36 = vsel %vm5326_vm5, %v1510_v15, %v1511_v8  ;;  %v5462_v22 = vld [vmem:[%s4968_s6 + $0x70] sm:$0xf] }
  0x90   : > { %v1516_v47 = vsel %vm5326_vm5, %v3916_v49, %v1515_v26  ;;  %v3917_v53 = vrot.slane %v5257_v5, 9  ;;  %v5426_v32 = vcombine.low %v5122_v48, %v5128_v57  ;;  %v3918_v35 = vrot.slane %v5430_v2, 9  ;;  %v4771_v26 = vld [vmem:[%s4996_s24 + $0xe0] sm:$0xff]  }
  0x91   : > { %v5436_v30 = vcombine.low %v5164_v44, %v5172_v50  ;;  %v5440_v52 = vcombine.low %v5217_v63, %v5226_v51  ;;  %v1524_v48 = vrot.slane %v1522_v3, 4  ;;  %v1525_v57 = vrot.slane %v5277_v34, 5  ;;  %v4776_v50 = vld [vmem:[%s4996_s24 + $0x118] sm:$0xff]  }
  0x92   : > { %4291 = vmatmul.mubr.bf16.vlgmr.msra.gmra.mxu1 %v5048_v19  ;;  %4421 = vmatpush3.bf16.msra.mxu0 %v4764_v33  ;;  %v1519_v33 = vsel %vm5326_vm5, %v1517_v11, %v1518_v17  ;;  %v5444_v4 = vcombine.low %v1509_v58, %v1512_v36  ;;  %v1531_v7 = vrot.slane %v1529_v42, 4  ;;  %v1532_v44 = vrot.slane %v4827_v28, 5  ;;  %v4780_v58 = vld [vmem:[%s4996_s24 + $0x110] sm:$0xff]  }
  0x93   : > { %4371 = vmatpush3.bf16.msra.mxu1 %v5268_v31  ;;  %4294 = vmatprep.mubr.bf16.mxu1 %v5384_v37  ;;  %v4767_v31 = vld [vmem:[%s4996_s24 + $0xe8] sm:$0xff]   ;;  %v5446_v8 = vcombine.low %v1516_v47, %v1519_v33  ;;  %v1523_v63 = vsel %vm5326_vm5, %v3917_v53, %v1522_v3  ;;  %v5455_v51 = vcombine.low %v5095_v9, %v5098_v16  ;;  %v3921_v34 = vrot.slane %v5095_v9, 9  ;;  %v4775_v3 = vld [vmem:[%s4996_s24 + $0xd8] sm:$0xff]  }
  0x94   : > { %4372 = vmatprep.subr.bf16.mxu1 %v4763_v27  ;;  %4422 = vmatprep.subr.bf16.mxu0 %v4768_v60  ;;  %v1550_v15 = vrot.slane %v5098_v16, 5  ;;  %v1530_v49 = vsel %vm5326_vm5, %v3918_v35, %v1529_v42  ;;  %v1536_v23 = vrot.slane %v5462_v22, 5  ;;  %v1553_v11 = vrot.slane %v5112_v39, 5 }
  0x95   : > { %4343 = vmatmul.mubr.bf16.gmra.mxu0 %v5402_v55  ;;  %v5468_v17 = vcombine.low %v5147_v20, %v5153_v29  ;;  %v1557_v39 = vrot.slane %v5153_v29, 5  ;;  %v1560_v42 = vrot.slane %v5159_v38, 5  ;;  %v5482_v36 = vcombine.low %v5183_v12, %v5190_v25 }
  0x96   : > { %4346 = vmatprep.mubr.bf16.mxu0 %v5406_v21  ;;  %4423 = vmatpush3.bf16.msra.mxu0 %v4768_v60  ;;  %v1551_v9 = vsel %vm5326_vm5, %v3921_v34, %v1550_v15  ;;  %v1552_v16 = vrot.slane %v1550_v15, 4  ;;  %v3922_v60 = vrot.slane %v5147_v20, 9  ;;  %v3923_v47 = vrot.slane %v5183_v12, 9  ;;  %v4829_v34 = vld [vmem:[%s4968_s6 + $0x7c] sm:$0xf] }
  0x97   : > { %4373 = vmatpush3.bf16.msra.mxu1 %v4763_v27  ;;  %4424 = vmatprep.subr.bf16.mxu0 %v4772_v40  ;;  %v1526_v27 = vsel %vm5326_vm5, %v1524_v48, %v1525_v57  ;;  %v1564_v33 = vrot.slane %v5190_v25, 5  ;;  %v1567_v53 = vrot.slane %v5212_v6, 5  ;;  %v5492_v29 = vcombine.low %v5239_v62, %v5243_v46  ;;  %v6513_v48 = vld [vmem:[#allocation16_spill] sm:$0xff] }
  0x98   : > { %4374 = vmatprep.subr.bf16.mxu1 %v4767_v31  ;;  %v1554_v20 = vsel %vm5326_vm5, %v1552_v16, %v1553_v11  ;;  %v1558_v12 = vsel %vm5326_vm5, %v3922_v60, %v1557_v39  ;;  %v1571_v35 = vrot.slane %v5243_v46, 5  ;;  %v1574_v57 = vrot.slane %v6513_v48, 5  ;;  %v4779_v46 = vld [vmem:[%s4996_s24 + $0xd0] sm:$0xff]   ;;  %v4784_v60 = vld [vmem:[%s4996_s24 + $0x108] sm:$0xff]  }
  0x99   : > { %v5494_v38 = vcombine.low %v1551_v9, %v1554_v20  ;;  %v1565_v25 = vsel %vm5326_vm5, %v3923_v47, %v1564_v33  ;;  %v1566_v6 = vrot.slane %v1564_v33, 4  ;;  %v1533_v28 = vsel %vm5326_vm5, %v1531_v7, %v1532_v44 }
  0x9a   : > { %4295 = vmatmul.mubr.bf16.gmra.mxu1 %v5355_v54  ;;  %4425 = vmatpush3.bf16.msra.mxu0 %v4772_v40  ;;  %v1559_v40 = vrot.slane %v1557_v39, 4  ;;  %v5512_v11 = vcombine.low %v5287_v14, %v5294_v61  ;;  %v5524_v39 = vcombine.low %v1523_v63, %v1526_v27  ;;  %v5530_v20 = vcombine.low %v1530_v49, %v1533_v28  ;;  %v4832_v27 = vld [vmem:[%s4968_s6 + $0x78] sm:$0xf]  ;;  %v4783_v49 = vld [vmem:[%s4996_s24 + $0xc8] sm:$0xff]   ;;  %v4787_v28 = vld [vmem:[%s4996_s24 + $0xc0] sm:$0xff]  }
  0x9b   : > { %4298 = vmatprep.mubr.bf16.mxu1 %v5426_v32  ;;  %4375 = vmatpush3.bf16.msra.mxu1 %v4767_v31  ;;  %v3924_v31 = vrot.slane %v5239_v62, 9  ;;  %v1543_v62 = vrot.slane %v4829_v34, 5  ;;  %v1568_v7 = vsel %vm5326_vm5, %v1566_v6, %v1567_v53  ;;  %v1538_v33 = vrot.slane %v1536_v23, 4  ;;  %v4831_v53 = vld [vmem:[%s4968_s6 + $0x74] sm:$0x1] }
  0x9c   : > { %4376 = vmatprep.subr.bf16.mxu1 %v4771_v26  ;;  %4426 = vmatprep.subr.bf16.mxu0 %v4776_v50  ;;  %v1561_v15 = vsel %vm5326_vm5, %v1559_v40, %v1560_v42  ;;  %v5521_v16 = vcombine.low %v1565_v25, %v1568_v7  ;;  %v3920_v40 = vrot.slane %v4832_v27, 9  ;;  %v4833_v25 = vld [vmem:[%s4968_s6 + $0x80] sm:$0x1] }
  0x9d   : > { %4347 = vmatmul.mubr.bf16.gmra.mxu0 %v5444_v4  ;;  %v5515_v9 = vcombine.low %v1558_v12, %v1561_v15  ;;  %v1572_v44 = vsel %vm5326_vm5, %v3924_v31, %v1571_v35  ;;  %v1539_v12 = vrot.slane %v4831_v53, 5  ;;  %v1545_v31 = vrot.slane %v1543_v62, 4  ;;  %v4790_v15 = vld [vmem:[%s4996_s24 + $0x1b8] sm:$0xff]  }
  0x9e   : > { %4350 = vmatprep.mubr.bf16.mxu0 %v5446_v8  ;;  %4427 = vmatpush3.bf16.msra.mxu0 %v4776_v50  ;;  %v1573_v50 = vrot.slane %v1571_v35, 4  ;;  %v1546_v6 = vrot.slane %v4833_v25, 5  ;;  %v4788_v35 = vld [vmem:[%s4996_s24 + $0x100] sm:$0xff]   ;;  %v4792_v25 = vld [vmem:[%s4996_s24 + $0x1b0] sm:$0xff]  }
  0x9f   : > { %4377 = vmatpush3.bf16.msra.mxu1 %v4771_v26  ;;  %4428 = vmatprep.subr.bf16.mxu0 %v4780_v58  ;;  %v4830_v26 = vld [vmem:[%s4968_s6 + $0x6c] sm:$0xf]  ;;  %v1540_v48 = vsel %vm5326_vm5, %v1538_v33, %v1539_v12  ;;  %v6514_v12 = vld [vmem:[#allocation8_spill] sm:$0xff] }
  0xa0   : > { %4378 = vmatprep.subr.bf16.mxu1 %v4775_v3  ;;  %v3919_v42 = vrot.slane %v4830_v26, 9  ;;  %v1575_v47 = vsel %vm5326_vm5, %v1573_v50, %v1574_v57  ;;  %v5556_v57 = vcombine.low %v5430_v2, %v5411_v1  ;;  %v4789_v1 = vld [vmem:[%s4996_s24 + $0x178] sm:$0xff]   ;;  %v5573_v2 = vcombine.low %v4830_v26, %v5462_v22  ;;  %v5602_v26 = vld [vmem:[%s4968_s6 + $0xc0] sm:$0xf] }
  0xa1   : > { %v5535_v63 = vcombine.low %v1572_v44, %v1575_v47  ;;  %v3925_v22 = vrot.slane %v5287_v14, 9  ;;  %v1581_v44 = vrot.slane %v5303_v56, 5  ;;  %v5597_v14 = vld [vmem:[%s4968_s6 + $0xc4] sm:$0xf]  ;;  %v3968_v47 = vrot.slane %v5602_v26, 9 }
  0xa2   : > { %4299 = vmatmul.mubr.bf16.gmra.mxu1 %v5436_v30  ;;  %4429 = vmatpush3.bf16.msra.mxu0 %v4780_v58  ;;  %v5545_v58 = vcombine.low %v5257_v5, %v5265_v45  ;;  %v1544_v45 = vsel %vm5326_vm5, %v3920_v40, %v1543_v62  ;;  %v1547_v5 = vsel %vm5326_vm5, %v1545_v31, %v1546_v6  ;;  %v2407_v56 = vrot.slane %v5597_v14, 5  ;;  %v6515_v6 = vld [vmem:[#allocation10_spill] sm:$0xff] }
  0xa3   : > { %4302 = vmatprep.mubr.bf16.mxu1 %v5440_v52  ;;  %4379 = vmatpush3.bf16.msra.mxu1 %v4775_v3  ;;  %v1537_v3 = vsel %vm5326_vm5, %v3919_v42, %v1536_v23  ;;  %v5567_v7 = vcombine.low %v1544_v45, %v1547_v5  ;;  %v5576_v62 = vcombine.low %v4832_v27, %v4829_v34  ;;  %v5605_v42 = vld [vmem:[%s4968_s6 + $0xc8] sm:$0x1]  ;;  %v6517_v45 = vld [vmem:[#allocation14_spill] sm:$0xff]  ;;  %v6518_v5 = vld [vmem:[#allocation17_spill] sm:$0xff] }
  0xa4   : > { %4380 = vmatprep.subr.bf16.mxu1 %v4779_v46  ;;  %4430 = vmatprep.subr.bf16.mxu0 %v4784_v60  ;;  %v5564_v23 = vcombine.low %v1537_v3, %v1540_v48  ;;  %v2409_v33 = vrot.slane %v2407_v56, 4  ;;  %v2410_v53 = vrot.slane %v5605_v42, 5  ;;  %v2408_v27 = vsel %vm5326_vm5, %v3968_v47, %v2407_v56  ;;  %v4794_v3 = vld [vmem:[%s4996_s24 + $0x1a8] sm:$0xff]   ;;  %v4796_v48 = vld [vmem:[%s4996_s24 + $0x1a0] sm:$0xff]   ;;  %v6520_v56 = vld [vmem:[#allocation9_spill] sm:$0xff] }
  0xa5   : > { %4351 = vmatmul.mubr.bf16.gmra.mxu0 %v5524_v39  ;;  %v4804_v47 = vld [vmem:[%s4996_s24 + $0x140] sm:$0xff]  }
  0xa6   : > { %4354 = vmatprep.mubr.bf16.mxu0 %v5530_v20  ;;  %4431 = vmatpush3.bf16.msra.mxu0 %v4784_v60  ;;  %v2411_v40 = vsel %vm5326_vm5, %v2409_v33, %v2410_v53  ;;  %v4807_v33 = vld [vmem:[%s4996_s24 + $0x238] sm:$0xff]  }
  0xa7   : > { %4381 = vmatpush3.bf16.msra.mxu1 %v4779_v46  ;;  %4432 = vmatprep.subr.bf16.mxu0 %v4788_v35  ;;  %v1578_v46 = vrot.slane %v5294_v61, 5  ;;  %v5615_v31 = vcombine.low %v2408_v27, %v2411_v40  ;;  %v4806_v53 = vld [vmem:[%s4996_s24 + $0x1f8] sm:$0xff]   ;;  %v2136_v40 = vshrl.u32 %v5602_v26, 16 }
  0xa8   : > { %4382 = vmatprep.subr.bf16.mxu1 %v4783_v49  ;;  %v6522_v27 = vld [vmem:[#allocation13_spill] sm:$0xff] }
  0xa9   : > { %v1580_v34 = vrot.slane %v1578_v46, 4  ;;  %v1579_v50 = vsel %vm5326_vm5, %v3925_v22, %v1578_v46  ;;  %v4797_v46 = vld [vmem:[%s4996_s24 + $0x158] sm:$0xff]   ;;  %v4799_v22 = vld [vmem:[%s4996_s24 + $0x150] sm:$0xff]  }
  0xaa   : > { %4303 = vmatmul.mubr.bf16.gmra.mxu1 %v5545_v58  ;;  %4433 = vmatpush3.bf16.msra.mxu0 %v4788_v35  ;;  %v6516_v35 = vld [vmem:[#allocation12_spill] sm:$0xff] }
  0xab   : > { %4306 = vmatprep.mubr.bf16.mxu1 %v5556_v57  ;;  %4383 = vmatpush3.bf16.msra.mxu1 %v4783_v49  ;;  %v1582_v61 = vsel %vm5326_vm5, %v1580_v34, %v1581_v44  ;;  %v4791_v49 = vld [vmem:[%s4996_s24 + $0x170] sm:$0xff]   ;;  %v4802_v34 = vld [vmem:[%s4996_s24 + $0x188] sm:$0xff]   ;;  %v4805_v44 = vld [vmem:[%s4996_s24 + $0x180] sm:$0xff]  }
  0xac   : > { %4384 = vmatprep.subr.bf16.mxu1 %v4787_v28  ;;  %4514 = vmatprep.subr.bf16.mxu0 %v4790_v15  ;;  %v5593_v60 = vcombine.low %v1579_v50, %v1582_v61  ;;  %v4801_v50 = vld [vmem:[%s4996_s24 + $0x148] sm:$0xff]  }
  0xad   : > { %4355 = vmatmul.mubr.bf16.gmra.mxu0 %v5564_v23  ;;  %v6519_v61 = vld [vmem:[#allocation7_spill] sm:$0xff] }
  0xae   : > { %4358 = vmatprep.mubr.bf16.mxu0 %v5567_v7 }
  0xaf   : > { %4385 = vmatpush3.bf16.msra.mxu1 %v4787_v28  ;;  %v4795_v28 = vld [vmem:[%s4996_s24 + $0x160] sm:$0xff]  }
  0xb0   : > { %4466 = vmatprep.subr.bf16.mxu1 %v4789_v1 }
  0xb2   : > { %4307 = vmatmul.mubr.bf16.gmra.mxu1 %v5573_v2 }
  0xb3   : > { %4310 = vmatprep.mubr.bf16.mxu1 %v5576_v62 }
  0xb5   : > { %4359 = vmatmul.mubr.bf16.gmra.mxu0 %v5494_v38 }
  0xb6   : > { %4362 = vmatprep.mubr.bf16.mxu0 %v5515_v9 }
  0xba   : > { %4311 = vmatmul.mubr.bf16.gmra.mxu1 %v5455_v51 }
  0xbb   : > { %4314 = vmatprep.mubr.bf16.mxu1 %v5468_v17 }
  0xbd   : > { %4363 = vmatmul.mubr.bf16.gmra.mxu0 %v5521_v16 }
  0xbe   : > { %4366 = vmatprep.mubr.bf16.mxu0 %v5535_v63 }
  0xc2   : > { %4315 = vmatmul.mubr.bf16.gmra.mxu1 %v5482_v36 }
  0xc3   : > { %4318 = vmatprep.mubr.bf16.mxu1 %v5492_v29 }
  0xc5   : > { %4367 = vmatmul.mubr.bf16.gmra.mxu0 %v5593_v60 }
  0xc6   : > { %4434 = vmatprep.mubr.bf16.mxu0 %v6514_v12  ;;  %v6521_v12 = vld [vmem:[#allocation11_spill] sm:$0xff] }
  0xca   : > { %4319 = vmatmul.mubr.bf16.gmra.mxu1 %v5512_v11 }
  0xcb   : > { %4386 = vmatprep.mubr.bf16.mxu1 %v5048_v19  ;;  %v4793_v19 = vld [vmem:[%s4996_s24 + $0x168] sm:$0xff]  }
  0xcd   : > { %4435 = vmatmul.mubr.bf16.vlgmr.msra.gmra.mxu0 %v6515_v6 }
  0xce   : > { %4515 = vmatpush3.bf16.msra.mxu0 %v4790_v15  ;;  %4438 = vmatprep.mubr.bf16.mxu0 %v6516_v35  ;;  %v4798_v15 = vld [vmem:[%s4996_s24 + $0x198] sm:$0xff]  }
  0xcf   : > { %4516 = vmatprep.subr.bf16.mxu0 %v4792_v25 }
  0xd2   : > { %4387 = vmatmul.mubr.bf16.vlgmr.msra.gmra.mxu1 %v5384_v37  ;;  %4517 = vmatpush3.bf16.msra.mxu0 %v4792_v25  ;;  %v2139_v25 = vshll.u32 %v5602_v26, 16 }
  0xd3   : > { %4467 = vmatpush3.bf16.msra.mxu1 %v4789_v1  ;;  %4390 = vmatprep.mubr.bf16.mxu1 %v5355_v54  ;;  %v4800_v1 = vld [vmem:[%s4996_s24 + $0x190] sm:$0xff]  }
  0xd4   : > { %4468 = vmatprep.subr.bf16.mxu1 %v4791_v49  ;;  %4518 = vmatprep.subr.bf16.mxu0 %v4794_v3 }
  0xd5   : > { %4439 = vmatmul.mubr.bf16.gmra.mxu0 %v6517_v45 }
  0xd6   : > { %4442 = vmatprep.mubr.bf16.mxu0 %v6518_v5  ;;  %4519 = vmatpush3.bf16.msra.mxu0 %v4794_v3  ;;  %v2145_v3 = vshll.u32 %v5597_v14, 16 }
  0xd7   : > { %4469 = vmatpush3.bf16.msra.mxu1 %v4791_v49  ;;  %4520 = vmatprep.subr.bf16.mxu0 %v4796_v48  ;;  %v2149_v49 = vshrl.u32 %v5597_v14, 16 }
  0xd8   : > { %4470 = vmatprep.subr.bf16.mxu1 %v4793_v19 }
  0xda   : > { %4391 = vmatmul.mubr.bf16.gmra.mxu1 %v5426_v32  ;;  %4521 = vmatpush3.bf16.msra.mxu0 %v4796_v48  ;;  %v2138_v48 = vrot.slane %v2136_v40, 4 }
  0xdb   : > { %4394 = vmatprep.mubr.bf16.mxu1 %v5436_v30  ;;  %4471 = vmatpush3.bf16.msra.mxu1 %v4793_v19  ;;  %v2141_v19 = vrot.slane %v2139_v25, 5 }
  0xdc   : > { %4472 = vmatprep.subr.bf16.mxu1 %v4795_v28  ;;  %4522 = vmatprep.subr.bf16.mxu0 %v4798_v15 }
  0xdd   : > { %4443 = vmatmul.mubr.bf16.gmra.mxu0 %v5306_v10 }
  0xde   : > { %4446 = vmatprep.mubr.bf16.mxu0 %v5335_v43  ;;  %4523 = vmatpush3.bf16.msra.mxu0 %v4798_v15  ;;  %v2151_v15 = vrot.slane %v2149_v49, 4  ;;  %v5677_v49 = vcombine.low %v5602_v26, %v5597_v14  ;;  %v4817_v26 = vld [vmem:[%s4996_s24 + $0x210] sm:$0xff]  }
  0xdf   : > { %4473 = vmatpush3.bf16.msra.mxu1 %v4795_v28  ;;  %4524 = vmatprep.subr.bf16.mxu0 %v4800_v1  ;;  %v2147_v28 = vrot.slane %v2145_v3, 5  ;;  %v4808_v3 = vld [vmem:[%s4996_s24 + $0x1f0] sm:$0xff]  }
  0xe0   : > { %4474 = vmatprep.subr.bf16.mxu1 %v4797_v46 }
  0xe2   : > { %4395 = vmatmul.mubr.bf16.gmra.mxu1 %v5440_v52  ;;  %4525 = vmatpush3.bf16.msra.mxu0 %v4800_v1  ;;  %v6523_v1 = vld [vmem:[#allocation15_spill] sm:$0xff] }
  0xe3   : > { %4398 = vmatprep.mubr.bf16.mxu1 %v5545_v58  ;;  %4475 = vmatpush3.bf16.msra.mxu1 %v4797_v46  ;;  %v6524_v46 = vld [vmem:[#allocation18_spill] sm:$0xff] }
  0xe4   : > { %4476 = vmatprep.subr.bf16.mxu1 %v4799_v22  ;;  %4526 = vmatprep.subr.bf16.mxu0 %v4802_v34 }
  0xe5   : > { %4447 = vmatmul.mubr.bf16.gmra.mxu0 %v6519_v61 }
  0xe6   : > { %4450 = vmatprep.mubr.bf16.mxu0 %v6520_v56  ;;  %4527 = vmatpush3.bf16.msra.mxu0 %v4802_v34  ;;  %v2152_v34 = vor.u32 %v2151_v15, %v2147_v28  ;;  %v4819_v15 = vld [vmem:[%s4996_s24 + $0x208] sm:$0xff]  }
  0xe7   : > { %4477 = vmatpush3.bf16.msra.mxu1 %v4799_v22  ;;  %4528 = vmatprep.subr.bf16.mxu0 %v4805_v44  ;;  %v2142_v22 = vor.u32 %v2141_v19, %v2138_v48  ;;  %v4811_v48 = vld [vmem:[%s4996_s24 + $0x228] sm:$0xff]  }
  0xe8   : > { %4478 = vmatprep.subr.bf16.mxu1 %v4801_v50 }
  0xea   : > { %4399 = vmatmul.mubr.bf16.gmra.mxu1 %v5556_v57  ;;  %4529 = vmatpush3.bf16.msra.mxu0 %v4805_v44  ;;  %v2155_v44 = vshll.u32 %v5605_v42, 16 }
  0xeb   : > { %4402 = vmatprep.mubr.bf16.mxu1 %v5573_v2  ;;  %4479 = vmatpush3.bf16.msra.mxu1 %v4801_v50  ;;  %v2143_v50 = vrot.slane %v2142_v22, 4 }
  0xec   : > { %4480 = vmatprep.subr.bf16.mxu1 %v4804_v47  ;;  %4610 = vmatprep.subr.bf16.mxu0 %v4807_v33  ;;  %v2157_v41 = vrot.slane %v2155_v44, 5 }
  0xed   : > { %4451 = vmatmul.mubr.bf16.gmra.mxu0 %v6521_v12  ;;  %v2148_v40 = vsel %vm5006_vm2, %v2143_v50, %v2147_v28  ;;  %v4816_v28 = vld [vmem:[%s4996_s24 + $0x1d0] sm:$0xff]  }
  0xee   : > { %4454 = vmatprep.mubr.bf16.mxu0 %v6522_v27 }
  0xef   : > { %4481 = vmatpush3.bf16.msra.mxu1 %v4804_v47  ;;  %v2153_v47 = vrot.slane %v2152_v34, 4  ;;  %v4818_v34 = vld [vmem:[%s4996_s24 + $0x1c8] sm:$0xff]  }
  0xf0   : > { %4562 = vmatprep.subr.bf16.mxu1 %v4806_v53 }
  0xf1   : > { %v2158_v42 = vsel %vm5006_vm2, %v2153_v47, %v2157_v41  ;;  %v4809_v41 = vld [vmem:[%s4996_s24 + $0x230] sm:$0xff]   ;;  %v4821_v47 = vld [vmem:[%s4996_s24 + $0x1c0] sm:$0xff]  }
  0xf2   : > { %4403 = vmatmul.mubr.bf16.gmra.mxu1 %v5576_v62  ;;  %v5670_v25 = vcombine.low %v2148_v40, %v2158_v42 }
  0xf3   : > { %4406 = vmatprep.mubr.bf16.mxu1 %v5455_v51 }
  0xf4   : > { %6525 = vst [vmem:[#allocation16_spill] sm:$0xff] %v5670_v25 }
  0xf5   : > { %4455 = vmatmul.mubr.bf16.gmra.mxu0 %v6523_v1 }
  0xf6   : > { %4458 = vmatprep.mubr.bf16.mxu0 %v6524_v46 }
  0xfa   : > { %4407 = vmatmul.mubr.bf16.gmra.mxu1 %v5468_v17 }
  0xfb   : > { %4410 = vmatprep.mubr.bf16.mxu1 %v5482_v36 }
  0xfd   : > { %4459 = vmatmul.mubr.bf16.gmra.mxu0 %v5316_v0 }
  0xfe   : > { %4462 = vmatprep.mubr.bf16.mxu0 %v5361_v18 }
 0x102   : > { %4411 = vmatmul.mubr.bf16.gmra.mxu1 %v5492_v29 }
 0x103   : > { %4414 = vmatprep.mubr.bf16.mxu1 %v5512_v11 }
 0x105   : > { %4463 = vmatmul.mubr.bf16.gmra.mxu0 %v5670_v25 }
 0x106   : > { %4530 = vmatprep.mubr.bf16.mxu0 %v5384_v37  ;;  %v4813_v37 = vld [vmem:[%s4996_s24 + $0x220] sm:$0xff]  }
 0x10a   : > { %4415 = vmatmul.mubr.bf16.gmra.mxu1 %v5677_v49 }
 0x10b   : > { %4482 = vmatprep.mubr.bf16.mxu1 %v5366_v24  ;;  %v4810_v24 = vld [vmem:[%s4996_s24 + $0x1e8] sm:$0xff]  }
 0x10d   : > { %4531 = vmatmul.mubr.bf16.vlgmr.msra.gmra.mxu0 %v5355_v54  ;;  %v4812_v54 = vld [vmem:[%s4996_s24 + $0x1e0] sm:$0xff]  }
 0x10e   : > { %4611 = vmatpush3.bf16.msra.mxu0 %v4807_v33  ;;  %4534 = vmatprep.mubr.bf16.mxu0 %v5426_v32  ;;  %v4815_v32 = vld [vmem:[%s4996_s24 + $0x218] sm:$0xff]  }
 0x10f   : > { %4612 = vmatprep.subr.bf16.mxu0 %v4809_v41 }
 0x112   : > { %4483 = vmatmul.mubr.bf16.vlgmr.msra.gmra.mxu1 %v5376_v59  ;;  %4613 = vmatpush3.bf16.msra.mxu0 %v4809_v41 }
 0x113   : > { %4563 = vmatpush3.bf16.msra.mxu1 %v4806_v53  ;;  %4486 = vmatprep.mubr.bf16.mxu1 %v5402_v55 }
 0x114   : > { %4564 = vmatprep.subr.bf16.mxu1 %v4808_v3  ;;  %4614 = vmatprep.subr.bf16.mxu0 %v4811_v48 }
 0x115   : > { %4535 = vmatmul.mubr.bf16.gmra.mxu0 %v5436_v30 }
 0x116   : > { %4538 = vmatprep.mubr.bf16.mxu0 %v5440_v52  ;;  %4615 = vmatpush3.bf16.msra.mxu0 %v4811_v48  ;;  %v4814_v52 = vld [vmem:[%s4996_s24 + $0x1d8] sm:$0xff]  }
 0x117   : > { %4565 = vmatpush3.bf16.msra.mxu1 %v4808_v3  ;;  %4616 = vmatprep.subr.bf16.mxu0 %v4813_v37 }
 0x118   : > { %4566 = vmatprep.subr.bf16.mxu1 %v4810_v24 }
 0x11a   : > { %4487 = vmatmul.mubr.bf16.gmra.mxu1 %v5406_v21  ;;  %4617 = vmatpush3.bf16.msra.mxu0 %v4813_v37 }
 0x11b   : > { %4490 = vmatprep.mubr.bf16.mxu1 %v5444_v4  ;;  %4567 = vmatpush3.bf16.msra.mxu1 %v4810_v24 }
 0x11c   : > { %4568 = vmatprep.subr.bf16.mxu1 %v4812_v54  ;;  %4618 = vmatprep.subr.bf16.mxu0 %v4815_v32 }
 0x11d   : > { %v5697_v14 = vpop.f32.mrf.mxu0  ;;  %v5699_v30 = vpop.f32.mrf.mxu1  ;;  %4539 = vmatmul.mubr.bf16.gmra.mxu0 %v5545_v58 }
 0x11e   : > { %4542 = vmatprep.mubr.bf16.mxu0 %v5556_v57  ;;  %4619 = vmatpush3.bf16.msra.mxu0 %v4815_v32  ;;  %v4822_v57 = vld [vmem:[%s4996_s24 + $0x200] sm:$0xff]   ;;  %v5768_v32 = vld [vmem:[%s4968_s6 + $0xd0] sm:$0xf] }
 0x11f   : > { %v5704_v33 = vpop.f32.mrf.mxu0  ;;  %v5707_v53 = vpop.f32.mrf.mxu1  ;;  %4569 = vmatpush3.bf16.msra.mxu1 %v4812_v54  ;;  %4620 = vmatprep.subr.bf16.mxu0 %v4817_v26 }
 0x120   : > { %4570 = vmatprep.subr.bf16.mxu1 %v4814_v52 }
 0x121   : > { %v5709_v19 = vpop.f32.mrf.mxu0  ;;  %v5716_v58 = vpop.f32.mrf.mxu1 }
 0x122   : > { %4491 = vmatmul.mubr.bf16.gmra.mxu1 %v5446_v8  ;;  %4621 = vmatpush3.bf16.msra.mxu0 %v4817_v26 }
 0x123   : > { %v5713_v22 = vpop.f32.mrf.mxu0  ;;  %4494 = vmatprep.mubr.bf16.mxu1 %v5524_v39  ;;  %4571 = vmatpush3.bf16.msra.mxu1 %v4814_v52  ;;  %v5725_v50 = vpop.f32.mrf.mxu1 }
 0x124   : > { %4572 = vmatprep.subr.bf16.mxu1 %v4816_v28  ;;  %4622 = vmatprep.subr.bf16.mxu0 %v4819_v15 }
 0x125   : > { %4543 = vmatmul.mubr.bf16.gmra.mxu0 %v5573_v2  ;;  %v5722_v44 = vpop.f32.mrf.mxu0 }
 0x126   : > { %4546 = vmatprep.mubr.bf16.mxu0 %v5576_v62  ;;  %4623 = vmatpush3.bf16.msra.mxu0 %v4819_v15 }
 0x127   : > { %4573 = vmatpush3.bf16.msra.mxu1 %v4816_v28  ;;  %4624 = vmatprep.subr.bf16.mxu0 %v4822_v57  ;;  %v5728_v40 = vpop.f32.mrf.mxu0 }
 0x128   : > { %4574 = vmatprep.subr.bf16.mxu1 %v4818_v34  ;;  %v5731_v42 = vpop.f32.mrf.mxu1 }
 0x129   : > { %v5735_v2 = vpop.f32.mrf.mxu0 }
 0x12a   : > { %4495 = vmatmul.mubr.bf16.gmra.mxu1 %v5530_v20  ;;  %4625 = vmatpush3.bf16.msra.mxu0 %v4822_v57  ;;  %v5738_v62 = vpop.f32.mrf.mxu1 }
 0x12b   : > { %4498 = vmatprep.mubr.bf16.mxu1 %v5564_v23  ;;  %4575 = vmatpush3.bf16.msra.mxu1 %v4818_v34  ;;  %v5740_v41 = vpop.f32.mrf.mxu0 }
 0x12c   : > { %4576 = vmatprep.subr.bf16.mxu1 %v4821_v47  ;;  %v5743_v3 = vpop.f32.mrf.mxu1 }
 0x12d   : > { %4547 = vmatmul.mubr.bf16.gmra.mxu0 %v5455_v51 }
 0x12e   : > { %4550 = vmatprep.mubr.bf16.mxu0 %v5468_v17  ;;  %v5749_v48 = vpop.f32.mrf.mxu1 }
 0x12f   : > { %4577 = vmatpush3.bf16.msra.mxu1 %v4821_v47 }
 0x132   : > { %4499 = vmatmul.mubr.bf16.gmra.mxu1 %v5567_v7 }
 0x133   : > { %4502 = vmatprep.mubr.bf16.mxu1 %v5494_v38 }
 0x135   : > { %4551 = vmatmul.mubr.bf16.gmra.mxu0 %v5482_v36  ;;  %v5747_v51 = vpop.f32.mrf.mxu0  ;;  %v5765_v36 = vld [vmem:[%s4968_s6 + $0xcc] sm:$0xf] }
 0x136   : > { %4554 = vmatprep.mubr.bf16.mxu0 %v5492_v29  ;;  %v3978_v26 = vcombine.low %v5765_v36, %v5768_v32 }
 0x137   : > { %v5752_v17 = vpop.f32.mrf.mxu0 }
 0x138   : > { %v5755_v37 = vpop.f32.mrf.mxu1 }
 0x139   : > { %6526 = vst [vmem:[#allocation8_spill] sm:$0xff] %v5755_v37  ;;  %v5759_v24 = vpop.f32.mrf.mxu0 }
 0x13a   : > { %4503 = vmatmul.mubr.bf16.gmra.mxu1 %v5515_v9  ;;  %v5761_v54 = vpop.f32.mrf.mxu1 }
 0x13b   : > { %4506 = vmatprep.mubr.bf16.mxu1 %v5521_v16  ;;  %6527 = vst [vmem:[#allocation10_spill] sm:$0xff] %v5761_v54  ;;  %v5770_v29 = vpop.f32.mrf.mxu0 }
 0x13c   : > { %v5775_v52 = vpop.f32.mrf.mxu1 }
 0x13d   : > { %4555 = vmatmul.mubr.bf16.gmra.mxu0 %v5512_v11  ;;  %6528 = vst [vmem:[#allocation12_spill] sm:$0xff] %v5775_v52 }
 0x13e   : > { %4558 = vmatprep.mubr.bf16.mxu0 %v5677_v49  ;;  %v5780_v28 = vpop.f32.mrf.mxu1 }
 0x13f   : > { %6529 = vst [vmem:[#allocation14_spill] sm:$0xff] %v5780_v28 }
 0x142   : > { %4507 = vmatmul.mubr.bf16.gmra.mxu1 %v5535_v63 }
 0x143   : > { %4510 = vmatprep.mubr.bf16.mxu1 %v5593_v60 }
 0x145   : > { %v5778_v11 = vpop.f32.mrf.mxu0  ;;  %4559 = vmatmul.mubr.bf16.gmra.mxu0 %v3978_v26 }
 0x146   : > { %4626 = vmatprep.mubr.bf16.mxu0 %v5376_v59 }
 0x147   : > { %v5783_v49 = vpop.f32.mrf.mxu0 }
 0x149   : > { %v5785_v15 = vpop.f32.mrf.mxu0 }
 0x14a   : > { %v5787_v57 = vpop.f32.mrf.mxu1  ;;  %4511 = vmatmul.mubr.bf16.gmra.mxu1 %v5615_v31 }
 0x14b   : > { %6530 = vst [vmem:[#allocation17_spill] sm:$0xff] %v5787_v57  ;;  %v5790_v34 = vpop.f32.mrf.mxu0  ;;  %4578 = vmatprep.mubr.bf16.mxu1 %v6515_v6 }
 0x14c   : > { %v5793_v47 = vpop.f32.mrf.mxu1 }
 0x14d   : > { %6531 = vst [vmem:[#allocation7_spill] sm:$0xff] %v5793_v47  ;;  %v4340_v52 = vpop.f32.mrf.mxu0  ;;  %4627 = vmatmul.mubr.bf16.vlgmr.msra.gmra.mxu0 %v5402_v55 }
 0x14e   : > { %v5796_v26 = vpop.f32.mrf.mxu1  ;;  %4630 = vmatprep.mubr.bf16.mxu0 %v5406_v21 }
 0x14f   : > { %6532 = vst [vmem:[#allocation9_spill] sm:$0xff] %v5796_v26  ;;  %v1729_v59 = vpop.f32.mrf.mxu0 }
 0x150   : > { %v5799_v28 = vpop.f32.mrf.mxu1 }
 0x151   : > { %6533 = vst [vmem:[#allocation11_spill] sm:$0xff] %v5799_v28  ;;  %v4341_v54 = vpop.f32.mrf.mxu0 }
 0x152   : > { %v4292_v57 = vpop.f32.mrf.mxu1  ;;  %4579 = vmatmul.mubr.bf16.vlgmr.msra.gmra.mxu1 %v6516_v35 }
 0x153   : > { %v1334_v13 = vadd.f32 %v4292_v57, %v5697_v14  ;;  %v1732_v25 = vpop.f32.mrf.mxu0  ;;  %4582 = vmatprep.mubr.bf16.mxu1 %v6517_v45 }
 0x154   : > { %v1325_v6 = vpop.f32.mrf.mxu1 }
 0x155   : > { %v5804_v47 = vadd.f32 %v4340_v52, %v1334_v13  ;;  %v1326_v55 = vadd.f32 %v1325_v6, %v5704_v33  ;;  %v4344_v26 = vpop.f32.mrf.mxu0  ;;  %4631 = vmatmul.mubr.bf16.gmra.mxu0 %v5444_v4 }
 0x156   : > { %v4293_v21 = vpop.f32.mrf.mxu1  ;;  %4634 = vmatprep.mubr.bf16.mxu0 %v5446_v8 }
 0x157   : > { %v5809_v28 = vadd.f32 %v1729_v59, %v1326_v55  ;;  %v1337_v35 = vadd.f32 %v4293_v21, %v5709_v19  ;;  %v1745_v37 = vpop.f32.mrf.mxu0 }
 0x158   : > { %v1328_v14 = vpop.f32.mrf.mxu1 }
 0x159   : > { %v5812_v57 = vadd.f32 %v4341_v54, %v1337_v35  ;;  %v1329_v45 = vadd.f32 %v1328_v14, %v5713_v22  ;;  %v4345_v13 = vpop.f32.mrf.mxu0 }
 0x15a   : > { %v4296_v52 = vpop.f32.mrf.mxu1  ;;  %4583 = vmatmul.mubr.bf16.gmra.mxu1 %v6518_v5 }
 0x15b   : > { %v5816_v33 = vadd.f32 %v1732_v25, %v1329_v45  ;;  %v1350_v4 = vadd.f32 %v4296_v52, %v5722_v44  ;;  %v1748_v6 = vpop.f32.mrf.mxu0  ;;  %4586 = vmatprep.mubr.bf16.mxu1 %v5306_v10 }
 0x15c   : > { %v1341_v8 = vpop.f32.mrf.mxu1 }
 0x15d   : > { %v5820_v59 = vadd.f32 %v4344_v26, %v1350_v4  ;;  %v1342_v19 = vadd.f32 %v1341_v8, %v5728_v40  ;;  %v4348_v54 = vpop.f32.mrf.mxu0  ;;  %4635 = vmatmul.mubr.bf16.gmra.mxu0 %v5524_v39 }
 0x15e   : > { %v4297_v22 = vpop.f32.mrf.mxu1  ;;  %4638 = vmatprep.mubr.bf16.mxu0 %v5530_v20 }
 0x15f   : > { %v5825_v55 = vadd.f32 %v1745_v37, %v1342_v19  ;;  %v1353_v5 = vadd.f32 %v4297_v22, %v5735_v2  ;;  %v1761_v25 = vpop.f32.mrf.mxu0 }
 0x160   : > { %v1344_v44 = vpop.f32.mrf.mxu1 }
 0x161   : > { %v5828_v21 = vadd.f32 %v4345_v13, %v1353_v5  ;;  %v1345_v10 = vadd.f32 %v1344_v44, %v5740_v41  ;;  %v4349_v26 = vpop.f32.mrf.mxu0 }
 0x162   : > { %v4300_v35 = vpop.f32.mrf.mxu1  ;;  %4587 = vmatmul.mubr.bf16.gmra.mxu1 %v5335_v43 }
 0x163   : > { %v5832_v40 = vadd.f32 %v1748_v6, %v1345_v10  ;;  %v1366_v39 = vadd.f32 %v4300_v35, %v5747_v51  ;;  %v1764_v14 = vpop.f32.mrf.mxu0  ;;  %4590 = vmatprep.mubr.bf16.mxu1 %v6519_v61 }
 0x164   : > { %v1357_v20 = vpop.f32.mrf.mxu1 }
 0x165   : > { %v5836_v37 = vadd.f32 %v4348_v54, %v1366_v39  ;;  %v1358_v2 = vadd.f32 %v1357_v20, %v5752_v17  ;;  %v4352_v45 = vpop.f32.mrf.mxu0  ;;  %4639 = vmatmul.mubr.bf16.gmra.mxu0 %v5564_v23 }
 0x166   : > { %v4301_v41 = vpop.f32.mrf.mxu1  ;;  %4642 = vmatprep.mubr.bf16.mxu0 %v5567_v7 }
 0x167   : > { %v5841_v13 = vadd.f32 %v1761_v25, %v1358_v2  ;;  %v1369_v43 = vadd.f32 %v4301_v41, %v5759_v24  ;;  %v1777_v52 = vpop.f32.mrf.mxu0 }
 0x168   : > { %v1360_v51 = vpop.f32.mrf.mxu1 }
 0x169   : > { %v5844_v4 = vadd.f32 %v4349_v26, %v1369_v43  ;;  %v1361_v61 = vadd.f32 %v1360_v51, %v5770_v29  ;;  %v4353_v6 = vpop.f32.mrf.mxu0  ;;  %v2905_v26 = vshrl.u32 %v5765_v36, 16  ;;  %v3176_v43 = vrot.slane %v5768_v32, 5 }
 0x16a   : > { %v4304_v8 = vpop.f32.mrf.mxu1  ;;  %4591 = vmatmul.mubr.bf16.gmra.mxu1 %v6520_v56 }
 0x16b   : > { %v5848_v17 = vadd.f32 %v1764_v14, %v1361_v61  ;;  %v1382_v23 = vadd.f32 %v4304_v8, %v5778_v11  ;;  %v1780_v19 = vpop.f32.mrf.mxu0  ;;  %4594 = vmatprep.mubr.bf16.mxu1 %v6521_v12 }
 0x16c   : > { %v1373_v7 = vpop.f32.mrf.mxu1 }
 0x16d   : > { %v5852_v54 = vadd.f32 %v4352_v45, %v1382_v23  ;;  %v1374_v24 = vadd.f32 %v1373_v7, %v5783_v49  ;;  %v4356_v22 = vpop.f32.mrf.mxu0  ;;  %4643 = vmatmul.mubr.bf16.gmra.mxu0 %v5494_v38  ;;  %v2908_v49 = vshll.u32 %v5765_v36, 16  ;;  %v2914_v38 = vshll.u32 %v5768_v32, 16  ;;  %v339_v23 = vld [vmem:[%s4968_s6 + $0xd4] sm:$0x1] }
 0x16e   : > { %v4305_v29 = vpop.f32.mrf.mxu1  ;;  %4646 = vmatprep.mubr.bf16.mxu0 %v5515_v9  ;;  %v2918_v9 = vshrl.u32 %v5768_v32, 16  ;;  %v3996_v7 = vrot.slane %v5765_v36, 9 }
 0x16f   : > { %v5857_v5 = vadd.f32 %v1777_v52, %v1374_v24  ;;  %v1385_v56 = vadd.f32 %v4305_v29, %v5785_v15  ;;  %v1793_v25 = vpop.f32.mrf.mxu0  ;;  %v2910_v41 = vrot.slane %v2908_v49, 5  ;;  %v3178_v24 = vrot.slane %v3176_v43, 4 }
 0x170   : > { %v1376_v11 = vpop.f32.mrf.mxu1  ;;  %v2920_v51 = vrot.slane %v2918_v9, 4 }
 0x171   : > { %v5860_v44 = vadd.f32 %v4353_v6, %v1385_v56  ;;  %v1377_v12 = vadd.f32 %v1376_v11, %v5790_v34  ;;  %v4357_v10 = vpop.f32.mrf.mxu0  ;;  %v2924_v11 = vshll.u32 %v339_v23, 16 }
 0x172   : > { %v4308_v35 = vpop.f32.mrf.mxu1  ;;  %4595 = vmatmul.mubr.bf16.gmra.mxu1 %v6522_v27  ;;  %v2907_v27 = vrot.slane %v2905_v26, 4 }
 0x173   : > { %v5868_v39 = vadd.f32 %v1780_v19, %v1377_v12  ;;  %v1398_v15 = vadd.f32 %v4308_v35, %v5699_v30  ;;  %v1796_v14 = vpop.f32.mrf.mxu0  ;;  %4598 = vmatprep.mubr.bf16.mxu1 %v6523_v1  ;;  %v2916_v30 = vrot.slane %v2914_v38, 5 }
 0x174   : > { %v1389_v34 = vpop.f32.mrf.mxu1 }
 0x175   : > { %v5872_v20 = vadd.f32 %v4356_v22, %v1398_v15  ;;  %v1390_v2 = vadd.f32 %v1389_v34, %v5707_v53  ;;  %v4360_v45 = vpop.f32.mrf.mxu0  ;;  %4647 = vmatmul.mubr.bf16.gmra.mxu0 %v5521_v16  ;;  %v3179_v22 = vrot.slane %v339_v23, 5  ;;  %v6538_v23 = vld [vmem:[#allocation10_spill] sm:$0xff] }
 0x176   : > { %v4309_v52 = vpop.f32.mrf.mxu1  ;;  %4650 = vmatprep.mubr.bf16.mxu0 %v5535_v63  ;;  %v2911_v63 = vor.u32 %v2910_v41, %v2907_v27  ;;  %v6535_v41 = vld [vmem:[#allocation8_spill] sm:$0xff] }
 0x177   : > { %v5878_v61 = vadd.f32 %v1793_v25, %v1390_v2  ;;  %v1401_v1 = vadd.f32 %v4309_v52, %v5716_v58  ;;  %v1809_v6 = vpop.f32.mrf.mxu0  ;;  %v2921_v25 = vor.u32 %v2920_v51, %v2916_v30  ;;  %v6536_v51 = vld [vmem:[#allocation16_spill] sm:$0xff] }
 0x178   : > { %v1392_v8 = vpop.f32.mrf.mxu1  ;;  %v2912_v26 = vrot.slane %v2911_v63, 4  ;;  %v6539_v63 = vld [vmem:[#allocation12_spill] sm:$0xff] }
 0x179   : > { %v5882_v53 = vadd.f32 %v4357_v10, %v1401_v1  ;;  %v1393_v16 = vadd.f32 %v1392_v8, %v5725_v50  ;;  %v4361_v19 = vpop.f32.mrf.mxu0  ;;  %v2922_v15 = vrot.slane %v2921_v25, 4 }
 0x17a   : > { %v4312_v32 = vpop.f32.mrf.mxu1  ;;  %4599 = vmatmul.mubr.bf16.gmra.mxu1 %v6524_v46  ;;  %v2917_v1 = vsel %vm5006_vm2, %v2912_v26, %v2916_v30  ;;  %v6540_v30 = vld [vmem:[#allocation14_spill] sm:$0xff] }
 0x17b   : > { %v5887_v29 = vadd.f32 %v1796_v14, %v1393_v16  ;;  %v1414_v58 = vadd.f32 %v4312_v32, %v5731_v42  ;;  %v1812_v56 = vpop.f32.mrf.mxu0  ;;  %4602 = vmatprep.mubr.bf16.mxu1 %v5316_v0  ;;  %v3177_v42 = vsel %vm5326_vm5, %v3996_v7, %v3176_v43  ;;  %v3180_v0 = vsel %vm5326_vm5, %v3178_v24, %v3179_v22 }
 0x17c   : > { %v1405_v12 = vpop.f32.mrf.mxu1  ;;  %v3997_v2 = vcombine.low %v3177_v42, %v3180_v0  ;;  %v6542_v0 = vld [vmem:[#allocation7_spill] sm:$0xff] }
 0x17d   : > { %v5891_v50 = vadd.f32 %v4360_v45, %v1414_v58  ;;  %v1406_v36 = vadd.f32 %v1405_v12, %v5738_v62  ;;  %v4364_v10 = vpop.f32.mrf.mxu0  ;;  %4651 = vmatmul.mubr.bf16.gmra.mxu0 %v5593_v60  ;;  %v2926_v62 = vrot.slane %v2924_v11, 5 }
 0x17e   : > { %v4313_v46 = vpop.f32.mrf.mxu1  ;;  %4654 = vmatprep.mubr.bf16.mxu0 %v5615_v31 }
 0x17f   : > { %v5900_v35 = vadd.f32 %v1809_v6, %v1406_v36  ;;  %v1417_v38 = vadd.f32 %v4313_v46, %v5743_v3  ;;  %v1825_v9 = vpop.f32.mrf.mxu0  ;;  %v2927_v6 = vsel %vm5006_vm2, %v2922_v15, %v2926_v62 }
 0x180   : > { %v1408_v14 = vpop.f32.mrf.mxu1  ;;  %v3987_v7 = vcombine.low %v2917_v1, %v2927_v6 }
 0x181   : > { %v5903_v34 = vadd.f32 %v4361_v19, %v1417_v38  ;;  %v1409_v60 = vadd.f32 %v1408_v14, %v5749_v48  ;;  %v4365_v31 = vpop.f32.mrf.mxu0  ;;  %v6543_v14 = vld [vmem:[#allocation9_spill] sm:$0xff] }
 0x182   : > { %v4316_v45 = vpop.f32.mrf.mxu1  ;;  %4603 = vmatmul.mubr.bf16.gmra.mxu1 %v5361_v18 }
 0x183   : > { %v5907_v27 = vadd.f32 %v1812_v56, %v1409_v60  ;;  %v1430_v43 = vadd.f32 %v4316_v45, %v6535_v41  ;;  %v1828_v52 = vpop.f32.mrf.mxu0  ;;  %4606 = vmatprep.mubr.bf16.mxu1 %v6536_v51  ;;  %v6544_v41 = vld [vmem:[#allocation11_spill] sm:$0xff] }
 0x184   : > { %v1421_v8 = vpop.f32.mrf.mxu1 }
 0x185   : > { %v5915_v48 = vadd.f32 %v4364_v10, %v1430_v43  ;;  %v1422_v16 = vadd.f32 %v1421_v8, %v6538_v23  ;;  %v4368_v19 = vpop.f32.mrf.mxu0  ;;  %4655 = vmatmul.mubr.bf16.gmra.mxu0 %v3997_v2  ;;  %v6541_v10 = vld [vmem:[#allocation17_spill] sm:$0xff] }
 0x186   : > { %v4317_v18 = vpop.f32.mrf.mxu1 }
 0x187   : > { %v5918_v32 = vadd.f32 %v1825_v9, %v1422_v16  ;;  %v1433_v24 = vadd.f32 %v4317_v18, %v6539_v63  ;;  %v1841_v22 = vpop.f32.mrf.mxu0 }
 0x188   : > { %v1424_v58 = vpop.f32.mrf.mxu1 }
 0x189   : > { %v5921_v56 = vadd.f32 %v4365_v31, %v1433_v24  ;;  %v1425_v25 = vadd.f32 %v1424_v58, %v6540_v30  ;;  %v4369_v11 = vpop.f32.mrf.mxu0 }
 0x18a   : > { %v4320_v12 = vpop.f32.mrf.mxu1  ;;  %4607 = vmatmul.mubr.bf16.gmra.mxu1 %v3987_v7 }
 0x18b   : > { %v5924_v36 = vadd.f32 %v1828_v52, %v1425_v25  ;;  %v1446_v46 = vadd.f32 %v4320_v12, %v6541_v10  ;;  %v1844_v26 = vpop.f32.mrf.mxu0 }
 0x18c   : > { %v1437_v49 = vpop.f32.mrf.mxu1 }
 0x18d   : > { %v5927_v42 = vadd.f32 %v4368_v19, %v1446_v46  ;;  %v1438_v38 = vadd.f32 %v1437_v49, %v6542_v0  ;;  %v4436_v9 = vpop.f32.mrf.mxu0 }
 0x18e   : > { %v4321_v15 = vpop.f32.mrf.mxu1 }
 0x18f   : > { %v5930_v62 = vadd.f32 %v1841_v22, %v1438_v38  ;;  %v1449_v60 = vadd.f32 %v4321_v15, %v6543_v14  ;;  %v2245_v31 = vpop.f32.mrf.mxu0 }
 0x190   : > { %v1440_v2 = vpop.f32.mrf.mxu1 }
 0x191   : > { %v5933_v45 = vadd.f32 %v4369_v11, %v1449_v60  ;;  %v1441_v43 = vadd.f32 %v1440_v2, %v6544_v41  ;;  %v4437_v52 = vpop.f32.mrf.mxu0 }
 0x192   : > { %v4388_v51 = vpop.f32.mrf.mxu1 }
 0x193   : > { %v5936_v3 = vadd.f32 %v1844_v26, %v1441_v43  ;;  %v2105_v1 = vadd.f32 %v4388_v51, %v5804_v47  ;;  %v2248_v6 = vpop.f32.mrf.mxu0 }
 0x194   : > { %v1976_v8 = vpop.f32.mrf.mxu1 }
 0x195   : > { %v5939_v23 = vadd.f32 %v4436_v9, %v2105_v1  ;;  %v2103_v16 = vadd.f32 %v1976_v8, %v5809_v28  ;;  %v4440_v19 = vpop.f32.mrf.mxu0 }
 0x196   : > { %v4389_v18 = vpop.f32.mrf.mxu1 }
 0x197   : > { %v5942_v7 = vadd.f32 %v2245_v31, %v2103_v16  ;;  %v2106_v63 = vadd.f32 %v4389_v18, %v5812_v57  ;;  %v2261_v24 = vpop.f32.mrf.mxu0 }
 0x198   : > { %v1979_v22 = vpop.f32.mrf.mxu1 }
 0x199   : > { %v5945_v58 = vadd.f32 %v4437_v52, %v2106_v63  ;;  %v2104_v30 = vadd.f32 %v1979_v22, %v5816_v33  ;;  %v4441_v25 = vpop.f32.mrf.mxu0 }
 0x19a   : > { %v4392_v47 = vpop.f32.mrf.mxu1 }
 0x19b   : > { %v5948_v11 = vadd.f32 %v2248_v6, %v2104_v30  ;;  %v2109_v12 = vadd.f32 %v4392_v47, %v5820_v59  ;;  %v2264_v10 = vpop.f32.mrf.mxu0 }
 0x19c   : > { %v1992_v28 = vpop.f32.mrf.mxu1 }
 0x19d   : > { %v5951_v46 = vadd.f32 %v4440_v19, %v2109_v12  ;;  %v2107_v26 = vadd.f32 %v1992_v28, %v5825_v55  ;;  %v4444_v49 = vpop.f32.mrf.mxu0 }
 0x19e   : > { %v4393_v57 = vpop.f32.mrf.mxu1 }
 0x19f   : > { %v5954_v0 = vadd.f32 %v2261_v24, %v2107_v26  ;;  %v2110_v38 = vadd.f32 %v4393_v57, %v5828_v21  ;;  %v2277_v9 = vpop.f32.mrf.mxu0 }
 0x1a0   : > { %v1995_v33 = vpop.f32.mrf.mxu1 }
 0x1a1   : > { %v5957_v15 = vadd.f32 %v4441_v25, %v2110_v38  ;;  %v2108_v14 = vadd.f32 %v1995_v33, %v5832_v40  ;;  %v4445_v60 = vpop.f32.mrf.mxu0 }
 0x1a2   : > { %v4396_v59 = vpop.f32.mrf.mxu1 }
 0x1a3   : > { %v5960_v31 = vadd.f32 %v2264_v10, %v2108_v14  ;;  %v2113_v2 = vadd.f32 %v4396_v59, %v5836_v37  ;;  %v2280_v41 = vpop.f32.mrf.mxu0 }
 0x1a4   : > { %v2008_v55 = vpop.f32.mrf.mxu1 }
 0x1a5   : > { %v5963_v43 = vadd.f32 %v4444_v49, %v2113_v2  ;;  %v2111_v52 = vadd.f32 %v2008_v55, %v5841_v13  ;;  %v4448_v51 = vpop.f32.mrf.mxu0 }
 0x1a6   : > { %v4397_v21 = vpop.f32.mrf.mxu1 }
 0x1a7   : > { %v5966_v1 = vadd.f32 %v2277_v9, %v2111_v52  ;;  %v2114_v6 = vadd.f32 %v4397_v21, %v5844_v4  ;;  %v2293_v8 = vpop.f32.mrf.mxu0 }
 0x1a8   : > { %v2011_v40 = vpop.f32.mrf.mxu1 }
 0x1a9   : > { %v5969_v16 = vadd.f32 %v4445_v60, %v2114_v6  ;;  %v2112_v19 = vadd.f32 %v2011_v40, %v5848_v17  ;;  %v4449_v18 = vpop.f32.mrf.mxu0 }
 0x1aa   : > { %v4400_v37 = vpop.f32.mrf.mxu1 }
 0x1ab   : > { %v5972_v63 = vadd.f32 %v2280_v41, %v2112_v19  ;;  %v2117_v24 = vadd.f32 %v4400_v37, %v5852_v54  ;;  %v2296_v22 = vpop.f32.mrf.mxu0 }
 0x1ac   : > { %v2024_v13 = vpop.f32.mrf.mxu1 }
 0x1ad   : > { %v5975_v30 = vadd.f32 %v4448_v51, %v2117_v24  ;;  %v2115_v25 = vadd.f32 %v2024_v13, %v5857_v5  ;;  %v4452_v47 = vpop.f32.mrf.mxu0 }
 0x1ae   : > { %v4401_v4 = vpop.f32.mrf.mxu1 }
 0x1af   : > { %v5978_v12 = vadd.f32 %v2293_v8, %v2115_v25  ;;  %v2118_v10 = vadd.f32 %v4401_v4, %v5860_v44  ;;  %v2309_v28 = vpop.f32.mrf.mxu0 }
 0x1b0   : > { %v2027_v17 = vpop.f32.mrf.mxu1 }
 0x1b1   : > { %v5981_v26 = vadd.f32 %v4449_v18, %v2118_v10  ;;  %v2116_v49 = vadd.f32 %v2027_v17, %v5868_v39  ;;  %v4453_v57 = vpop.f32.mrf.mxu0 }
 0x1b2   : > { %v4404_v54 = vpop.f32.mrf.mxu1 }
 0x1b3   : > { %v5984_v38 = vadd.f32 %v2296_v22, %v2116_v49  ;;  %v2121_v9 = vadd.f32 %v4404_v54, %v5872_v20  ;;  %v2312_v33 = vpop.f32.mrf.mxu0 }
 0x1b4   : > { %v2040_v5 = vpop.f32.mrf.mxu1 }
 0x1b5   : > { %v5987_v14 = vadd.f32 %v4452_v47, %v2121_v9  ;;  %v2119_v60 = vadd.f32 %v2040_v5, %v5878_v61  ;;  %v4456_v59 = vpop.f32.mrf.mxu0 }
 0x1b6   : > { %v4405_v44 = vpop.f32.mrf.mxu1 }
 0x1b7   : > { %v5990_v2 = vadd.f32 %v2309_v28, %v2119_v60  ;;  %v2122_v41 = vadd.f32 %v4405_v44, %v5882_v53  ;;  %v2325_v55 = vpop.f32.mrf.mxu0 }
 0x1b8   : > { %v2043_v39 = vpop.f32.mrf.mxu1 }
 0x1b9   : > { %v5993_v52 = vadd.f32 %v4453_v57, %v2122_v41  ;;  %v2120_v51 = vadd.f32 %v2043_v39, %v5887_v29  ;;  %v4457_v21 = vpop.f32.mrf.mxu0 }
 0x1ba   : > { %v4408_v20 = vpop.f32.mrf.mxu1 }
 0x1bb   : > { %6545 = vst [vmem:[#allocation13_spill] sm:$0xff] %v5993_v52  ;;  %v5996_v6 = vadd.f32 %v2312_v33, %v2120_v51  ;;  %v2125_v8 = vadd.f32 %v4408_v20, %v5891_v50  ;;  %v2328_v40 = vpop.f32.mrf.mxu0 }
 0x1bc   : > { %v2056_v61 = vpop.f32.mrf.mxu1 }
 0x1bd   : > { %6546 = vst [vmem:[#allocation15_spill] sm:$0xff] %v5996_v6  ;;  %v5999_v19 = vadd.f32 %v4456_v59, %v2125_v8  ;;  %v2123_v18 = vadd.f32 %v2056_v61, %v5900_v35  ;;  %v4460_v37 = vpop.f32.mrf.mxu0 }
 0x1be   : > { %v4409_v53 = vpop.f32.mrf.mxu1 }
 0x1bf   : > { %6547 = vst [vmem:[#allocation18_spill] sm:$0xff] %v5999_v19  ;;  %v6002_v24 = vadd.f32 %v2325_v55, %v2123_v18  ;;  %v2126_v22 = vadd.f32 %v4409_v53, %v5903_v34  ;;  %v2341_v13 = vpop.f32.mrf.mxu0 }
 0x1c0   : > { %v2059_v29 = vpop.f32.mrf.mxu1 }
 0x1c1   : > { %6548 = vst [vmem:[#allocation19_spill] sm:$0xff] %v6002_v24  ;;  %v6005_v25 = vadd.f32 %v4457_v21, %v2126_v22  ;;  %v2124_v47 = vadd.f32 %v2059_v29, %v5907_v27  ;;  %v4461_v4 = vpop.f32.mrf.mxu0 }
 0x1c2   : > { %v4412_v50 = vpop.f32.mrf.mxu1 }
 0x1c3   : > { %6549 = vst [vmem:[#allocation8_spill] sm:$0xff] %v6005_v25  ;;  %v6008_v10 = vadd.f32 %v2328_v40, %v2124_v47  ;;  %v2129_v28 = vadd.f32 %v4412_v50, %v5915_v48  ;;  %v2344_v17 = vpop.f32.mrf.mxu0 }
 0x1c4   : > { %v2072_v35 = vpop.f32.mrf.mxu1 }
 0x1c5   : > { %6550 = vst [vmem:[#allocation16_spill] sm:$0xff] %v6008_v10  ;;  %v6011_v49 = vadd.f32 %v4460_v37, %v2129_v28  ;;  %v2127_v57 = vadd.f32 %v2072_v35, %v5918_v32  ;;  %v4464_v54 = vpop.f32.mrf.mxu0 }
 0x1c6   : > { %v4413_v34 = vpop.f32.mrf.mxu1 }
 0x1c7   : > { %6551 = vst [vmem:[#allocation6_spill] sm:$0xff] %v6011_v49  ;;  %v6014_v9 = vadd.f32 %v2341_v13, %v2127_v57  ;;  %v2130_v33 = vadd.f32 %v4413_v34, %v5921_v56  ;;  %v2357_v5 = vpop.f32.mrf.mxu0 }
 0x1c8   : > { %v2075_v27 = vpop.f32.mrf.mxu1 }
 0x1c9   : > { %6552 = vst [vmem:[#allocation10_spill] sm:$0xff] %v6014_v9  ;;  %v6017_v60 = vadd.f32 %v4461_v4, %v2130_v33  ;;  %v2128_v59 = vadd.f32 %v2075_v27, %v5924_v36  ;;  %v4465_v44 = vpop.f32.mrf.mxu0 }
 0x1ca   : > { %v4416_v48 = vpop.f32.mrf.mxu1 }
 0x1cb   : > { %6553 = vst [vmem:[#allocation12_spill] sm:$0xff] %v6017_v60  ;;  %v6020_v41 = vadd.f32 %v2344_v17, %v2128_v59  ;;  %v2133_v55 = vadd.f32 %v4416_v48, %v5927_v42  ;;  %v2360_v39 = vpop.f32.mrf.mxu0 }
 0x1cc   : > { %v2088_v32 = vpop.f32.mrf.mxu1 }
 0x1cd   : > { %6554 = vst [vmem:[#allocation14_spill] sm:$0xff] %v6020_v41  ;;  %v6023_v51 = vadd.f32 %v4464_v54, %v2133_v55  ;;  %v2131_v21 = vadd.f32 %v2088_v32, %v5930_v62  ;;  %v6026_v20 = vpop.f32.mrf.mxu0 }
 0x1ce   : > { %v4417_v56 = vpop.f32.mrf.mxu1 }
 0x1cf   : > { %6555 = vst [vmem:[#allocation17_spill] sm:$0xff] %v6023_v51  ;;  %v6028_v8 = vadd.f32 %v2357_v5, %v2131_v21  ;;  %v2134_v40 = vadd.f32 %v4417_v56, %v5933_v45  ;;  %v6031_v36 = vpop.f32.mrf.mxu0 }
 0x1d0   : > { %v2091_v61 = vpop.f32.mrf.mxu1 }
 0x1d1   : > { %6556 = vst [vmem:[#allocation7_spill] sm:$0xff] %v6028_v8  ;;  %v6033_v18 = vadd.f32 %v4465_v44, %v2134_v40  ;;  %v2132_v42 = vadd.f32 %v2091_v61, %v5936_v3  ;;  %v6036_v37 = vpop.f32.mrf.mxu0 }
 0x1d2   : > { %v4484_v53 = vpop.f32.mrf.mxu1 }
 0x1d3   : > { %6557 = vst [vmem:[#allocation9_spill] sm:$0xff] %v6033_v18  ;;  %v6038_v22 = vadd.f32 %v2360_v39, %v2132_v42  ;;  %v6040_v62 = vpop.f32.mrf.mxu0 }
 0x1d4   : > { %v2498_v13 = vpop.f32.mrf.mxu1 }
 0x1d5   : > { %6558 = vst [vmem:[#allocation11_spill] sm:$0xff] %v6038_v22  ;;  %v6042_v29 = vpop.f32.mrf.mxu0 }
 0x1d6   : > { %v4485_v47 = vpop.f32.mrf.mxu1 }
 0x1d7   : > { %v6044_v4 = vpop.f32.mrf.mxu0 }
 0x1d8   : > { %v6046_v45 = vpop.f32.mrf.mxu1 }
 0x1d9   : > { %v6048_v50 = vpop.f32.mrf.mxu0 }
 0x1da   : > { %v6050_v28 = vpop.f32.mrf.mxu1 }
 0x1db   : > { %v6052_v3 = vpop.f32.mrf.mxu0 }
 0x1dc   : > { %v6054_v17 = vpop.f32.mrf.mxu1 }
 0x1dd   : > { %v6056_v35 = vpop.f32.mrf.mxu0 }
 0x1de   : > { %v6058_v57 = vpop.f32.mrf.mxu1 }
 0x1df   : > { %v6060_v54 = vpop.f32.mrf.mxu0 }
 0x1e0   : > { %v6062_v34 = vpop.f32.mrf.mxu1 }
 0x1e1   : > { %v6064_v33 = vpop.f32.mrf.mxu0 }
 0x1e2   : > { %v6066_v5 = vpop.f32.mrf.mxu1 }
 0x1e3   : > { %v6068_v27 = vpop.f32.mrf.mxu0 }
 0x1e4   : > { %v6070_v59 = vpop.f32.mrf.mxu1 }
 0x1e5   : > { %v6072_v44 = vpop.f32.mrf.mxu0 }
 0x1e6   : > { %v6074_v48 = vpop.f32.mrf.mxu1 }
 0x1e7   : > { %v6076_v55 = vpop.f32.mrf.mxu0 }
 0x1e8   : > { %v6078_v39 = vpop.f32.mrf.mxu1 }
 0x1e9   : > { %v6080_v32 = vpop.f32.mrf.mxu0 }
 0x1ea   : > { %v6082_v21 = vpop.f32.mrf.mxu1 }
 0x1eb   : > { %v6084_v56 = vpop.f32.mrf.mxu0 }
 0x1ec   : > { %6559 = vst [vmem:[#allocation20_spill] sm:$0xff] %v6084_v56  ;;  %v6086_v40 = vpop.f32.mrf.mxu1 }
 0x1ed   : > { %v6088_v61 = vpop.f32.mrf.mxu0 }
 0x1ee   : > { %6560 = vst [vmem:[#allocation21_spill] sm:$0xff] %v6088_v61  ;;  %v6090_v42 = vpop.f32.mrf.mxu1 }
 0x1ef   : > { %v6092_v22 = vpop.f32.mrf.mxu0 }
 0x1f0   : > { %6561 = vst [vmem:[#allocation22_spill] sm:$0xff] %v6092_v22  ;;  %v6094_v18 = vpop.f32.mrf.mxu1 }
 0x1f1   : > { %v6096_v8 = vpop.f32.mrf.mxu0 }
 0x1f2   : > { %6562 = vst [vmem:[#allocation23_spill] sm:$0xff] %v6096_v8  ;;  %v6098_v51 = vpop.f32.mrf.mxu1 }
 0x1f3   : > { %v6100_v41 = vpop.f32.mrf.mxu0 }
 0x1f4   : > { %6563 = vst [vmem:[#allocation24_spill] sm:$0xff] %v6100_v41  ;;  %v6102_v60 = vpop.f32.mrf.mxu1 }
 0x1f5   : > { %6564 = vst [vmem:[#allocation25_spill] sm:$0xff] %v6102_v60  ;;  %v6104_v9 = vpop.f32.mrf.mxu0 }
 0x1f6   : > { %6565 = vst [vmem:[#allocation26_spill] sm:$0xff] %v6104_v9  ;;  %v6106_v49 = vpop.f32.mrf.mxu1 }
 0x1f7   : > { %6566 = vst [vmem:[#allocation27_spill] sm:$0xff] %v6106_v49  ;;  %v6108_v10 = vpop.f32.mrf.mxu0 }
 0x1f8   : > { %6567 = vst [vmem:[#allocation28_spill] sm:$0xff] %v6108_v10  ;;  %v6110_v25 = vpop.f32.mrf.mxu1 }
 0x1f9   : > { %6568 = vst [vmem:[#allocation29_spill] sm:$0xff] %v6110_v25  ;;  %v6112_v24 = vpop.f32.mrf.mxu0 }
 0x1fa   : > { %6569 = vst [vmem:[#allocation30_spill] sm:$0xff] %v6112_v24  ;;  %v6114_v19 = vpop.f32.mrf.mxu1 }
 0x1fb   : > { %6570 = vst [vmem:[#allocation31_spill] sm:$0xff] %v6114_v19  ;;  %v6116_v6 = vpop.f32.mrf.mxu0 }
 0x1fc   : > { %6571 = vst [vmem:[#allocation32_spill] sm:$0xff] %v6116_v6  ;;  %v6118_v8 = vpop.f32.mrf.mxu1 }
 0x1fd   : > { %6572 = vst [vmem:[#allocation33_spill] sm:$0xff] %v6118_v8  ;;  %v6120_v22 = vpop.f32.mrf.mxu0 }
 0x1fe   : > { %6573 = vst [vmem:[#allocation34_spill] sm:$0xff] %v6120_v22  ;;  %v6122_v41 = vpop.f32.mrf.mxu1 }
 0x1ff   : > { %6574 = vst [vmem:[#allocation35_spill] sm:$0xff] %v6122_v41  ;;  %v6124_v52 = vpop.f32.mrf.mxu0 }
 0x200   : > { %6575 = vst [vmem:[#allocation36_spill] sm:$0xff] %v6124_v52  ;;  %v6126_v9 = vpop.f32.mrf.mxu1 }
 0x201   : > { %6576 = vst [vmem:[#allocation37_spill] sm:$0xff] %v6126_v9  ;;  %v6128_v49 = vpop.f32.mrf.mxu0 }
 0x202   : > { %6577 = vst [vmem:[#allocation38_spill] sm:$0xff] %v6128_v49  ;;  %v6130_v10 = vpop.f32.mrf.mxu1 }
 0x203   : > { %6578 = vst [vmem:[#allocation39_spill] sm:$0xff] %v6130_v10  ;;  %v6132_v25 = vpop.f32.mrf.mxu0 }
 0x204   : > { %6579 = vst [vmem:[#allocation40_spill] sm:$0xff] %v6132_v25  ;;  %v6134_v24 = vpop.f32.mrf.mxu1  ;;  %v2627_v25 = vadd.f32 %v4484_v53, %v5939_v23 }
 0x205   : > { %6580 = vst [vmem:[#allocation41_spill] sm:$0xff] %v6134_v24  ;;  %v6136_v19 = vpop.f32.mrf.mxu0 }
 0x206   : > { %6581 = vst [vmem:[#allocation42_spill] sm:$0xff] %v6136_v19  ;;  %v6138_v6 = vpop.f32.mrf.mxu1  ;;  %v2625_v19 = vadd.f32 %v2498_v13, %v5942_v7  ;;  %v3428_v7 = vld [vmem:[#allocation2 + $0xd8] sm:$0xff] }
 0x207   : > { %6582 = vst [vmem:[#allocation43_spill] sm:$0xff] %v6138_v6  ;;  %v6140_v8 = vpop.f32.mrf.mxu0 }
 0x208   : > { %6583 = vst [vmem:[#allocation44_spill] sm:$0xff] %v6140_v8  ;;  %v6142_v22 = vpop.f32.mrf.mxu1  ;;  %v2874_v8 = vadd.f32 %v6026_v20, %v2627_v25 }
 0x209   : > { %6584 = vst [vmem:[#allocation45_spill] sm:$0xff] %v6142_v22  ;;  %v6144_v41 = vpop.f32.mrf.mxu0 }
 0x20a   : > { %6585 = vst [vmem:[#allocation46_spill] sm:$0xff] %v6144_v41  ;;  %v6146_v52 = vpop.f32.mrf.mxu1  ;;  %v2628_v41 = vadd.f32 %v4485_v47, %v5945_v58  ;;  %v2629_v58 = vadd.f32 %v6054_v17, %v5954_v0  ;;  %v3426_v47 = vld [vmem:[#allocation2 + $0xb0] sm:$0xff] }
 0x20b   : > { %6586 = vst [vmem:[#allocation47_spill] sm:$0xff] %v6146_v52  ;;  %v6148_v9 = vpop.f32.mrf.mxu0 }
 0x20c   : > { %6587 = vst [vmem:[#allocation48_spill] sm:$0xff] %v6148_v9  ;;  %v6150_v49 = vpop.f32.mrf.mxu1  ;;  %v2872_v9 = vadd.f32 %v6031_v36, %v2625_v19  ;;  %v2876_v17 = vadd.f32 %v6044_v4, %v2629_v58 }
 0x20d   : > { %6588 = vst [vmem:[#allocation49_spill] sm:$0xff] %v6150_v49  ;;  %v4628_v10 = vpop.f32.mrf.mxu0  ;;  %v2626_v49 = vadd.f32 %v6046_v45, %v5948_v11 }
 0x20e   : > { %v6153_v24 = vpop.f32.mrf.mxu1 }
 0x20f   : > { %6589 = vst [vmem:[#allocation50_spill] sm:$0xff] %v6153_v24  ;;  %v3267_v6 = vpop.f32.mrf.mxu0  ;;  %v2631_v24 = vadd.f32 %v6050_v28, %v5951_v46  ;;  %v2873_v36 = vadd.f32 %v6040_v62, %v2626_v49  ;;  %v3429_v28 = vld [vmem:[#allocation2 + $0x18] sm:$0xff] }
 0x210   : > { %v6156_v61 = vpop.f32.mrf.mxu1 }
 0x211   : > { %6590 = vst [vmem:[#allocation51_spill] sm:$0xff] %v6156_v61  ;;  %v4629_v22 = vpop.f32.mrf.mxu0  ;;  %v2875_v61 = vadd.f32 %v6036_v37, %v2628_v41  ;;  %v2878_v46 = vadd.f32 %v6042_v29, %v2631_v24 }
 0x212   : > { %v4580_v52 = vpop.f32.mrf.mxu1 }
 0x213   : > { %v3143_v23 = vadd.f32 %v4580_v52, %v2874_v8  ;;  %v3270_v53 = vpop.f32.mrf.mxu0 }
 0x214   : > { %v3014_v13 = vpop.f32.mrf.mxu1 }
 0x215   : > { %v3396_v56 = vadd.f32 %v4628_v10, %v3143_v23  ;;  %v3141_v25 = vadd.f32 %v3014_v13, %v2872_v9  ;;  %v4632_v20 = vpop.f32.mrf.mxu0  ;;  %v2632_v10 = vadd.f32 %v6058_v57, %v5957_v15  ;;  %v3427_v23 = vld [vmem:[#allocation2] sm:$0xff]  ;;  %v2635_v15 = vadd.f32 %v6066_v5, %v5963_v43  ;;  %v3432_v57 = vld [vmem:[#allocation2 + $0x30] sm:$0xff] }
 0x216   : > { %v4581_v19 = vpop.f32.mrf.mxu1 }
 0x217   : > { %v3460_v11 = vadd.f32 %v3428_v7, %v3396_v56  ;;  %v3394_v52 = vadd.f32 %v3267_v6, %v3141_v25  ;;  %v3144_v8 = vadd.f32 %v4581_v19, %v2875_v61  ;;  %v3283_v45 = vpop.f32.mrf.mxu0  ;;  %v2630_v6 = vadd.f32 %v6062_v34, %v5960_v31  ;;  %v3430_v34 = vld [vmem:[#allocation2 + $0x50] sm:$0xff] }
 0x218   : > { %v3017_v60 = vpop.f32.mrf.mxu1  ;;  %v2633_v31 = vadd.f32 %v6070_v59, %v5966_v1  ;;  %v2882_v19 = vadd.f32 %v6056_v35, %v2635_v15  ;;  %v2640_v15 = vadd.f32 %v6090_v42, %v5981_v26  ;;  %v2643_v26 = vadd.f32 %v6098_v51, %v5987_v14  ;;  %v3440_v42 = vld [vmem:[#allocation2 + $0x8] sm:$0xff] }
 0x219   : > { %3492 = vst [vmem:[#allocation2 + $0xd8] sm:$0xff] %v3460_v11  ;;  %v3458_v9 = vadd.f32 %v3426_v47, %v3394_v52  ;;  %v3397_v41 = vadd.f32 %v4629_v22, %v3144_v8  ;;  %v3142_v37 = vadd.f32 %v3017_v60, %v2873_v36  ;;  %v4633_v0 = vpop.f32.mrf.mxu0  ;;  %v2879_v60 = vadd.f32 %v6048_v50, %v2632_v10  ;;  %v3433_v50 = vld [vmem:[#allocation2 + $0x48] sm:$0xff] }
 0x21a   : > { %v4584_v49 = vpop.f32.mrf.mxu1  ;;  %v2880_v8 = vadd.f32 %v6060_v54, %v2633_v31 }
 0x21b   : > { %3490 = vst [vmem:[#allocation2 + $0xb0] sm:$0xff] %v3458_v9  ;;  %v3461_v62 = vadd.f32 %v3429_v28, %v3397_v41  ;;  %v3395_v24 = vadd.f32 %v3270_v53, %v3142_v37  ;;  %v3147_v29 = vadd.f32 %v4584_v49, %v2878_v46  ;;  %v3286_v56 = vpop.f32.mrf.mxu0  ;;  %v2877_v53 = vadd.f32 %v6052_v3, %v2630_v6  ;;  %v3431_v3 = vld [vmem:[#allocation2 + $0x68] sm:$0xff] }
 0x21c   : > { %v3030_v61 = vpop.f32.mrf.mxu1 }
 0x21d   : > { %3493 = vst [vmem:[#allocation2 + $0x18] sm:$0xff] %v3461_v62  ;;  %v3459_v22 = vadd.f32 %v3427_v23, %v3395_v24  ;;  %v3400_v4 = vadd.f32 %v4632_v20, %v3147_v29  ;;  %v3145_v7 = vadd.f32 %v3030_v61, %v2876_v17  ;;  %v4636_v13 = vpop.f32.mrf.mxu0  ;;  %v2636_v20 = vadd.f32 %v6074_v48, %v5969_v16  ;;  %v3436_v48 = vld [vmem:[#allocation2 + $0xe8] sm:$0xff] }
 0x21e   : > { %v4585_v25 = vpop.f32.mrf.mxu1  ;;  %v2639_v16 = vadd.f32 %v6082_v21, %v5975_v30 }
 0x21f   : > { %3491 = vst [vmem:[#allocation2] sm:$0xff] %v3459_v22  ;;  %v3464_v58 = vadd.f32 %v3432_v57, %v3400_v4  ;;  %v3398_v47 = vadd.f32 %v3283_v45, %v3145_v7  ;;  %v3148_v43 = vadd.f32 %v4585_v25, %v2879_v60  ;;  %v3299_v5 = vpop.f32.mrf.mxu0  ;;  %v2634_v45 = vadd.f32 %v6078_v39, %v5972_v63  ;;  %v3434_v39 = vld [vmem:[#allocation2 + $0x80] sm:$0xff] }
 0x220   : > { %v3033_v36 = vpop.f32.mrf.mxu1  ;;  %v2883_v37 = vadd.f32 %v6064_v33, %v2636_v20  ;;  %v2637_v63 = vadd.f32 %v6086_v40, %v5978_v12  ;;  %v2886_v29 = vadd.f32 %v6072_v44, %v2639_v16  ;;  %v3437_v33 = vld [vmem:[#allocation2 + $0xb8] sm:$0xff]  ;;  %v2638_v4 = vadd.f32 %v6094_v18, %v5984_v38  ;;  %v3438_v18 = vld [vmem:[#allocation2 + $0x60] sm:$0xff] }
 0x221   : > { %3496 = vst [vmem:[#allocation2 + $0x30] sm:$0xff] %v3464_v58  ;;  %v3462_v11 = vadd.f32 %v3430_v34, %v3398_v47  ;;  %v3401_v52 = vadd.f32 %v4633_v0, %v3148_v43  ;;  %v3146_v1 = vadd.f32 %v3033_v36, %v2877_v53  ;;  %v4637_v59 = vpop.f32.mrf.mxu0  ;;  %v2881_v6 = vadd.f32 %v6068_v27, %v2634_v45  ;;  %v3435_v27 = vld [vmem:[#allocation2 + $0x88] sm:$0xff]  ;;  %v6591_v43 = vld [vmem:[#allocation25_spill] sm:$0xff] }
 0x222   : > { %v4588_v46 = vpop.f32.mrf.mxu1  ;;  %v2884_v60 = vadd.f32 %v6076_v55, %v2637_v63  ;;  %v2887_v25 = vadd.f32 %v6080_v32, %v2640_v15  ;;  %v2641_v38 = vadd.f32 %v6591_v43, %v5990_v2  ;;  %v3441_v32 = vld [vmem:[#allocation2 + $0x78] sm:$0xff]  ;;  %v6599_v63 = vld [vmem:[#allocation18_spill] sm:$0xff]  ;;  %v6602_v15 = vld [vmem:[#allocation19_spill] sm:$0xff] }
 0x223   : > { %3494 = vst [vmem:[#allocation2 + $0x50] sm:$0xff] %v3462_v11  ;;  %v3465_v28 = vadd.f32 %v3433_v50, %v3401_v52  ;;  %v3399_v35 = vadd.f32 %v3286_v56, %v3146_v1  ;;  %v3151_v10 = vadd.f32 %v4588_v46, %v2882_v19  ;;  %v3302_v9 = vpop.f32.mrf.mxu0  ;;  %v6592_v19 = vld [vmem:[#allocation20_spill] sm:$0xff]  ;;  %v6593_v11 = vld [vmem:[#allocation21_spill] sm:$0xff] }
 0x224   : > { %v3046_v41 = vpop.f32.mrf.mxu1  ;;  %v2885_v50 = vadd.f32 %v6592_v19, %v2638_v4  ;;  %v2890_v52 = vadd.f32 %v6593_v11, %v2643_v26  ;;  %v3445_v26 = vld [vmem:[#allocation2 + $0xc8] sm:$0xff] }
 0x225   : > { %3497 = vst [vmem:[#allocation2 + $0x48] sm:$0xff] %v3465_v28  ;;  %v3463_v0 = vadd.f32 %v3431_v3, %v3399_v35  ;;  %v3404_v54 = vadd.f32 %v4636_v13, %v3151_v10  ;;  %v3149_v17 = vadd.f32 %v3046_v41, %v2880_v8  ;;  %v4640_v23 = vpop.f32.mrf.mxu0  ;;  %v6595_v8 = vld [vmem:[#allocation27_spill] sm:$0xff]  ;;  %v6596_v35 = vld [vmem:[#allocation22_spill] sm:$0xff]  ;;  %v6598_v41 = vld [vmem:[#allocation29_spill] sm:$0xff] }
 0x226   : > { %v4589_v49 = vpop.f32.mrf.mxu1  ;;  %v2888_v10 = vadd.f32 %v6596_v35, %v2641_v38  ;;  %v6608_v38 = vld [vmem:[#allocation28_spill] sm:$0xff] }
 0x227   : > { %3495 = vst [vmem:[#allocation2 + $0x68] sm:$0xff] %v3463_v0  ;;  %v3468_v62 = vadd.f32 %v3436_v48, %v3404_v54  ;;  %v3402_v24 = vadd.f32 %v3299_v5, %v3149_v17  ;;  %v3152_v30 = vadd.f32 %v4589_v49, %v2883_v37  ;;  %v3315_v21 = vpop.f32.mrf.mxu0  ;;  %v6597_v48 = vld [vmem:[#allocation15_spill] sm:$0xff] }
 0x228   : > { %v3049_v56 = vpop.f32.mrf.mxu1  ;;  %v2642_v37 = vadd.f32 %v6598_v41, %v6597_v48  ;;  %v3446_v41 = vld [vmem:[#allocation2 + $0xe0] sm:$0xff] }
 0x229   : > { %3500 = vst [vmem:[#allocation2 + $0xe8] sm:$0xff] %v3468_v62  ;;  %v3466_v57 = vadd.f32 %v3434_v39, %v3402_v24  ;;  %v3405_v61 = vadd.f32 %v4637_v59, %v3152_v30  ;;  %v3150_v12 = vadd.f32 %v3049_v56, %v2881_v6  ;;  %v4641_v40 = vpop.f32.mrf.mxu0  ;;  %v6594_v59 = vld [vmem:[#allocation13_spill] sm:$0xff]  ;;  %v6600_v39 = vld [vmem:[#allocation31_spill] sm:$0xff]  ;;  %v3444_v6 = vld [vmem:[#allocation2 + $0x40] sm:$0xff] }
 0x22a   : > { %v4592_v22 = vpop.f32.mrf.mxu1  ;;  %v2644_v3 = vadd.f32 %v6595_v8, %v6594_v59  ;;  %v2647_v49 = vadd.f32 %v6600_v39, %v6599_v63  ;;  %v6601_v24 = vld [vmem:[#allocation23_spill] sm:$0xff]  ;;  %v3448_v8 = vld [vmem:[#allocation2 + $0x70] sm:$0xff] }
 0x22b   : > { %3498 = vst [vmem:[#allocation2 + $0x80] sm:$0xff] %v3466_v57  ;;  %v3469_v7 = vadd.f32 %v3437_v33, %v3405_v61  ;;  %v3403_v44 = vadd.f32 %v3302_v9, %v3150_v12  ;;  %v3155_v13 = vadd.f32 %v4592_v22, %v2886_v29  ;;  %v3318_v31 = vpop.f32.mrf.mxu0  ;;  %v3439_v9 = vld [vmem:[#allocation2 + $0xf0] sm:$0xff]  ;;  %v6603_v57 = vld [vmem:[#allocation33_spill] sm:$0xff] }
 0x22c   : > { %v3062_v34 = vpop.f32.mrf.mxu1  ;;  %v2891_v30 = vadd.f32 %v6601_v24, %v2644_v3  ;;  %v2645_v61 = vadd.f32 %v6603_v57, %v6602_v15  ;;  %v3442_v12 = vld [vmem:[#allocation2 + $0x38] sm:$0xff] }
 0x22d   : > { %3501 = vst [vmem:[#allocation2 + $0xb8] sm:$0xff] %v3469_v7  ;;  %v3467_v53 = vadd.f32 %v3435_v27, %v3403_v44  ;;  %v3408_v55 = vadd.f32 %v4640_v23, %v3155_v13  ;;  %v3153_v58 = vadd.f32 %v3062_v34, %v2884_v60  ;;  %v4644_v47 = vpop.f32.mrf.mxu0  ;;  %v6604_v60 = vld [vmem:[#allocation24_spill] sm:$0xff]  ;;  %v6605_v13 = vld [vmem:[#allocation26_spill] sm:$0xff] }
 0x22e   : > { %v4593_v5 = vpop.f32.mrf.mxu1  ;;  %v2889_v27 = vadd.f32 %v6604_v60, %v2642_v37  ;;  %v6606_v34 = vld [vmem:[#allocation8_spill] sm:$0xff] }
 0x22f   : > { %3499 = vst [vmem:[#allocation2 + $0x88] sm:$0xff] %v3467_v53  ;;  %v3472_v36 = vadd.f32 %v3440_v42, %v3408_v55  ;;  %v3406_v20 = vadd.f32 %v3315_v21, %v3153_v58  ;;  %v3156_v14 = vadd.f32 %v4593_v5, %v2887_v25  ;;  %v3331_v51 = vpop.f32.mrf.mxu0  ;;  %v6607_v25 = vld [vmem:[#allocation35_spill] sm:$0xff]  ;;  %v3443_v5 = vld [vmem:[#allocation2 + $0x58] sm:$0xff] }
 0x230   : > { %v3065_v1 = vpop.f32.mrf.mxu1  ;;  %v2648_v53 = vadd.f32 %v6607_v25, %v6606_v34  ;;  %v3452_v25 = vld [vmem:[#allocation2 + $0x10] sm:$0xff] }
 0x231   : > { %3504 = vst [vmem:[#allocation2 + $0x8] sm:$0xff] %v3472_v36  ;;  %v3470_v46 = vadd.f32 %v3438_v18, %v3406_v20  ;;  %v3409_v45 = vadd.f32 %v4641_v40, %v3156_v14  ;;  %v3154_v2 = vadd.f32 %v3065_v1, %v2885_v50  ;;  %v4645_v28 = vpop.f32.mrf.mxu0  ;;  %v2892_v18 = vadd.f32 %v6608_v38, %v2645_v61  ;;  %v6609_v50 = vld [vmem:[#allocation16_spill] sm:$0xff]  ;;  %v6610_v36 = vld [vmem:[#allocation37_spill] sm:$0xff]  ;;  %v6612_v1 = vld [vmem:[#allocation39_spill] sm:$0xff] }
 0x232   : > { %v4596_v16 = vpop.f32.mrf.mxu1  ;;  %v2646_v20 = vadd.f32 %v6610_v36, %v6609_v50  ;;  %v6620_v61 = vld [vmem:[#allocation36_spill] sm:$0xff]  ;;  %v3450_v50 = vld [vmem:[#allocation2 + $0xa8] sm:$0xff] }
 0x233   : > { %3502 = vst [vmem:[#allocation2 + $0x60] sm:$0xff] %v3470_v46  ;;  %v3473_v0 = vadd.f32 %v3441_v32, %v3409_v45  ;;  %v3407_v54 = vadd.f32 %v3318_v31, %v3154_v2  ;;  %v3159_v17 = vadd.f32 %v4596_v16, %v2890_v52  ;;  %v3334_v23 = vpop.f32.mrf.mxu0  ;;  %v2894_v31 = vadd.f32 %v6605_v13, %v2647_v49  ;;  %v6611_v32 = vld [vmem:[#allocation6_spill] sm:$0xff]  ;;  %v6615_v16 = vld [vmem:[#allocation41_spill] sm:$0xff] }
 0x234   : > { %v3078_v62 = vpop.f32.mrf.mxu1  ;;  %v2651_v59 = vadd.f32 %v6612_v1, %v6611_v32  ;;  %v6613_v46 = vld [vmem:[#allocation30_spill] sm:$0xff] }
 0x235   : > { %3505 = vst [vmem:[#allocation2 + $0x78] sm:$0xff] %v3473_v0  ;;  %v3471_v21 = vadd.f32 %v3439_v9, %v3407_v54  ;;  %v3412_v29 = vadd.f32 %v4644_v47, %v3159_v17  ;;  %v3157_v33 = vadd.f32 %v3078_v62, %v2888_v10  ;;  %v4648_v56 = vpop.f32.mrf.mxu0  ;;  %v2895_v45 = vadd.f32 %v6613_v46, %v2648_v53  ;;  %v6614_v9 = vld [vmem:[#allocation10_spill] sm:$0xff]  ;;  %v6616_v0 = vld [vmem:[#allocation32_spill] sm:$0xff]  ;;  %v6630_v46 = vld [vmem:[#allocation9_spill] sm:$0xff] }
 0x236   : > { %v4597_v40 = vpop.f32.mrf.mxu1  ;;  %v2649_v48 = vadd.f32 %v6615_v16, %v6614_v9  ;;  %v2893_v54 = vadd.f32 %v6616_v0, %v2646_v20  ;;  %v6617_v49 = vld [vmem:[#allocation34_spill] sm:$0xff]  ;;  %v6632_v9 = vld [vmem:[#allocation44_spill] sm:$0xff]  ;;  %v6633_v0 = vld [vmem:[#allocation11_spill] sm:$0xff] }
 0x237   : > { %3503 = vst [vmem:[#allocation2 + $0xf0] sm:$0xff] %v3471_v21  ;;  %v3476_v22 = vadd.f32 %v3444_v6, %v3412_v29  ;;  %v3410_v4 = vadd.f32 %v3331_v51, %v3157_v33  ;;  %v3160_v7 = vadd.f32 %v4597_v40, %v2891_v30  ;;  %v3347_v44 = vpop.f32.mrf.mxu0  ;;  %v2898_v6 = vadd.f32 %v6617_v49, %v2651_v59  ;;  %v3449_v62 = vld [vmem:[#allocation2 + $0xc0] sm:$0xff]  ;;  %v6618_v30 = vld [vmem:[#allocation12_spill] sm:$0xff]  ;;  %v6619_v21 = vld [vmem:[#allocation43_spill] sm:$0xff] }
 0x238   : > { %v3081_v42 = vpop.f32.mrf.mxu1  ;;  %v2652_v29 = vadd.f32 %v6619_v21, %v6618_v30  ;;  %v3447_v40 = vld [vmem:[#allocation2 + $0x90] sm:$0xff]  ;;  %v6629_v1 = vld [vmem:[#allocation42_spill] sm:$0xff] }
 0x239   : > { %3508 = vst [vmem:[#allocation2 + $0x40] sm:$0xff] %v3476_v22  ;;  %v3474_v55 = vadd.f32 %v3442_v12, %v3410_v4  ;;  %v3413_v58 = vadd.f32 %v4645_v28, %v3160_v7  ;;  %v3158_v47 = vadd.f32 %v3081_v42, %v2889_v27  ;;  %v4649_v43 = vpop.f32.mrf.mxu0  ;;  %v2896_v12 = vadd.f32 %v6620_v61, %v2649_v48  ;;  %v6621_v27 = vld [vmem:[#allocation14_spill] sm:$0xff]  ;;  %v6622_v22 = vld [vmem:[#allocation45_spill] sm:$0xff]  ;;  %v6624_v42 = vld [vmem:[#allocation47_spill] sm:$0xff] }
 0x23a   : > { %v4600_v19 = vpop.f32.mrf.mxu1  ;;  %v2650_v4 = vadd.f32 %v6622_v22, %v6621_v27  ;;  %v3451_v48 = vld [vmem:[#allocation2 + $0xd0] sm:$0xff]  ;;  %v3456_v49 = vld [vmem:[#allocation2 + $0x20] sm:$0xff]  ;;  %v3457_v27 = vld [vmem:[#allocation2 + $0x98] sm:$0xff] }
 0x23b   : > { %3506 = vst [vmem:[#allocation2 + $0x38] sm:$0xff] %v3474_v55  ;;  %v3477_v14 = vadd.f32 %v3445_v26, %v3413_v58  ;;  %v3411_v51 = vadd.f32 %v3334_v23, %v3158_v47  ;;  %v3163_v11 = vadd.f32 %v4600_v19, %v2894_v31  ;;  %v3350_v52 = vpop.f32.mrf.mxu0  ;;  %v6623_v26 = vld [vmem:[#allocation17_spill] sm:$0xff]  ;;  %v6625_v55 = vld [vmem:[#allocation38_spill] sm:$0xff] }
 0x23c   : > { %v3094_v3 = vpop.f32.mrf.mxu1  ;;  %v2655_v34 = vadd.f32 %v6624_v42, %v6623_v26  ;;  %v2899_v58 = vadd.f32 %v6625_v55, %v2652_v29 }
 0x23d   : > { %3509 = vst [vmem:[#allocation2 + $0xc8] sm:$0xff] %v3477_v14  ;;  %v3475_v2 = vadd.f32 %v3443_v5, %v3411_v51  ;;  %v3416_v28 = vadd.f32 %v4648_v56, %v3163_v11  ;;  %v3161_v35 = vadd.f32 %v3094_v3, %v2892_v18  ;;  %v4652_v10 = vpop.f32.mrf.mxu0  ;;  %v6626_v18 = vld [vmem:[#allocation7_spill] sm:$0xff]  ;;  %v6627_v5 = vld [vmem:[#allocation49_spill] sm:$0xff]  ;;  %v6628_v14 = vld [vmem:[#allocation40_spill] sm:$0xff] }
 0x23e   : > { %v4601_v37 = vpop.f32.mrf.mxu1  ;;  %v2653_v19 = vadd.f32 %v6627_v5, %v6626_v18  ;;  %v2897_v51 = vadd.f32 %v6628_v14, %v2650_v4  ;;  %v2902_v59 = vadd.f32 %v6629_v1, %v2655_v34 }
 0x23f   : > { %3507 = vst [vmem:[#allocation2 + $0x58] sm:$0xff] %v3475_v2  ;;  %v3480_v17 = vadd.f32 %v3448_v8, %v3416_v28  ;;  %v3414_v23 = vadd.f32 %v3347_v44, %v3161_v35  ;;  %v3164_v63 = vadd.f32 %v4601_v37, %v2895_v45  ;;  %v3363_v39 = vpop.f32.mrf.mxu0  ;;  %v3453_v8 = vld [vmem:[#allocation2 + $0x28] sm:$0xff]  ;;  %v6631_v45 = vld [vmem:[#allocation50_spill] sm:$0xff] }
 0x240   : > { %v3097_v24 = vpop.f32.mrf.mxu1  ;;  %v2656_v2 = vadd.f32 %v6631_v45, %v6630_v46  ;;  %v2900_v16 = vadd.f32 %v6632_v9, %v2653_v19 }
 0x241   : > { %3512 = vst [vmem:[#allocation2 + $0x70] sm:$0xff] %v3480_v17  ;;  %v3478_v33 = vadd.f32 %v3446_v41, %v3414_v23  ;;  %v3417_v56 = vadd.f32 %v4649_v43, %v3164_v63  ;;  %v3162_v15 = vadd.f32 %v3097_v24, %v2893_v54  ;;  %v4653_v57 = vpop.f32.mrf.mxu0  ;;  %v6634_v54 = vld [vmem:[#allocation51_spill] sm:$0xff] }
 0x242   : > { %v4604_v60 = vpop.f32.mrf.mxu1  ;;  %v2654_v17 = vadd.f32 %v6634_v54, %v6633_v0 }
 0x243   : > { %3510 = vst [vmem:[#allocation2 + $0xe0] sm:$0xff] %v3478_v33  ;;  %v3481_v7 = vadd.f32 %v3449_v62, %v3417_v56  ;;  %v3415_v44 = vadd.f32 %v3350_v52, %v3162_v15  ;;  %v3167_v13 = vadd.f32 %v4604_v60, %v2898_v6  ;;  %v3366_v31 = vpop.f32.mrf.mxu0  ;;  %v6635_v62 = vld [vmem:[#allocation46_spill] sm:$0xff] }
 0x244   : > { %v3110_v53 = vpop.f32.mrf.mxu1  ;;  %v2903_v24 = vadd.f32 %v6635_v62, %v2656_v2  ;;  %v3454_v33 = vld [vmem:[#allocation2 + $0xa0] sm:$0xff] }
 0x245   : > { %3513 = vst [vmem:[#allocation2 + $0xc0] sm:$0xff] %v3481_v7  ;;  %v3479_v47 = vadd.f32 %v3447_v40, %v3415_v44  ;;  %v3420_v43 = vadd.f32 %v4652_v10, %v3167_v13  ;;  %v3165_v38 = vadd.f32 %v3110_v53, %v2896_v12  ;;  %v4656_v20 = vpop.f32.mrf.mxu0 }
 0x246   : > { %v4605_v36 = vpop.f32.mrf.mxu1 }
 0x247   : > { %3511 = vst [vmem:[#allocation2 + $0x90] sm:$0xff] %v3479_v47  ;;  %v3484_v11 = vadd.f32 %v3452_v25, %v3420_v43  ;;  %v3418_v52 = vadd.f32 %v3363_v39, %v3165_v38  ;;  %v3168_v32 = vadd.f32 %v4605_v36, %v2899_v58  ;;  %v3379_v37 = vpop.f32.mrf.mxu0 }
 0x248   : > { %v3113_v3 = vpop.f32.mrf.mxu1 }
 0x249   : > { %3516 = vst [vmem:[#allocation2 + $0x10] sm:$0xff] %v3484_v11  ;;  %v3482_v28 = vadd.f32 %v3450_v50, %v3418_v52  ;;  %v3421_v35 = vadd.f32 %v4653_v57, %v3168_v32  ;;  %v3166_v10 = vadd.f32 %v3113_v3, %v2897_v51  ;;  %v4657_v15 = vpop.f32.mrf.mxu0  ;;  %v6636_v57 = vld [vmem:[#allocation48_spill] sm:$0xff] }
 0x24a   : > { %v4608_v41 = vpop.f32.mrf.mxu1  ;;  %v2901_v61 = vadd.f32 %v6636_v57, %v2654_v17 }
 0x24b   : > { %3514 = vst [vmem:[#allocation2 + $0xa8] sm:$0xff] %v3482_v28  ;;  %v3485_v23 = vadd.f32 %v3453_v8, %v3421_v35  ;;  %v3419_v63 = vadd.f32 %v3366_v31, %v3166_v10  ;;  %v3171_v39 = vadd.f32 %v4608_v41, %v2902_v59  ;;  %v3382_v13 = vpop.f32.mrf.mxu0  ;;  %v3455_v31 = vld [vmem:[#allocation2 + $0xf8] sm:$0xff] }
 0x24c   : > { %v3126_v6 = vpop.f32.mrf.mxu1 }
 0x24d   : > { %3517 = vst [vmem:[#allocation2 + $0x28] sm:$0xff] %v3485_v23  ;;  %v3483_v30 = vadd.f32 %v3451_v48, %v3419_v63  ;;  %v3424_v21 = vadd.f32 %v4656_v20, %v3171_v39  ;;  %v3169_v29 = vadd.f32 %v3126_v6, %v2900_v16 }
 0x24e   : > { %v4609_v56 = vpop.f32.mrf.mxu1 }
 0x24f   : > { %3515 = vst [vmem:[#allocation2 + $0xd0] sm:$0xff] %v3483_v30  ;;  %v3488_v12 = vadd.f32 %v3456_v49, %v3424_v21  ;;  %v3422_v40 = vadd.f32 %v3379_v37, %v3169_v29  ;;  %v3172_v60 = vadd.f32 %v4609_v56, %v2903_v24 }
 0x250   : > { %v3129_v22 = vpop.f32.mrf.mxu1 }
 0x251   : > { %3520 = vst [vmem:[#allocation2 + $0x20] sm:$0xff] %v3488_v12  ;;  %v3486_v4 = vadd.f32 %v3454_v33, %v3422_v40  ;;  %v3425_v7 = vadd.f32 %v4657_v15, %v3172_v60  ;;  %v3170_v44 = vadd.f32 %v3129_v22, %v2901_v61 }
 0x253   : > { %3518 = vst [vmem:[#allocation2 + $0xa0] sm:$0xff] %v3486_v4  ;;  %v3489_v26 = vadd.f32 %v3457_v27, %v3425_v7  ;;  %v3423_v42 = vadd.f32 %v3382_v13, %v3170_v44 }
 0x255   : > { %3521 = vst [vmem:[#allocation2 + $0x98] sm:$0xff] %v3489_v26  ;;  %v3487_v34 = vadd.f32 %v3455_v31, %v3423_v42 }
 0x257   : > { %3519 = vst [vmem:[#allocation2 + $0xf8] sm:$0xff] %v3487_v34 }
 0x258 PF: > { %p4006_p13 = scmp.ne.s32.totalorder %s4864_s12, 2 }
 0x25a   : > { %3525 = sbr.rel (%p4006_p13) target bundleno = 686 (0x2ae), region = 40 }
 0x25f   : > { %v3526_v25 = vld [vmem:[#allocation2 + $0xb0] sm:$0xff]  ;;  %v3527_v53 = vld [vmem:[#allocation2] sm:$0xff]  ;;  %v3528_v55 = vld [vmem:[#allocation2 + $0xd8] sm:$0xff]  ;;  %vm3696_vm6 = vcmask 1040384  }
 0x260   : > { %3558 = vst [vmem:[%s4973_s21] sm:$0xff] %v3526_v25  ;;  %v3627_v58 = vmul.f32 %v3526_v25, %v3526_v25  ;;  %3559 = vst [vmem:[%s4973_s21 + $0x8] sm:$0xff] %v3527_v53  ;;  %v3590_v47 = vadd.f32 %v3527_v53, %v3526_v25  ;;  %v3628_v43 = vmul.f32 %v3527_v53, %v3527_v53  ;;  %v3529_v18 = vld [vmem:[#allocation2 + $0x18] sm:$0xff]  ;;  %v3530_v5 = vld [vmem:[#allocation2 + $0x50] sm:$0xff] }
 0x261   : > { %3560 = vst [vmem:[%s4973_s21 + $0x10] sm:$0xff] %v3528_v55  ;;  %v3629_v38 = vmul.f32 %v3528_v55, %v3528_v55  ;;  %v3531_v19 = vld [vmem:[#allocation2 + $0x68] sm:$0xff]  ;;  %3561 = vst [vmem:[%s4973_s21 + $0x18] sm:$0xff] %v3529_v18  ;;  %v6256_v50 = vld [vmem:[#allocation2 + $0x30] sm:$0xff]  ;;  %v3630_v11 = vmul.f32 %v3529_v18, %v3529_v18  ;;  %v3631_v2 = vmul.f32 %v3530_v5, %v3530_v5 }
 0x262   : > { %3562 = vst [vmem:[%s4973_s21 + $0x20] sm:$0xff] %v3530_v5  ;;  %3563 = vst [vmem:[%s4973_s21 + $0x28] sm:$0xff] %v3531_v19  ;;  %v6258_v36 = vld [vmem:[#allocation2 + $0x48] sm:$0xff]  ;;  %v6260_v20 = vld [vmem:[#allocation2 + $0x80] sm:$0xff]  ;;  %v3659_v14 = vadd.f32 %v3628_v43, %v3627_v58  ;;  %v3591_v51 = vadd.f32 %v3590_v47, %v3528_v55  ;;  %v3632_v0 = vmul.f32 %v3531_v19, %v3531_v19 }
 0x263   : > { %3564 = vst [vmem:[%s4973_s21 + $0x30] sm:$0xff] %v6256_v50  ;;  %3565 = vst [vmem:[%s4973_s21 + $0x38] sm:$0xff] %v6258_v36  ;;  %v6268_v52 = vld [vmem:[#allocation2 + $0x88] sm:$0xff]  ;;  %v6272_v1 = vld [vmem:[#allocation2 + $0xb8] sm:$0xff]  ;;  %v3633_v24 = vmul.f32 %v6256_v50, %v6256_v50  ;;  %v3634_v61 = vmul.f32 %v6258_v36, %v6258_v36  ;;  %v3635_v60 = vmul.f32 %v6260_v20, %v6260_v20 }
 0x264   : > { %3566 = vst [vmem:[%s4973_s21 + $0x40] sm:$0xff] %v6260_v20  ;;  %v6270_v32 = vld [vmem:[#allocation2 + $0xe8] sm:$0xff]  ;;  %3567 = vst [vmem:[%s4973_s21 + $0x48] sm:$0xff] %v6268_v52  ;;  %v6280_v59 = vld [vmem:[#allocation2 + $0x60] sm:$0xff]  ;;  %v3660_v46 = vadd.f32 %v3659_v14, %v3629_v38  ;;  %v3592_v45 = vadd.f32 %v3591_v51, %v3529_v18  ;;  %v3636_v4 = vmul.f32 %v6268_v52, %v6268_v52 }
 0x265   : > { %3568 = vst [vmem:[%s4973_s21 + $0x50] sm:$0xff] %v6270_v32  ;;  %3569 = vst [vmem:[%s4973_s21 + $0x58] sm:$0xff] %v6272_v1  ;;  %v6282_v8 = vld [vmem:[#allocation2 + $0xf0] sm:$0xff]  ;;  %v6284_v3 = vld [vmem:[#allocation2 + $0x8] sm:$0xff]  ;;  %v3637_v13 = vmul.f32 %v6270_v32, %v6270_v32  ;;  %v3638_v42 = vmul.f32 %v6272_v1, %v6272_v1  ;;  %v3639_v53 = vmul.f32 %v6280_v59, %v6280_v59 }
 0x266   : > { %3570 = vst [vmem:[%s4973_s21 + $0x60] sm:$0xff] %v6280_v59  ;;  %3571 = vst [vmem:[%s4973_s21 + $0x68] sm:$0xff] %v6282_v8  ;;  %v6292_v28 = vld [vmem:[#allocation2 + $0x78] sm:$0xff]  ;;  %v6304_v9 = vld [vmem:[#allocation2 + $0x40] sm:$0xff]  ;;  %v3661_v41 = vadd.f32 %v3660_v46, %v3630_v11  ;;  %v3593_v37 = vadd.f32 %v3592_v45, %v3530_v5  ;;  %v3640_v47 = vmul.f32 %v6282_v8, %v6282_v8 }
 0x267   : > { %3572 = vst [vmem:[%s4973_s21 + $0x70] sm:$0xff] %v6284_v3  ;;  %v6294_v35 = vld [vmem:[#allocation2 + $0x38] sm:$0xff]  ;;  %3573 = vst [vmem:[%s4973_s21 + $0x78] sm:$0xff] %v6292_v28  ;;  %v6306_v16 = vld [vmem:[#allocation2 + $0xc8] sm:$0xff]  ;;  %v3641_v18 = vmul.f32 %v6284_v3, %v6284_v3 }
 0x268   : > { %v6296_v10 = vld [vmem:[#allocation2 + $0x58] sm:$0xff]  ;;  %3574 = vst [vmem:[%s4973_s21 + $0x80] sm:$0xff] %v6294_v35  ;;  %v6308_v48 = vld [vmem:[#allocation2 + $0xe0] sm:$0xff]  ;;  %3576 = vst [vmem:[%s4973_s21 + $0x90] sm:$0xff] %v6304_v9  ;;  %v3662_v6 = vadd.f32 %v3661_v41, %v3631_v2  ;;  %v3594_v62 = vadd.f32 %v3593_v37, %v3531_v19  ;;  %v3643_v14 = vmul.f32 %v6294_v35, %v6294_v35 }
 0x269   : > { %3575 = vst [vmem:[%s4973_s21 + $0x88] sm:$0xff] %v6296_v10  ;;  %3577 = vst [vmem:[%s4973_s21 + $0x98] sm:$0xff] %v6306_v16  ;;  %v6316_v54 = vld [vmem:[#allocation2 + $0x90] sm:$0xff]  ;;  %v6320_v23 = vld [vmem:[#allocation2 + $0xc0] sm:$0xff]  ;;  %v3646_v46 = vmul.f32 %v6306_v16, %v6306_v16 }
 0x26a   : > { %3578 = vst [vmem:[%s4973_s21 + $0xa0] sm:$0xff] %v6308_v48  ;;  %v6318_v17 = vld [vmem:[#allocation2 + $0x70] sm:$0xff]  ;;  %3579 = vst [vmem:[%s4973_s21 + $0xa8] sm:$0xff] %v6316_v54  ;;  %v6328_v63 = vld [vmem:[#allocation2 + $0xa8] sm:$0xff]  ;;  %v3663_v15 = vadd.f32 %v3662_v6, %v3632_v0  ;;  %v3595_v57 = vadd.f32 %v3594_v62, %v6256_v50  ;;  %v3642_v50 = vmul.f32 %v6292_v28, %v6292_v28 }
 0x26b   : > { %3580 = vst [vmem:[%s4973_s21 + $0xb0] sm:$0xff] %v6318_v17  ;;  %3581 = vst [vmem:[%s4973_s21 + $0xb8] sm:$0xff] %v6320_v23  ;;  %v6330_v39 = vld [vmem:[#allocation2 + $0xd0] sm:$0xff]  ;;  %v6342_v30 = vld [vmem:[#allocation2 + $0x28] sm:$0xff] }
 0x26c   : > { %v6332_v49 = vld [vmem:[#allocation2 + $0x10] sm:$0xff]  ;;  %3582 = vst [vmem:[%s4973_s21 + $0xc0] sm:$0xff] %v6328_v63  ;;  %3583 = vst [vmem:[%s4973_s21 + $0xc8] sm:$0xff] %v6330_v39  ;;  %v6344_v21 = vld [vmem:[#allocation2 + $0xa0] sm:$0xff]  ;;  %v3664_v12 = vadd.f32 %v3663_v15, %v3633_v24  ;;  %v3596_v40 = vadd.f32 %v3595_v57, %v6258_v36 }
 0x26d   : > { %3584 = vst [vmem:[%s4973_s21 + $0xd0] sm:$0xff] %v6332_v49  ;;  %v6346_v29 = vld [vmem:[#allocation2 + $0xf8] sm:$0xff]  ;;  %3585 = vst [vmem:[%s4973_s21 + $0xd8] sm:$0xff] %v6342_v30  ;;  %v6354_v33 = vld [vmem:[#allocation2 + $0x20] sm:$0xff] }
 0x26e   : > { %3586 = vst [vmem:[%s4973_s21 + $0xe0] sm:$0xff] %v6344_v21  ;;  %3587 = vst [vmem:[%s4973_s21 + $0xe8] sm:$0xff] %v6346_v29  ;;  %v6356_v56 = vld [vmem:[#allocation2 + $0x98] sm:$0xff]  ;;  %v3665_v27 = vadd.f32 %v3664_v12, %v3634_v61  ;;  %v3597_v22 = vadd.f32 %v3596_v40, %v6260_v20 }
 0x26f   : > { %3588 = vst [vmem:[%s4973_s21 + $0xf0] sm:$0xff] %v6354_v33  ;;  %3589 = vst [vmem:[%s4973_s21 + $0xf8] sm:$0xff] %v6356_v56 }
 0x270   : > { %v3666_v7 = vadd.f32 %v3665_v27, %v3635_v60  ;;  %v3598_v44 = vadd.f32 %v3597_v22, %v6268_v52  ;;  %v3644_v52 = vmul.f32 %v6296_v10, %v6296_v10 }
 0x272   : > { %v3667_v31 = vadd.f32 %v3666_v7, %v3636_v4  ;;  %v3599_v26 = vadd.f32 %v3598_v44, %v6270_v32 }
 0x274   : > { %v3668_v34 = vadd.f32 %v3667_v31, %v3637_v13  ;;  %v3600_v25 = vadd.f32 %v3599_v26, %v6272_v1 }
 0x276   : > { %v3669_v55 = vadd.f32 %v3668_v34, %v3638_v42  ;;  %v3601_v58 = vadd.f32 %v3600_v25, %v6280_v59  ;;  %v3645_v59 = vmul.f32 %v6304_v9, %v6304_v9 }
 0x278   : > { %v3670_v43 = vadd.f32 %v3669_v55, %v3639_v53  ;;  %v3602_v38 = vadd.f32 %v3601_v58, %v6282_v8 }
 0x27a   : > { %v3671_v5 = vadd.f32 %v3670_v43, %v3640_v47  ;;  %v3603_v19 = vadd.f32 %v3602_v38, %v6284_v3 }
 0x27c   : > { %v3672_v36 = vadd.f32 %v3671_v5, %v3641_v18  ;;  %v3604_v20 = vadd.f32 %v3603_v19, %v6292_v28  ;;  %v3647_v28 = vmul.f32 %v6308_v48, %v6308_v48 }
 0x27e   : > { %v3673_v51 = vadd.f32 %v3672_v36, %v3642_v50  ;;  %v3605_v11 = vadd.f32 %v3604_v20, %v6294_v35 }
 0x280   : > { %v3674_v32 = vadd.f32 %v3673_v51, %v3643_v14  ;;  %v3606_v1 = vadd.f32 %v3605_v11, %v6296_v10  ;;  %v3648_v10 = vmul.f32 %v6316_v54, %v6316_v54 }
 0x282   : > { %v3675_v8 = vadd.f32 %v3674_v32, %v3644_v52  ;;  %v3607_v3 = vadd.f32 %v3606_v1, %v6304_v9  ;;  %v3649_v9 = vmul.f32 %v6318_v17, %v6318_v17 }
 0x284   : > { %v3676_v45 = vadd.f32 %v3675_v8, %v3645_v59  ;;  %v3608_v2 = vadd.f32 %v3607_v3, %v6306_v16  ;;  %v3650_v16 = vmul.f32 %v6320_v23, %v6320_v23 }
 0x286   : > { %v3677_v35 = vadd.f32 %v3676_v45, %v3646_v46  ;;  %v3609_v41 = vadd.f32 %v3608_v2, %v6308_v48  ;;  %v3651_v48 = vmul.f32 %v6328_v63, %v6328_v63 }
 0x288   : > { %v3678_v37 = vadd.f32 %v3677_v35, %v3647_v28  ;;  %v3610_v0 = vadd.f32 %v3609_v41, %v6316_v54  ;;  %v3652_v54 = vmul.f32 %v6330_v39, %v6330_v39 }
 0x28a   : > { %v3679_v6 = vadd.f32 %v3678_v37, %v3648_v10  ;;  %v3611_v62 = vadd.f32 %v3610_v0, %v6318_v17  ;;  %v3653_v17 = vmul.f32 %v6332_v49, %v6332_v49 }
 0x28c   : > { %v3680_v24 = vadd.f32 %v3679_v6, %v3649_v9  ;;  %v3612_v15 = vadd.f32 %v3611_v62, %v6320_v23  ;;  %v3654_v23 = vmul.f32 %v6342_v30, %v6342_v30 }
 0x28e   : > { %v3681_v57 = vadd.f32 %v3680_v24, %v3650_v16  ;;  %v3613_v61 = vadd.f32 %v3612_v15, %v6328_v63  ;;  %v3655_v63 = vmul.f32 %v6344_v21, %v6344_v21 }
 0x290   : > { %v3682_v12 = vadd.f32 %v3681_v57, %v3651_v48  ;;  %v3614_v40 = vadd.f32 %v3613_v61, %v6330_v39  ;;  %v3656_v39 = vmul.f32 %v6346_v29, %v6346_v29 }
 0x292   : > { %v3683_v60 = vadd.f32 %v3682_v12, %v3652_v54  ;;  %v3615_v27 = vadd.f32 %v3614_v40, %v6332_v49  ;;  %v3657_v49 = vmul.f32 %v6354_v33, %v6354_v33 }
 0x294   : > { %v3684_v22 = vadd.f32 %v3683_v60, %v3653_v17  ;;  %v3616_v4 = vadd.f32 %v3615_v27, %v6342_v30  ;;  %v3658_v30 = vmul.f32 %v6356_v56, %v6356_v56 }
 0x296   : > { %v3685_v7 = vadd.f32 %v3684_v22, %v3654_v23  ;;  %v3617_v44 = vadd.f32 %v3616_v4, %v6344_v21 }
 0x298   : > { %v3686_v13 = vadd.f32 %v3685_v7, %v3655_v63  ;;  %v3618_v31 = vadd.f32 %v3617_v44, %v6346_v29 }
 0x29a   : > { %v3687_v26 = vadd.f32 %v3686_v13, %v3656_v39  ;;  %v3619_v42 = vadd.f32 %v3618_v31, %v6354_v33 }
 0x29c   : > { %v3688_v34 = vadd.f32 %v3687_v26, %v3657_v49  ;;  %v3620_v25 = vadd.f32 %v3619_v42, %v6356_v56 }
 0x29e   : > { %v3621_v21 = vrot.slane %v3620_v25, 4  ;;  %v3689_v53 = vadd.f32 %v3688_v34, %v3658_v30 }
 0x2a0   : > { %v3622_v55 = vadd.f32 %v3621_v21, %v3620_v25  ;;  %v3690_v58 = vrot.slane %v3689_v53, 4 }
 0x2a2   : > { %v3623_v47 = vrot.slane %v3622_v55, 2  ;;  %v3691_v43 = vadd.f32 %v3690_v58, %v3689_v53 }
 0x2a4   : > { %v3624_v29 = vadd.f32 %v3623_v47, %v3622_v55  ;;  %v3692_v38 = vrot.slane %v3691_v43, 2 }
 0x2a6   : > { %v3625_v18 = vrot.slane %v3624_v29, 1  ;;  %v3693_v5 = vadd.f32 %v3692_v38, %v3691_v43 }
 0x2a8   : > { %v3626_v19 = vadd.f32 %v3625_v18, %v3624_v29  ;;  %v3694_v50 = vrot.slane %v3693_v5, 1 }
 0x2aa   : > { %v3695_v33 = vadd.f32 %v3694_v50, %v3693_v5 }
 0x2ac   : > { %v3697_v36 = vsel %vm3696_vm6, %v3626_v19, %v3695_v33 }
 0x2ad   : > { %3698 = vst [vmem:[%s4978_s14] sm:$0x3] %v3697_v36 }
 0x2ae PF: > { %s14_s18 = sadd.s32 1, %s4888_s18   ;;  %s6637_s21 = sld [smem:[#allocation3_spill]] }
 0x2af   : > { %p11_p0 = scmp.ge.s32.totalorder %s14_s18, 50   ;;  %s6638_s22 = sld [smem:[#allocation4_spill]] }
 0x2b0   : > { %s6639_s25 = sld [smem:[#allocation5_spill]]  ;;  %s6640_s12 = smov %s4876_s15 }
 0x2b1   : > { %s6641_s13 = smov %s4880_s16  ;;  %s6642_s14 = smov %s4884_s17 }
 0x2b2   :  { %13 = sbr.rel (!%p11_p0) target bundleno = 4 (0x4), region = 83 }
 0x2b4   : > { %s6643_s15 = smov %s6637_s21 }
 0x2b5   : > { %s6644_s16 = smov %s6638_s22 }
 0x2b6   : > { %s6645_s17 = smov %s6639_s25 }

// kernel: double_conv3d_forward.5
= control target key start
LH: loop header
LB: loop body
LE: loop exit
PB: predicated region body
PF: predicated region fallthrough
CT: control target
= control target key end

     0   :  { %s591_s12 = smov 0   ;;  %s593_s13 = smov 0   ;;  %s784_s0 = inlined_call_operand.vmem [shape: f32[2,8,16,16,128], index: 0, kind: input, shape index: {}]   ;;  %s785_s1 = inlined_call_operand.vmem [shape: f32[1,128], index: 1, kind: input, shape index: {}]   ;;  %s786_s2 = inlined_call_operand.vmem [shape: f32[1,128], index: 2, kind: input, shape index: {}]   ;;  %s787_s3 = inlined_call_operand.vmem [shape: f32[2,8,16,16,128], index: 3, kind: output, shape index: {}]  }
   0x1   :  { %s595_s14 = smov 0   ;;  %s597_s15 = smov 0  }
   0x2   :  { %s599_s16 = smov 0  }
   0x3 LB: > { %s22_s17 = sadd.s32 1, %s561_s14  ;;  %s25_s18 = sadd.s32 1, %s565_s15  ;;  %s569_s16 = sphi %s599_s16, %s13_s16   ;;  %s565_s15 = sphi %s597_s15, %s791_s15   ;;  %s561_s14 = sphi %s595_s14, %s790_s14   ;;  %s557_s13 = sphi %s593_s13, %s789_s13   ;;  %s553_s12 = sphi %s591_s12, %s788_s12  }
   0x4   : > { %p23_p0 = scmp.ge.s32.totalorder %s22_s17, 8  ;;  %p480_p1 = scmp.ge.s32.totalorder %s569_s16, 1 }
   0x5   : > { %p157_p2 = scmp.lt.s32.totalorder %s569_s16, 17 }
   0x6   : > { %s793_s17 = smov (%p23_p0, %s22_s17), 0  ;;  %s795_s18 = smov (!%p23_p0, %s25_s18), %s565_s15 }
   0x7   : > { %p158_p3 = pnand %p480_p1, %p157_p2  ;;  %p27_p4 = scmp.ge.s32.totalorder %s795_s18, 2 }
   0x8   : > { %p189_p5 = scmp.lt.s32.totalorder (!%p158_p3), %s557_s13, 1  ;;  %p191_p6 = scmp.lt.s32.totalorder (!%p158_p3), %s553_s12, 7 }
   0x9   : > { %s797_s18 = smov (%p27_p4, %s795_s18), 0  ;;  %161 = sbr.rel (%p158_p3) target bundleno = 49 (0x31), region = 32 }
   0xe   : > { %s799_s13 = smov (!%p189_p5, %s557_s13), 1  ;;  %s801_s12 = smov (!%p191_p6, %s553_s12), 7  ;;  %v624_v0 = vld [vmem:[%s785_s1] ss:$0 sm:$0xff] }
   0xf   : > { %s482_s19 = sshll.u32 %s799_s13, 8  ;;  %s481_s20 = sshll.u32 %s801_s12, 5  ;;  %v634_v1 = vld [vmem:[%s786_s2] ss:$0 sm:$0xff] }
  0x10   : > { %s195_s21 = sadd.s32 %s482_s19, %s481_s20 }
  0x11   : > { %s483_s22 = sshll.u32 %s195_s21, 3 }
  0x12   : > { %s629_s27 = scalar_lea.vmem %s784_s0, %s483_s22  ;;  %s657_s5 = scalar_lea.vmem %s787_s3, %s483_s22 }
  0x13   : > { %v207_v2 = vld [vmem:[%s629_s27] sm:$0xff]  ;;  %v208_v3 = vld [vmem:[%s629_s27 + $0x8] sm:$0xff]  ;;  %v209_v4 = vld [vmem:[%s629_s27 + $0x10] sm:$0xff] }
  0x14   : > { %v247_v5 = vmul.f32 %v624_v0, %v207_v2  ;;  %v248_v6 = vmul.f32 %v624_v0, %v208_v3  ;;  %v249_v7 = vmul.f32 %v624_v0, %v209_v4  ;;  %v210_v8 = vld [vmem:[%s629_s27 + $0x18] sm:$0xff]  ;;  %v211_v9 = vld [vmem:[%s629_s27 + $0x20] sm:$0xff]  ;;  %v212_v10 = vld [vmem:[%s629_s27 + $0x28] sm:$0xff] }
  0x15   : > { %v250_v11 = vmul.f32 %v624_v0, %v210_v8  ;;  %v251_v12 = vmul.f32 %v624_v0, %v211_v9  ;;  %v252_v13 = vmul.f32 %v624_v0, %v212_v10  ;;  %v213_v14 = vld [vmem:[%s629_s27 + $0x30] sm:$0xff]  ;;  %v214_v15 = vld [vmem:[%s629_s27 + $0x38] sm:$0xff]  ;;  %v215_v24 = vld [vmem:[%s629_s27 + $0x40] sm:$0xff] }
  0x16   : > { %v285_v16 = vadd.f32 %v634_v1, %v247_v5  ;;  %v286_v17 = vadd.f32 %v634_v1, %v248_v6  ;;  %v287_v18 = vadd.f32 %v634_v1, %v249_v7  ;;  %v253_v19 = vmul.f32 %v624_v0, %v213_v14  ;;  %v216_v25 = vld [vmem:[%s629_s27 + $0x48] sm:$0xff]  ;;  %v217_v26 = vld [vmem:[%s629_s27 + $0x50] sm:$0xff]  ;;  %v218_v31 = vld [vmem:[%s629_s27 + $0x58] sm:$0xff] }
  0x17   : > { %v288_v20 = vadd.f32 %v634_v1, %v250_v11  ;;  %v289_v21 = vadd.f32 %v634_v1, %v251_v12  ;;  %v290_v22 = vadd.f32 %v634_v1, %v252_v13  ;;  %v254_v23 = vmul.f32 %v624_v0, %v214_v15  ;;  %v219_v32 = vld [vmem:[%s629_s27 + $0x60] sm:$0xff]  ;;  %v220_v33 = vld [vmem:[%s629_s27 + $0x68] sm:$0xff]  ;;  %v221_v38 = vld [vmem:[%s629_s27 + $0x70] sm:$0xff] }
  0x18   : > { %v317_v27 = vmax.f32 %v285_v16, 0.0  ;;  %v318_v28 = vmax.f32 %v286_v17, 0.0  ;;  %v319_v29 = vmax.f32 %v287_v18, 0.0  ;;  %v291_v30 = vadd.f32 %v634_v1, %v253_v19  ;;  %v222_v43 = vld [vmem:[%s629_s27 + $0x78] sm:$0xff]  ;;  %v223_v56 = vld [vmem:[%s629_s27 + $0x80] sm:$0xff]  ;;  %v224_v57 = vld [vmem:[%s629_s27 + $0x88] sm:$0xff] }
  0x19   : > { %v320_v34 = vmax.f32 %v288_v20, 0.0  ;;  %v321_v35 = vmax.f32 %v289_v21, 0.0  ;;  %v322_v36 = vmax.f32 %v290_v22, 0.0  ;;  %v292_v37 = vadd.f32 %v634_v1, %v254_v23  ;;  %v225_v58 = vld [vmem:[%s629_s27 + $0x90] sm:$0xff]  ;;  %v226_v63 = vld [vmem:[%s629_s27 + $0x98] sm:$0xff]  ;;  %v227_v2 = vld [vmem:[%s629_s27 + $0xa0] sm:$0xff] }
  0x1a   : > { %349 = vst [vmem:[%s657_s5] sm:$0xff] %v317_v27  ;;  %350 = vst [vmem:[%s657_s5 + $0x8] sm:$0xff] %v318_v28  ;;  %v323_v39 = vmax.f32 %v291_v30, 0.0  ;;  %v255_v40 = vmul.f32 %v624_v0, %v215_v24  ;;  %v256_v41 = vmul.f32 %v624_v0, %v216_v25  ;;  %v257_v42 = vmul.f32 %v624_v0, %v217_v26  ;;  %v228_v3 = vld [vmem:[%s629_s27 + $0xa8] sm:$0xff]  ;;  %v229_v8 = vld [vmem:[%s629_s27 + $0xb0] sm:$0xff] }
  0x1b   : > { %351 = vst [vmem:[%s657_s5 + $0x10] sm:$0xff] %v319_v29  ;;  %352 = vst [vmem:[%s657_s5 + $0x18] sm:$0xff] %v320_v34  ;;  %v324_v44 = vmax.f32 %v292_v37, 0.0  ;;  %v258_v45 = vmul.f32 %v624_v0, %v218_v31  ;;  %v259_v46 = vmul.f32 %v624_v0, %v219_v32  ;;  %v260_v47 = vmul.f32 %v624_v0, %v220_v33  ;;  %v230_v13 = vld [vmem:[%s629_s27 + $0xb8] sm:$0xff]  ;;  %v231_v26 = vld [vmem:[%s629_s27 + $0xc0] sm:$0xff] }
  0x1c   : > { %353 = vst [vmem:[%s657_s5 + $0x20] sm:$0xff] %v321_v35  ;;  %354 = vst [vmem:[%s657_s5 + $0x28] sm:$0xff] %v322_v36  ;;  %v293_v48 = vadd.f32 %v634_v1, %v255_v40  ;;  %v294_v49 = vadd.f32 %v634_v1, %v256_v41  ;;  %v295_v50 = vadd.f32 %v634_v1, %v257_v42  ;;  %v232_v27 = vld [vmem:[%s629_s27 + $0xc8] sm:$0xff]  ;;  %v233_v28 = vld [vmem:[%s629_s27 + $0xd0] sm:$0xff] }
  0x1d   : > { %355 = vst [vmem:[%s657_s5 + $0x30] sm:$0xff] %v323_v39  ;;  %v261_v51 = vmul.f32 %v624_v0, %v221_v38  ;;  %356 = vst [vmem:[%s657_s5 + $0x38] sm:$0xff] %v324_v44  ;;  %v296_v52 = vadd.f32 %v634_v1, %v258_v45  ;;  %v297_v53 = vadd.f32 %v634_v1, %v259_v46  ;;  %v234_v33 = vld [vmem:[%s629_s27 + $0xd8] sm:$0xff]  ;;  %v235_v34 = vld [vmem:[%s629_s27 + $0xe0] sm:$0xff] }
  0x1e   : > { %v298_v54 = vadd.f32 %v634_v1, %v260_v47  ;;  %v262_v55 = vmul.f32 %v624_v0, %v222_v43  ;;  %v325_v59 = vmax.f32 %v293_v48, 0.0  ;;  %v326_v60 = vmax.f32 %v294_v49, 0.0  ;;  %v236_v35 = vld [vmem:[%s629_s27 + $0xe8] sm:$0xff]  ;;  %v237_v40 = vld [vmem:[%s629_s27 + $0xf0] sm:$0xff]  ;;  %v238_v45 = vld [vmem:[%s629_s27 + $0xf8] sm:$0xff] }
  0x1f   : > { %v327_v61 = vmax.f32 %v295_v50, 0.0  ;;  %v299_v62 = vadd.f32 %v634_v1, %v261_v51  ;;  %v328_v4 = vmax.f32 %v296_v52, 0.0  ;;  %v329_v5 = vmax.f32 %v297_v53, 0.0 }
  0x20   : > { %v330_v6 = vmax.f32 %v298_v54, 0.0  ;;  %v300_v7 = vadd.f32 %v634_v1, %v262_v55  ;;  %357 = vst [vmem:[%s657_s5 + $0x40] sm:$0xff] %v325_v59  ;;  %358 = vst [vmem:[%s657_s5 + $0x48] sm:$0xff] %v326_v60  ;;  %v263_v10 = vmul.f32 %v624_v0, %v223_v56  ;;  %v264_v11 = vmul.f32 %v624_v0, %v224_v57 }
  0x21   : > { %359 = vst [vmem:[%s657_s5 + $0x50] sm:$0xff] %v327_v61  ;;  %v331_v9 = vmax.f32 %v299_v62, 0.0  ;;  %v265_v12 = vmul.f32 %v624_v0, %v225_v58  ;;  %360 = vst [vmem:[%s657_s5 + $0x58] sm:$0xff] %v328_v4  ;;  %v266_v15 = vmul.f32 %v624_v0, %v226_v63  ;;  %v267_v16 = vmul.f32 %v624_v0, %v227_v2 }
  0x22   : > { %361 = vst [vmem:[%s657_s5 + $0x60] sm:$0xff] %v329_v5  ;;  %362 = vst [vmem:[%s657_s5 + $0x68] sm:$0xff] %v330_v6  ;;  %v332_v14 = vmax.f32 %v300_v7, 0.0  ;;  %v268_v17 = vmul.f32 %v624_v0, %v228_v3  ;;  %v301_v18 = vadd.f32 %v634_v1, %v263_v10  ;;  %v302_v19 = vadd.f32 %v634_v1, %v264_v11 }
  0x23   : > { %363 = vst [vmem:[%s657_s5 + $0x70] sm:$0xff] %v331_v9  ;;  %v303_v20 = vadd.f32 %v634_v1, %v265_v12  ;;  %v269_v21 = vmul.f32 %v624_v0, %v229_v8  ;;  %v304_v22 = vadd.f32 %v634_v1, %v266_v15  ;;  %v305_v23 = vadd.f32 %v634_v1, %v267_v16 }
  0x24   : > { %364 = vst [vmem:[%s657_s5 + $0x78] sm:$0xff] %v332_v14  ;;  %v306_v24 = vadd.f32 %v634_v1, %v268_v17  ;;  %v270_v25 = vmul.f32 %v624_v0, %v230_v13  ;;  %v333_v29 = vmax.f32 %v301_v18, 0.0  ;;  %v334_v30 = vmax.f32 %v302_v19, 0.0 }
  0x25   : > { %v335_v31 = vmax.f32 %v303_v20, 0.0  ;;  %v307_v32 = vadd.f32 %v634_v1, %v269_v21  ;;  %v336_v36 = vmax.f32 %v304_v22, 0.0  ;;  %v337_v37 = vmax.f32 %v305_v23, 0.0 }
  0x26   : > { %v338_v38 = vmax.f32 %v306_v24, 0.0  ;;  %v308_v39 = vadd.f32 %v634_v1, %v270_v25  ;;  %365 = vst [vmem:[%s657_s5 + $0x80] sm:$0xff] %v333_v29  ;;  %366 = vst [vmem:[%s657_s5 + $0x88] sm:$0xff] %v334_v30  ;;  %v271_v42 = vmul.f32 %v624_v0, %v231_v26  ;;  %v272_v43 = vmul.f32 %v624_v0, %v232_v27 }
  0x27   : > { %367 = vst [vmem:[%s657_s5 + $0x90] sm:$0xff] %v335_v31  ;;  %v339_v41 = vmax.f32 %v307_v32, 0.0  ;;  %v273_v44 = vmul.f32 %v624_v0, %v233_v28  ;;  %368 = vst [vmem:[%s657_s5 + $0x98] sm:$0xff] %v336_v36  ;;  %v274_v47 = vmul.f32 %v624_v0, %v234_v33  ;;  %v275_v48 = vmul.f32 %v624_v0, %v235_v34 }
  0x28   : > { %369 = vst [vmem:[%s657_s5 + $0xa0] sm:$0xff] %v337_v37  ;;  %370 = vst [vmem:[%s657_s5 + $0xa8] sm:$0xff] %v338_v38  ;;  %v340_v46 = vmax.f32 %v308_v39, 0.0  ;;  %v276_v49 = vmul.f32 %v624_v0, %v236_v35  ;;  %v309_v50 = vadd.f32 %v634_v1, %v271_v42  ;;  %v310_v51 = vadd.f32 %v634_v1, %v272_v43 }
  0x29   : > { %371 = vst [vmem:[%s657_s5 + $0xb0] sm:$0xff] %v339_v41  ;;  %v311_v52 = vadd.f32 %v634_v1, %v273_v44  ;;  %v277_v53 = vmul.f32 %v624_v0, %v237_v40  ;;  %v312_v54 = vadd.f32 %v634_v1, %v274_v47  ;;  %v313_v55 = vadd.f32 %v634_v1, %v275_v48 }
  0x2a   : > { %372 = vst [vmem:[%s657_s5 + $0xb8] sm:$0xff] %v340_v46  ;;  %v314_v56 = vadd.f32 %v634_v1, %v276_v49  ;;  %v278_v57 = vmul.f32 %v624_v0, %v238_v45  ;;  %v341_v58 = vmax.f32 %v309_v50, 0.0  ;;  %v342_v59 = vmax.f32 %v310_v51, 0.0 }
  0x2b   : > { %v343_v60 = vmax.f32 %v311_v52, 0.0  ;;  %v315_v61 = vadd.f32 %v634_v1, %v277_v53  ;;  %v344_v62 = vmax.f32 %v312_v54, 0.0  ;;  %v345_v63 = vmax.f32 %v313_v55, 0.0 }
  0x2c   : > { %v346_v2 = vmax.f32 %v314_v56, 0.0  ;;  %v316_v3 = vadd.f32 %v634_v1, %v278_v57  ;;  %373 = vst [vmem:[%s657_s5 + $0xc0] sm:$0xff] %v341_v58  ;;  %374 = vst [vmem:[%s657_s5 + $0xc8] sm:$0xff] %v342_v59 }
  0x2d   : > { %375 = vst [vmem:[%s657_s5 + $0xd0] sm:$0xff] %v343_v60  ;;  %v347_v4 = vmax.f32 %v315_v61, 0.0  ;;  %376 = vst [vmem:[%s657_s5 + $0xd8] sm:$0xff] %v344_v62 }
  0x2e   : > { %377 = vst [vmem:[%s657_s5 + $0xe0] sm:$0xff] %v345_v63  ;;  %378 = vst [vmem:[%s657_s5 + $0xe8] sm:$0xff] %v346_v2  ;;  %v348_v0 = vmax.f32 %v316_v3, 0.0 }
  0x2f   : > { %379 = vst [vmem:[%s657_s5 + $0xf0] sm:$0xff] %v347_v4 }
  0x30   : > { %380 = vst [vmem:[%s657_s5 + $0xf8] sm:$0xff] %v348_v0 }
  0x31 PF: > { %s13_s16 = sadd.s32 1, %s569_s16   ;;  %s788_s12 = smov %s561_s14 }
  0x32   : > { %p10_p7 = scmp.ge.s32.totalorder %s13_s16, 18   ;;  %s789_s13 = smov %s565_s15 }
  0x33   : > { %s790_s14 = smov %s793_s17  ;;  %s791_s15 = smov %s797_s18 }
  0x34   :  { %12 = sbr.rel (!%p10_p7) target bundleno = 3 (0x3), region = 62 }

// kernel: double_conv3d_forward.4
= control target key start
LH: loop header
LB: loop body
LE: loop exit
PB: predicated region body
PF: predicated region fallthrough
CT: control target
= control target key end

     0   :  { %s4832_s18 = smov 0   ;;  %s4834_s19 = smov 0   ;;  %s6625_s0 = inlined_call_operand.vmem [shape: f32[2,10,18,18,128], index: 0, kind: input, shape index: {}]   ;;  %s6626_s1 = inlined_call_operand.vmem [shape: bf16[3,1152,128], index: 1, kind: input, shape index: {}]   ;;  %s6627_s2 = inlined_call_operand.vmem [shape: f32[1,128], index: 2, kind: input, shape index: {}]   ;;  %s6628_s3 = inlined_call_operand.vmem [shape: f32[1,128], index: 3, kind: input, shape index: {}]   ;;  %s6629_s4 = inlined_call_operand.vmem [shape: f32[2,8,16,16,128], index: 4, kind: output, shape index: {0}]   ;;  %s6630_s5 = inlined_call_operand.vmem [shape: f32[2,8,2,128], index: 5, kind: output, shape index: {1}]  }
   0x1   :  { %s4836_s20 = smov 0   ;;  %s4838_s21 = smov 0  }
   0x2   :  { %s4840_s22 = smov 0   ;;  %s4842_s23 = smov 0  }
   0x3   :  { %s4844_s24 = smov 0  }
   0x4 LB: > { %6700 = sst [smem:[#allocation3_spill]] %s4788_s22  ;;  %s28_s25 = sadd.s32 1, %s4784_s21  ;;  %s4796_s24 = sphi %s4844_s24, %s16_s24   ;;  %s4792_s23 = sphi %s4842_s23, %s6906_s23   ;;  %s4788_s22 = sphi %s4840_s22, %s6905_s22   ;;  %s4784_s21 = sphi %s4838_s21, %s6908_s21   ;;  %s4780_s20 = sphi %s4836_s20, %s6903_s20   ;;  %s4776_s19 = sphi %s4834_s19, %s6902_s19   ;;  %s4772_s18 = sphi %s4832_s18, %s6907_s18  }
   0x5   : > { %6701 = sst [smem:[#allocation4_spill]] %s4792_s23  ;;  %p29_p0 = scmp.ge.s32.totalorder %s28_s25, 3 }
   0x6   : > { %s31_s26 = sadd.s32 1, %s4788_s22  ;;  %p3717_p1 = scmp.ge.s32.totalorder %s4796_s24, 1 }
   0x7   : > { %p223_p2 = scmp.lt.s32.totalorder %s4796_s24, 49  ;;  %s6910_s25 = smov (%p29_p0, %s28_s25), 0 }
   0x8   : > { %6702 = sst [smem:[#allocation5_spill]] %s6910_s25  ;;  %s6912_s26 = smov (!%p29_p0, %s31_s26), %s4788_s22 }
   0x9   : > { %p224_p3 = pnand %p3717_p1, %p223_p2  ;;  %p33_p4 = scmp.ge.s32.totalorder %s6912_s26, 8 }
   0xa   : > { %s35_s27 = sadd.s32 1, %s4792_s23  ;;  %s4880_s28 = sadd.s32 (!%p224_p3), %s4772_s18, %s4776_s19 }
   0xb   : > { %s6914_s26 = smov (%p33_p4, %s6912_s26), 0  ;;  %s6916_s27 = smov (!%p33_p4, %s35_s27), %s4792_s23 }
   0xc   : > { %6703 = sst [smem:[#allocation6_spill]] %s6914_s26  ;;  %p37_p5 = scmp.ge.s32.totalorder %s6916_s27, 2 }
   0xd   : > { %227 = sbr.rel (%p224_p3) target bundleno = 693 (0x2b5), region = 36  ;;  %p269_p6 = scmp.lt.s32.totalorder (!%p224_p3), %s4780_s20, 1 }
   0xe   : > { %s6918_s27 = smov (%p37_p5, %s6916_s27), 0  ;;  %p271_p7 = scmp.lt.s32.totalorder (!%p224_p3), %s4880_s28, 9 }
   0xf   : > { %6704 = sst [smem:[#allocation7_spill]] %s6918_s27  ;;  %p281_p8 = scmp.lt.s32.totalorder (!%p224_p3), %s4776_s19, 7 }
  0x10   : > { %p3724_p9 = scmp.ne.s32.totalorder (!%p224_p3), %s4772_s18, 0 }
  0x12   : > { %s6920_s20 = smov (!%p269_p6, %s4780_s20), 1  ;;  %s6922_s19 = smov (!%p281_p8, %s4776_s19), 7 }
  0x13   : > { %s272_s29 = scalar_select %p271_p7, %s4880_s28, 9 }
  0x14   : > { %s4607_s30 = smul.u32 540, %s6920_s20  ;;  %s3720_s7 = sshll.u32 %s6920_s20, 8 }
  0x15   : > { %s4606_s6 = smul.u32 54, %s272_s29  ;;  %s3722_s9 = sshll.u32 %s6920_s20, 3 }
  0x16   : > { %s3719_s11 = sshll.u32 %s6922_s19, 5  ;;  %s293_s17 = sadd.s32 %s3722_s9, %s6922_s19 }
  0x17   : > { %s275_s8 = sadd.s32 %s4607_s30, %s4606_s6  ;;  %s285_s15 = sadd.s32 %s3720_s7, %s3719_s11 }
  0x18   : > { %s3718_s10 = sshll.u32 %s275_s8, 3  ;;  %s3721_s16 = sshll.u32 %s285_s15, 3 }
  0x19   : > { %s4889_s14 = scalar_lea.vmem %s6625_s0, %s3718_s10  ;;  %s4894_s25 = scalar_lea.vmem %s6629_s4, %s3721_s16 }
  0x1a   : > { %s3723_s29 = sshll.u32 %s293_s17, 1  ;;  %300 = sbr.rel (%p3724_p9) target bundleno = 48 (0x30), region = 40 }
  0x1b   : > { %s4899_s20 = scalar_lea.vmem %s6630_s5, %s3723_s29 }
  0x1f   : > { %v4798_v0 = vmov 0.0  }
  0x20   : > { %301 = vst [vmem:[#allocation2 + $0xb0] sm:$0xff] %v4798_v0  ;;  %302 = vst [vmem:[#allocation2] sm:$0xff] %v4798_v0 }
  0x21   : > { %303 = vst [vmem:[#allocation2 + $0xd8] sm:$0xff] %v4798_v0  ;;  %304 = vst [vmem:[#allocation2 + $0x18] sm:$0xff] %v4798_v0 }
  0x22   : > { %305 = vst [vmem:[#allocation2 + $0x50] sm:$0xff] %v4798_v0  ;;  %306 = vst [vmem:[#allocation2 + $0x68] sm:$0xff] %v4798_v0 }
  0x23   : > { %307 = vst [vmem:[#allocation2 + $0x30] sm:$0xff] %v4798_v0  ;;  %308 = vst [vmem:[#allocation2 + $0x48] sm:$0xff] %v4798_v0 }
  0x24   : > { %309 = vst [vmem:[#allocation2 + $0x80] sm:$0xff] %v4798_v0  ;;  %310 = vst [vmem:[#allocation2 + $0x88] sm:$0xff] %v4798_v0 }
  0x25   : > { %311 = vst [vmem:[#allocation2 + $0xe8] sm:$0xff] %v4798_v0  ;;  %312 = vst [vmem:[#allocation2 + $0xb8] sm:$0xff] %v4798_v0 }
  0x26   : > { %313 = vst [vmem:[#allocation2 + $0x60] sm:$0xff] %v4798_v0  ;;  %314 = vst [vmem:[#allocation2 + $0xf0] sm:$0xff] %v4798_v0 }
  0x27   : > { %315 = vst [vmem:[#allocation2 + $0x8] sm:$0xff] %v4798_v0  ;;  %316 = vst [vmem:[#allocation2 + $0x78] sm:$0xff] %v4798_v0 }
  0x28   : > { %317 = vst [vmem:[#allocation2 + $0x38] sm:$0xff] %v4798_v0  ;;  %318 = vst [vmem:[#allocation2 + $0x58] sm:$0xff] %v4798_v0 }
  0x29   : > { %319 = vst [vmem:[#allocation2 + $0x40] sm:$0xff] %v4798_v0  ;;  %320 = vst [vmem:[#allocation2 + $0xc8] sm:$0xff] %v4798_v0 }
  0x2a   : > { %321 = vst [vmem:[#allocation2 + $0xe0] sm:$0xff] %v4798_v0  ;;  %322 = vst [vmem:[#allocation2 + $0x90] sm:$0xff] %v4798_v0 }
  0x2b   : > { %323 = vst [vmem:[#allocation2 + $0x70] sm:$0xff] %v4798_v0  ;;  %324 = vst [vmem:[#allocation2 + $0xc0] sm:$0xff] %v4798_v0 }
  0x2c   : > { %325 = vst [vmem:[#allocation2 + $0xa8] sm:$0xff] %v4798_v0  ;;  %326 = vst [vmem:[#allocation2 + $0xd0] sm:$0xff] %v4798_v0 }
  0x2d   : > { %327 = vst [vmem:[#allocation2 + $0x10] sm:$0xff] %v4798_v0  ;;  %328 = vst [vmem:[#allocation2 + $0x28] sm:$0xff] %v4798_v0 }
  0x2e   : > { %329 = vst [vmem:[#allocation2 + $0xa0] sm:$0xff] %v4798_v0  ;;  %330 = vst [vmem:[#allocation2 + $0xf8] sm:$0xff] %v4798_v0 }
  0x2f   : > { %331 = vst [vmem:[#allocation2 + $0x20] sm:$0xff] %v4798_v0  ;;  %332 = vst [vmem:[#allocation2 + $0x98] sm:$0xff] %v4798_v0 }
  0x30 PF: > { %p334_p10 = scmp.eq.s32.totalorder %s4880_s28, 0  ;;  %p335_p11 = scmp.eq.s32.totalorder %s4880_s28, 9 }
  0x32   : > { %p336_p12 = por %p335_p11, %p334_p10 }
  0x34   : > { %339 = sbr.rel (%p336_p12) target bundleno = 607 (0x25f), region = 44 }
  0x39   : > { %s3941_s19 = smul.u32 576, %s4772_s18  ;;  %v364_v1 = vld [vmem:[%s4889_s14 + $0xc0] sm:$0xff]  ;;  %v365_v2 = vld [vmem:[%s4889_s14 + $0xc8] sm:$0xff]  ;;  %v366_v3 = vld [vmem:[%s4889_s14 + $0xd0] sm:$0x3]  ;;  %v570_v4 = vlaneseq  ;;  %v4799_v5 = vmov 0  }
  0x3a   : > { %v4908_v6 = vrot.slane %v4799_v5, 1  ;;  %v4913_v7 = vld [vmem:[%s6627_s2] ss:$0 sm:$0xff]  ;;  %v343_v13 = vld [vmem:[%s4889_s14 + $0x18] sm:$0xff]  ;;  %v345_v15 = vld [vmem:[%s4889_s14 + $0x28] sm:$0x3] }
  0x3b   : > { %v4918_v8 = vld [vmem:[%s6628_s3] ss:$0 sm:$0xff]  ;;  %s4923_s6 = scalar_lea.vmem %s6626_s1, %s3941_s19  ;;  %v426_v9 = vmul.f32 %v4913_v7, %v364_v1  ;;  %v427_v10 = vmul.f32 %v4913_v7, %v365_v2  ;;  %v428_v11 = vmul.f32 %v4913_v7, %v366_v3  ;;  %v4928_v12 = vshrl.u32 %v570_v4, 7  ;;  %v367_v38 = vld [vmem:[%s4889_s14 + $0xd8] sm:$0xff]  ;;  %v369_v43 = vld [vmem:[%s4889_s14 + $0xe8] sm:$0x3] }
  0x3c   : > { %6705 = vst [vmem:[#allocation8_spill] sm:$0xff] %v4908_v6  ;;  %v344_v14 = vld [vmem:[%s4889_s14 + $0x20] sm:$0xff]  ;;  %v4668_v16 = vld [vmem:[%s4923_s6 + $0x78] sm:$0xff]   ;;  %4174 = vmatprep.mubr.bf16.mxu0 %v4908_v6  ;;  %v405_v17 = vmul.f32 %v4913_v7, %v343_v13  ;;  %v4669_v19 = vld [vmem:[%s4923_s6 + $0x70] sm:$0xff]   ;;  %v407_v23 = vmul.f32 %v4913_v7, %v345_v15  ;;  %vm841_vm2 = vsmask.f32 7424  ;;  %v429_v44 = vmul.f32 %v4913_v7, %v367_v38 }
  0x3d   : > { %v406_v18 = vmul.f32 %v4913_v7, %v344_v14  ;;  %v486_v20 = vadd.f32 %v4918_v8, %v426_v9  ;;  %v487_v21 = vadd.f32 %v4918_v8, %v427_v10  ;;  %v488_v22 = vadd.f32 %v4918_v8, %v428_v11  ;;  %4158 = vmatprep.subr.bf16.mxu0 %v4668_v16  ;;  %v4670_v25 = vld [vmem:[%s4923_s6 + $0x68] sm:$0xff]   ;;  %v4671_v33 = vld [vmem:[%s4923_s6 + $0x60] sm:$0xff]   ;;  %v4672_v53 = vld [vmem:[%s4923_s6 + $0x58] sm:$0xff]  }
  0x3e   : > { %4590 = vmatprep.subr.bf16.mxu1 %v4668_v16  ;;  %v4943_v24 = vadd.s32 16, %v4928_v12  ;;  %4159 = vmatpush3.bf16.msra.mxu0 %v4668_v16  ;;  %vm574_vm0 = vcmp.ge.s32.totalorder %v4928_v12, 1  ;;  %v465_v28 = vadd.f32 %v4918_v8, %v405_v17  ;;  %v467_v31 = vadd.f32 %v4918_v8, %v407_v23  ;;  %v368_v39 = vld [vmem:[%s4889_s14 + $0xe0] sm:$0xff]  ;;  %v346_v2 = vld [vmem:[%s4889_s14 + $0x30] sm:$0xff]  ;;  %v347_v5 = vld [vmem:[%s4889_s14 + $0x38] sm:$0xff] }
  0x3f   : > { %4598 = vmatpush3.bf16.msra.mxu1 %v4668_v16  ;;  %v540_v26 = vmax.f32 %v486_v20, 0.0  ;;  %4160 = vmatprep.subr.bf16.mxu0 %v4669_v19  ;;  %v541_v27 = vmax.f32 %v487_v21, 0.0  ;;  %v542_v29 = vmax.f32 %v488_v22, 0.0  ;;  %v466_v30 = vadd.f32 %v4918_v8, %v406_v18  ;;  %v348_v9 = vld [vmem:[%s4889_s14 + $0x40] sm:$0x3]  ;;  %v370_v11 = vld [vmem:[%s4889_s14 + $0xf0] sm:$0xff] }
  0x40   : > { %6706 = vst [vmem:[#allocation9_spill] sm:$0xff] %v4943_v24  ;;  %4591 = vmatprep.subr.bf16.mxu1 %v4669_v19  ;;  %vm585_vm1 = vcmp.le.s32.totalorder %v4943_v24, 16  ;;  %v519_v37 = vmax.f32 %v465_v28, 0.0  ;;  %v521_v42 = vmax.f32 %v467_v31, 0.0  ;;  %v430_v48 = vmul.f32 %v4913_v7, %v368_v39  ;;  %v4673_v13 = vld [vmem:[%s4923_s6 + $0x50] sm:$0xff]   ;;  %v371_v18 = vld [vmem:[%s4889_s14 + $0xf8] sm:$0xff] }
  0x41   : > { %v4951_v32 = vpack.c.bf16 %v541_v27, %v540_v26  ;;  %v628_v34 = vsel %vm574_vm0, %v540_v26, 0.0  ;;  %v630_v35 = vsel %vm585_vm1, %v542_v29, 0.0  ;;  %v520_v41 = vmax.f32 %v466_v30, 0.0  ;;  %v372_v23 = vld [vmem:[%s4889_s14 + $0x100] sm:$0x3] }
  0x42   : > { %4161 = vmatpush3.bf16.msra.mxu0 %v4669_v19  ;;  %v4958_v36 = vpack.c.bf16 %v541_v27, %v628_v34  ;;  %v4962_v40 = vpack.c.bf16 %v630_v35, %v630_v35  ;;  %v607_v47 = vsel %vm574_vm0, %v519_v37, 0.0  ;;  %v609_v50 = vsel %vm585_vm1, %v521_v42, 0.0  ;;  %v4674_v34 = vld [vmem:[%s4923_s6 + $0x48] sm:$0xff]   ;;  %v380_v6 = vld [vmem:[%s4889_s14 + $0x140] sm:$0xff] }
  0x43   : > { %6707 = vst [vmem:[#allocation10_spill] sm:$0xff] %v4951_v32  ;;  %4599 = vmatpush3.bf16.msra.mxu1 %v4669_v19  ;;  %4162 = vmatprep.subr.bf16.mxu0 %v4670_v25  ;;  %v4974_v51 = vpack.c.bf16 %v520_v41, %v607_v47  ;;  %v4976_v52 = vpack.c.bf16 %v520_v41, %v519_v37  ;;  %v4690_v32 = vld [vmem:[%s4923_s6] sm:$0xff]   ;;  %vm1500_vm3 = vcmask 1046528   ;;  %vm4801_vm4 = vmmov 1  }
  0x44   : > { %4592 = vmatprep.subr.bf16.mxu1 %v4670_v25  ;;  %6708 = vst [vmem:[#allocation11_spill] sm:$0xff] %v4958_v36  ;;  %6709 = vst [vmem:[#allocation12_spill] sm:$0xff] %v4962_v40  ;;  %v939_v45 = vshrl.u32 %v4958_v36, 16  ;;  %v941_v46 = vshll.u32 %v4958_v36, 16  ;;  %v946_v49 = vshll.u32 %v4962_v40, 16  ;;  %v4979_v55 = vpack.c.bf16 %v609_v50, %v609_v50  ;;  %v350_v50 = vld [vmem:[%s4889_s14 + $0x50] sm:$0xff] }
  0x45   : > { %v431_v56 = vmul.f32 %v4913_v7, %v369_v43  ;;  %v4983_v57 = vadd.f32 %v4918_v8, %v429_v44  ;;  %v855_v59 = vshrl.u32 %v4974_v51, 16  ;;  %v857_v60 = vshll.u32 %v4974_v51, 16  ;;  %v363_v40 = vld [vmem:[%s4889_s14 + $0xb8] sm:$0x3]  ;;  %vm5525_vm5 = vmpackc.low %vm4801_vm4, %vm574_vm0 }
  0x46   : > { %4163 = vmatpush3.bf16.msra.mxu0 %v4670_v25  ;;  %v943_v54 = vrot.slane %v941_v46, 1  ;;  %v948_v58 = vrot.slane %v946_v49, 1  ;;  %v4988_v61 = vadd.f32 %v4918_v8, %v430_v48  ;;  %v862_v63 = vshll.u32 %v4979_v55, 16 }
  0x47   : > { %4600 = vmatpush3.bf16.msra.mxu1 %v4670_v25  ;;  %4164 = vmatprep.subr.bf16.mxu0 %v4671_v33  ;;  %6710 = vst [vmem:[#allocation13_spill] sm:$0xff] %v4983_v57  ;;  %v491_v0 = vadd.f32 %v4918_v8, %v431_v56  ;;  %v6634_v1 = vmax.f32 %v4983_v57, 0.0  ;;  %v859_v3 = vrot.slane %v857_v60, 1  ;;  %v408_v10 = vmul.f32 %v4913_v7, %v346_v2 }
  0x48   : > { %4593 = vmatprep.subr.bf16.mxu1 %v4671_v33  ;;  %6711 = vst [vmem:[#allocation14_spill] sm:$0xff] %v4988_v61  ;;  %v944_v62 = vor.u32 %v943_v54, %v939_v45  ;;  %v6633_v4 = vmax.f32 %v4988_v61, 0.0  ;;  %v864_v15 = vrot.slane %v862_v63, 1  ;;  %v409_v21 = vmul.f32 %v4913_v7, %v347_v5  ;;  %v349_v45 = vld [vmem:[%s4889_s14 + $0x48] sm:$0xff]  ;;  %v4691_v61 = vld [vmem:[%s4923_s6 + $0x80] sm:$0xff]  }
  0x49   : > { %v545_v16 = vmax.f32 %v491_v0, 0.0  ;;  %v631_v17 = vsel %vm574_vm0, %v6634_v1, 0.0  ;;  %v860_v19 = vor.u32 %v859_v3, %v855_v59  ;;  %v410_v22 = vmul.f32 %v4913_v7, %v348_v9  ;;  %v351_v0 = vld [vmem:[%s4889_s14 + $0x58] sm:$0x3]  ;;  %v4682_v1 = vld [vmem:[%s4923_s6 + $0x20] sm:$0xff]  }
  0x4a   : > { %4165 = vmatpush3.bf16.msra.mxu0 %v4671_v33  ;;  %v5001_v14 = vsel %vm841_vm2, %v944_v62, %v948_v58  ;;  %v5011_v20 = vpack.c.bf16 %v6633_v4, %v631_v17  ;;  %v5019_v26 = vadd.f32 %v4918_v8, %v408_v10  ;;  %v432_v27 = vmul.f32 %v4913_v7, %v370_v11  ;;  %v4676_v17 = vld [vmem:[%s4923_s6 + $0x38] sm:$0xff]  }
  0x4b   : > { %4601 = vmatpush3.bf16.msra.mxu1 %v4671_v33  ;;  %4166 = vmatprep.subr.bf16.mxu0 %v4672_v53  ;;  %6712 = vst [vmem:[#allocation15_spill] sm:$0xff] %v5001_v14  ;;  %v633_v25 = vsel %vm585_vm1, %v545_v16, 0.0  ;;  %v433_v28 = vmul.f32 %v4913_v7, %v371_v18  ;;  %v5024_v29 = vsel %vm841_vm2, %v860_v19, %v864_v15  ;;  %v4677_v18 = vld [vmem:[%s4923_s6 + $0xb8] sm:$0xff]  }
  0x4c   : > { %4594 = vmatprep.subr.bf16.mxu1 %v4672_v53  ;;  %4190 = vmatprep.mubr.bf16.mxu1 %v5001_v14  ;;  %6713 = vst [vmem:[#allocation16_spill] sm:$0xff] %v5011_v20  ;;  %6714 = vst [vmem:[#allocation17_spill] sm:$0xff] %v5024_v29  ;;  %v5026_v30 = vpack.c.bf16 %v633_v25, %v633_v25  ;;  %v951_v31 = vshrl.u32 %v5011_v20, 16  ;;  %v953_v33 = vshll.u32 %v5011_v20, 16  ;;  %v6644_v38 = vmax.f32 %v5019_v26, 0.0  ;;  %v373_v25 = vld [vmem:[%s4889_s14 + $0x108] sm:$0xff] }
  0x4d   : > { %v5032_v35 = vadd.f32 %v4918_v8, %v409_v21  ;;  %v470_v37 = vadd.f32 %v4918_v8, %v410_v22  ;;  %v434_v39 = vmul.f32 %v4913_v7, %v372_v23  ;;  %v5039_v43 = vadd.f32 %v4918_v8, %v432_v27 }
  0x4e   : > { %4167 = vmatpush3.bf16.msra.mxu0 %v4672_v53  ;;  %6715 = vst [vmem:[#allocation18_spill] sm:$0xff] %v5026_v30  ;;  %v955_v41 = vrot.slane %v953_v33, 1  ;;  %v958_v42 = vshll.u32 %v5026_v30, 16  ;;  %v5042_v44 = vadd.f32 %v4918_v8, %v433_v28  ;;  %v610_v48 = vsel %vm574_vm0, %v6644_v38, 0.0  ;;  %v5316_v30 = vld [vmem:[%s4923_s6 + $0x138] sm:$0xff]  }
  0x4f   : > { %4602 = vmatpush3.bf16.msra.mxu1 %v4672_v53  ;;  %4168 = vmatprep.subr.bf16.mxu0 %v4673_v13  ;;  %v6643_v46 = vmax.f32 %v5032_v35, 0.0  ;;  %v524_v47 = vmax.f32 %v470_v37, 0.0  ;;  %v494_v49 = vadd.f32 %v4918_v8, %v434_v39  ;;  %v4675_v53 = vld [vmem:[%s4923_s6 + $0x40] sm:$0xff]   ;;  %v6639_v58 = vmax.f32 %v5039_v43, 0.0  ;;  %v375_v37 = vld [vmem:[%s4889_s14 + $0x118] sm:$0x3] }
  0x50   : > { %4595 = vmatprep.subr.bf16.mxu1 %v4673_v13  ;;  %v956_v54 = vor.u32 %v955_v41, %v951_v31  ;;  %v960_v56 = vrot.slane %v958_v42, 1  ;;  %v6636_v59 = vmax.f32 %v5042_v44, 0.0  ;;  %v411_v2 = vmul.f32 %v4913_v7, %v349_v45 }
  0x51   : > { %v612_v60 = vsel %vm585_vm1, %v524_v47, 0.0  ;;  %v5059_v62 = vpack.c.bf16 %v6643_v46, %v610_v48  ;;  %v548_v63 = vmax.f32 %v494_v49, 0.0  ;;  %v634_v9 = vsel %vm574_vm0, %v6639_v58, 0.0  ;;  %v4678_v47 = vld [vmem:[%s4923_s6 + $0x30] sm:$0xff]  }
  0x52   : > { %4169 = vmatpush3.bf16.msra.mxu0 %v4673_v13  ;;  %v5064_v3 = vsel %vm841_vm2, %v956_v54, %v960_v56  ;;  %v5066_v5 = vpack.c.bf16 %v612_v60, %v612_v60  ;;  %v412_v10 = vmul.f32 %v4913_v7, %v350_v50  ;;  %v5079_v16 = vpack.c.bf16 %v6636_v59, %v634_v9  ;;  %v4679_v48 = vld [vmem:[%s4923_s6 + $0xb0] sm:$0xff]   ;;  %v352_v9 = vld [vmem:[%s4889_s14 + $0x60] sm:$0xff] }
  0x53   : > { %4603 = vmatpush3.bf16.msra.mxu1 %v4673_v13  ;;  %4170 = vmatprep.subr.bf16.mxu0 %v4674_v34  ;;  %6716 = vst [vmem:[#allocation19_spill] sm:$0xff] %v5064_v3  ;;  %v867_v11 = vshrl.u32 %v5059_v62, 16  ;;  %v869_v13 = vshll.u32 %v5059_v62, 16  ;;  %v636_v15 = vsel %vm585_vm1, %v548_v63, 0.0  ;;  %v413_v22 = vmul.f32 %v4913_v7, %v351_v0  ;;  %v6781_v12 = vld [vmem:[#allocation17_spill] sm:$0xff] }
  0x54   : > { %4596 = vmatprep.subr.bf16.mxu1 %v4674_v34  ;;  %v874_v19 = vshll.u32 %v5066_v5, 16  ;;  %v5084_v21 = vpack.c.bf16 %v636_v15, %v636_v15  ;;  %v5088_v23 = vadd.f32 %v4918_v8, %v411_v2  ;;  %v963_v28 = vshrl.u32 %v5079_v16, 16 }
  0x55   : > { %v871_v27 = vrot.slane %v869_v13, 1  ;;  %v965_v31 = vshll.u32 %v5079_v16, 16  ;;  %v5094_v33 = vadd.f32 %v4918_v8, %v412_v10  ;;  %v473_v42 = vadd.f32 %v4918_v8, %v413_v22 }
  0x56   : > { %4171 = vmatpush3.bf16.msra.mxu0 %v4674_v34  ;;  %v876_v39 = vrot.slane %v874_v19, 1  ;;  %v970_v41 = vshll.u32 %v5084_v21, 16  ;;  %v6641_v45 = vmax.f32 %v5088_v23, 0.0  ;;  %v435_v56 = vmul.f32 %v4913_v7, %v373_v25  ;;  %v353_v25 = vld [vmem:[%s4889_s14 + $0x68] sm:$0xff] }
  0x57   : > { %4604 = vmatpush3.bf16.msra.mxu1 %v4674_v34  ;;  %4172 = vmatprep.subr.bf16.mxu0 %v4675_v53  ;;  %v374_v34 = vld [vmem:[%s4889_s14 + $0x110] sm:$0xff]  ;;  %v872_v49 = vor.u32 %v871_v27, %v867_v11  ;;  %v967_v50 = vrot.slane %v965_v31, 1  ;;  %v6640_v54 = vmax.f32 %v5094_v33, 0.0  ;;  %v527_v63 = vmax.f32 %v473_v42, 0.0 }
  0x58   : > { %4597 = vmatprep.subr.bf16.mxu1 %v4675_v53  ;;  %v972_v60 = vrot.slane %v970_v41, 1  ;;  %v613_v0 = vsel %vm574_vm0, %v6641_v45, 0.0  ;;  %v436_v2 = vmul.f32 %v4913_v7, %v374_v34  ;;  %v437_v15 = vmul.f32 %v4913_v7, %v375_v37  ;;  %v354_v27 = vld [vmem:[%s4889_s14 + $0x70] sm:$0x3] }
  0x59   : > { %v5112_v10 = vsel %vm841_vm2, %v872_v49, %v876_v39  ;;  %v968_v11 = vor.u32 %v967_v50, %v963_v28  ;;  %v615_v13 = vsel %vm585_vm1, %v527_v63, 0.0  ;;  %v5122_v19 = vadd.f32 %v4918_v8, %v435_v56  ;;  %v376_v39 = vld [vmem:[%s4889_s14 + $0x120] sm:$0xff]  ;;  %v4680_v63 = vld [vmem:[%s4923_s6 + $0x28] sm:$0xff]  }
  0x5a   : > { %4173 = vmatpush3.bf16.msra.mxu0 %v4675_v53  ;;  %6717 = vst [vmem:[#allocation20_spill] sm:$0xff] %v5112_v10  ;;  %v5125_v22 = vadd.f32 %v4918_v8, %v436_v2  ;;  %v5134_v31 = vpack.c.bf16 %v615_v13, %v615_v13  ;;  %v497_v41 = vadd.f32 %v4918_v8, %v437_v15  ;;  %v377_v2 = vld [vmem:[%s4889_s14 + $0x128] sm:$0xff]  ;;  %v378_v15 = vld [vmem:[%s4889_s14 + $0x130] sm:$0x3] }
  0x5b   : > { %4605 = vmatpush3.bf16.msra.mxu1 %v4675_v53  ;;  %4254 = vmatprep.subr.bf16.mxu0 %v4677_v18  ;;  %v5116_v53 = vpack.c.bf16 %v6640_v54, %v613_v0  ;;  %v5132_v28 = vsel %vm841_vm2, %v968_v11, %v972_v60  ;;  %v6635_v42 = vmax.f32 %v5122_v19, 0.0  ;;  %v414_v50 = vmul.f32 %v4913_v7, %v352_v9  ;;  %v4681_v0 = vld [vmem:[%s4923_s6 + $0xa8] sm:$0xff]  }
  0x5c   : > { %4206 = vmatprep.subr.bf16.mxu1 %v4676_v17  ;;  %6718 = vst [vmem:[#allocation21_spill] sm:$0xff] %v5132_v28  ;;  %v6637_v49 = vmax.f32 %v5125_v22, 0.0  ;;  %v886_v60 = vshll.u32 %v5134_v31, 16  ;;  %v551_v11 = vmax.f32 %v497_v41, 0.0 }
  0x5d   : > { %4175 = vmatmul.mubr.bf16.vlgmr.msra.gmra.mxu0 %v5024_v29  ;;  %v879_v34 = vshrl.u32 %v5116_v53, 16  ;;  %v881_v37 = vshll.u32 %v5116_v53, 16  ;;  %v637_v9 = vsel %vm574_vm0, %v6635_v42, 0.0  ;;  %v5156_v13 = vadd.f32 %v4918_v8, %v414_v50  ;;  %v4683_v50 = vld [vmem:[%s4923_s6 + $0xa0] sm:$0xff]  }
  0x5e   : > { %4191 = vmatmul.mubr.bf16.vlgmr.msra.gmra.mxu1 %v5064_v3  ;;  %4255 = vmatpush3.bf16.msra.mxu0 %v4677_v18  ;;  %v416_v18 = vmul.f32 %v4913_v7, %v354_v27  ;;  %v5162_v4 = vpack.c.bf16 %v6637_v49, %v637_v9  ;;  %v639_v42 = vsel %vm585_vm1, %v551_v11, 0.0  ;;  %v440_v11 = vmul.f32 %v4913_v7, %v378_v15  ;;  %v4686_v3 = vld [vmem:[%s4923_s6 + $0x10] sm:$0xff]   ;;  %v384_v29 = vld [vmem:[%s4889_s14 + $0x160] sm:$0x3] }
  0x5f   : > { %4207 = vmatpush3.bf16.msra.mxu1 %v4676_v17  ;;  %4256 = vmatprep.subr.bf16.mxu0 %v4679_v48  ;;  %v883_v56 = vrot.slane %v881_v37, 1  ;;  %v415_v17 = vmul.f32 %v4913_v7, %v353_v25  ;;  %v438_v25 = vmul.f32 %v4913_v7, %v376_v39  ;;  %v888_v37 = vrot.slane %v886_v60, 1 }
  0x60   : > { %4208 = vmatprep.subr.bf16.mxu1 %v4678_v47  ;;  %4178 = vmatprep.mubr.bf16.mxu0 %v5112_v10  ;;  %v476_v59 = vadd.f32 %v4918_v8, %v416_v18  ;;  %v6638_v39 = vmax.f32 %v5156_v13, 0.0  ;;  %v5178_v9 = vpack.c.bf16 %v639_v42, %v639_v42  ;;  %v446_v20 = vmul.f32 %v4913_v7, %v384_v29 }
  0x61   : > { %4194 = vmatprep.mubr.bf16.mxu1 %v5132_v28  ;;  %v884_v27 = vor.u32 %v883_v56, %v879_v34  ;;  %v5166_v41 = vadd.f32 %v4918_v8, %v415_v17  ;;  %v439_v34 = vmul.f32 %v4913_v7, %v377_v2  ;;  %v355_v56 = vld [vmem:[%s4889_s14 + $0x78] sm:$0xff]  ;;  %v381_v28 = vld [vmem:[%s4889_s14 + $0x148] sm:$0x3] }
  0x62   : > { %4257 = vmatpush3.bf16.msra.mxu0 %v4679_v48  ;;  %v977_v48 = vshll.u32 %v5162_v4, 16  ;;  %v530_v18 = vmax.f32 %v476_v59, 0.0  ;;  %v616_v2 = vsel %vm574_vm0, %v6638_v39, 0.0  ;;  %v357_v59 = vld [vmem:[%s4889_s14 + $0x88] sm:$0x3]  ;;  %v417_v58 = vmul.f32 %v4913_v7, %v355_v56 }
  0x63   : > { %4209 = vmatpush3.bf16.msra.mxu1 %v4678_v47  ;;  %v5176_v60 = vsel %vm841_vm2, %v884_v27, %v888_v37  ;;  %v975_v47 = vshrl.u32 %v5162_v4, 16  ;;  %4258 = vmatprep.subr.bf16.mxu0 %v4681_v0  ;;  %v6642_v17 = vmax.f32 %v5166_v41, 0.0  ;;  %v982_v27 = vshll.u32 %v5178_v9, 16 }
  0x64   : > { %6719 = vst [vmem:[#allocation22_spill] sm:$0xff] %v5176_v60  ;;  %4210 = vmatprep.subr.bf16.mxu1 %v4680_v63  ;;  %v979_v42 = vrot.slane %v977_v48, 1  ;;  %v5191_v37 = vadd.f32 %v4918_v8, %v438_v25  ;;  %v5194_v49 = vadd.f32 %v4918_v8, %v439_v34  ;;  %v618_v39 = vsel %vm585_vm1, %v530_v18, 0.0  ;;  %v356_v25 = vld [vmem:[%s4889_s14 + $0x80] sm:$0xff]  ;;  %v4685_v18 = vld [vmem:[%s4923_s6 + $0x98] sm:$0xff]  }
  0x65   : > { %4179 = vmatmul.mubr.bf16.gmra.mxu0 %v5176_v60  ;;  %v5201_v15 = vpack.c.bf16 %v6642_v17, %v616_v2  ;;  %v500_v48 = vadd.f32 %v4918_v8, %v440_v11  ;;  %v984_v34 = vrot.slane %v982_v27, 1  ;;  %v5206_v45 = vpack.c.bf16 %v618_v39, %v618_v39 }
  0x66   : > { %4259 = vmatpush3.bf16.msra.mxu0 %v4681_v0  ;;  %v980_v54 = vor.u32 %v979_v42, %v975_v47  ;;  %v4684_v0 = vld [vmem:[%s4923_s6 + $0x18] sm:$0xff]   ;;  %v6651_v11 = vmax.f32 %v5194_v49, 0.0  ;;  %v418_v46 = vmul.f32 %v4913_v7, %v356_v25 }
  0x67   : > { %4211 = vmatpush3.bf16.msra.mxu1 %v4680_v63  ;;  %4260 = vmatprep.subr.bf16.mxu0 %v4683_v50  ;;  %v6650_v63 = vmax.f32 %v5191_v37, 0.0  ;;  %v891_v2 = vshrl.u32 %v5201_v15, 16  ;;  %v893_v17 = vshll.u32 %v5201_v15, 16  ;;  %v554_v56 = vmax.f32 %v500_v48, 0.0  ;;  %v379_v47 = vld [vmem:[%s4889_s14 + $0x138] sm:$0xff] }
  0x68   : > { %4212 = vmatprep.subr.bf16.mxu1 %v4682_v1  ;;  %v5216_v42 = vsel %vm841_vm2, %v980_v54, %v984_v34  ;;  %v898_v39 = vshll.u32 %v5206_v45, 16  ;;  %v419_v34 = vmul.f32 %v4913_v7, %v357_v59 }
  0x69   : > { %6720 = vst [vmem:[#allocation23_spill] sm:$0xff] %v5216_v42  ;;  %v640_v27 = vsel %vm574_vm0, %v6650_v63, 0.0  ;;  %4195 = vmatmul.mubr.bf16.gmra.mxu1 %v5216_v42  ;;  %v895_v38 = vrot.slane %v893_v17, 1  ;;  %v642_v48 = vsel %vm585_vm1, %v554_v56, 0.0  ;;  %v5241_v17 = vadd.f32 %v4918_v8, %v418_v46  ;;  %v4687_v56 = vld [vmem:[%s4923_s6 + $0x90] sm:$0xff]  }
  0x6a   : > { %4261 = vmatpush3.bf16.msra.mxu0 %v4683_v50  ;;  %v5229_v54 = vpack.c.bf16 %v6651_v11, %v640_v27  ;;  %v900_v25 = vrot.slane %v898_v39, 1  ;;  %v5235_v63 = vpack.c.bf16 %v642_v48, %v642_v48  ;;  %v5238_v50 = vadd.f32 %v4918_v8, %v417_v58  ;;  %v358_v48 = vld [vmem:[%s4889_s14 + $0x90] sm:$0xff] }
  0x6b   : > { %4213 = vmatpush3.bf16.msra.mxu1 %v4682_v1  ;;  %6722 = vst [vmem:[#allocation25_spill] sm:$0xff] %v5241_v17  ;;  %4262 = vmatprep.subr.bf16.mxu0 %v4685_v18  ;;  %v896_v27 = vor.u32 %v895_v38, %v891_v2  ;;  %v479_v42 = vadd.f32 %v4918_v8, %v419_v34 }
  0x6c   : > { %6721 = vst [vmem:[#allocation24_spill] sm:$0xff] %v5238_v50  ;;  %v987_v11 = vshrl.u32 %v5229_v54, 16  ;;  %v989_v59 = vshll.u32 %v5229_v54, 16  ;;  %4214 = vmatprep.subr.bf16.mxu1 %v4684_v0  ;;  %v994_v1 = vshll.u32 %v5235_v63, 16  ;;  %v6660_v39 = vmax.f32 %v5238_v50, 0.0 }
  0x6d   : > { %v441_v46 = vmul.f32 %v4913_v7, %v379_v47  ;;  %v5253_v38 = vsel %vm841_vm2, %v896_v27, %v900_v25  ;;  %v533_v14 = vmax.f32 %v479_v42, 0.0  ;;  %v442_v34 = vmul.f32 %v4913_v7, %v380_v6  ;;  %v359_v42 = vld [vmem:[%s4889_s14 + $0x98] sm:$0xff]  ;;  %v360_v25 = vld [vmem:[%s4889_s14 + $0xa0] sm:$0x3]  ;;  %v4688_v6 = vld [vmem:[%s4923_s6 + $0x8] sm:$0xff]  }
  0x6e   : > { %6723 = vst [vmem:[#allocation26_spill] sm:$0xff] %v5253_v38  ;;  %v991_v2 = vrot.slane %v989_v59, 1  ;;  %4263 = vmatpush3.bf16.msra.mxu0 %v4685_v18  ;;  %4182 = vmatprep.mubr.bf16.mxu0 %v5253_v38  ;;  %v996_v60 = vrot.slane %v994_v1, 1  ;;  %v619_v58 = vsel %vm574_vm0, %v6660_v39, 0.0  ;;  %v443_v47 = vmul.f32 %v4913_v7, %v381_v28  ;;  %v4689_v28 = vld [vmem:[%s4923_s6 + $0x88] sm:$0xff]  }
  0x6f   : > { %v5263_v10 = vadd.f32 %v4918_v8, %v441_v46  ;;  %4215 = vmatpush3.bf16.msra.mxu1 %v4684_v0  ;;  %v621_v27 = vsel %vm585_vm1, %v533_v14, 0.0  ;;  %v6724_v59 = vmax.f32 %v5241_v17, 0.0  ;;  %v5275_v39 = vadd.f32 %v4918_v8, %v442_v34  ;;  %4264 = vmatprep.subr.bf16.mxu0 %v4687_v56 }
  0x70   : > { %v992_v18 = vor.u32 %v991_v2, %v987_v11  ;;  %4216 = vmatprep.subr.bf16.mxu1 %v4686_v3  ;;  %v5278_v46 = vpack.c.bf16 %v621_v27, %v621_v27  ;;  %v503_v0 = vadd.f32 %v4918_v8, %v443_v47  ;;  %v420_v14 = vmul.f32 %v4913_v7, %v358_v48  ;;  %v382_v2 = vld [vmem:[%s4889_s14 + $0x150] sm:$0xff]  ;;  %v383_v27 = vld [vmem:[%s4889_s14 + $0x158] sm:$0xff] }
  0x71   : > { %v5272_v1 = vpack.c.bf16 %v6724_v59, %v619_v58  ;;  %v6726_v48 = vmax.f32 %v5263_v10, 0.0 }
  0x72   : > { %v5285_v58 = vsel %vm841_vm2, %v992_v18, %v996_v60  ;;  %4265 = vmatpush3.bf16.msra.mxu0 %v4687_v56  ;;  %v910_v47 = vshll.u32 %v5278_v46, 16  ;;  %v557_v11 = vmax.f32 %v503_v0, 0.0  ;;  %v421_v18 = vmul.f32 %v4913_v7, %v359_v42 }
  0x73   : > { %6725 = vst [vmem:[#allocation27_spill] sm:$0xff] %v5285_v58  ;;  %v903_v34 = vshrl.u32 %v5272_v1, 16  ;;  %v905_v59 = vshll.u32 %v5272_v1, 16  ;;  %4198 = vmatprep.mubr.bf16.mxu1 %v5285_v58  ;;  %v643_v60 = vsel %vm574_vm0, %v6726_v48, 0.0  ;;  %4217 = vmatpush3.bf16.msra.mxu1 %v4686_v3  ;;  %v6727_v56 = vmax.f32 %v5275_v39, 0.0 }
  0x74   : > { %v422_v58 = vmul.f32 %v4913_v7, %v360_v25  ;;  %v5306_v0 = vadd.f32 %v4918_v8, %v420_v14  ;;  %4218 = vmatprep.subr.bf16.mxu1 %v4688_v6  ;;  %4266 = vmatprep.subr.bf16.mxu0 %v4689_v28  ;;  %v912_v48 = vrot.slane %v910_v47, 1  ;;  %v645_v3 = vsel %vm585_vm1, %v557_v11, 0.0 }
  0x75   : > { %v907_v38 = vrot.slane %v905_v59, 1  ;;  %v5302_v57 = vpack.c.bf16 %v6727_v56, %v643_v60  ;;  %v5312_v42 = vadd.f32 %v4918_v8, %v421_v18  ;;  %v444_v59 = vmul.f32 %v4913_v7, %v382_v2 }
  0x76   : > { %6728 = vst [vmem:[#allocation28_spill] sm:$0xff] %v5306_v0  ;;  %v5318_v25 = vpack.c.bf16 %v645_v3, %v645_v3  ;;  %4267 = vmatpush3.bf16.msra.mxu0 %v4689_v28  ;;  %v482_v11 = vadd.f32 %v4918_v8, %v422_v58  ;;  %v6676_v18 = vmax.f32 %v5306_v0, 0.0  ;;  %v445_v2 = vmul.f32 %v4913_v7, %v383_v27  ;;  %v361_v28 = vld [vmem:[%s4889_s14 + $0xa8] sm:$0xff]  ;;  %v5334_v58 = vld [vmem:[%s4923_s6 + $0xf8] sm:$0xff]  }
  0x77   : > { %6729 = vst [vmem:[#allocation29_spill] sm:$0xff] %v5312_v42  ;;  %v908_v60 = vor.u32 %v907_v38, %v903_v34  ;;  %v999_v14 = vshrl.u32 %v5302_v57, 16  ;;  %v1001_v47 = vshll.u32 %v5302_v57, 16  ;;  %v6677_v56 = vmax.f32 %v5312_v42, 0.0  ;;  %4219 = vmatpush3.bf16.msra.mxu1 %v4688_v6  ;;  %4268 = vmatprep.subr.bf16.mxu0 %v4691_v61 }
  0x78   : > { %v1006_v3 = vshll.u32 %v5318_v25, 16  ;;  %4220 = vmatprep.subr.bf16.mxu1 %v4690_v32  ;;  %v536_v27 = vmax.f32 %v482_v11, 0.0  ;;  %v622_v6 = vsel %vm574_vm0, %v6676_v18, 0.0  ;;  %v362_v11 = vld [vmem:[%s4889_s14 + $0xb0] sm:$0xff] }
  0x79   : > { %v5327_v38 = vsel %vm841_vm2, %v908_v60, %v912_v48  ;;  %v1003_v34 = vrot.slane %v1001_v47, 1  ;;  %v5342_v48 = vadd.f32 %v4918_v8, %v444_v59  ;;  %v5345_v60 = vadd.f32 %v4918_v8, %v445_v2 }
  0x7a   : > { %6730 = vst [vmem:[#allocation30_spill] sm:$0xff] %v5327_v38  ;;  %4183 = vmatmul.mubr.bf16.gmra.mxu0 %v5327_v38  ;;  %v1008_v47 = vrot.slane %v1006_v3, 1  ;;  %v5349_v36 = vpack.c.bf16 %v6677_v56, %v622_v6  ;;  %v506_v38 = vadd.f32 %v4918_v8, %v446_v20  ;;  %v624_v0 = vsel %vm585_vm1, %v536_v27, 0.0  ;;  %v387_v6 = vld [vmem:[%s4889_s14 + $0x178] sm:$0x3] }
  0x7b   : > { %v1004_v29 = vor.u32 %v1003_v34, %v999_v14  ;;  %4269 = vmatpush3.bf16.msra.mxu0 %v4691_v61  ;;  %v6680_v18 = vmax.f32 %v5342_v48, 0.0  ;;  %v6684_v59 = vmax.f32 %v5345_v60, 0.0  ;;  %v423_v2 = vmul.f32 %v4913_v7, %v361_v28  ;;  %v385_v14 = vld [vmem:[%s4889_s14 + $0x168] sm:$0xff]  ;;  %4221 = vmatpush3.bf16.msra.mxu1 %v4690_v32 }
  0x7c   : > { %4350 = vmatprep.subr.bf16.mxu0 %v5316_v30  ;;  %v5363_v20 = vpack.c.bf16 %v624_v0, %v624_v0  ;;  %v915_v61 = vshrl.u32 %v5349_v36, 16  ;;  %v917_v3 = vshll.u32 %v5349_v36, 16  ;;  %4302 = vmatprep.subr.bf16.mxu1 %v5334_v58  ;;  %v560_v27 = vmax.f32 %v506_v38, 0.0 }
  0x7d   : > { %v5361_v34 = vsel %vm841_vm2, %v1004_v29, %v1008_v47  ;;  %v646_v32 = vsel %vm574_vm0, %v6680_v18, 0.0  ;;  %v424_v28 = vmul.f32 %v4913_v7, %v362_v11  ;;  %v425_v0 = vmul.f32 %v4913_v7, %v363_v40  ;;  %v386_v40 = vld [vmem:[%s4889_s14 + $0x170] sm:$0xff] }
  0x7e   : > { %6731 = vst [vmem:[#allocation31_spill] sm:$0xff] %v5361_v34  ;;  %6732 = vst [vmem:[#allocation32_spill] sm:$0xff] %v5363_v20  ;;  %4199 = vmatmul.mubr.bf16.gmra.mxu1 %v5361_v34  ;;  %v919_v29 = vrot.slane %v917_v3, 1  ;;  %v922_v47 = vshll.u32 %v5363_v20, 16  ;;  %v5379_v56 = vpack.c.bf16 %v6684_v59, %v646_v32  ;;  %v5382_v34 = vadd.f32 %v4918_v8, %v423_v2 }
  0x7f   : > { %v648_v38 = vsel %vm585_vm1, %v560_v27, 0.0  ;;  %v5387_v18 = vadd.f32 %v4918_v8, %v424_v28  ;;  %v485_v11 = vadd.f32 %v4918_v8, %v425_v0  ;;  %v447_v3 = vmul.f32 %v4913_v7, %v385_v14  ;;  %v5405_v7 = vld [vmem:[%s6627_s2] ss:$0 sm:$0xff] }
  0x80   : > { %v920_v42 = vor.u32 %v919_v29, %v915_v61  ;;  %v924_v17 = vrot.slane %v922_v47, 1  ;;  %v5392_v50 = vpack.c.bf16 %v648_v38, %v648_v38  ;;  %v1011_v32 = vshrl.u32 %v5379_v56, 16  ;;  %6734 = vst [vmem:[#allocation34_spill] sm:$0xff] %v5405_v7  ;;  %v5419_v29 = vld [vmem:[%s6628_s3] ss:$0 sm:$0xff] }
  0x81   : > { %v1013_v2 = vshll.u32 %v5379_v56, 16  ;;  %v6686_v59 = vmax.f32 %v5382_v34, 0.0  ;;  %v6691_v27 = vmax.f32 %v5387_v18, 0.0  ;;  %v539_v20 = vmax.f32 %v485_v11, 0.0  ;;  %6735 = vst [vmem:[#allocation35_spill] sm:$0xff] %v5419_v29 }
  0x82   : > { %v5399_v28 = vsel %vm841_vm2, %v920_v42, %v924_v17  ;;  %v1018_v8 = vshll.u32 %v5392_v50, 16  ;;  %v448_v14 = vmul.f32 %v5405_v7, %v386_v40  ;;  %v449_v61 = vmul.f32 %v5405_v7, %v387_v6 }
  0x83   : > { %6733 = vst [vmem:[#allocation33_spill] sm:$0xff] %v5399_v28  ;;  %4186 = vmatprep.mubr.bf16.mxu0 %v5399_v28  ;;  %v1015_v0 = vrot.slane %v1013_v2, 1  ;;  %v625_v17 = vsel %vm574_vm0, %v6686_v59, 0.0  ;;  %v627_v42 = vsel %vm585_vm1, %v539_v20, 0.0  ;;  %v5422_v47 = vadd.f32 %v5419_v29, %v447_v3 }
  0x84   : > { %v1020_v6 = vrot.slane %v1018_v8, 1  ;;  %v5426_v38 = vpack.c.bf16 %v6691_v27, %v625_v17  ;;  %v5428_v11 = vpack.c.bf16 %v627_v42, %v627_v42  ;;  %v5431_v40 = vadd.f32 %v5419_v29, %v448_v14 }
  0x85   : > { %v1016_v2 = vor.u32 %v1015_v0, %v1011_v32  ;;  %v509_v20 = vadd.f32 %v5419_v29, %v449_v61  ;;  %v6694_v59 = vmax.f32 %v5422_v47, 0.0  ;;  %v4800_v29 = vmov 0.0|0.0  }
  0x86   : > { %v927_v28 = vshrl.u32 %v5426_v38, 16  ;;  %v929_v3 = vshll.u32 %v5426_v38, 16  ;;  %v934_v8 = vshll.u32 %v5428_v11, 16  ;;  %v6697_v7 = vmax.f32 %v5431_v40, 0.0 }
  0x87   : > { %v5440_v17 = vsel %vm841_vm2, %v1016_v2, %v1020_v6  ;;  %v563_v42 = vmax.f32 %v509_v20, 0.0  ;;  %v649_v32 = vsel %vm574_vm0, %v6694_v59, 0.0  ;;  %v5454_v6 = vrot.slane %v4800_v29, 1 }
  0x88   : > { %6736 = vst [vmem:[#allocation36_spill] sm:$0xff] %v5440_v17  ;;  %4202 = vmatprep.mubr.bf16.mxu1 %v5440_v17  ;;  %v931_v14 = vrot.slane %v929_v3, 1  ;;  %v936_v61 = vrot.slane %v934_v8, 1  ;;  %v5449_v0 = vpack.c.bf16 %v6697_v7, %v649_v32  ;;  %v6738_v2 = vmax.f32 %v5019_v26, 0.0 }
  0x89   : > { %v651_v27 = vsel %vm585_vm1, %v563_v42, 0.0  ;;  %6737 = vst [vmem:[#allocation37_spill] sm:$0xff] %v5454_v6  ;;  %v6739_v20 = vmax.f32 %v5032_v35, 0.0  ;;  %v6740_v7 = vmax.f32 %v5088_v23, 0.0  ;;  %v6741_v42 = vmax.f32 %v5094_v33, 0.0 }
  0x8a   : > { %v932_v17 = vor.u32 %v931_v14, %v927_v28  ;;  %v5462_v3 = vpack.c.bf16 %v651_v27, %v651_v27  ;;  %v1023_v8 = vshrl.u32 %v5449_v0, 16  ;;  %v1025_v32 = vshll.u32 %v5449_v0, 16 }
  0x8b   : > { %v5460_v59 = vpack.c.bf16 %v6739_v20, %v6738_v2  ;;  %v5470_v24 = vpack.c.bf16 %v6741_v42, %v6740_v7  ;;  %v1504_v27 = vrot.slane %v4974_v51, 1  ;;  %v1505_v23 = vrot.slane %v4979_v55, 1  ;;  %v4695_v20 = vld [vmem:[%s4923_s6 + $0x130] sm:$0xff]  }
  0x8c   : > { %v5473_v26 = vsel %vm841_vm2, %v932_v17, %v936_v61  ;;  %v1027_v35 = vrot.slane %v1025_v32, 1  ;;  %v1030_v2 = vshll.u32 %v5462_v3, 16  ;;  %v1507_v33 = vrot.slane %v5059_v62, 1 }
  0x8d   : > { %4187 = vmatmul.mubr.bf16.gmra.mxu0 %v5473_v26  ;;  %v1508_v7 = vrot.slane %v5066_v5, 1  ;;  %v1510_v61 = vrot.slane %v5116_v53, 1  ;;  %v5490_v51 = vsel %vm1500_vm3, %v1504_v27, %v1505_v23  ;;  %v1511_v55 = vrot.slane %v5134_v31, 1 }
  0x8e   : > { %v1028_v28 = vor.u32 %v1027_v35, %v1023_v8  ;;  %v1032_v14 = vrot.slane %v1030_v2, 1  ;;  %4270 = vmatprep.mubr.bf16.mxu0 %v5454_v6  ;;  %v1513_v62 = vrot.slane %v5201_v15, 1  ;;  %v1514_v8 = vrot.slane %v5206_v45, 1  ;;  %v4694_v45 = vld [vmem:[%s4923_s6 + $0xf0] sm:$0xff]  }
  0x8f   : > { %v5495_v5 = vsel %vm1500_vm3, %v1507_v33, %v1508_v7  ;;  %v6742_v32 = vmax.f32 %v5039_v43, 0.0  ;;  %v6743_v42 = vmax.f32 %v5042_v44, 0.0  ;;  %v1531_v35 = vrot.slane %v5079_v16, 1 }
  0x90   : > { %v5483_v17 = vsel %vm841_vm2, %v1028_v28, %v1032_v14  ;;  %v1532_v2 = vrot.slane %v5084_v21, 1  ;;  %v6744_v27 = vmax.f32 %v5122_v19, 0.0  ;;  %v6745_v31 = vmax.f32 %v5125_v22, 0.0 }
  0x91   : > { %4203 = vmatmul.mubr.bf16.gmra.mxu1 %v5483_v17  ;;  %v5502_v53 = vpack.c.bf16 %v6743_v42, %v6742_v32  ;;  %v1534_v28 = vrot.slane %v5162_v4, 1  ;;  %v1535_v43 = vrot.slane %v5178_v9, 1  ;;  %v6746_v44 = vmax.f32 %v5191_v37, 0.0 }
  0x92   : > { %4222 = vmatprep.mubr.bf16.mxu1 %v4800_v29  ;;  %v5510_v15 = vpack.c.bf16 %v6745_v31, %v6744_v27  ;;  %v6747_v14 = vmax.f32 %v5194_v49, 0.0  ;;  %v1537_v21 = vrot.slane %v5229_v54, 1  ;;  %v5532_v4 = vsel %vm1500_vm3, %v1531_v35, %v1532_v2  ;;  %v4698_v31 = vld [vmem:[%s4923_s6 + $0xe0] sm:$0xff]  }
  0x93   : > { %v1538_v22 = vrot.slane %v5235_v63, 1  ;;  %v6750_v49 = vmax.f32 %v5263_v10, 0.0  ;;  %v6751_v9 = vmax.f32 %v5275_v39, 0.0  ;;  %v1540_v54 = vrot.slane %v5302_v57, 1  ;;  %v4697_v39 = vld [vmem:[%s4923_s6 + $0x128] sm:$0xff]  }
  0x94   : > { %v5520_v16 = vpack.c.bf16 %v6747_v14, %v6746_v44  ;;  %v1541_v23 = vrot.slane %v5318_v25, 1  ;;  %v6752_v33 = vmax.f32 %v5342_v48, 0.0  ;;  %v6753_v7 = vmax.f32 %v5345_v60, 0.0  ;;  %v4696_v25 = vld [vmem:[%s4923_s6 + $0xe8] sm:$0xff]  }
  0x95   : > { %4271 = vmatmul.mubr.bf16.vlgmr.msra.gmra.mxu0 %v5490_v51  ;;  %v5539_v37 = vpack.c.bf16 %v6751_v9, %v6750_v49  ;;  %v1543_v10 = vrot.slane %v5379_v56, 1  ;;  %v5555_v32 = vsel %vm1500_vm3, %v1537_v21, %v1538_v22  ;;  %v1544_v57 = vrot.slane %v5392_v50, 1  ;;  %v4699_v56 = vld [vmem:[%s4923_s6 + $0x120] sm:$0xff]   ;;  %v6765_v49 = vld [vmem:[#allocation29_spill] sm:$0xff] }
  0x96   : > { %4351 = vmatpush3.bf16.msra.mxu0 %v5316_v30  ;;  %4274 = vmatprep.mubr.bf16.mxu0 %v5495_v5  ;;  %v5543_v30 = vsel %vm1500_vm3, %v1534_v28, %v1535_v43  ;;  %v5550_v63 = vpack.c.bf16 %v6753_v7, %v6752_v33  ;;  %v6754_v42 = vmax.f32 %v5422_v47, 0.0  ;;  %v6755_v35 = vmax.f32 %v5431_v40, 0.0  ;;  %v6759_v28 = vld [vmem:[#allocation24_spill] sm:$0xff]  ;;  %v6761_v43 = vld [vmem:[#allocation25_spill] sm:$0xff]  ;;  %v6767_v7 = vld [vmem:[#allocation11_spill] sm:$0xff] }
  0x97   : > { %4352 = vmatprep.subr.bf16.mxu0 %v4695_v20  ;;  %v5569_v48 = vsel %vm1500_vm3, %v1540_v54, %v1541_v23  ;;  %v5576_v50 = vsel %vm1500_vm3, %v1510_v61, %v1511_v55  ;;  %v5580_v60 = vsel %vm1500_vm3, %v1543_v10, %v1544_v57  ;;  %v5583_v47 = vsel %vm1500_vm3, %v1513_v62, %v1514_v8  ;;  %v6758_v8 = vld [vmem:[#allocation32_spill] sm:$0xff] }
  0x98   : > { %v5562_v2 = vpack.c.bf16 %v6755_v35, %v6754_v42  ;;  %v6757_v40 = vmax.f32 %v5166_v41, 0.0  ;;  %v1516_v55 = vrot.slane %v5272_v1, 1  ;;  %v1519_v62 = vrot.slane %v5349_v36, 1  ;;  %v4700_v36 = vld [vmem:[%s4923_s6 + $0xd8] sm:$0xff]   ;;  %v6763_v21 = vld [vmem:[#allocation28_spill] sm:$0xff]  ;;  %v4702_v42 = vld [vmem:[%s4923_s6 + $0xd0] sm:$0xff]  }
  0x99   : > { %4223 = vmatmul.mubr.msk.bf16.vlgmr.msra.gmra.mxu1 %vm5525_vm5, %v4976_v52  ;;  %v1520_v27 = vrot.slane %v6758_v8, 1  ;;  %v6762_v44 = vmax.f32 %v6761_v43, 0.0  ;;  %v6764_v22 = vmax.f32 %v6763_v21, 0.0  ;;  %v6766_v9 = vmax.f32 %v6765_v49, 0.0  ;;  %v4705_v35 = vld [vmem:[%s4923_s6 + $0x108] sm:$0xff]   ;;  %v6772_v8 = vld [vmem:[#allocation18_spill] sm:$0xff] }
  0x9a   : > { %4303 = vmatpush3.bf16.msra.mxu1 %v5334_v58  ;;  %4226 = vmatprep.mubr.msk.bf16.mxu1 %vm5525_vm5, %v5460_v59  ;;  %v6756_v58 = vmax.f32 %v5156_v13, 0.0  ;;  %v4701_v13 = vld [vmem:[%s4923_s6 + $0x118] sm:$0xff]   ;;  %v1522_v23 = vrot.slane %v5426_v38, 1  ;;  %v1523_v33 = vrot.slane %v5428_v11, 1  ;;  %v1525_v10 = vrot.slane %v6767_v7, 1  ;;  %v388_v21 = vld [vmem:[%s4889_s14 + $0x180] sm:$0xff] }
  0x9b   : > { %4304 = vmatprep.subr.bf16.mxu1 %v4694_v45  ;;  %4353 = vmatpush3.bf16.msra.mxu0 %v4695_v20  ;;  %v1517_v20 = vrot.slane %v5278_v46, 1  ;;  %v5609_v1 = vsel %vm1500_vm3, %v1519_v62, %v1520_v27  ;;  %v4703_v46 = vld [vmem:[%s4923_s6 + $0x110] sm:$0xff]   ;;  %v5624_v54 = vpack.c.bf16 %v6766_v9, %v6764_v22  ;;  %v1529_v27 = vrot.slane %v6772_v8, 1  ;;  %v389_v49 = vld [vmem:[%s4889_s14 + $0x188] sm:$0xff] }
  0x9c   : > { %4354 = vmatprep.subr.bf16.mxu0 %v4697_v39  ;;  %v5590_v61 = vpack.c.bf16 %v6757_v40, %v6756_v58  ;;  %v5640_v38 = vsel %vm1500_vm3, %v1522_v23, %v1523_v33  ;;  %v6769_v58 = vmax.f32 %v5382_v34, 0.0  ;;  %v6770_v40 = vmax.f32 %v5387_v18, 0.0  ;;  %v6773_v18 = vld [vmem:[#allocation10_spill] sm:$0xff] }
  0x9d   : > { %4275 = vmatmul.mubr.bf16.gmra.mxu0 %v5576_v50  ;;  %v5606_v41 = vsel %vm1500_vm3, %v1516_v55, %v1517_v20  ;;  %v6771_v20 = vld [vmem:[#allocation16_spill] sm:$0xff]  ;;  %v390_v22 = vld [vmem:[%s4889_s14 + $0x190] sm:$0x3] }
  0x9e   : > { %4305 = vmatpush3.bf16.msra.mxu1 %v4694_v45  ;;  %4278 = vmatprep.mubr.bf16.mxu0 %v5583_v47  ;;  %v6760_v45 = vmax.f32 %v6759_v28, 0.0  ;;  %v5651_v55 = vpack.c.bf16 %v6770_v40, %v6769_v58  ;;  %v1528_v62 = vrot.slane %v6771_v20, 1  ;;  %v6778_v9 = vld [vmem:[#allocation34_spill] sm:$0xff]  ;;  %v1547_v58 = vrot.slane %v5462_v3, 1 }
  0x9f   : > { %4306 = vmatprep.subr.bf16.mxu1 %v4696_v25  ;;  %4355 = vmatpush3.bf16.msra.mxu0 %v4697_v39  ;;  %v6768_v39 = vld [vmem:[#allocation12_spill] sm:$0xff]  ;;  %v450_v23 = vmul.f32 %v6778_v9, %v388_v21  ;;  %v452_v33 = vmul.f32 %v6778_v9, %v390_v22  ;;  %v451_v7 = vmul.f32 %v6778_v9, %v389_v49  ;;  %v6783_v21 = vld [vmem:[#allocation22_spill] sm:$0xff]  ;;  %v4713_v49 = vld [vmem:[%s4923_s6 + $0x1a8] sm:$0xff]  }
  0xa0   : > { %4356 = vmatprep.subr.bf16.mxu0 %v4699_v56  ;;  %v5617_v14 = vpack.c.bf16 %v6762_v44, %v6760_v45  ;;  %v1526_v57 = vrot.slane %v6768_v39, 1  ;;  %v5666_v34 = vsel %vm1500_vm3, %v1528_v62, %v1529_v27  ;;  %v6776_v45 = vld [vmem:[#allocation14_spill] sm:$0xff]  ;;  %v6787_v62 = vld [vmem:[#allocation15_spill] sm:$0xff] }
  0xa1   : > { %4227 = vmatmul.mubr.msk.bf16.gmra.mxu1 %vm5525_vm5, %v5470_v24  ;;  %v6777_v43 = vmax.f32 %v6776_v45, 0.0  ;;  %v4711_v45 = vld [vmem:[%s4923_s6 + $0x1b0] sm:$0xff]  }
  0xa2   : > { %4230 = vmatprep.mubr.msk.bf16.mxu1 %vm5525_vm5, %v5590_v61  ;;  %4307 = vmatpush3.bf16.msra.mxu1 %v4696_v25  ;;  %v5643_v11 = vsel %vm1500_vm3, %v1525_v10, %v1526_v57  ;;  %v4704_v25 = vld [vmem:[%s4923_s6 + $0xc8] sm:$0xff]   ;;  %v6779_v10 = vld [vmem:[#allocation35_spill] sm:$0xff]  ;;  %v4710_v22 = vld [vmem:[%s4923_s6 + $0x170] sm:$0xff]  }
  0xa3   : > { %4308 = vmatprep.subr.bf16.mxu1 %v4698_v31  ;;  %4357 = vmatpush3.bf16.msra.mxu0 %v4699_v56  ;;  %v4707_v56 = vld [vmem:[%s4923_s6 + $0x100] sm:$0xff]   ;;  %v5695_v39 = vadd.f32 %v6779_v10, %v450_v23  ;;  %v512_v57 = vadd.f32 %v6779_v10, %v452_v33  ;;  %v6784_v9 = vld [vmem:[#allocation26_spill] sm:$0xff] }
  0xa4   : > { %4358 = vmatprep.subr.bf16.mxu0 %v4701_v13  ;;  %v6785_v23 = vld [vmem:[#allocation30_spill] sm:$0xff]  ;;  %v4714_v33 = vld [vmem:[%s4923_s6 + $0x160] sm:$0xff]  }
  0xa5   : > { %4279 = vmatmul.mubr.bf16.gmra.mxu0 %v5606_v41 }
  0xa6   : > { %4282 = vmatprep.mubr.bf16.mxu0 %v5609_v1  ;;  %4309 = vmatpush3.bf16.msra.mxu1 %v4698_v31  ;;  %v4706_v31 = vld [vmem:[%s4923_s6 + $0xc0] sm:$0xff]  }
  0xa7   : > { %4310 = vmatprep.subr.bf16.mxu1 %v4700_v36  ;;  %4359 = vmatpush3.bf16.msra.mxu0 %v4701_v13  ;;  %v4709_v13 = vld [vmem:[%s4923_s6 + $0x1b8] sm:$0xff]  }
  0xa8   : > { %4360 = vmatprep.subr.bf16.mxu0 %v4703_v46 }
  0xa9   : > { %4231 = vmatmul.mubr.msk.bf16.gmra.mxu1 %vm5525_vm5, %v5617_v14 }
  0xaa   : > { %4234 = vmatprep.mubr.msk.bf16.mxu1 %vm5525_vm5, %v5624_v54  ;;  %4311 = vmatpush3.bf16.msra.mxu1 %v4700_v36  ;;  %v4708_v36 = vld [vmem:[%s4923_s6 + $0x178] sm:$0xff]  }
  0xab   : > { %4312 = vmatprep.subr.bf16.mxu1 %v4702_v42  ;;  %4361 = vmatpush3.bf16.msra.mxu0 %v4703_v46  ;;  %v6774_v46 = vld [vmem:[#allocation13_spill] sm:$0xff] }
  0xac   : > { %4362 = vmatprep.subr.bf16.mxu0 %v4705_v35  ;;  %v6775_v28 = vmax.f32 %v6774_v46, 0.0 }
  0xad   : > { %4283 = vmatmul.mubr.bf16.gmra.mxu0 %v5640_v38 }
  0xae   : > { %4286 = vmatprep.mubr.bf16.mxu0 %v5643_v11  ;;  %4313 = vmatpush3.bf16.msra.mxu1 %v4702_v42  ;;  %v5673_v44 = vpack.c.bf16 %v6777_v43, %v6775_v28  ;;  %v5702_v42 = vadd.f32 %v6779_v10, %v451_v7  ;;  %v6782_v43 = vld [vmem:[#allocation20_spill] sm:$0xff]  ;;  %v4716_v7 = vld [vmem:[%s4923_s6 + $0x158] sm:$0xff]   ;;  %v4719_v10 = vld [vmem:[%s4923_s6 + $0x190] sm:$0xff]  }
  0xaf   : > { %4314 = vmatprep.subr.bf16.mxu1 %v4704_v25  ;;  %4363 = vmatpush3.bf16.msra.mxu0 %v4705_v35  ;;  %v564_v35 = vmax.f32 %v5695_v39, 0.0  ;;  %v4726_v39 = vld [vmem:[%s4923_s6 + $0x1f0] sm:$0xff]  }
  0xb0   : > { %4364 = vmatprep.subr.bf16.mxu0 %v4707_v56  ;;  %v565_v40 = vmax.f32 %v5702_v42, 0.0  ;;  %v4730_v42 = vld [vmem:[%s4923_s6 + $0x1e0] sm:$0xff]  }
  0xb1   : > { %4235 = vmatmul.mubr.msk.bf16.gmra.mxu1 %vm5525_vm5, %v5651_v55  ;;  %v652_v20 = vsel %vm574_vm0, %v564_v35, 0.0 }
  0xb2   : > { %4238 = vmatprep.mubr.msk.bf16.mxu1 %vm5525_vm5, %v6773_v18  ;;  %4315 = vmatpush3.bf16.msra.mxu1 %v4704_v25  ;;  %v566_v25 = vmax.f32 %v512_v57, 0.0  ;;  %v5727_v3 = vpack.c.bf16 %v565_v40, %v652_v20  ;;  %v6786_v57 = vld [vmem:[#allocation33_spill] sm:$0xff]  ;;  %v4723_v20 = vld [vmem:[%s4923_s6 + $0x180] sm:$0xff]  }
  0xb3   : > { %4316 = vmatprep.subr.bf16.mxu1 %v4706_v31  ;;  %4365 = vmatpush3.bf16.msra.mxu0 %v4707_v56  ;;  %v1546_v56 = vrot.slane %v5449_v0, 1 }
  0xb4   : > { %4446 = vmatprep.subr.bf16.mxu0 %v4709_v13  ;;  %v654_v8 = vsel %vm585_vm1, %v566_v25, 0.0  ;;  %v4718_v25 = vld [vmem:[%s4923_s6 + $0x150] sm:$0xff]  }
  0xb5   : > { %4287 = vmatmul.mubr.bf16.gmra.mxu0 %v5666_v34  ;;  %v5723_v0 = vsel %vm1500_vm3, %v1546_v56, %v1547_v58  ;;  %v5729_v27 = vpack.c.bf16 %v654_v8, %v654_v8  ;;  %v4721_v56 = vld [vmem:[%s4923_s6 + $0x188] sm:$0xff]   ;;  %v6788_v8 = vld [vmem:[#allocation19_spill] sm:$0xff] }
  0xb6   : > { %4290 = vmatprep.mubr.bf16.mxu0 %v5532_v4  ;;  %4317 = vmatpush3.bf16.msra.mxu1 %v4706_v31  ;;  %v2303_v31 = vrot.slane %v5727_v3, 1  ;;  %v4720_v58 = vld [vmem:[%s4923_s6 + $0x148] sm:$0xff]  }
  0xb7   : > { %4398 = vmatprep.subr.bf16.mxu1 %v4708_v36  ;;  %v2304_v46 = vrot.slane %v5729_v27, 1 }
  0xb9   : > { %4239 = vmatmul.mubr.msk.bf16.gmra.mxu1 %vm5525_vm5, %v5673_v44  ;;  %v5736_v28 = vsel %vm1500_vm3, %v2303_v31, %v2304_v46  ;;  %v4725_v31 = vld [vmem:[%s4923_s6 + $0x238] sm:$0xff]  }
  0xba   : > { %4242 = vmatprep.mubr.msk.bf16.mxu1 %vm5525_vm5, %v5502_v53  ;;  %v4724_v46 = vld [vmem:[%s4923_s6 + $0x1f8] sm:$0xff]  }
  0xbd   : > { %4291 = vmatmul.mubr.bf16.gmra.mxu0 %v5543_v30 }
  0xbe   : > { %4294 = vmatprep.mubr.bf16.mxu0 %v5555_v32 }
  0xc1   : > { %4243 = vmatmul.mubr.msk.bf16.gmra.mxu1 %vm5525_vm5, %v5510_v15 }
  0xc2   : > { %4246 = vmatprep.mubr.msk.bf16.mxu1 %vm5525_vm5, %v5520_v16 }
  0xc5   : > { %4295 = vmatmul.mubr.bf16.gmra.mxu0 %v5569_v48 }
  0xc6   : > { %4298 = vmatprep.mubr.bf16.mxu0 %v5580_v60 }
  0xc9   : > { %4247 = vmatmul.mubr.msk.bf16.gmra.mxu1 %vm5525_vm5, %v5539_v37 }
  0xca   : > { %4250 = vmatprep.mubr.msk.bf16.mxu1 %vm5525_vm5, %v5550_v63 }
  0xcd   : > { %4299 = vmatmul.mubr.bf16.gmra.mxu0 %v5723_v0 }
  0xce   : > { %4366 = vmatprep.mubr.bf16.mxu0 %v6781_v12  ;;  %v4722_v12 = vld [vmem:[%s4923_s6 + $0x140] sm:$0xff]  }
  0xd1   : > { %4251 = vmatmul.mubr.msk.bf16.gmra.mxu1 %vm5525_vm5, %v5562_v2 }
  0xd2   : > { %4318 = vmatprep.mubr.msk.bf16.mxu1 %vm5525_vm5, %v4976_v52  ;;  %v4712_v52 = vld [vmem:[%s4923_s6 + $0x168] sm:$0xff]  }
  0xd5   : > { %4367 = vmatmul.mubr.bf16.vlgmr.msra.gmra.mxu0 %v6782_v43 }
  0xd6   : > { %4447 = vmatpush3.bf16.msra.mxu0 %v4709_v13  ;;  %4370 = vmatprep.mubr.bf16.mxu0 %v6783_v21  ;;  %v4715_v13 = vld [vmem:[%s4923_s6 + $0x1a0] sm:$0xff]  }
  0xd7   : > { %4448 = vmatprep.subr.bf16.mxu0 %v4711_v45 }
  0xd9   : > { %4319 = vmatmul.mubr.msk.bf16.vlgmr.msra.gmra.mxu1 %vm5525_vm5, %v5460_v59 }
  0xda   : > { %4399 = vmatpush3.bf16.msra.mxu1 %v4708_v36  ;;  %4322 = vmatprep.mubr.msk.bf16.mxu1 %vm5525_vm5, %v5470_v24  ;;  %v4717_v36 = vld [vmem:[%s4923_s6 + $0x198] sm:$0xff]  }
  0xdb   : > { %4400 = vmatprep.subr.bf16.mxu1 %v4710_v22  ;;  %4449 = vmatpush3.bf16.msra.mxu0 %v4711_v45  ;;  %v6789_v45 = vld [vmem:[#allocation21_spill] sm:$0xff] }
  0xdc   : > { %4450 = vmatprep.subr.bf16.mxu0 %v4713_v49 }
  0xdd   : > { %4371 = vmatmul.mubr.bf16.gmra.mxu0 %v6784_v9 }
  0xde   : > { %4401 = vmatpush3.bf16.msra.mxu1 %v4710_v22  ;;  %4374 = vmatprep.mubr.bf16.mxu0 %v6785_v23  ;;  %v6790_v22 = vld [vmem:[#allocation23_spill] sm:$0xff] }
  0xdf   : > { %4402 = vmatprep.subr.bf16.mxu1 %v4712_v52  ;;  %4451 = vmatpush3.bf16.msra.mxu0 %v4713_v49  ;;  %v6791_v49 = vld [vmem:[#allocation27_spill] sm:$0xff] }
  0xe0   : > { %4452 = vmatprep.subr.bf16.mxu0 %v4715_v13 }
  0xe1   : > { %4323 = vmatmul.mubr.msk.bf16.gmra.mxu1 %vm5525_vm5, %v5590_v61 }
  0xe2   : > { %4326 = vmatprep.mubr.msk.bf16.mxu1 %vm5525_vm5, %v5617_v14  ;;  %4403 = vmatpush3.bf16.msra.mxu1 %v4712_v52  ;;  %v6792_v52 = vld [vmem:[#allocation31_spill] sm:$0xff] }
  0xe3   : > { %4404 = vmatprep.subr.bf16.mxu1 %v4714_v33  ;;  %4453 = vmatpush3.bf16.msra.mxu0 %v4715_v13  ;;  %v2050_v13 = vshll.u32 %v5727_v3, 16 }
  0xe4   : > { %4454 = vmatprep.subr.bf16.mxu0 %v4717_v36 }
  0xe5   : > { %4375 = vmatmul.mubr.bf16.gmra.mxu0 %v6786_v57 }
  0xe6   : > { %4378 = vmatprep.mubr.bf16.mxu0 %v5473_v26  ;;  %4405 = vmatpush3.bf16.msra.mxu1 %v4714_v33  ;;  %v2048_v33 = vshrl.u32 %v5727_v3, 16 }
  0xe7   : > { %4406 = vmatprep.subr.bf16.mxu1 %v4716_v7  ;;  %4455 = vmatpush3.bf16.msra.mxu0 %v4717_v36  ;;  %v2052_v36 = vrot.slane %v2050_v13, 1  ;;  %v4737_v13 = vld [vmem:[%s4923_s6 + $0x208] sm:$0xff]  }
  0xe8   : > { %4456 = vmatprep.subr.bf16.mxu0 %v4719_v10 }
  0xe9   : > { %4327 = vmatmul.mubr.msk.bf16.gmra.mxu1 %vm5525_vm5, %v5624_v54 }
  0xea   : > { %4330 = vmatprep.mubr.msk.bf16.mxu1 %vm5525_vm5, %v5651_v55  ;;  %4407 = vmatpush3.bf16.msra.mxu1 %v4716_v7  ;;  %v2055_v7 = vshll.u32 %v5729_v27, 16  ;;  %v5826_v27 = vpack.c.bf16 %v565_v40, %v564_v35  ;;  %v4733_v35 = vld [vmem:[%s4923_s6 + $0x218] sm:$0xff]  }
  0xeb   : > { %4408 = vmatprep.subr.bf16.mxu1 %v4718_v25  ;;  %4457 = vmatpush3.bf16.msra.mxu0 %v4719_v10  ;;  %v6793_v10 = vld [vmem:[#allocation36_spill] sm:$0xff] }
  0xec   : > { %4458 = vmatprep.subr.bf16.mxu0 %v4721_v56 }
  0xed   : > { %4379 = vmatmul.mubr.bf16.gmra.mxu0 %v6787_v62 }
  0xee   : > { %4382 = vmatprep.mubr.bf16.mxu0 %v6788_v8  ;;  %4409 = vmatpush3.bf16.msra.mxu1 %v4718_v25  ;;  %v2053_v25 = vor.u32 %v2052_v36, %v2048_v33  ;;  %v4739_v36 = vld [vmem:[%s4923_s6 + $0x200] sm:$0xff]  }
  0xef   : > { %4410 = vmatprep.subr.bf16.mxu1 %v4720_v58  ;;  %4459 = vmatpush3.bf16.msra.mxu0 %v4721_v56  ;;  %v2057_v56 = vrot.slane %v2055_v7, 1 }
  0xf0   : > { %4460 = vmatprep.subr.bf16.mxu0 %v4723_v20 }
  0xf1   : > { %4331 = vmatmul.mubr.msk.bf16.gmra.mxu1 %vm5525_vm5, %v6773_v18  ;;  %v5820_v3 = vsel %vm841_vm2, %v2053_v25, %v2057_v56  ;;  %v4738_v56 = vld [vmem:[%s4923_s6 + $0x1c0] sm:$0xff]  }
  0xf2   : > { %4334 = vmatprep.mubr.msk.bf16.mxu1 %vm5525_vm5, %v5673_v44  ;;  %4411 = vmatpush3.bf16.msra.mxu1 %v4720_v58  ;;  %v4727_v58 = vld [vmem:[%s4923_s6 + $0x230] sm:$0xff]  }
  0xf3   : > { %4412 = vmatprep.subr.bf16.mxu1 %v4722_v12  ;;  %4461 = vmatpush3.bf16.msra.mxu0 %v4723_v20  ;;  %v4732_v20 = vld [vmem:[%s4923_s6 + $0x1d8] sm:$0xff]  }
  0xf4   : > { %4542 = vmatprep.subr.bf16.mxu0 %v4725_v31 }
  0xf5   : > { %4383 = vmatmul.mubr.bf16.gmra.mxu0 %v6789_v45 }
  0xf6   : > { %4386 = vmatprep.mubr.bf16.mxu0 %v6790_v22  ;;  %4413 = vmatpush3.bf16.msra.mxu1 %v4722_v12 }
  0xf7   : > { %4494 = vmatprep.subr.bf16.mxu1 %v4724_v46 }
  0xf9   : > { %4335 = vmatmul.mubr.msk.bf16.gmra.mxu1 %vm5525_vm5, %v5502_v53 }
  0xfa   : > { %4338 = vmatprep.mubr.msk.bf16.mxu1 %vm5525_vm5, %v5510_v15 }
  0xfd   : > { %4387 = vmatmul.mubr.bf16.gmra.mxu0 %v6791_v49 }
  0xfe   : > { %4390 = vmatprep.mubr.bf16.mxu0 %v6792_v52 }
 0x101   : > { %4339 = vmatmul.mubr.msk.bf16.gmra.mxu1 %vm5525_vm5, %v5520_v16 }
 0x102   : > { %4342 = vmatprep.mubr.msk.bf16.mxu1 %vm5525_vm5, %v5539_v37 }
 0x105   : > { %4391 = vmatmul.mubr.bf16.gmra.mxu0 %v6793_v10 }
 0x106   : > { %4394 = vmatprep.mubr.bf16.mxu0 %v5483_v17 }
 0x109   : > { %4343 = vmatmul.mubr.msk.bf16.gmra.mxu1 %vm5525_vm5, %v5550_v63 }
 0x10a   : > { %4346 = vmatprep.mubr.msk.bf16.mxu1 %vm5525_vm5, %v5562_v2 }
 0x10d   : > { %4395 = vmatmul.mubr.bf16.gmra.mxu0 %v5820_v3 }
 0x10e   : > { %4462 = vmatprep.mubr.msk.bf16.mxu0 %vm5525_vm5, %v5460_v59  ;;  %v4729_v59 = vld [vmem:[%s4923_s6 + $0x228] sm:$0xff]  }
 0x111   : > { %4347 = vmatmul.mubr.msk.bf16.gmra.mxu1 %vm5525_vm5, %v5826_v27 }
 0x112   : > { %4414 = vmatprep.mubr.bf16.mxu1 %v5490_v51  ;;  %v4728_v51 = vld [vmem:[%s4923_s6 + $0x1e8] sm:$0xff]  }
 0x115   : > { %4463 = vmatmul.mubr.msk.bf16.vlgmr.msra.gmra.mxu0 %vm5525_vm5, %v5470_v24  ;;  %v4731_v24 = vld [vmem:[%s4923_s6 + $0x220] sm:$0xff]  }
 0x116   : > { %4543 = vmatpush3.bf16.msra.mxu0 %v4725_v31  ;;  %4466 = vmatprep.mubr.msk.bf16.mxu0 %vm5525_vm5, %v5590_v61 }
 0x117   : > { %4544 = vmatprep.subr.bf16.mxu0 %v4727_v58 }
 0x119   : > { %4415 = vmatmul.mubr.bf16.vlgmr.msra.gmra.mxu1 %v5495_v5 }
 0x11a   : > { %4495 = vmatpush3.bf16.msra.mxu1 %v4724_v46  ;;  %4418 = vmatprep.mubr.bf16.mxu1 %v5576_v50  ;;  %v4734_v46 = vld [vmem:[%s4923_s6 + $0x1d0] sm:$0xff]  }
 0x11b   : > { %4496 = vmatprep.subr.bf16.mxu1 %v4726_v39  ;;  %4545 = vmatpush3.bf16.msra.mxu0 %v4727_v58 }
 0x11c   : > { %4546 = vmatprep.subr.bf16.mxu0 %v4729_v59 }
 0x11d   : > { %4467 = vmatmul.mubr.msk.bf16.gmra.mxu0 %vm5525_vm5, %v5617_v14  ;;  %v5852_v61 = vpop.f32.mrf.mxu0 }
 0x11e   : > { %4497 = vmatpush3.bf16.msra.mxu1 %v4726_v39  ;;  %4470 = vmatprep.mubr.msk.bf16.mxu0 %vm5525_vm5, %v5624_v54  ;;  %v5860_v40 = vpop.f32.mrf.mxu1  ;;  %v4735_v54 = vld [vmem:[%s4923_s6 + $0x210] sm:$0xff]  }
 0x11f   : > { %4498 = vmatprep.subr.bf16.mxu1 %v4728_v51  ;;  %4547 = vmatpush3.bf16.msra.mxu0 %v4729_v59  ;;  %v5862_v14 = vpop.f32.mrf.mxu0 }
 0x120   : > { %4548 = vmatprep.subr.bf16.mxu0 %v4731_v24  ;;  %v5870_v12 = vpop.f32.mrf.mxu1 }
 0x121   : > { %4419 = vmatmul.mubr.bf16.gmra.mxu1 %v5583_v47  ;;  %v5872_v31 = vpop.f32.mrf.mxu0 }
 0x122   : > { %4422 = vmatprep.mubr.bf16.mxu1 %v5606_v41  ;;  %4499 = vmatpush3.bf16.msra.mxu1 %v4728_v51  ;;  %v5880_v33 = vpop.f32.mrf.mxu1 }
 0x123   : > { %4500 = vmatprep.subr.bf16.mxu1 %v4730_v42  ;;  %4549 = vmatpush3.bf16.msra.mxu0 %v4731_v24 }
 0x124   : > { %4550 = vmatprep.subr.bf16.mxu0 %v4733_v35  ;;  %v5890_v7 = vpop.f32.mrf.mxu1 }
 0x125   : > { %4471 = vmatmul.mubr.msk.bf16.gmra.mxu0 %vm5525_vm5, %v5651_v55  ;;  %v5882_v55 = vpop.f32.mrf.mxu0 }
 0x126   : > { %4474 = vmatprep.mubr.msk.bf16.mxu0 %vm5525_vm5, %v6773_v18  ;;  %4501 = vmatpush3.bf16.msra.mxu1 %v4730_v42  ;;  %v4736_v18 = vld [vmem:[%s4923_s6 + $0x1c8] sm:$0xff]  }
 0x127   : > { %4502 = vmatprep.subr.bf16.mxu1 %v4732_v20  ;;  %4551 = vmatpush3.bf16.msra.mxu0 %v4733_v35  ;;  %v5892_v25 = vpop.f32.mrf.mxu0 }
 0x128   : > { %4552 = vmatprep.subr.bf16.mxu0 %v4735_v54 }
 0x129   : > { %4423 = vmatmul.mubr.bf16.gmra.mxu1 %v5609_v1  ;;  %v5899_v58 = vpop.f32.mrf.mxu1  ;;  %v5901_v39 = vpop.f32.mrf.mxu0 }
 0x12a   : > { %4426 = vmatprep.mubr.bf16.mxu1 %v5640_v38  ;;  %4503 = vmatpush3.bf16.msra.mxu1 %v4732_v20 }
 0x12b   : > { %4504 = vmatprep.subr.bf16.mxu1 %v4734_v46  ;;  %4553 = vmatpush3.bf16.msra.mxu0 %v4735_v54 }
 0x12c   : > { %4554 = vmatprep.subr.bf16.mxu0 %v4737_v13 }
 0x12d   : > { %4475 = vmatmul.mubr.msk.bf16.gmra.mxu0 %vm5525_vm5, %v5673_v44  ;;  %v5909_v44 = vpop.f32.mrf.mxu0 }
 0x12e   : > { %4478 = vmatprep.mubr.msk.bf16.mxu0 %vm5525_vm5, %v5502_v53  ;;  %4505 = vmatpush3.bf16.msra.mxu1 %v4734_v46  ;;  %v5907_v53 = vpop.f32.mrf.mxu1 }
 0x12f   : > { %4506 = vmatprep.subr.bf16.mxu1 %v4736_v18  ;;  %4555 = vmatpush3.bf16.msra.mxu0 %v4737_v13  ;;  %v5917_v51 = vpop.f32.mrf.mxu0 }
 0x130   : > { %4556 = vmatprep.subr.bf16.mxu0 %v4739_v36  ;;  %v5915_v59 = vpop.f32.mrf.mxu1 }
 0x131   : > { %4427 = vmatmul.mubr.bf16.gmra.mxu1 %v5643_v11 }
 0x132   : > { %4430 = vmatprep.mubr.bf16.mxu1 %v5666_v34  ;;  %4507 = vmatpush3.bf16.msra.mxu1 %v4736_v18 }
 0x133   : > { %4508 = vmatprep.subr.bf16.mxu1 %v4738_v56  ;;  %4557 = vmatpush3.bf16.msra.mxu0 %v4739_v36 }
 0x135   : > { %4479 = vmatmul.mubr.msk.bf16.gmra.mxu0 %vm5525_vm5, %v5510_v15  ;;  %v5923_v15 = vpop.f32.mrf.mxu1 }
 0x136   : > { %4482 = vmatprep.mubr.msk.bf16.mxu0 %vm5525_vm5, %v5520_v16  ;;  %4509 = vmatpush3.bf16.msra.mxu1 %v4738_v56 }
 0x139   : > { %4431 = vmatmul.mubr.bf16.gmra.mxu1 %v5532_v4 }
 0x13a   : > { %4434 = vmatprep.mubr.bf16.mxu1 %v5543_v30  ;;  %v5925_v24 = vpop.f32.mrf.mxu0 }
 0x13c   : > { %v5933_v42 = vpop.f32.mrf.mxu0 }
 0x13d   : > { %4483 = vmatmul.mubr.msk.bf16.gmra.mxu0 %vm5525_vm5, %v5539_v37 }
 0x13e   : > { %4486 = vmatprep.mubr.msk.bf16.mxu0 %vm5525_vm5, %v5550_v63  ;;  %v5931_v16 = vpop.f32.mrf.mxu1  ;;  %v5941_v35 = vpop.f32.mrf.mxu0 }
 0x140   : > { %v5939_v37 = vpop.f32.mrf.mxu1  ;;  %v5949_v20 = vpop.f32.mrf.mxu0 }
 0x141   : > { %4435 = vmatmul.mubr.bf16.gmra.mxu1 %v5555_v32  ;;  %6794 = vst [vmem:[#allocation32_spill] sm:$0xff] %v5939_v37 }
 0x142   : > { %4438 = vmatprep.mubr.bf16.mxu1 %v5569_v48  ;;  %v5947_v63 = vpop.f32.mrf.mxu1 }
 0x143   : > { %6795 = vst [vmem:[#allocation24_spill] sm:$0xff] %v5947_v63 }
 0x144   : > { %v5952_v54 = vpop.f32.mrf.mxu1 }
 0x145   : > { %4487 = vmatmul.mubr.msk.bf16.gmra.mxu0 %vm5525_vm5, %v5562_v2  ;;  %6796 = vst [vmem:[#allocation25_spill] sm:$0xff] %v5952_v54 }
 0x146   : > { %4490 = vmatprep.mubr.msk.bf16.mxu0 %vm5525_vm5, %v5826_v27 }
 0x149   : > { %4439 = vmatmul.mubr.bf16.gmra.mxu1 %v5580_v60 }
 0x14a   : > { %4442 = vmatprep.mubr.bf16.mxu1 %v5723_v0 }
 0x14d   : > { %v5954_v46 = vpop.f32.mrf.mxu0  ;;  %4491 = vmatmul.mubr.bf16.gmra.mxu0 %v4800_v29 }
 0x14e   : > { %4558 = vmatprep.mubr.bf16.mxu0 %v5495_v5 }
 0x14f   : > { %v5958_v2 = vpop.f32.mrf.mxu0 }
 0x151   : > { %v5960_v19 = vpop.f32.mrf.mxu1  ;;  %4443 = vmatmul.mubr.bf16.gmra.mxu1 %v5736_v28  ;;  %v5963_v27 = vpop.f32.mrf.mxu0 }
 0x152   : > { %6797 = vst [vmem:[#allocation28_spill] sm:$0xff] %v5960_v19  ;;  %4510 = vmatprep.mubr.bf16.mxu1 %v6782_v43 }
 0x153   : > { %v5966_v13 = vpop.f32.mrf.mxu1  ;;  %v5968_v18 = vpop.f32.mrf.mxu0 }
 0x154   : > { %6798 = vst [vmem:[#allocation29_spill] sm:$0xff] %v5966_v13 }
 0x155   : > { %v5970_v36 = vpop.f32.mrf.mxu1  ;;  %v4272_v56 = vpop.f32.mrf.mxu0  ;;  %4559 = vmatmul.mubr.bf16.vlgmr.msra.gmra.mxu0 %v5576_v50 }
 0x156   : > { %6799 = vst [vmem:[#allocation11_spill] sm:$0xff] %v5970_v36  ;;  %4562 = vmatprep.mubr.bf16.mxu0 %v5583_v47 }
 0x157   : > { %v5974_v29 = vpop.f32.mrf.mxu1  ;;  %v1647_v5 = vpop.f32.mrf.mxu0 }
 0x158   : > { %6800 = vst [vmem:[#allocation12_spill] sm:$0xff] %v5974_v29 }
 0x159   : > { %v4224_v19 = vpop.f32.mrf.mxu1  ;;  %4511 = vmatmul.mubr.bf16.vlgmr.msra.gmra.mxu1 %v6783_v21  ;;  %v4273_v54 = vpop.f32.mrf.mxu0 }
 0x15a   : > { %v1350_v43 = vadd.f32 %v4224_v19, %v5852_v61  ;;  %4514 = vmatprep.mubr.bf16.mxu1 %v6784_v9 }
 0x15b   : > { %v1341_v13 = vpop.f32.mrf.mxu1  ;;  %v1650_v63 = vpop.f32.mrf.mxu0 }
 0x15c   : > { %v5979_v6 = vadd.f32 %v4272_v56, %v1350_v43  ;;  %v1342_v36 = vadd.f32 %v1341_v13, %v5862_v14 }
 0x15d   : > { %v4225_v50 = vpop.f32.mrf.mxu1  ;;  %v4276_v37 = vpop.f32.mrf.mxu0  ;;  %4563 = vmatmul.mubr.bf16.gmra.mxu0 %v5606_v41 }
 0x15e   : > { %v5983_v47 = vadd.f32 %v1647_v5, %v1342_v36  ;;  %v1353_v29 = vadd.f32 %v4225_v50, %v5872_v31  ;;  %4566 = vmatprep.mubr.bf16.mxu0 %v5609_v1 }
 0x15f   : > { %v1344_v21 = vpop.f32.mrf.mxu1  ;;  %v1663_v61 = vpop.f32.mrf.mxu0 }
 0x160   : > { %v5987_v19 = vadd.f32 %v4273_v54, %v1353_v29  ;;  %v1345_v9 = vadd.f32 %v1344_v21, %v5882_v55 }
 0x161   : > { %v4228_v56 = vpop.f32.mrf.mxu1  ;;  %4515 = vmatmul.mubr.bf16.gmra.mxu1 %v6785_v23  ;;  %v4277_v14 = vpop.f32.mrf.mxu0 }
 0x162   : > { %v5991_v13 = vadd.f32 %v1650_v63, %v1345_v9  ;;  %v1366_v41 = vadd.f32 %v4228_v56, %v5892_v25  ;;  %4518 = vmatprep.mubr.bf16.mxu1 %v6786_v57 }
 0x163   : > { %v1357_v36 = vpop.f32.mrf.mxu1  ;;  %v1666_v31 = vpop.f32.mrf.mxu0 }
 0x164   : > { %v5995_v5 = vadd.f32 %v4276_v37, %v1366_v41  ;;  %v1358_v1 = vadd.f32 %v1357_v36, %v5901_v39 }
 0x165   : > { %v4229_v54 = vpop.f32.mrf.mxu1  ;;  %v4280_v29 = vpop.f32.mrf.mxu0  ;;  %4567 = vmatmul.mubr.bf16.gmra.mxu0 %v5640_v38 }
 0x166   : > { %v5999_v55 = vadd.f32 %v1663_v61, %v1358_v1  ;;  %v1369_v23 = vadd.f32 %v4229_v54, %v5909_v44  ;;  %4570 = vmatprep.mubr.bf16.mxu0 %v5643_v11 }
 0x167   : > { %v1360_v63 = vpop.f32.mrf.mxu1  ;;  %v1679_v25 = vpop.f32.mrf.mxu0 }
 0x168   : > { %v6003_v43 = vadd.f32 %v4277_v14, %v1369_v23  ;;  %v1361_v57 = vadd.f32 %v1360_v63, %v5917_v51 }
 0x169   : > { %v4232_v37 = vpop.f32.mrf.mxu1  ;;  %4519 = vmatmul.mubr.bf16.gmra.mxu1 %v5473_v26  ;;  %v4281_v39 = vpop.f32.mrf.mxu0 }
 0x16a   : > { %v6007_v50 = vadd.f32 %v1666_v31, %v1361_v57  ;;  %v1382_v38 = vadd.f32 %v4232_v37, %v5925_v24  ;;  %4522 = vmatprep.mubr.bf16.mxu1 %v6787_v62 }
 0x16b   : > { %v1373_v21 = vpop.f32.mrf.mxu1  ;;  %v1682_v44 = vpop.f32.mrf.mxu0 }
 0x16c   : > { %v6011_v61 = vadd.f32 %v4280_v29, %v1382_v38  ;;  %v1374_v11 = vadd.f32 %v1373_v21, %v5933_v42 }
 0x16d   : > { %v4233_v9 = vpop.f32.mrf.mxu1  ;;  %v4284_v56 = vpop.f32.mrf.mxu0  ;;  %4571 = vmatmul.mubr.bf16.gmra.mxu0 %v5666_v34 }
 0x16e   : > { %v6015_v51 = vadd.f32 %v1679_v25, %v1374_v11  ;;  %v1385_v26 = vadd.f32 %v4233_v9, %v5941_v35  ;;  %4574 = vmatprep.mubr.bf16.mxu0 %v5532_v4 }
 0x16f   : > { %v1376_v14 = vpop.f32.mrf.mxu1  ;;  %v1695_v24 = vpop.f32.mrf.mxu0 }
 0x170   : > { %v6019_v41 = vadd.f32 %v4281_v39, %v1385_v26  ;;  %v1377_v62 = vadd.f32 %v1376_v14, %v5949_v20 }
 0x171   : > { %v4236_v36 = vpop.f32.mrf.mxu1  ;;  %4523 = vmatmul.mubr.bf16.gmra.mxu1 %v6788_v8  ;;  %v4285_v42 = vpop.f32.mrf.mxu0 }
 0x172   : > { %v6023_v31 = vadd.f32 %v1682_v44, %v1377_v62  ;;  %v1398_v34 = vadd.f32 %v4236_v36, %v5954_v46  ;;  %4526 = vmatprep.mubr.bf16.mxu1 %v6789_v45 }
 0x173   : > { %v1389_v1 = vpop.f32.mrf.mxu1  ;;  %v1698_v35 = vpop.f32.mrf.mxu0 }
 0x174   : > { %v6027_v54 = vadd.f32 %v4284_v56, %v1398_v34  ;;  %v1390_v4 = vadd.f32 %v1389_v1, %v5958_v2 }
 0x175   : > { %v4237_v29 = vpop.f32.mrf.mxu1  ;;  %v4288_v23 = vpop.f32.mrf.mxu0  ;;  %4575 = vmatmul.mubr.bf16.gmra.mxu0 %v5543_v30 }
 0x176   : > { %v6031_v20 = vadd.f32 %v1695_v24, %v1390_v4  ;;  %v1401_v8 = vadd.f32 %v4237_v29, %v5963_v27  ;;  %4578 = vmatprep.mubr.bf16.mxu0 %v5555_v32 }
 0x177   : > { %v1392_v63 = vpop.f32.mrf.mxu1  ;;  %v1711_v46 = vpop.f32.mrf.mxu0 }
 0x178   : > { %v6035_v25 = vadd.f32 %v4285_v42, %v1401_v8  ;;  %v1393_v45 = vadd.f32 %v1392_v63, %v5968_v18 }
 0x179   : > { %v4240_v57 = vpop.f32.mrf.mxu1  ;;  %4527 = vmatmul.mubr.bf16.gmra.mxu1 %v6790_v22  ;;  %v4289_v2 = vpop.f32.mrf.mxu0 }
 0x17a   : > { %v6039_v37 = vadd.f32 %v1698_v35, %v1393_v45  ;;  %v1414_v30 = vadd.f32 %v4240_v57, %v5860_v40  ;;  %4530 = vmatprep.mubr.bf16.mxu1 %v6791_v49 }
 0x17b   : > { %v1405_v39 = vpop.f32.mrf.mxu1  ;;  %v1714_v27 = vpop.f32.mrf.mxu0 }
 0x17c   : > { %v6043_v38 = vadd.f32 %v4288_v23, %v1414_v30  ;;  %v1406_v32 = vadd.f32 %v1405_v39, %v5870_v12 }
 0x17d   : > { %v4241_v21 = vpop.f32.mrf.mxu1  ;;  %v4292_v44 = vpop.f32.mrf.mxu0  ;;  %4579 = vmatmul.mubr.bf16.gmra.mxu0 %v5569_v48 }
 0x17e   : > { %v6047_v18 = vadd.f32 %v1711_v46, %v1406_v32  ;;  %v1417_v22 = vadd.f32 %v4241_v21, %v5880_v33  ;;  %4582 = vmatprep.mubr.bf16.mxu0 %v5580_v60  ;;  %v6802_v46 = vld [vmem:[#allocation37_spill] sm:$0xff] }
 0x17f   : > { %v1408_v11 = vpop.f32.mrf.mxu1  ;;  %v1727_v40 = vpop.f32.mrf.mxu0 }
 0x180   : > { %v6051_v9 = vadd.f32 %v4289_v2, %v1417_v22  ;;  %v1409_v49 = vadd.f32 %v1408_v11, %v5890_v7 }
 0x181   : > { %v4244_v56 = vpop.f32.mrf.mxu1  ;;  %4531 = vmatmul.mubr.bf16.gmra.mxu1 %v6792_v52  ;;  %v4293_v12 = vpop.f32.mrf.mxu0 }
 0x182   : > { %v6055_v26 = vadd.f32 %v1714_v27, %v1409_v49  ;;  %v1430_v48 = vadd.f32 %v4244_v56, %v5899_v58  ;;  %4534 = vmatprep.mubr.bf16.mxu1 %v6793_v10  ;;  %v6805_v27 = vld [vmem:[#allocation8_spill] sm:$0xff]  ;;  %v6807_v56 = vld [vmem:[#allocation29_spill] sm:$0xff] }
 0x183   : > { %v1421_v14 = vpop.f32.mrf.mxu1  ;;  %v1730_v33 = vpop.f32.mrf.mxu0 }
 0x184   : > { %v6059_v24 = vadd.f32 %v4292_v44, %v1430_v48  ;;  %v1422_v60 = vadd.f32 %v1421_v14, %v5907_v53  ;;  %v6806_v44 = vld [vmem:[#allocation28_spill] sm:$0xff] }
 0x185   : > { %v4245_v62 = vpop.f32.mrf.mxu1  ;;  %v4296_v36 = vpop.f32.mrf.mxu0  ;;  %4583 = vmatmul.mubr.bf16.gmra.mxu0 %v5723_v0 }
 0x186   : > { %v6063_v7 = vadd.f32 %v1727_v40, %v1422_v60  ;;  %v1433_v52 = vadd.f32 %v4245_v62, %v5915_v59  ;;  %4586 = vmatprep.mubr.bf16.mxu0 %v5736_v28  ;;  %v6801_v28 = vld [vmem:[#allocation32_spill] sm:$0xff]  ;;  %v6808_v60 = vld [vmem:[#allocation11_spill] sm:$0xff] }
 0x187   : > { %v1424_v42 = vpop.f32.mrf.mxu1  ;;  %v1743_v58 = vpop.f32.mrf.mxu0 }
 0x188   : > { %v6067_v34 = vadd.f32 %v4293_v12, %v1433_v52  ;;  %v1425_v10 = vadd.f32 %v1424_v42, %v5923_v15 }
 0x189   : > { %v4248_v1 = vpop.f32.mrf.mxu1  ;;  %4535 = vmatmul.mubr.bf16.gmra.mxu1 %v5483_v17  ;;  %v4297_v53 = vpop.f32.mrf.mxu0  ;;  %v6803_v17 = vld [vmem:[#allocation24_spill] sm:$0xff] }
 0x18a   : > { %v6071_v35 = vadd.f32 %v1730_v33, %v1425_v10  ;;  %v1446_v0 = vadd.f32 %v4248_v1, %v5931_v16  ;;  %4538 = vmatprep.mubr.bf16.mxu1 %v5820_v3  ;;  %v6804_v16 = vld [vmem:[#allocation25_spill] sm:$0xff] }
 0x18b   : > { %v1437_v4 = vpop.f32.mrf.mxu1  ;;  %v1746_v59 = vpop.f32.mrf.mxu0 }
 0x18c   : > { %v6075_v29 = vadd.f32 %v4296_v36, %v1446_v0  ;;  %v1438_v23 = vadd.f32 %v1437_v4, %v6801_v28 }
 0x18d   : > { %v4249_v8 = vpop.f32.mrf.mxu1  ;;  %v4300_v63 = vpop.f32.mrf.mxu0  ;;  %4587 = vmatmul.mubr.bf16.gmra.mxu0 %v6802_v46 }
 0x18e   : > { %v6079_v15 = vadd.f32 %v1743_v58, %v1438_v23  ;;  %v1449_v45 = vadd.f32 %v4249_v8, %v6803_v17  ;;  %v6809_v58 = vld [vmem:[#allocation12_spill] sm:$0xff] }
 0x18f   : > { %v1440_v57 = vpop.f32.mrf.mxu1  ;;  %v1759_v2 = vpop.f32.mrf.mxu0 }
 0x190   : > { %v6082_v30 = vadd.f32 %v4297_v53, %v1449_v45  ;;  %v1441_v3 = vadd.f32 %v1440_v57, %v6804_v16 }
 0x191   : > { %v4252_v39 = vpop.f32.mrf.mxu1  ;;  %4539 = vmatmul.mubr.bf16.gmra.mxu1 %v6805_v27  ;;  %v4301_v32 = vpop.f32.mrf.mxu0 }
 0x192   : > { %v6086_v21 = vadd.f32 %v1746_v59, %v1441_v3  ;;  %v1462_v22 = vadd.f32 %v4252_v39, %v6806_v44 }
 0x193   : > { %v1453_v11 = vpop.f32.mrf.mxu1  ;;  %v1762_v40 = vpop.f32.mrf.mxu0 }
 0x194   : > { %v6089_v49 = vadd.f32 %v4300_v63, %v1462_v22  ;;  %v1454_v12 = vadd.f32 %v1453_v11, %v6807_v56 }
 0x195   : > { %v4253_v48 = vpop.f32.mrf.mxu1  ;;  %v4368_v14 = vpop.f32.mrf.mxu0 }
 0x196   : > { %v6092_v33 = vadd.f32 %v1759_v2, %v1454_v12  ;;  %v1465_v62 = vadd.f32 %v4253_v48, %v6808_v60 }
 0x197   : > { %v1456_v36 = vpop.f32.mrf.mxu1  ;;  %v2142_v52 = vpop.f32.mrf.mxu0 }
 0x198   : > { %v6095_v42 = vadd.f32 %v4301_v32, %v1465_v62  ;;  %v1457_v10 = vadd.f32 %v1456_v36, %v6809_v58 }
 0x199   : > { %v4320_v1 = vpop.f32.mrf.mxu1  ;;  %v4369_v53 = vpop.f32.mrf.mxu0 }
 0x19a   : > { %v6098_v0 = vadd.f32 %v1762_v40, %v1457_v10  ;;  %v2017_v4 = vadd.f32 %v4320_v1, %v5979_v6 }
 0x19b   : > { %v1888_v59 = vpop.f32.mrf.mxu1  ;;  %v2145_v28 = vpop.f32.mrf.mxu0 }
 0x19c   : > { %v6101_v23 = vadd.f32 %v4368_v14, %v2017_v4  ;;  %v2015_v8 = vadd.f32 %v1888_v59, %v5983_v47 }
 0x19d   : > { %v4321_v63 = vpop.f32.mrf.mxu1  ;;  %v4372_v46 = vpop.f32.mrf.mxu0 }
 0x19e   : > { %v6104_v17 = vadd.f32 %v2142_v52, %v2015_v8  ;;  %v2018_v45 = vadd.f32 %v4321_v63, %v5987_v19 }
 0x19f   : > { %v1891_v57 = vpop.f32.mrf.mxu1  ;;  %v2158_v2 = vpop.f32.mrf.mxu0 }
 0x1a0   : > { %v6107_v16 = vadd.f32 %v4369_v53, %v2018_v45  ;;  %v2016_v3 = vadd.f32 %v1891_v57, %v5991_v13 }
 0x1a1   : > { %v4324_v39 = vpop.f32.mrf.mxu1  ;;  %v4373_v6 = vpop.f32.mrf.mxu0 }
 0x1a2   : > { %v6110_v27 = vadd.f32 %v2145_v28, %v2016_v3  ;;  %v2021_v32 = vadd.f32 %v4324_v39, %v5995_v5 }
 0x1a3   : > { %v1904_v44 = vpop.f32.mrf.mxu1  ;;  %v2161_v47 = vpop.f32.mrf.mxu0 }
 0x1a4   : > { %v6113_v22 = vadd.f32 %v4372_v46, %v2021_v32  ;;  %v2019_v11 = vadd.f32 %v1904_v44, %v5999_v55 }
 0x1a5   : > { %v4325_v40 = vpop.f32.mrf.mxu1  ;;  %v4376_v19 = vpop.f32.mrf.mxu0 }
 0x1a6   : > { %v6116_v56 = vadd.f32 %v2158_v2, %v2019_v11  ;;  %v2022_v12 = vadd.f32 %v4325_v40, %v6003_v43 }
 0x1a7   : > { %v1907_v48 = vpop.f32.mrf.mxu1  ;;  %v2174_v13 = vpop.f32.mrf.mxu0 }
 0x1a8   : > { %v6119_v14 = vadd.f32 %v4373_v6, %v2022_v12  ;;  %v2020_v60 = vadd.f32 %v1907_v48, %v6007_v50 }
 0x1a9   : > { %v4328_v62 = vpop.f32.mrf.mxu1  ;;  %v4377_v5 = vpop.f32.mrf.mxu0 }
 0x1aa   : > { %v6122_v36 = vadd.f32 %v2161_v47, %v2020_v60  ;;  %v2025_v52 = vadd.f32 %v4328_v62, %v6011_v61 }
 0x1ab   : > { %v1920_v58 = vpop.f32.mrf.mxu1  ;;  %v2177_v55 = vpop.f32.mrf.mxu0 }
 0x1ac   : > { %v6125_v10 = vadd.f32 %v4376_v19, %v2025_v52  ;;  %v2023_v1 = vadd.f32 %v1920_v58, %v6015_v51 }
 0x1ad   : > { %v4329_v53 = vpop.f32.mrf.mxu1  ;;  %v4380_v43 = vpop.f32.mrf.mxu0 }
 0x1ae   : > { %v6128_v4 = vadd.f32 %v2174_v13, %v2023_v1  ;;  %v2026_v59 = vadd.f32 %v4329_v53, %v6019_v41 }
 0x1af   : > { %v1923_v28 = vpop.f32.mrf.mxu1  ;;  %v2190_v50 = vpop.f32.mrf.mxu0 }
 0x1b0   : > { %v6131_v8 = vadd.f32 %v4377_v5, %v2026_v59  ;;  %v2024_v63 = vadd.f32 %v1923_v28, %v6023_v31 }
 0x1b1   : > { %v4332_v46 = vpop.f32.mrf.mxu1  ;;  %v4381_v61 = vpop.f32.mrf.mxu0 }
 0x1b2   : > { %v6134_v45 = vadd.f32 %v2177_v55, %v2024_v63  ;;  %v2029_v57 = vadd.f32 %v4332_v46, %v6027_v54 }
 0x1b3   : > { %v1936_v2 = vpop.f32.mrf.mxu1  ;;  %v2193_v51 = vpop.f32.mrf.mxu0 }
 0x1b4   : > { %v6137_v3 = vadd.f32 %v4380_v43, %v2029_v57  ;;  %v2027_v39 = vadd.f32 %v1936_v2, %v6031_v20 }
 0x1b5   : > { %v4333_v6 = vpop.f32.mrf.mxu1  ;;  %v4384_v41 = vpop.f32.mrf.mxu0 }
 0x1b6   : > { %v6140_v32 = vadd.f32 %v2190_v50, %v2027_v39  ;;  %v2030_v44 = vadd.f32 %v4333_v6, %v6035_v25 }
 0x1b7   : > { %v1939_v47 = vpop.f32.mrf.mxu1  ;;  %v2206_v31 = vpop.f32.mrf.mxu0 }
 0x1b8   : > { %v6143_v11 = vadd.f32 %v4381_v61, %v2030_v44  ;;  %v2028_v40 = vadd.f32 %v1939_v47, %v6039_v37 }
 0x1b9   : > { %v4336_v19 = vpop.f32.mrf.mxu1  ;;  %v4385_v54 = vpop.f32.mrf.mxu0 }
 0x1ba   : > { %v6146_v12 = vadd.f32 %v2193_v51, %v2028_v40  ;;  %v2033_v48 = vadd.f32 %v4336_v19, %v6043_v38 }
 0x1bb   : > { %v1952_v13 = vpop.f32.mrf.mxu1  ;;  %v2209_v20 = vpop.f32.mrf.mxu0 }
 0x1bc   : > { %v6149_v60 = vadd.f32 %v4384_v41, %v2033_v48  ;;  %v2031_v62 = vadd.f32 %v1952_v13, %v6047_v18 }
 0x1bd   : > { %v4337_v5 = vpop.f32.mrf.mxu1  ;;  %v4388_v25 = vpop.f32.mrf.mxu0 }
 0x1be   : > { %v6152_v52 = vadd.f32 %v2206_v31, %v2031_v62  ;;  %v2034_v58 = vadd.f32 %v4337_v5, %v6051_v9 }
 0x1bf   : > { %v1955_v55 = vpop.f32.mrf.mxu1  ;;  %v2222_v37 = vpop.f32.mrf.mxu0 }
 0x1c0   : > { %v6155_v1 = vadd.f32 %v4385_v54, %v2034_v58  ;;  %v2032_v53 = vadd.f32 %v1955_v55, %v6055_v26 }
 0x1c1   : > { %v4340_v43 = vpop.f32.mrf.mxu1  ;;  %v4389_v38 = vpop.f32.mrf.mxu0 }
 0x1c2   : > { %6810 = vst [vmem:[#allocation16_spill] sm:$0xff] %v6155_v1  ;;  %v6158_v59 = vadd.f32 %v2209_v20, %v2032_v53  ;;  %v2037_v28 = vadd.f32 %v4340_v43, %v6059_v24 }
 0x1c3   : > { %v1968_v50 = vpop.f32.mrf.mxu1  ;;  %v2225_v18 = vpop.f32.mrf.mxu0 }
 0x1c4   : > { %6811 = vst [vmem:[#allocation18_spill] sm:$0xff] %v6158_v59  ;;  %v6161_v63 = vadd.f32 %v4388_v25, %v2037_v28  ;;  %v2035_v46 = vadd.f32 %v1968_v50, %v6063_v7 }
 0x1c5   : > { %v4341_v61 = vpop.f32.mrf.mxu1  ;;  %v4392_v9 = vpop.f32.mrf.mxu0 }
 0x1c6   : > { %6812 = vst [vmem:[#allocation10_spill] sm:$0xff] %v6161_v63  ;;  %v6164_v57 = vadd.f32 %v2222_v37, %v2035_v46  ;;  %v2038_v2 = vadd.f32 %v4341_v61, %v6067_v34 }
 0x1c7   : > { %v1971_v51 = vpop.f32.mrf.mxu1  ;;  %v2238_v26 = vpop.f32.mrf.mxu0 }
 0x1c8   : > { %6813 = vst [vmem:[#allocation13_spill] sm:$0xff] %v6164_v57  ;;  %v6167_v39 = vadd.f32 %v4389_v38, %v2038_v2  ;;  %v2036_v6 = vadd.f32 %v1971_v51, %v6071_v35 }
 0x1c9   : > { %v4344_v41 = vpop.f32.mrf.mxu1  ;;  %v4393_v24 = vpop.f32.mrf.mxu0 }
 0x1ca   : > { %6814 = vst [vmem:[#allocation14_spill] sm:$0xff] %v6167_v39  ;;  %v6170_v44 = vadd.f32 %v2225_v18, %v2036_v6  ;;  %v2041_v47 = vadd.f32 %v4344_v41, %v6075_v29 }
 0x1cb   : > { %v1984_v31 = vpop.f32.mrf.mxu1  ;;  %v2241_v7 = vpop.f32.mrf.mxu0 }
 0x1cc   : > { %6815 = vst [vmem:[#allocation34_spill] sm:$0xff] %v6170_v44  ;;  %v6173_v40 = vadd.f32 %v4392_v9, %v2041_v47  ;;  %v2039_v19 = vadd.f32 %v1984_v31, %v6079_v15 }
 0x1cd   : > { %v4345_v54 = vpop.f32.mrf.mxu1  ;;  %v4396_v34 = vpop.f32.mrf.mxu0 }
 0x1ce   : > { %6816 = vst [vmem:[#allocation35_spill] sm:$0xff] %v6173_v40  ;;  %v6176_v48 = vadd.f32 %v2238_v26, %v2039_v19  ;;  %v2042_v13 = vadd.f32 %v4345_v54, %v6082_v30 }
 0x1cf   : > { %v1987_v20 = vpop.f32.mrf.mxu1  ;;  %v2254_v35 = vpop.f32.mrf.mxu0 }
 0x1d0   : > { %6817 = vst [vmem:[#allocation9_spill] sm:$0xff] %v6176_v48  ;;  %v6179_v62 = vadd.f32 %v4393_v24, %v2042_v13  ;;  %v2040_v5 = vadd.f32 %v1987_v20, %v6086_v21 }
 0x1d1   : > { %v4348_v25 = vpop.f32.mrf.mxu1  ;;  %v4397_v29 = vpop.f32.mrf.mxu0 }
 0x1d2   : > { %6818 = vst [vmem:[#allocation17_spill] sm:$0xff] %v6179_v62  ;;  %v6182_v58 = vadd.f32 %v2241_v7, %v2040_v5  ;;  %v2045_v55 = vadd.f32 %v4348_v25, %v6089_v49 }
 0x1d3   : > { %v2000_v37 = vpop.f32.mrf.mxu1  ;;  %v2257_v15 = vpop.f32.mrf.mxu0 }
 0x1d4   : > { %6819 = vst [vmem:[#allocation20_spill] sm:$0xff] %v6182_v58  ;;  %v6185_v53 = vadd.f32 %v4396_v34, %v2045_v55  ;;  %v2043_v43 = vadd.f32 %v2000_v37, %v6092_v33 }
 0x1d5   : > { %v4349_v38 = vpop.f32.mrf.mxu1  ;;  %v6188_v30 = vpop.f32.mrf.mxu0 }
 0x1d6   : > { %6820 = vst [vmem:[#allocation22_spill] sm:$0xff] %v6185_v53  ;;  %v6190_v28 = vadd.f32 %v2254_v35, %v2043_v43  ;;  %v2046_v50 = vadd.f32 %v4349_v38, %v6095_v42 }
 0x1d7   : > { %v2003_v21 = vpop.f32.mrf.mxu1  ;;  %v6193_v18 = vpop.f32.mrf.mxu0 }
 0x1d8   : > { %6821 = vst [vmem:[#allocation26_spill] sm:$0xff] %v6190_v28  ;;  %v6195_v46 = vadd.f32 %v4397_v29, %v2046_v50  ;;  %v2044_v49 = vadd.f32 %v2003_v21, %v6098_v0 }
 0x1d9   : > { %v4416_v61 = vpop.f32.mrf.mxu1  ;;  %v6198_v9 = vpop.f32.mrf.mxu0 }
 0x1da   : > { %6822 = vst [vmem:[#allocation30_spill] sm:$0xff] %v6195_v46  ;;  %v6200_v2 = vadd.f32 %v2257_v15, %v2044_v49 }
 0x1db   : > { %v2389_v33 = vpop.f32.mrf.mxu1  ;;  %v6202_v51 = vpop.f32.mrf.mxu0 }
 0x1dc   : > { %6823 = vst [vmem:[#allocation33_spill] sm:$0xff] %v6200_v2 }
 0x1dd   : > { %v6204_v26 = vpop.f32.mrf.mxu1  ;;  %v6206_v6 = vpop.f32.mrf.mxu0 }
 0x1df   : > { %v6208_v42 = vpop.f32.mrf.mxu1  ;;  %v6210_v41 = vpop.f32.mrf.mxu0 }
 0x1e1   : > { %v6212_v24 = vpop.f32.mrf.mxu1  ;;  %v6214_v47 = vpop.f32.mrf.mxu0 }
 0x1e3   : > { %v6216_v0 = vpop.f32.mrf.mxu1  ;;  %v6218_v31 = vpop.f32.mrf.mxu0 }
 0x1e5   : > { %v6220_v7 = vpop.f32.mrf.mxu1  ;;  %v6222_v19 = vpop.f32.mrf.mxu0 }
 0x1e7   : > { %v6224_v54 = vpop.f32.mrf.mxu1  ;;  %v6226_v34 = vpop.f32.mrf.mxu0 }
 0x1e9   : > { %v6228_v13 = vpop.f32.mrf.mxu1  ;;  %v6230_v20 = vpop.f32.mrf.mxu0 }
 0x1eb   : > { %v6232_v35 = vpop.f32.mrf.mxu1  ;;  %v6234_v5 = vpop.f32.mrf.mxu0 }
 0x1ed   : > { %v6236_v25 = vpop.f32.mrf.mxu1  ;;  %v6238_v29 = vpop.f32.mrf.mxu0 }
 0x1ef   : > { %v6240_v55 = vpop.f32.mrf.mxu1  ;;  %v6242_v37 = vpop.f32.mrf.mxu0 }
 0x1f1   : > { %v6244_v15 = vpop.f32.mrf.mxu1  ;;  %v6246_v43 = vpop.f32.mrf.mxu0 }
 0x1f3   : > { %v6248_v38 = vpop.f32.mrf.mxu1  ;;  %v6250_v50 = vpop.f32.mrf.mxu0 }
 0x1f4   : > { %6824 = vst [vmem:[#allocation15_spill] sm:$0xff] %v6250_v50 }
 0x1f5   : > { %v6252_v21 = vpop.f32.mrf.mxu1  ;;  %v6254_v49 = vpop.f32.mrf.mxu0 }
 0x1f6   : > { %6825 = vst [vmem:[#allocation19_spill] sm:$0xff] %v6254_v49 }
 0x1f7   : > { %v6256_v2 = vpop.f32.mrf.mxu1  ;;  %v6258_v46 = vpop.f32.mrf.mxu0 }
 0x1f8   : > { %6826 = vst [vmem:[#allocation21_spill] sm:$0xff] %v6258_v46 }
 0x1f9   : > { %v6260_v28 = vpop.f32.mrf.mxu1  ;;  %v6262_v53 = vpop.f32.mrf.mxu0 }
 0x1fa   : > { %6827 = vst [vmem:[#allocation23_spill] sm:$0xff] %v6262_v53 }
 0x1fb   : > { %v6264_v58 = vpop.f32.mrf.mxu1  ;;  %v6266_v62 = vpop.f32.mrf.mxu0 }
 0x1fc   : > { %6828 = vst [vmem:[#allocation27_spill] sm:$0xff] %v6264_v58  ;;  %6829 = vst [vmem:[#allocation31_spill] sm:$0xff] %v6266_v62 }
 0x1fd   : > { %v6268_v48 = vpop.f32.mrf.mxu1  ;;  %v6270_v40 = vpop.f32.mrf.mxu0 }
 0x1fe   : > { %6830 = vst [vmem:[#allocation36_spill] sm:$0xff] %v6268_v48  ;;  %6831 = vst [vmem:[#allocation32_spill] sm:$0xff] %v6270_v40 }
 0x1ff   : > { %v6272_v44 = vpop.f32.mrf.mxu1  ;;  %v6274_v39 = vpop.f32.mrf.mxu0 }
 0x200   : > { %6832 = vst [vmem:[#allocation37_spill] sm:$0xff] %v6272_v44  ;;  %6833 = vst [vmem:[#allocation24_spill] sm:$0xff] %v6274_v39 }
 0x201   : > { %v6276_v57 = vpop.f32.mrf.mxu1  ;;  %v6278_v63 = vpop.f32.mrf.mxu0 }
 0x202   : > { %6834 = vst [vmem:[#allocation25_spill] sm:$0xff] %v6276_v57  ;;  %6835 = vst [vmem:[#allocation8_spill] sm:$0xff] %v6278_v63 }
 0x203   : > { %v6280_v59 = vpop.f32.mrf.mxu1  ;;  %v6282_v46 = vpop.f32.mrf.mxu0 }
 0x204   : > { %6836 = vst [vmem:[#allocation28_spill] sm:$0xff] %v6280_v59  ;;  %6837 = vst [vmem:[#allocation29_spill] sm:$0xff] %v6282_v46 }
 0x205   : > { %v6284_v53 = vpop.f32.mrf.mxu1  ;;  %v6286_v1 = vpop.f32.mrf.mxu0 }
 0x206   : > { %6838 = vst [vmem:[#allocation11_spill] sm:$0xff] %v6284_v53  ;;  %6839 = vst [vmem:[#allocation12_spill] sm:$0xff] %v6286_v1 }
 0x207   : > { %v6288_v62 = vpop.f32.mrf.mxu1  ;;  %v6290_v48 = vpop.f32.mrf.mxu0 }
 0x208   : > { %6840 = vst [vmem:[#allocation38_spill] sm:$0xff] %v6288_v62  ;;  %6841 = vst [vmem:[#allocation39_spill] sm:$0xff] %v6290_v48 }
 0x209   : > { %v6292_v40 = vpop.f32.mrf.mxu1  ;;  %v6294_v44 = vpop.f32.mrf.mxu0 }
 0x20a   : > { %6842 = vst [vmem:[#allocation40_spill] sm:$0xff] %v6292_v40  ;;  %6843 = vst [vmem:[#allocation41_spill] sm:$0xff] %v6294_v44  ;;  %v2518_v44 = vadd.f32 %v4416_v61, %v6101_v23  ;;  %v2517_v23 = vadd.f32 %v6208_v42, %v6110_v27  ;;  %v3293_v42 = vld [vmem:[#allocation2 + $0x18] sm:$0xff] }
 0x20b   : > { %v6296_v39 = vpop.f32.mrf.mxu1  ;;  %v6298_v57 = vpop.f32.mrf.mxu0 }
 0x20c   : > { %6844 = vst [vmem:[#allocation42_spill] sm:$0xff] %v6296_v39  ;;  %6845 = vst [vmem:[#allocation43_spill] sm:$0xff] %v6298_v57 }
 0x20d   : > { %v6300_v63 = vpop.f32.mrf.mxu1  ;;  %v6302_v59 = vpop.f32.mrf.mxu0 }
 0x20e   : > { %6846 = vst [vmem:[#allocation44_spill] sm:$0xff] %v6300_v63  ;;  %6847 = vst [vmem:[#allocation45_spill] sm:$0xff] %v6302_v59  ;;  %v2516_v63 = vadd.f32 %v2389_v33, %v6104_v17  ;;  %v3292_v17 = vld [vmem:[#allocation2 + $0xd8] sm:$0xff] }
 0x20f   : > { %v6304_v46 = vpop.f32.mrf.mxu1  ;;  %v6306_v53 = vpop.f32.mrf.mxu0 }
 0x210   : > { %6848 = vst [vmem:[#allocation46_spill] sm:$0xff] %v6304_v46  ;;  %6849 = vst [vmem:[#allocation47_spill] sm:$0xff] %v6306_v53  ;;  %v2759_v53 = vadd.f32 %v6188_v30, %v2518_v44 }
 0x211   : > { %v6308_v1 = vpop.f32.mrf.mxu1  ;;  %v6310_v62 = vpop.f32.mrf.mxu0 }
 0x212   : > { %6850 = vst [vmem:[#allocation48_spill] sm:$0xff] %v6308_v1  ;;  %6851 = vst [vmem:[#allocation49_spill] sm:$0xff] %v6310_v62  ;;  %v2519_v1 = vadd.f32 %v6204_v26, %v6107_v16  ;;  %v2520_v16 = vadd.f32 %v6216_v0, %v6116_v56  ;;  %v3290_v26 = vld [vmem:[#allocation2 + $0xb0] sm:$0xff]  ;;  %v3291_v0 = vld [vmem:[#allocation2] sm:$0xff] }
 0x213   : > { %v6312_v48 = vpop.f32.mrf.mxu1  ;;  %v6314_v40 = vpop.f32.mrf.mxu0 }
 0x214   : > { %6852 = vst [vmem:[#allocation50_spill] sm:$0xff] %v6312_v48  ;;  %6853 = vst [vmem:[#allocation51_spill] sm:$0xff] %v6314_v40  ;;  %v2757_v48 = vadd.f32 %v6193_v18, %v2516_v63  ;;  %v2522_v40 = vadd.f32 %v6212_v24, %v6113_v22  ;;  %v2758_v18 = vadd.f32 %v6202_v51, %v2517_v23 }
 0x215   : > { %v6317_v39 = vpop.f32.mrf.mxu1  ;;  %v4560_v57 = vpop.f32.mrf.mxu0 }
 0x216   : > { %6854 = vst [vmem:[#allocation52_spill] sm:$0xff] %v6317_v39  ;;  %v2760_v39 = vadd.f32 %v6198_v9, %v2519_v1  ;;  %v2763_v22 = vadd.f32 %v6206_v6, %v2522_v40  ;;  %v2523_v1 = vadd.f32 %v6220_v7, %v6119_v14  ;;  %v2761_v9 = vadd.f32 %v6210_v41, %v2520_v16  ;;  %v3296_v14 = vld [vmem:[#allocation2 + $0x30] sm:$0xff] }
 0x217   : > { %v6320_v59 = vpop.f32.mrf.mxu1  ;;  %v3131_v46 = vpop.f32.mrf.mxu0 }
 0x218   : > { %6855 = vst [vmem:[#allocation53_spill] sm:$0xff] %v6320_v59 }
 0x219   : > { %v4512_v62 = vpop.f32.mrf.mxu1  ;;  %v4561_v49 = vpop.f32.mrf.mxu0 }
 0x21a   : > { %v3013_v61 = vadd.f32 %v4512_v62, %v2759_v53 }
 0x21b   : > { %v2884_v33 = vpop.f32.mrf.mxu1  ;;  %v3134_v59 = vpop.f32.mrf.mxu0 }
 0x21c   : > { %v3260_v44 = vadd.f32 %v4560_v57, %v3013_v61  ;;  %v3011_v30 = vadd.f32 %v2884_v33, %v2757_v48 }
 0x21d   : > { %v4513_v50 = vpop.f32.mrf.mxu1  ;;  %v4564_v63 = vpop.f32.mrf.mxu0 }
 0x21e   : > { %v3324_v27 = vadd.f32 %v3292_v17, %v3260_v44  ;;  %v3258_v62 = vadd.f32 %v3131_v46, %v3011_v30  ;;  %v3014_v53 = vadd.f32 %v4513_v50, %v2760_v39  ;;  %v2521_v39 = vadd.f32 %v6224_v54, %v6122_v36  ;;  %v3294_v36 = vld [vmem:[#allocation2 + $0x50] sm:$0xff] }
 0x21f   : > { %v2887_v24 = vpop.f32.mrf.mxu1  ;;  %v3147_v58 = vpop.f32.mrf.mxu0  ;;  %v2526_v50 = vadd.f32 %v6228_v13, %v6125_v10  ;;  %v2524_v44 = vadd.f32 %v6232_v35, %v6128_v4 }
 0x220   : > { %3356 = vst [vmem:[#allocation2 + $0xd8] sm:$0xff] %v3324_v27  ;;  %v3322_v57 = vadd.f32 %v3290_v26, %v3258_v62  ;;  %v3261_v48 = vadd.f32 %v4561_v49, %v3014_v53  ;;  %v3012_v56 = vadd.f32 %v2887_v24, %v2758_v18  ;;  %v2764_v49 = vadd.f32 %v6214_v47, %v2523_v1  ;;  %v3297_v18 = vld [vmem:[#allocation2 + $0x48] sm:$0xff] }
 0x221   : > { %v4516_v61 = vpop.f32.mrf.mxu1  ;;  %v4565_v51 = vpop.f32.mrf.mxu0  ;;  %v2767_v26 = vadd.f32 %v6222_v19, %v2526_v50  ;;  %v2765_v53 = vadd.f32 %v6226_v34, %v2524_v44 }
 0x222   : > { %3354 = vst [vmem:[#allocation2 + $0xb0] sm:$0xff] %v3322_v57  ;;  %v3325_v40 = vadd.f32 %v3293_v42, %v3261_v48  ;;  %v3259_v46 = vadd.f32 %v3134_v59, %v3012_v56  ;;  %v3017_v6 = vadd.f32 %v4516_v61, %v2763_v22  ;;  %v2762_v59 = vadd.f32 %v6218_v31, %v2521_v39  ;;  %v3295_v22 = vld [vmem:[#allocation2 + $0x68] sm:$0xff] }
 0x223   : > { %v2900_v7 = vpop.f32.mrf.mxu1  ;;  %v3150_v23 = vpop.f32.mrf.mxu0  ;;  %v2530_v57 = vadd.f32 %v6244_v15, %v6137_v3  ;;  %v2528_v61 = vadd.f32 %v6248_v38, %v6140_v32 }
 0x224   : > { %3357 = vst [vmem:[#allocation2 + $0x18] sm:$0xff] %v3325_v40  ;;  %v3323_v41 = vadd.f32 %v3291_v0, %v3259_v46  ;;  %v3264_v17 = vadd.f32 %v4564_v63, %v3017_v6  ;;  %v3015_v33 = vadd.f32 %v2900_v7, %v2761_v9  ;;  %v2527_v63 = vadd.f32 %v6236_v25, %v6131_v8  ;;  %v3300_v8 = vld [vmem:[#allocation2 + $0xe8] sm:$0xff]  ;;  %v3301_v6 = vld [vmem:[#allocation2 + $0xb8] sm:$0xff] }
 0x225   : > { %v4517_v54 = vpop.f32.mrf.mxu1  ;;  %v4568_v30 = vpop.f32.mrf.mxu0  ;;  %v2771_v46 = vadd.f32 %v6238_v29, %v2530_v57 }
 0x226   : > { %3355 = vst [vmem:[#allocation2] sm:$0xff] %v3323_v41  ;;  %v3328_v16 = vadd.f32 %v3296_v14, %v3264_v17  ;;  %v3262_v10 = vadd.f32 %v3147_v58, %v3015_v33  ;;  %v3018_v13 = vadd.f32 %v4517_v54, %v2764_v49  ;;  %v2525_v58 = vadd.f32 %v6240_v55, %v6134_v45  ;;  %v3298_v45 = vld [vmem:[#allocation2 + $0x80] sm:$0xff]  ;;  %v3299_v49 = vld [vmem:[#allocation2 + $0x88] sm:$0xff] }
 0x227   : > { %v2903_v47 = vpop.f32.mrf.mxu1  ;;  %v3163_v27 = vpop.f32.mrf.mxu0  ;;  %v2768_v56 = vadd.f32 %v6230_v20, %v2527_v63  ;;  %v2531_v14 = vadd.f32 %v6252_v21, %v6143_v11  ;;  %v2529_v17 = vadd.f32 %v6256_v2, %v6146_v12  ;;  %v3304_v11 = vld [vmem:[#allocation2 + $0x8] sm:$0xff]  ;;  %v3302_v12 = vld [vmem:[#allocation2 + $0x60] sm:$0xff]  ;;  %v6858_v63 = vld [vmem:[#allocation19_spill] sm:$0xff] }
 0x228   : > { %3360 = vst [vmem:[#allocation2 + $0x30] sm:$0xff] %v3328_v16  ;;  %v3326_v62 = vadd.f32 %v3294_v36, %v3262_v10  ;;  %v3265_v4 = vadd.f32 %v4565_v51, %v3018_v13  ;;  %v3016_v35 = vadd.f32 %v2903_v47, %v2762_v59  ;;  %v2766_v39 = vadd.f32 %v6234_v5, %v2525_v58  ;;  %v6856_v10 = vld [vmem:[#allocation27_spill] sm:$0xff] }
 0x229   : > { %v4520_v31 = vpop.f32.mrf.mxu1  ;;  %v4569_v42 = vpop.f32.mrf.mxu0  ;;  %v2534_v36 = vadd.f32 %v6260_v28, %v6149_v60  ;;  %v2532_v13 = vadd.f32 %v6856_v10, %v6152_v52 }
 0x22a   : > { %3358 = vst [vmem:[#allocation2 + $0x50] sm:$0xff] %v3326_v62  ;;  %v3329_v19 = vadd.f32 %v3297_v18, %v3265_v4  ;;  %v3263_v24 = vadd.f32 %v3150_v23, %v3016_v35  ;;  %v3021_v1 = vadd.f32 %v4520_v31, %v2767_v26  ;;  %v2769_v23 = vadd.f32 %v6242_v37, %v2528_v61  ;;  %v6857_v18 = vld [vmem:[#allocation15_spill] sm:$0xff]  ;;  %v6864_v61 = vld [vmem:[#allocation10_spill] sm:$0xff] }
 0x22b   : > { %v2916_v25 = vpop.f32.mrf.mxu1  ;;  %v3166_v48 = vpop.f32.mrf.mxu0  ;;  %v2770_v47 = vadd.f32 %v6857_v18, %v2529_v17  ;;  %v2775_v62 = vadd.f32 %v6858_v63, %v2534_v36  ;;  %v3305_v4 = vld [vmem:[#allocation2 + $0x78] sm:$0xff]  ;;  %v3309_v36 = vld [vmem:[#allocation2 + $0xc8] sm:$0xff] }
 0x22c   : > { %3361 = vst [vmem:[#allocation2 + $0x48] sm:$0xff] %v3329_v19  ;;  %v3327_v34 = vadd.f32 %v3295_v22, %v3263_v24  ;;  %v3268_v9 = vadd.f32 %v4568_v30, %v3021_v1  ;;  %v3019_v0 = vadd.f32 %v2916_v25, %v2765_v53  ;;  %v2772_v30 = vadd.f32 %v6246_v43, %v2531_v14  ;;  %v6859_v53 = vld [vmem:[#allocation16_spill] sm:$0xff]  ;;  %v6861_v19 = vld [vmem:[#allocation21_spill] sm:$0xff]  ;;  %v3303_v1 = vld [vmem:[#allocation2 + $0xf0] sm:$0xff] }
 0x22d   : > { %v4521_v55 = vpop.f32.mrf.mxu1  ;;  %v4572_v51 = vpop.f32.mrf.mxu0  ;;  %v6860_v22 = vld [vmem:[#allocation36_spill] sm:$0xff]  ;;  %v2773_v24 = vadd.f32 %v6861_v19, %v2532_v13  ;;  %v6862_v25 = vld [vmem:[#allocation18_spill] sm:$0xff] }
 0x22e   : > { %3359 = vst [vmem:[#allocation2 + $0x68] sm:$0xff] %v3327_v34  ;;  %v3332_v40 = vadd.f32 %v3300_v8, %v3268_v9  ;;  %v3266_v3 = vadd.f32 %v3163_v27, %v3019_v0  ;;  %v3022_v15 = vadd.f32 %v4521_v55, %v2768_v56  ;;  %v2535_v31 = vadd.f32 %v6860_v22, %v6859_v53  ;;  %v6868_v14 = vld [vmem:[#allocation28_spill] sm:$0xff]  ;;  %v3312_v53 = vld [vmem:[#allocation2 + $0x70] sm:$0xff] }
 0x22f   : > { %v2919_v20 = vpop.f32.mrf.mxu1  ;;  %v3179_v50 = vpop.f32.mrf.mxu0  ;;  %v6873_v13 = vld [vmem:[#allocation24_spill] sm:$0xff] }
 0x230   : > { %3364 = vst [vmem:[#allocation2 + $0xe8] sm:$0xff] %v3332_v40  ;;  %v3330_v7 = vadd.f32 %v3298_v45, %v3266_v3  ;;  %v3269_v32 = vadd.f32 %v4569_v42, %v3022_v15  ;;  %v3020_v38 = vadd.f32 %v2919_v20, %v2766_v39  ;;  %v6865_v45 = vld [vmem:[#allocation25_spill] sm:$0xff]  ;;  %v6866_v3 = vld [vmem:[#allocation23_spill] sm:$0xff] }
 0x231   : > { %v4524_v5 = vpop.f32.mrf.mxu1  ;;  %v4573_v41 = vpop.f32.mrf.mxu0  ;;  %v2538_v55 = vadd.f32 %v6865_v45, %v6864_v61  ;;  %v2776_v15 = vadd.f32 %v6866_v3, %v2535_v31 }
 0x232   : > { %3362 = vst [vmem:[#allocation2 + $0x80] sm:$0xff] %v3330_v7  ;;  %v3333_v29 = vadd.f32 %v3301_v6, %v3269_v32  ;;  %v3267_v33 = vadd.f32 %v3166_v48, %v3020_v38  ;;  %v3025_v44 = vadd.f32 %v4524_v5, %v2771_v46  ;;  %v6863_v48 = vld [vmem:[#allocation37_spill] sm:$0xff]  ;;  %v3306_v32 = vld [vmem:[#allocation2 + $0x38] sm:$0xff] }
 0x233   : > { %v2932_v21 = vpop.f32.mrf.mxu1  ;;  %v3182_v54 = vpop.f32.mrf.mxu0  ;;  %v2533_v56 = vadd.f32 %v6863_v48, %v6862_v25  ;;  %v3310_v25 = vld [vmem:[#allocation2 + $0xe0] sm:$0xff] }
 0x234   : > { %3365 = vst [vmem:[#allocation2 + $0xb8] sm:$0xff] %v3333_v29  ;;  %v3331_v37 = vadd.f32 %v3299_v49, %v3267_v33  ;;  %v3272_v59 = vadd.f32 %v4572_v51, %v3025_v44  ;;  %v3023_v16 = vadd.f32 %v2932_v21, %v2769_v23  ;;  %v3308_v51 = vld [vmem:[#allocation2 + $0x40] sm:$0xff]  ;;  %v6869_v49 = vld [vmem:[#allocation31_spill] sm:$0xff] }
 0x235   : > { %v4525_v2 = vpop.f32.mrf.mxu1  ;;  %v4576_v26 = vpop.f32.mrf.mxu0  ;;  %v2774_v5 = vadd.f32 %v6869_v49, %v2533_v56  ;;  %v6870_v33 = vld [vmem:[#allocation32_spill] sm:$0xff] }
 0x236   : > { %3363 = vst [vmem:[#allocation2 + $0x88] sm:$0xff] %v3331_v37  ;;  %v3336_v27 = vadd.f32 %v3304_v11, %v3272_v59  ;;  %v3270_v60 = vadd.f32 %v3179_v50, %v3023_v16  ;;  %v3026_v28 = vadd.f32 %v4525_v2, %v2772_v30  ;;  %v6867_v50 = vld [vmem:[#allocation13_spill] sm:$0xff]  ;;  %v2779_v44 = vadd.f32 %v6870_v33, %v2538_v55  ;;  %v6872_v30 = vld [vmem:[#allocation11_spill] sm:$0xff]  ;;  %v6882_v55 = vld [vmem:[#allocation12_spill] sm:$0xff] }
 0x237   : > { %v2935_v43 = vpop.f32.mrf.mxu1  ;;  %v3195_v35 = vpop.f32.mrf.mxu0  ;;  %v2536_v7 = vadd.f32 %v6868_v14, %v6867_v50  ;;  %v3307_v2 = vld [vmem:[#allocation2 + $0x58] sm:$0xff] }
 0x238   : > { %3368 = vst [vmem:[#allocation2 + $0x8] sm:$0xff] %v3336_v27  ;;  %v3334_v42 = vadd.f32 %v3302_v12, %v3270_v60  ;;  %v3273_v52 = vadd.f32 %v4573_v41, %v3026_v28  ;;  %v3024_v58 = vadd.f32 %v2935_v43, %v2770_v47  ;;  %v6874_v47 = vld [vmem:[#allocation34_spill] sm:$0xff]  ;;  %v6877_v43 = vld [vmem:[#allocation40_spill] sm:$0xff] }
 0x239   : > { %v4528_v57 = vpop.f32.mrf.mxu1  ;;  %v4577_v8 = vpop.f32.mrf.mxu0  ;;  %v2777_v12 = vadd.f32 %v6873_v13, %v2536_v7  ;;  %v6875_v27 = vld [vmem:[#allocation38_spill] sm:$0xff]  ;;  %v6885_v7 = vld [vmem:[#allocation39_spill] sm:$0xff] }
 0x23a   : > { %3366 = vst [vmem:[#allocation2 + $0x60] sm:$0xff] %v3334_v42  ;;  %v3337_v34 = vadd.f32 %v3305_v4, %v3273_v52  ;;  %v3271_v9 = vadd.f32 %v3182_v54, %v3024_v58  ;;  %v3029_v0 = vadd.f32 %v4528_v57, %v2775_v62  ;;  %v6871_v54 = vld [vmem:[#allocation14_spill] sm:$0xff]  ;;  %v2537_v60 = vadd.f32 %v6875_v27, %v6874_v47  ;;  %v6876_v4 = vld [vmem:[#allocation35_spill] sm:$0xff]  ;;  %v6878_v42 = vld [vmem:[#allocation8_spill] sm:$0xff] }
 0x23b   : > { %v2948_v39 = vpop.f32.mrf.mxu1  ;;  %v3198_v40 = vpop.f32.mrf.mxu0  ;;  %v2539_v37 = vadd.f32 %v6872_v30, %v6871_v54  ;;  %v6880_v57 = vld [vmem:[#allocation42_spill] sm:$0xff]  ;;  %v3314_v47 = vld [vmem:[#allocation2 + $0xa8] sm:$0xff] }
 0x23c   : > { %3369 = vst [vmem:[#allocation2 + $0x78] sm:$0xff] %v3337_v34  ;;  %v3335_v46 = vadd.f32 %v3303_v1, %v3271_v9  ;;  %v3276_v6 = vadd.f32 %v4576_v26, %v3029_v0  ;;  %v3027_v20 = vadd.f32 %v2948_v39, %v2773_v24  ;;  %v6879_v1 = vld [vmem:[#allocation9_spill] sm:$0xff]  ;;  %v3313_v39 = vld [vmem:[#allocation2 + $0xc0] sm:$0xff]  ;;  %v3316_v54 = vld [vmem:[#allocation2 + $0x10] sm:$0xff] }
 0x23d   : > { %v4529_v38 = vpop.f32.mrf.mxu1  ;;  %v4580_v23 = vpop.f32.mrf.mxu0  ;;  %v2780_v52 = vadd.f32 %v6878_v42, %v2539_v37  ;;  %v6881_v34 = vld [vmem:[#allocation29_spill] sm:$0xff]  ;;  %v6895_v42 = vld [vmem:[#allocation30_spill] sm:$0xff] }
 0x23e   : > { %3367 = vst [vmem:[#allocation2 + $0xf0] sm:$0xff] %v3335_v46  ;;  %v3340_v41 = vadd.f32 %v3308_v51, %v3276_v6  ;;  %v3274_v17 = vadd.f32 %v3195_v35, %v3027_v20  ;;  %v3030_v29 = vadd.f32 %v4529_v38, %v2776_v15  ;;  %v2542_v35 = vadd.f32 %v6877_v43, %v6876_v4  ;;  %v6883_v15 = vld [vmem:[#allocation17_spill] sm:$0xff]  ;;  %v6884_v46 = vld [vmem:[#allocation44_spill] sm:$0xff]  ;;  %v3311_v38 = vld [vmem:[#allocation2 + $0x90] sm:$0xff] }
 0x23f   : > { %v2951_v11 = vpop.f32.mrf.mxu1  ;;  %v3211_v21 = vpop.f32.mrf.mxu0  ;;  %v2778_v9 = vadd.f32 %v6881_v34, %v2537_v60  ;;  %v2543_v6 = vadd.f32 %v6884_v46, %v6883_v15  ;;  %v6898_v34 = vld [vmem:[#allocation33_spill] sm:$0xff] }
 0x240   : > { %3372 = vst [vmem:[#allocation2 + $0x40] sm:$0xff] %v3340_v41  ;;  %v3338_v59 = vadd.f32 %v3306_v32, %v3274_v17  ;;  %v3277_v16 = vadd.f32 %v4577_v8, %v3030_v29  ;;  %v3028_v10 = vadd.f32 %v2951_v11, %v2774_v5  ;;  %v2540_v8 = vadd.f32 %v6880_v57, %v6879_v1  ;;  %v6886_v5 = vld [vmem:[#allocation20_spill] sm:$0xff]  ;;  %v6887_v41 = vld [vmem:[#allocation46_spill] sm:$0xff]  ;;  %v6897_v57 = vld [vmem:[#allocation47_spill] sm:$0xff] }
 0x241   : > { %v4532_v26 = vpop.f32.mrf.mxu1  ;;  %v4581_v18 = vpop.f32.mrf.mxu0  ;;  %v2783_v51 = vadd.f32 %v6882_v55, %v2542_v35  ;;  %v2541_v17 = vadd.f32 %v6887_v41, %v6886_v5  ;;  %v6889_v11 = vld [vmem:[#allocation48_spill] sm:$0xff]  ;;  %v6894_v35 = vld [vmem:[#allocation45_spill] sm:$0xff]  ;;  %v3321_v5 = vld [vmem:[#allocation2 + $0x98] sm:$0xff] }
 0x242   : > { %3370 = vst [vmem:[#allocation2 + $0x38] sm:$0xff] %v3338_v59  ;;  %v3341_v28 = vadd.f32 %v3309_v36, %v3277_v16  ;;  %v3275_v63 = vadd.f32 %v3198_v40, %v3028_v10  ;;  %v3033_v62 = vadd.f32 %v4532_v26, %v2779_v44  ;;  %v2781_v32 = vadd.f32 %v6885_v7, %v2540_v8  ;;  %v6888_v36 = vld [vmem:[#allocation22_spill] sm:$0xff]  ;;  %v6890_v59 = vld [vmem:[#allocation41_spill] sm:$0xff]  ;;  %v6901_v7 = vld [vmem:[#allocation51_spill] sm:$0xff] }
 0x243   : > { %v2964_v22 = vpop.f32.mrf.mxu1  ;;  %v3214_v31 = vpop.f32.mrf.mxu0  ;;  %v2784_v16 = vadd.f32 %v6890_v59, %v2543_v6  ;;  %v6892_v26 = vld [vmem:[#allocation50_spill] sm:$0xff] }
 0x244   : > { %3373 = vst [vmem:[#allocation2 + $0xc8] sm:$0xff] %v3341_v28  ;;  %v3339_v58 = vadd.f32 %v3307_v2, %v3275_v63  ;;  %v3280_v19 = vadd.f32 %v4580_v23, %v3033_v62  ;;  %v3031_v24 = vadd.f32 %v2964_v22, %v2777_v12  ;;  %v6891_v2 = vld [vmem:[#allocation26_spill] sm:$0xff]  ;;  %v6893_v28 = vld [vmem:[#allocation43_spill] sm:$0xff]  ;;  %v3317_v22 = vld [vmem:[#allocation2 + $0x28] sm:$0xff] }
 0x245   : > { %v4533_v48 = vpop.f32.mrf.mxu1  ;;  %v4584_v56 = vpop.f32.mrf.mxu0  ;;  %v2782_v63 = vadd.f32 %v6893_v28, %v2541_v17 }
 0x246   : > { %3371 = vst [vmem:[#allocation2 + $0x58] sm:$0xff] %v3339_v58  ;;  %v3344_v0 = vadd.f32 %v3312_v53, %v3280_v19  ;;  %v3278_v61 = vadd.f32 %v3211_v21, %v3031_v24  ;;  %v3034_v45 = vadd.f32 %v4533_v48, %v2780_v52  ;;  %v2546_v21 = vadd.f32 %v6889_v11, %v6888_v36  ;;  %v6896_v52 = vld [vmem:[#allocation52_spill] sm:$0xff]  ;;  %v3319_v36 = vld [vmem:[#allocation2 + $0xf8] sm:$0xff] }
 0x247   : > { %v2967_v40 = vpop.f32.mrf.mxu1  ;;  %v3227_v3 = vpop.f32.mrf.mxu0  ;;  %v2547_v58 = vadd.f32 %v6896_v52, %v6895_v42 }
 0x248   : > { %3376 = vst [vmem:[#allocation2 + $0x70] sm:$0xff] %v3344_v0  ;;  %v3342_v20 = vadd.f32 %v3310_v25, %v3278_v61  ;;  %v3281_v50 = vadd.f32 %v4581_v18, %v3034_v45  ;;  %v3032_v14 = vadd.f32 %v2967_v40, %v2778_v9  ;;  %v2544_v18 = vadd.f32 %v6892_v26, %v6891_v2  ;;  %v3315_v25 = vld [vmem:[#allocation2 + $0xd0] sm:$0xff]  ;;  %v6899_v9 = vld [vmem:[#allocation53_spill] sm:$0xff] }
 0x249   : > { %v4536_v23 = vpop.f32.mrf.mxu1  ;;  %v4585_v49 = vpop.f32.mrf.mxu0  ;;  %v2787_v53 = vadd.f32 %v6894_v35, %v2546_v21  ;;  %v2545_v0 = vadd.f32 %v6899_v9, %v6898_v34  ;;  %v6900_v40 = vld [vmem:[#allocation49_spill] sm:$0xff] }
 0x24a   : > { %3374 = vst [vmem:[#allocation2 + $0xe0] sm:$0xff] %v3342_v20  ;;  %v3345_v29 = vadd.f32 %v3313_v39, %v3281_v50  ;;  %v3279_v33 = vadd.f32 %v3214_v31, %v3032_v14  ;;  %v3037_v44 = vadd.f32 %v4536_v23, %v2783_v51  ;;  %v2785_v8 = vadd.f32 %v6897_v57, %v2544_v18  ;;  %v3320_v51 = vld [vmem:[#allocation2 + $0x20] sm:$0xff] }
 0x24b   : > { %v2980_v30 = vpop.f32.mrf.mxu1  ;;  %v3230_v37 = vpop.f32.mrf.mxu0  ;;  %v3318_v20 = vld [vmem:[#allocation2 + $0xa0] sm:$0xff] }
 0x24c   : > { %3377 = vst [vmem:[#allocation2 + $0xc0] sm:$0xff] %v3345_v29  ;;  %v3343_v10 = vadd.f32 %v3311_v38, %v3279_v33  ;;  %v3284_v13 = vadd.f32 %v4584_v56, %v3037_v44  ;;  %v3035_v12 = vadd.f32 %v2980_v30, %v2781_v32  ;;  %v2786_v32 = vadd.f32 %v6901_v7, %v2545_v0 }
 0x24d   : > { %v4537_v27 = vpop.f32.mrf.mxu1  ;;  %v4588_v60 = vpop.f32.mrf.mxu0 }
 0x24e   : > { %3375 = vst [vmem:[#allocation2 + $0x90] sm:$0xff] %v3343_v10  ;;  %v3348_v62 = vadd.f32 %v3316_v54, %v3284_v13  ;;  %v3282_v4 = vadd.f32 %v3227_v3, %v3035_v12  ;;  %v3038_v43 = vadd.f32 %v4537_v27, %v2784_v16  ;;  %v2788_v3 = vadd.f32 %v6900_v40, %v2547_v58 }
 0x24f   : > { %v2983_v31 = vpop.f32.mrf.mxu1  ;;  %v3243_v56 = vpop.f32.mrf.mxu0 }
 0x250   : > { %3380 = vst [vmem:[#allocation2 + $0x10] sm:$0xff] %v3348_v62  ;;  %v3346_v19 = vadd.f32 %v3314_v47, %v3282_v4  ;;  %v3285_v24 = vadd.f32 %v4585_v49, %v3038_v43  ;;  %v3036_v1 = vadd.f32 %v2983_v31, %v2782_v63 }
 0x251   : > { %v4540_v48 = vpop.f32.mrf.mxu1  ;;  %v4589_v14 = vpop.f32.mrf.mxu0 }
 0x252   : > { %3378 = vst [vmem:[#allocation2 + $0xa8] sm:$0xff] %v3346_v19  ;;  %v3349_v61 = vadd.f32 %v3317_v22, %v3285_v24  ;;  %v3283_v45 = vadd.f32 %v3230_v37, %v3036_v1  ;;  %v3041_v55 = vadd.f32 %v4540_v48, %v2787_v53 }
 0x253   : > { %v2996_v39 = vpop.f32.mrf.mxu1  ;;  %v3246_v44 = vpop.f32.mrf.mxu0 }
 0x254   : > { %3381 = vst [vmem:[#allocation2 + $0x28] sm:$0xff] %v3349_v61  ;;  %v3347_v15 = vadd.f32 %v3315_v25, %v3283_v45  ;;  %v3288_v46 = vadd.f32 %v4588_v60, %v3041_v55  ;;  %v3039_v6 = vadd.f32 %v2996_v39, %v2785_v8 }
 0x255   : > { %v4541_v50 = vpop.f32.mrf.mxu1 }
 0x256   : > { %3379 = vst [vmem:[#allocation2 + $0xd0] sm:$0xff] %v3347_v15  ;;  %v3352_v38 = vadd.f32 %v3320_v51, %v3288_v46  ;;  %v3286_v23 = vadd.f32 %v3243_v56, %v3039_v6  ;;  %v3042_v49 = vadd.f32 %v4541_v50, %v2788_v3 }
 0x257   : > { %v2999_v41 = vpop.f32.mrf.mxu1 }
 0x258   : > { %3384 = vst [vmem:[#allocation2 + $0x20] sm:$0xff] %v3352_v38  ;;  %v3350_v17 = vadd.f32 %v3318_v20, %v3286_v23  ;;  %v3289_v29 = vadd.f32 %v4589_v14, %v3042_v49  ;;  %v3040_v33 = vadd.f32 %v2999_v41, %v2786_v32 }
 0x25a   : > { %3382 = vst [vmem:[#allocation2 + $0xa0] sm:$0xff] %v3350_v17  ;;  %v3353_v11 = vadd.f32 %v3321_v5, %v3289_v29  ;;  %v3287_v21 = vadd.f32 %v3246_v44, %v3040_v33 }
 0x25c   : > { %3385 = vst [vmem:[#allocation2 + $0x98] sm:$0xff] %v3353_v11  ;;  %v3351_v54 = vadd.f32 %v3319_v36, %v3287_v21 }
 0x25e   : > { %3383 = vst [vmem:[#allocation2 + $0xf8] sm:$0xff] %v3351_v54 }
 0x25f PF: > { %p3938_p13 = scmp.ne.s32.totalorder %s4772_s18, 2 }
 0x261   : > { %3389 = sbr.rel (%p3938_p13) target bundleno = 693 (0x2b5), region = 48 }
 0x266   : > { %v3390_v30 = vld [vmem:[#allocation2 + $0xb0] sm:$0xff]  ;;  %v3391_v37 = vld [vmem:[#allocation2] sm:$0xff]  ;;  %v3392_v59 = vld [vmem:[#allocation2 + $0xd8] sm:$0xff]  ;;  %vm3560_vm6 = vcmask 1040384  }
 0x267   : > { %3422 = vst [vmem:[%s4894_s25] sm:$0xff] %v3390_v30  ;;  %v3491_v16 = vmul.f32 %v3390_v30, %v3390_v30  ;;  %3423 = vst [vmem:[%s4894_s25 + $0x8] sm:$0xff] %v3391_v37  ;;  %v3454_v10 = vadd.f32 %v3391_v37, %v3390_v30  ;;  %v3492_v13 = vmul.f32 %v3391_v37, %v3391_v37  ;;  %v3393_v2 = vld [vmem:[#allocation2 + $0x18] sm:$0xff]  ;;  %v3394_v26 = vld [vmem:[#allocation2 + $0x50] sm:$0xff] }
 0x268   : > { %3424 = vst [vmem:[%s4894_s25 + $0x10] sm:$0xff] %v3392_v59  ;;  %v3493_v12 = vmul.f32 %v3392_v59, %v3392_v59  ;;  %v3395_v18 = vld [vmem:[#allocation2 + $0x68] sm:$0xff]  ;;  %3425 = vst [vmem:[%s4894_s25 + $0x18] sm:$0xff] %v3393_v2  ;;  %v6421_v47 = vld [vmem:[#allocation2 + $0x30] sm:$0xff]  ;;  %v3494_v62 = vmul.f32 %v3393_v2, %v3393_v2  ;;  %v3495_v58 = vmul.f32 %v3394_v26, %v3394_v26 }
 0x269   : > { %3426 = vst [vmem:[%s4894_s25 + $0x20] sm:$0xff] %v3394_v26  ;;  %3427 = vst [vmem:[%s4894_s25 + $0x28] sm:$0xff] %v3395_v18  ;;  %v6423_v27 = vld [vmem:[#allocation2 + $0x48] sm:$0xff]  ;;  %v6425_v60 = vld [vmem:[#allocation2 + $0x80] sm:$0xff]  ;;  %v3523_v28 = vadd.f32 %v3492_v13, %v3491_v16  ;;  %v3455_v63 = vadd.f32 %v3454_v10, %v3392_v59  ;;  %v3496_v34 = vmul.f32 %v3395_v18, %v3395_v18 }
 0x26a   : > { %3428 = vst [vmem:[%s4894_s25 + $0x30] sm:$0xff] %v6421_v47  ;;  %3429 = vst [vmem:[%s4894_s25 + $0x38] sm:$0xff] %v6423_v27  ;;  %v6433_v4 = vld [vmem:[#allocation2 + $0x88] sm:$0xff]  ;;  %v6437_v35 = vld [vmem:[#allocation2 + $0xb8] sm:$0xff]  ;;  %v3497_v3 = vmul.f32 %v6421_v47, %v6421_v47  ;;  %v3498_v32 = vmul.f32 %v6423_v27, %v6423_v27  ;;  %v3499_v49 = vmul.f32 %v6425_v60, %v6425_v60 }
 0x26b   : > { %3430 = vst [vmem:[%s4894_s25 + $0x40] sm:$0xff] %v6425_v60  ;;  %v6435_v43 = vld [vmem:[#allocation2 + $0xe8] sm:$0xff]  ;;  %3431 = vst [vmem:[%s4894_s25 + $0x48] sm:$0xff] %v6433_v4  ;;  %v6445_v53 = vld [vmem:[#allocation2 + $0x60] sm:$0xff]  ;;  %v3524_v42 = vadd.f32 %v3523_v28, %v3493_v12  ;;  %v3456_v52 = vadd.f32 %v3455_v63, %v3393_v2  ;;  %v3500_v17 = vmul.f32 %v6433_v4, %v6433_v4 }
 0x26c   : > { %3432 = vst [vmem:[%s4894_s25 + $0x50] sm:$0xff] %v6435_v43  ;;  %3433 = vst [vmem:[%s4894_s25 + $0x58] sm:$0xff] %v6437_v35  ;;  %v6447_v22 = vld [vmem:[#allocation2 + $0xf0] sm:$0xff]  ;;  %v6449_v31 = vld [vmem:[#allocation2 + $0x8] sm:$0xff]  ;;  %v3501_v44 = vmul.f32 %v6435_v43, %v6435_v43  ;;  %v3502_v21 = vmul.f32 %v6437_v35, %v6437_v35  ;;  %v3503_v37 = vmul.f32 %v6445_v53, %v6445_v53 }
 0x26d   : > { %3434 = vst [vmem:[%s4894_s25 + $0x60] sm:$0xff] %v6445_v53  ;;  %3435 = vst [vmem:[%s4894_s25 + $0x68] sm:$0xff] %v6447_v22  ;;  %v6457_v19 = vld [vmem:[#allocation2 + $0x78] sm:$0xff]  ;;  %v6469_v57 = vld [vmem:[#allocation2 + $0x40] sm:$0xff]  ;;  %v3525_v48 = vadd.f32 %v3524_v42, %v3494_v62  ;;  %v3457_v56 = vadd.f32 %v3456_v52, %v3394_v26  ;;  %v3504_v10 = vmul.f32 %v6447_v22, %v6447_v22 }
 0x26e   : > { %3436 = vst [vmem:[%s4894_s25 + $0x70] sm:$0xff] %v6449_v31  ;;  %v6459_v24 = vld [vmem:[#allocation2 + $0x38] sm:$0xff]  ;;  %3437 = vst [vmem:[%s4894_s25 + $0x78] sm:$0xff] %v6457_v19  ;;  %v6471_v8 = vld [vmem:[#allocation2 + $0xc8] sm:$0xff]  ;;  %v3505_v2 = vmul.f32 %v6449_v31, %v6449_v31 }
 0x26f   : > { %v6461_v1 = vld [vmem:[#allocation2 + $0x58] sm:$0xff]  ;;  %3438 = vst [vmem:[%s4894_s25 + $0x80] sm:$0xff] %v6459_v24  ;;  %v6473_v25 = vld [vmem:[#allocation2 + $0xe0] sm:$0xff]  ;;  %3440 = vst [vmem:[%s4894_s25 + $0x90] sm:$0xff] %v6469_v57  ;;  %v3526_v39 = vadd.f32 %v3525_v48, %v3495_v58  ;;  %v3458_v40 = vadd.f32 %v3457_v56, %v3395_v18  ;;  %v3507_v28 = vmul.f32 %v6459_v24, %v6459_v24 }
 0x270   : > { %3439 = vst [vmem:[%s4894_s25 + $0x88] sm:$0xff] %v6461_v1  ;;  %3441 = vst [vmem:[%s4894_s25 + $0x98] sm:$0xff] %v6471_v8  ;;  %v6481_v9 = vld [vmem:[#allocation2 + $0x90] sm:$0xff]  ;;  %v6485_v61 = vld [vmem:[#allocation2 + $0xc0] sm:$0xff]  ;;  %v3510_v42 = vmul.f32 %v6471_v8, %v6471_v8 }
 0x271   : > { %3442 = vst [vmem:[%s4894_s25 + $0xa0] sm:$0xff] %v6473_v25  ;;  %v6483_v0 = vld [vmem:[#allocation2 + $0x70] sm:$0xff]  ;;  %3443 = vst [vmem:[%s4894_s25 + $0xa8] sm:$0xff] %v6481_v9  ;;  %v6493_v45 = vld [vmem:[#allocation2 + $0xa8] sm:$0xff]  ;;  %v3527_v14 = vadd.f32 %v3526_v39, %v3496_v34  ;;  %v3459_v7 = vadd.f32 %v3458_v40, %v6421_v47  ;;  %v3506_v47 = vmul.f32 %v6457_v19, %v6457_v19 }
 0x272   : > { %3444 = vst [vmem:[%s4894_s25 + $0xb0] sm:$0xff] %v6483_v0  ;;  %3445 = vst [vmem:[%s4894_s25 + $0xb8] sm:$0xff] %v6485_v61  ;;  %v6495_v55 = vld [vmem:[#allocation2 + $0xd0] sm:$0xff]  ;;  %v6507_v15 = vld [vmem:[#allocation2 + $0x28] sm:$0xff] }
 0x273   : > { %v6497_v51 = vld [vmem:[#allocation2 + $0x10] sm:$0xff]  ;;  %3446 = vst [vmem:[%s4894_s25 + $0xc0] sm:$0xff] %v6493_v45  ;;  %3447 = vst [vmem:[%s4894_s25 + $0xc8] sm:$0xff] %v6495_v55  ;;  %v6509_v46 = vld [vmem:[#allocation2 + $0xa0] sm:$0xff]  ;;  %v3528_v38 = vadd.f32 %v3527_v14, %v3497_v3  ;;  %v3460_v23 = vadd.f32 %v3459_v7, %v6423_v27 }
 0x274   : > { %3448 = vst [vmem:[%s4894_s25 + $0xd0] sm:$0xff] %v6497_v51  ;;  %v6511_v6 = vld [vmem:[#allocation2 + $0xf8] sm:$0xff]  ;;  %3449 = vst [vmem:[%s4894_s25 + $0xd8] sm:$0xff] %v6507_v15  ;;  %v6519_v20 = vld [vmem:[#allocation2 + $0x20] sm:$0xff] }
 0x275   : > { %3450 = vst [vmem:[%s4894_s25 + $0xe0] sm:$0xff] %v6509_v46  ;;  %3451 = vst [vmem:[%s4894_s25 + $0xe8] sm:$0xff] %v6511_v6  ;;  %v6521_v50 = vld [vmem:[#allocation2 + $0x98] sm:$0xff]  ;;  %v3529_v5 = vadd.f32 %v3528_v38, %v3498_v32  ;;  %v3461_v41 = vadd.f32 %v3460_v23, %v6425_v60 }
 0x276   : > { %3452 = vst [vmem:[%s4894_s25 + $0xf0] sm:$0xff] %v6519_v20  ;;  %3453 = vst [vmem:[%s4894_s25 + $0xf8] sm:$0xff] %v6521_v50 }
 0x277   : > { %v3530_v29 = vadd.f32 %v3529_v5, %v3499_v49  ;;  %v3462_v33 = vadd.f32 %v3461_v41, %v6433_v4  ;;  %v3508_v4 = vmul.f32 %v6461_v1, %v6461_v1 }
 0x279   : > { %v3531_v36 = vadd.f32 %v3530_v29, %v3500_v17  ;;  %v3463_v11 = vadd.f32 %v3462_v33, %v6435_v43 }
 0x27b   : > { %v3532_v54 = vadd.f32 %v3531_v36, %v3501_v44  ;;  %v3464_v30 = vadd.f32 %v3463_v11, %v6437_v35 }
 0x27d   : > { %v3533_v59 = vadd.f32 %v3532_v54, %v3502_v21  ;;  %v3465_v16 = vadd.f32 %v3464_v30, %v6445_v53  ;;  %v3509_v53 = vmul.f32 %v6469_v57, %v6469_v57 }
 0x27f   : > { %v3534_v13 = vadd.f32 %v3533_v59, %v3503_v37  ;;  %v3466_v12 = vadd.f32 %v3465_v16, %v6447_v22 }
 0x281   : > { %v3535_v26 = vadd.f32 %v3534_v13, %v3504_v10  ;;  %v3467_v18 = vadd.f32 %v3466_v12, %v6449_v31 }
 0x283   : > { %v3536_v27 = vadd.f32 %v3535_v26, %v3505_v2  ;;  %v3468_v60 = vadd.f32 %v3467_v18, %v6457_v19  ;;  %v3511_v19 = vmul.f32 %v6473_v25, %v6473_v25 }
 0x285   : > { %v3537_v63 = vadd.f32 %v3536_v27, %v3506_v47  ;;  %v3469_v62 = vadd.f32 %v3468_v60, %v6459_v24 }
 0x287   : > { %v3538_v43 = vadd.f32 %v3537_v63, %v3507_v28  ;;  %v3470_v35 = vadd.f32 %v3469_v62, %v6461_v1  ;;  %v3512_v1 = vmul.f32 %v6481_v9, %v6481_v9 }
 0x289   : > { %v3539_v22 = vadd.f32 %v3538_v43, %v3508_v4  ;;  %v3471_v31 = vadd.f32 %v3470_v35, %v6469_v57  ;;  %v3513_v57 = vmul.f32 %v6483_v0, %v6483_v0 }
 0x28b   : > { %v3540_v52 = vadd.f32 %v3539_v22, %v3509_v53  ;;  %v3472_v58 = vadd.f32 %v3471_v31, %v6471_v8  ;;  %v3514_v8 = vmul.f32 %v6485_v61, %v6485_v61 }
 0x28d   : > { %v3541_v24 = vadd.f32 %v3540_v52, %v3510_v42  ;;  %v3473_v48 = vadd.f32 %v3472_v58, %v6473_v25  ;;  %v3515_v25 = vmul.f32 %v6493_v45, %v6493_v45 }
 0x28f   : > { %v3542_v56 = vadd.f32 %v3541_v24, %v3511_v19  ;;  %v3474_v34 = vadd.f32 %v3473_v48, %v6481_v9  ;;  %v3516_v9 = vmul.f32 %v6495_v55, %v6495_v55 }
 0x291   : > { %v3543_v39 = vadd.f32 %v3542_v56, %v3512_v1  ;;  %v3475_v40 = vadd.f32 %v3474_v34, %v6483_v0  ;;  %v3517_v0 = vmul.f32 %v6497_v51, %v6497_v51 }
 0x293   : > { %v3544_v3 = vadd.f32 %v3543_v39, %v3513_v57  ;;  %v3476_v14 = vadd.f32 %v3475_v40, %v6485_v61  ;;  %v3518_v61 = vmul.f32 %v6507_v15, %v6507_v15 }
 0x295   : > { %v3545_v7 = vadd.f32 %v3544_v3, %v3514_v8  ;;  %v3477_v32 = vadd.f32 %v3476_v14, %v6493_v45  ;;  %v3519_v45 = vmul.f32 %v6509_v46, %v6509_v46 }
 0x297   : > { %v3546_v38 = vadd.f32 %v3545_v7, %v3515_v25  ;;  %v3478_v23 = vadd.f32 %v3477_v32, %v6495_v55  ;;  %v3520_v55 = vmul.f32 %v6511_v6, %v6511_v6 }
 0x299   : > { %v3547_v49 = vadd.f32 %v3546_v38, %v3516_v9  ;;  %v3479_v5 = vadd.f32 %v3478_v23, %v6497_v51  ;;  %v3521_v51 = vmul.f32 %v6519_v20, %v6519_v20 }
 0x29b   : > { %v3548_v41 = vadd.f32 %v3547_v49, %v3517_v0  ;;  %v3480_v17 = vadd.f32 %v3479_v5, %v6507_v15  ;;  %v3522_v15 = vmul.f32 %v6521_v50, %v6521_v50 }
 0x29d   : > { %v3549_v29 = vadd.f32 %v3548_v41, %v3518_v61  ;;  %v3481_v33 = vadd.f32 %v3480_v17, %v6509_v46 }
 0x29f   : > { %v3550_v44 = vadd.f32 %v3549_v29, %v3519_v45  ;;  %v3482_v36 = vadd.f32 %v3481_v33, %v6511_v6 }
 0x2a1   : > { %v3551_v11 = vadd.f32 %v3550_v44, %v3520_v55  ;;  %v3483_v21 = vadd.f32 %v3482_v36, %v6519_v20 }
 0x2a3   : > { %v3552_v54 = vadd.f32 %v3551_v11, %v3521_v51  ;;  %v3484_v30 = vadd.f32 %v3483_v21, %v6521_v50 }
 0x2a5   : > { %v3485_v46 = vrot.slane %v3484_v30, 4  ;;  %v3553_v37 = vadd.f32 %v3552_v54, %v3522_v15 }
 0x2a7   : > { %v3486_v59 = vadd.f32 %v3485_v46, %v3484_v30  ;;  %v3554_v16 = vrot.slane %v3553_v37, 4 }
 0x2a9   : > { %v3487_v10 = vrot.slane %v3486_v59, 2  ;;  %v3555_v13 = vadd.f32 %v3554_v16, %v3553_v37 }
 0x2ab   : > { %v3488_v6 = vadd.f32 %v3487_v10, %v3486_v59  ;;  %v3556_v12 = vrot.slane %v3555_v13, 2 }
 0x2ad   : > { %v3489_v2 = vrot.slane %v3488_v6, 1  ;;  %v3557_v26 = vadd.f32 %v3556_v12, %v3555_v13 }
 0x2af   : > { %v3490_v18 = vadd.f32 %v3489_v2, %v3488_v6  ;;  %v3558_v47 = vrot.slane %v3557_v26, 1 }
 0x2b1   : > { %v3559_v20 = vadd.f32 %v3558_v47, %v3557_v26 }
 0x2b3   : > { %v3561_v27 = vsel %vm3560_vm6, %v3490_v18, %v3559_v20 }
 0x2b4   : > { %3562 = vst [vmem:[%s4899_s20] sm:$0x3] %v3561_v27 }
 0x2b5 PF: > { %s16_s24 = sadd.s32 1, %s4796_s24   ;;  %s6902_s19 = sld [smem:[#allocation3_spill]] }
 0x2b6   : > { %p13_p0 = scmp.ge.s32.totalorder %s16_s24, 50   ;;  %s6903_s20 = sld [smem:[#allocation4_spill]] }
 0x2b7   : > { %s6904_s25 = sld [smem:[#allocation5_spill]]  ;;  %s6907_s18 = smov %s4784_s21 }
 0x2b8   : > { %s6905_s22 = sld [smem:[#allocation6_spill]] }
 0x2b9   : > { %s6906_s23 = sld [smem:[#allocation7_spill]]  ;;  %15 = sbr.rel (!%p13_p0) target bundleno = 4 (0x4), region = 91 }
 0x2bd   : > { %s6908_s21 = smov %s6904_s25 }

</bundles_post_ra>
